<compile_context>
chip_gen: v7x
topology: tpu7x:2x2x1
jax: 0.10.0
libtpu: 0.0.40
codegen_flags: <defaults>
</compile_context>

<pallas_src>
import jax
import jax.numpy as jnp
from jax.experimental import pallas as pl
from jax.experimental.pallas import tpu as pltpu


HIDDEN = 50        # real hidden size (PyTorch module default)
H_PAD = 128        # padded hidden size: one full 128-lane vreg per gate
B_PAD = 8          # padded batch: full sublane tile
NUM_LAYERS = 3


def _lstm_cell(gates, c_prev, hp):
  """PyTorch gate order (i, f, g, o); every slice is 128-lane aligned."""
  i_g = jax.nn.sigmoid(gates[:, 0 * hp:1 * hp])
  f_g = jax.nn.sigmoid(gates[:, 1 * hp:2 * hp])
  g_g = jnp.tanh(gates[:, 2 * hp:3 * hp])
  o_g = jax.nn.sigmoid(gates[:, 3 * hp:4 * hp])
  c_new = f_g * c_prev + i_g * g_g
  h_new = o_g * jnp.tanh(c_new)
  return h_new, c_new


# ----------------------------------------------------------------------------
# Fused Pallas kernel: 3 LSTM layers (wavefront) + FC head, VMEM-resident.
# ----------------------------------------------------------------------------
def fused_lstm_kernel(x_ref,
                      wih0_ref, b0_ref, whh0_ref,
                      w1_ref, b1_ref,
                      w2_ref, b2_ref,
                      fcw_ref, fcb_ref,
                      out_ref,
                      xw0_scr):
  """Fused forward.

  x_ref    : (T*B_PAD, 1)          time-major flattened input (input_size = 1)
  wih0_ref : (1, 4*H_PAD)          layer-0 W_ih^T (single real row), gate blocks
                                   at column offsets k*H_PAD, padded cols zero
  b0_ref   : (1, 4*H_PAD)          layer-0 b_ih + b_hh (padded cols zero)
  whh0_ref : (H_PAD, 4*H_PAD)      layer-0 W_hh^T (padded rows/cols zero)
  w1_ref   : (2*H_PAD, 4*H_PAD)    layer-1 vstack(W_ih^T, W_hh^T)
  b1_ref   : (1, 4*H_PAD)
  w2_ref   : (2*H_PAD, 4*H_PAD)    layer-2 vstack(W_ih^T, W_hh^T)
  b2_ref   : (1, 4*H_PAD)
  fcw_ref  : (1, H_PAD)            fc weight row (padded cols zero)
  fcb_ref  : (1, 1)
  out_ref  : (B_PAD, H_PAD)        final scalar broadcast across lanes
  xw0_scr  : (T*B_PAD, 4*H_PAD)    hoisted layer-0 input projection
  """
  B = out_ref.shape[0]
  T = x_ref.shape[0] // B
  HP = whh0_ref.shape[0]

  # Layer-0 input projection: rank-1 (input_size == 1) -> pure VPU broadcast
  # multiply, hoisted over all T steps.  No MXU pass, no padded layer-0 weight.
  xw0_scr[...] = x_ref[...] * wih0_ref[...] + b0_ref[...]

  zeros = jnp.zeros((B, HP), jnp.float32)
  h = [zeros, zeros, zeros]   # per-layer hidden state (h0 = 0, matches PyTorch)
  c = [zeros, zeros, zeros]   # per-layer cell state   (c0 = 0)

  # Wavefront: layer l is active at tick s iff l <= s <= l + T - 1.
  # Statically unrolled (T + 2 = 10 ticks, 24 active cell updates total).
  n_ticks = T + NUM_LAYERS - 1
  for s in range(n_ticks):
    hp = list(h)   # snapshot of end-of-previous-tick states (wavefront inputs)
    cp = list(c)

    # ---- layer 0, time step s ------------------------------------------
    if s <= T - 1:
      g0 = (jnp.dot(hp[0], whh0_ref[...], preferred_element_type=jnp.float32)
            + xw0_scr[s * B:(s + 1) * B, :])
      h[0], c[0] = _lstm_cell(g0, cp[0], HP)

    # ---- layer 1, time step s-1 (input = layer-0 output at step s-1) ----
    if 1 <= s <= T:
      lhs1 = jnp.concatenate([hp[0], hp[1]], axis=1)          # (B, 2*HP)
      g1 = (jnp.dot(lhs1, w1_ref[...], preferred_element_type=jnp.float32)
            + b1_ref[...])
      h[1], c[1] = _lstm_cell(g1, cp[1], HP)

    # ---- layer 2, time step s-2 (input = layer-1 output at step s-2) ----
    if 2 <= s <= T + 1:
      lhs2 = jnp.concatenate([hp[1], hp[2]], axis=1)          # (B, 2*HP)
      g2 = (jnp.dot(lhs2, w2_ref[...], preferred_element_type=jnp.float32)
            + b2_ref[...])
      h[2], c[2] = _lstm_cell(g2, cp[2], HP)

  # FC head: N=1 dot-product -> VPU multiply + lane reduction (no MXU).
  # Padded lanes of h and fcw are zero, so they contribute nothing.
  prod = h[2] * fcw_ref[...]                                  # (B, H_PAD)
  y = jnp.sum(prod, axis=-1, keepdims=True) + fcb_ref[...]    # (B, 1)
  out_ref[...] = jnp.broadcast_to(y, out_ref.shape)           # lane-dense store


# ----------------------------------------------------------------------------
# Wrapper
# ----------------------------------------------------------------------------
@jax.jit
def lstm_net_forward(x, kparams):
  """x: (B, T, input_size=1) batch-first, like the PyTorch module."""
  B, T, Din = x.shape
  x_tm = jnp.transpose(x, (1, 0, 2)).astype(jnp.float32)          # (T, B, 1)
  x_pad = jnp.zeros((T, B_PAD, 1), jnp.float32).at[:, :B, :Din].set(x_tm)
  x_flat = x_pad.reshape(T * B_PAD, 1)

  out_pad = pl.pallas_call(
      fused_lstm_kernel,
      out_shape=jax.ShapeDtypeStruct((B_PAD, H_PAD), jnp.float32),
      in_specs=[pl.BlockSpec(memory_space=pltpu.MemorySpace.VMEM)] * 10,
      out_specs=pl.BlockSpec(memory_space=pltpu.MemorySpace.VMEM),
      scratch_shapes=[
          pltpu.VMEM((T * B_PAD, 4 * H_PAD), jnp.float32),  # hoisted xw0
      ],
  )(x_flat, *kparams)
  return out_pad[:B, :1]


# ----------------------------------------------------------------------------
# Parameter construction (PyTorch nn.LSTM / nn.Linear layout) + padding
# ----------------------------------------------------------------------------
def init_params(key, input_size=1, hidden_size=HIDDEN, num_layers=NUM_LAYERS):
  """Torch-layout params: w_ih (4H, Din), w_hh (4H, H), b_ih (4H,), b_hh (4H,)."""
  params = {"lstm": []}
  bound = 1.0 / (hidden_size ** 0.5)
  for layer in range(num_layers):
    din = input_size if layer == 0 else hidden_size
    key, k1, k2, k3, k4 = jax.random.split(key, 5)
    w_ih = jax.random.uniform(k1, (4 * hidden_size, din), jnp.float32, -bound, bound)
    w_hh = jax.random.uniform(k2, (4 * hidden_size, hidden_size), jnp.float32, -bound, bound)
    b_ih = jax.random.uniform(k3, (4 * hidden_size,), jnp.float32, -bound, bound)
    b_hh = jax.random.uniform(k4, (4 * hidden_size,), jnp.float32, -bound, bound)
    params["lstm"].append((w_ih, w_hh, b_ih, b_hh))
  key, k1, k2 = jax.random.split(key, 3)
  params["fc_w"] = jax.random.uniform(k1, (1, hidden_size), jnp.float32, -bound, bound)
  params["fc_b"] = jax.random.uniform(k2, (1,), jnp.float32, -bound, bound)
  return params


def _pad_gate_cols(w, h, hp):
  """(rows, 4*h) -> (rows, 4*hp); gate block k placed at columns [k*hp, k*hp+h)."""
  rows = w.shape[0]
  out = jnp.zeros((rows, 4 * hp), jnp.float32)
  for k in range(4):
    out = out.at[:, k * hp:k * hp + h].set(w[:, k * h:(k + 1) * h])
  return out


def _pad_rows(w, rp):
  out = jnp.zeros((rp,) + w.shape[1:], w.dtype)
  return out.at[:w.shape[0]].set(w)


def prepare_kernel_params(params, hidden_size=HIDDEN):
  """Transpose + zero-pad torch-layout params to the kernel's padded layout."""
  H = hidden_size
  w_ih0, w_hh0, b_ih0, b_hh0 = params["lstm"][0]
  wih0_row = _pad_gate_cols(w_ih0.T, H, H_PAD)                      # (1, 4*H_PAD)
  b0 = _pad_gate_cols((b_ih0 + b_hh0).reshape(1, -1), H, H_PAD)     # (1, 4*H_PAD)
  whh0 = _pad_rows(_pad_gate_cols(w_hh0.T, H, H_PAD), H_PAD)        # (H_PAD, 4*H_PAD)
  kp = [wih0_row, b0, whh0]
  for layer in (1, 2):
    w_ih, w_hh, b_ih, b_hh = params["lstm"][layer]
    wih_t = _pad_rows(_pad_gate_cols(w_ih.T, H, H_PAD), H_PAD)
    whh_t = _pad_rows(_pad_gate_cols(w_hh.T, H, H_PAD), H_PAD)
    wcat = jnp.concatenate([wih_t, whh_t], axis=0)                  # (2*H_PAD, 4*H_PAD)
    b = _pad_gate_cols((b_ih + b_hh).reshape(1, -1), H, H_PAD)
    kp += [wcat, b]
  fcw = jnp.zeros((1, H_PAD), jnp.float32).at[:, :H].set(params["fc_w"])
  fcb = params["fc_b"].reshape(1, 1)
  kp += [fcw, fcb]
  return tuple(kp)


# ----------------------------------------------------------------------------
# Pure-JAX reference (same math, unpadded, layer-serialized) for correctness
# ----------------------------------------------------------------------------
def reference_forward(x, params, hidden_size=HIDDEN):
  H = hidden_size
  x_tm = jnp.transpose(x, (1, 0, 2)).astype(jnp.float32)
  for (w_ih, w_hh, b_ih, b_hh) in params["lstm"]:
    T, B, _ = x_tm.shape
    wih_t, whh_t = w_ih.T, w_hh.T
    b = (b_ih + b_hh)[None, :]
    h = jnp.zeros((B, H), jnp.float32)
    c = jnp.zeros((B, H), jnp.float32)
    outs = []
    for t in range(T):
      gates = x_tm[t] @ wih_t + h @ whh_t + b
      i_g = jax.nn.sigmoid(gates[:, 0 * H:1 * H])
      f_g = jax.nn.sigmoid(gates[:, 1 * H:2 * H])
      g_g = jnp.tanh(gates[:, 2 * H:3 * H])
      o_g = jax.nn.sigmoid(gates[:, 3 * H:4 * H])
      c = f_g * c + i_g * g_g
      h = o_g * jnp.tanh(c)
      outs.append(h)
    x_tm = jnp.stack(outs, axis=0)
  return x_tm[-1] @ params["fc_w"].T + params["fc_b"][None, :]


# ----------------------------------------------------------------------------
if __name__ == "__main__":
  B, T, INPUT_SIZE = 4, 8, 1

  key = jax.random.PRNGKey(0)
  key, kx, kp = jax.random.split(key, 3)
  x = jax.random.normal(kx, (B, T, INPUT_SIZE), jnp.float32)
  params = init_params(kp, input_size=INPUT_SIZE, hidden_size=HIDDEN,
                       num_layers=NUM_LAYERS)
  kernel_params = prepare_kernel_params(params, HIDDEN)

  out = lstm_net_forward(x, kernel_params)
  out = jax.block_until_ready(out)

  ref = reference_forward(x, params, hidden_size=HIDDEN)
  assert out.shape == (B, 1), out.shape
  assert jnp.allclose(out, ref, atol=1e-4, rtol=1e-4), (out, ref)

  print("KERNEL_OK")
</pallas_src>

<mosaic_0001>
module attributes {stable_mosaic.version = 11 : i64} {
  func.func @fused_lstm_kernel(%arg0: memref<64x1xf32, #tpu.memory_space<vmem>>, %arg1: memref<1x512xf32, #tpu.memory_space<vmem>>, %arg2: memref<1x512xf32, #tpu.memory_space<vmem>>, %arg3: memref<128x512xf32, #tpu.memory_space<vmem>>, %arg4: memref<256x512xf32, #tpu.memory_space<vmem>>, %arg5: memref<1x512xf32, #tpu.memory_space<vmem>>, %arg6: memref<256x512xf32, #tpu.memory_space<vmem>>, %arg7: memref<1x512xf32, #tpu.memory_space<vmem>>, %arg8: memref<1x128xf32, #tpu.memory_space<vmem>>, %arg9: memref<1x1xf32, #tpu.memory_space<vmem>>, %arg10: memref<8x128xf32, #tpu.memory_space<vmem>>, %arg11: memref<64x512xf32, #tpu.memory_space<vmem>>) attributes {dimension_semantics = [], scalar_prefetch = 0 : i64, scratch_operands = 1 : i64, tpu.core_type = #tpu.core_type<tc>} {
    %c0 = arith.constant 0 : index
    %c0_0 = arith.constant 0 : index
    %0 = vector.load %arg0[%c0, %c0_0] : memref<64x1xf32, #tpu.memory_space<vmem>>, vector<64x1xf32>
    %c0_1 = arith.constant 0 : index
    %c0_2 = arith.constant 0 : index
    %1 = vector.load %arg1[%c0_1, %c0_2] : memref<1x512xf32, #tpu.memory_space<vmem>>, vector<1x512xf32>
    %2 = vector.broadcast %0 : vector<64x1xf32> to vector<64x512xf32>
    %3 = vector.broadcast %1 : vector<1x512xf32> to vector<64x512xf32>
    %4 = arith.mulf %2, %3 : vector<64x512xf32>
    %c0_3 = arith.constant 0 : index
    %c0_4 = arith.constant 0 : index
    %5 = vector.load %arg2[%c0_3, %c0_4] : memref<1x512xf32, #tpu.memory_space<vmem>>, vector<1x512xf32>
    %6 = vector.broadcast %5 : vector<1x512xf32> to vector<64x512xf32>
    %7 = arith.addf %4, %6 : vector<64x512xf32>
    %c0_5 = arith.constant 0 : index
    %c0_6 = arith.constant 0 : index
    %8 = vector.load %arg11[%c0_5, %c0_6] : memref<64x512xf32, #tpu.memory_space<vmem>>, vector<64x512xf32>
    tpu.vector_store %arg11[%c0_5, %c0_6], %7 {strides = array<i32>} : memref<64x512xf32, #tpu.memory_space<vmem>>, vector<64x512xf32>,
    %cst = arith.constant 0.000000e+00 : f32
    %9 = vector.broadcast %cst : f32 to vector<8x128xf32>
    %c0_7 = arith.constant 0 : index
    %c0_8 = arith.constant 0 : index
    %10 = vector.load %arg3[%c0_7, %c0_8] : memref<128x512xf32, #tpu.memory_space<vmem>>, vector<128x512xf32>
    %cst_9 = arith.constant dense<0.000000e+00> : vector<8x512xf32>
    %11 = tpu.matmul %9, %10, %cst_9 {dimension_numbers = #tpu.dot_dimension_numbers<[1], [0], [0], [1], [0, 0, 1, 1], [], []>} : vector<8x128xf32>, vector<128x512xf32>, vector<8x512xf32> -> vector<8x512xf32>
    %c0_10 = arith.constant 0 : index
    %c0_11 = arith.constant 0 : index
    %12 = vector.load %arg11[%c0_10, %c0_11] : memref<64x512xf32, #tpu.memory_space<vmem>>, vector<8x512xf32>
    %13 = arith.addf %11, %12 : vector<8x512xf32>
    %14 = vector.extract_strided_slice %13 {offsets = [0, 0], sizes = [8, 128], strides = [1, 1]} : vector<8x512xf32> to vector<8x128xf32>
    %15 = arith.negf %14 : vector<8x128xf32>
    %16 = math.exp %15 : vector<8x128xf32>
    %cst_12 = arith.constant 1.000000e+00 : f32
    %17 = vector.broadcast %cst_12 : f32 to vector<8x128xf32>
    %18 = arith.addf %17, %16 : vector<8x128xf32>
    %19 = arith.divf %17, %18 : vector<8x128xf32>
    %20 = vector.extract_strided_slice %13 {offsets = [0, 128], sizes = [8, 128], strides = [1, 1]} : vector<8x512xf32> to vector<8x128xf32>
    %21 = arith.negf %20 : vector<8x128xf32>
    %22 = math.exp %21 : vector<8x128xf32>
    %cst_13 = arith.constant 1.000000e+00 : f32
    %23 = vector.broadcast %cst_13 : f32 to vector<8x128xf32>
    %24 = arith.addf %23, %22 : vector<8x128xf32>
    %25 = arith.divf %23, %24 : vector<8x128xf32>
    %26 = vector.extract_strided_slice %13 {offsets = [0, 256], sizes = [8, 128], strides = [1, 1]} : vector<8x512xf32> to vector<8x128xf32>
    %27 = math.tanh %26 : vector<8x128xf32>
    %28 = vector.extract_strided_slice %13 {offsets = [0, 384], sizes = [8, 128], strides = [1, 1]} : vector<8x512xf32> to vector<8x128xf32>
    %29 = arith.negf %28 : vector<8x128xf32>
    %30 = math.exp %29 : vector<8x128xf32>
    %cst_14 = arith.constant 1.000000e+00 : f32
    %31 = vector.broadcast %cst_14 : f32 to vector<8x128xf32>
    %32 = arith.addf %31, %30 : vector<8x128xf32>
    %33 = arith.divf %31, %32 : vector<8x128xf32>
    %34 = arith.mulf %25, %9 : vector<8x128xf32>
    %35 = arith.mulf %19, %27 : vector<8x128xf32>
    %36 = arith.addf %34, %35 : vector<8x128xf32>
    %37 = math.tanh %36 : vector<8x128xf32>
    %38 = arith.mulf %33, %37 : vector<8x128xf32>
    %c0_15 = arith.constant 0 : index
    %c0_16 = arith.constant 0 : index
    %39 = vector.load %arg3[%c0_15, %c0_16] : memref<128x512xf32, #tpu.memory_space<vmem>>, vector<128x512xf32>
    %cst_17 = arith.constant dense<0.000000e+00> : vector<8x512xf32>
    %40 = tpu.matmul %38, %39, %cst_17 {dimension_numbers = #tpu.dot_dimension_numbers<[1], [0], [0], [1], [0, 0, 1, 1], [], []>} : vector<8x128xf32>, vector<128x512xf32>, vector<8x512xf32> -> vector<8x512xf32>
    %c8 = arith.constant 8 : index
    %c0_18 = arith.constant 0 : index
    %41 = vector.load %arg11[%c8, %c0_18] : memref<64x512xf32, #tpu.memory_space<vmem>>, vector<8x512xf32>
    %42 = arith.addf %40, %41 : vector<8x512xf32>
    %43 = vector.extract_strided_slice %42 {offsets = [0, 0], sizes = [8, 128], strides = [1, 1]} : vector<8x512xf32> to vector<8x128xf32>
    %44 = arith.negf %43 : vector<8x128xf32>
    %45 = math.exp %44 : vector<8x128xf32>
    %cst_19 = arith.constant 1.000000e+00 : f32
    %46 = vector.broadcast %cst_19 : f32 to vector<8x128xf32>
    %47 = arith.addf %46, %45 : vector<8x128xf32>
    %48 = arith.divf %46, %47 : vector<8x128xf32>
    %49 = vector.extract_strided_slice %42 {offsets = [0, 128], sizes = [8, 128], strides = [1, 1]} : vector<8x512xf32> to vector<8x128xf32>
    %50 = arith.negf %49 : vector<8x128xf32>
    %51 = math.exp %50 : vector<8x128xf32>
    %cst_20 = arith.constant 1.000000e+00 : f32
    %52 = vector.broadcast %cst_20 : f32 to vector<8x128xf32>
    %53 = arith.addf %52, %51 : vector<8x128xf32>
    %54 = arith.divf %52, %53 : vector<8x128xf32>
    %55 = vector.extract_strided_slice %42 {offsets = [0, 256], sizes = [8, 128], strides = [1, 1]} : vector<8x512xf32> to vector<8x128xf32>
    %56 = math.tanh %55 : vector<8x128xf32>
    %57 = vector.extract_strided_slice %42 {offsets = [0, 384], sizes = [8, 128], strides = [1, 1]} : vector<8x512xf32> to vector<8x128xf32>
    %58 = arith.negf %57 : vector<8x128xf32>
    %59 = math.exp %58 : vector<8x128xf32>
    %cst_21 = arith.constant 1.000000e+00 : f32
    %60 = vector.broadcast %cst_21 : f32 to vector<8x128xf32>
    %61 = arith.addf %60, %59 : vector<8x128xf32>
    %62 = arith.divf %60, %61 : vector<8x128xf32>
    %63 = arith.mulf %54, %36 : vector<8x128xf32>
    %64 = arith.mulf %48, %56 : vector<8x128xf32>
    %65 = arith.addf %63, %64 : vector<8x128xf32>
    %66 = math.tanh %65 : vector<8x128xf32>
    %67 = arith.mulf %62, %66 : vector<8x128xf32>
    %68 = tpu.concatenate %38, %9 in 1 : vector<8x128xf32>, vector<8x128xf32> -> vector<8x256xf32>
    %c0_22 = arith.constant 0 : index
    %c0_23 = arith.constant 0 : index
    %69 = vector.load %arg4[%c0_22, %c0_23] : memref<256x512xf32, #tpu.memory_space<vmem>>, vector<256x512xf32>
    %cst_24 = arith.constant dense<0.000000e+00> : vector<8x512xf32>
    %70 = tpu.matmul %68, %69, %cst_24 {dimension_numbers = #tpu.dot_dimension_numbers<[1], [0], [0], [1], [0, 0, 1, 1], [], []>} : vector<8x256xf32>, vector<256x512xf32>, vector<8x512xf32> -> vector<8x512xf32>
    %c0_25 = arith.constant 0 : index
    %c0_26 = arith.constant 0 : index
    %71 = vector.load %arg5[%c0_25, %c0_26] : memref<1x512xf32, #tpu.memory_space<vmem>>, vector<1x512xf32>
    %72 = vector.broadcast %71 : vector<1x512xf32> to vector<8x512xf32>
    %73 = arith.addf %70, %72 : vector<8x512xf32>
    %74 = vector.extract_strided_slice %73 {offsets = [0, 0], sizes = [8, 128], strides = [1, 1]} : vector<8x512xf32> to vector<8x128xf32>
    %75 = arith.negf %74 : vector<8x128xf32>
    %76 = math.exp %75 : vector<8x128xf32>
    %cst_27 = arith.constant 1.000000e+00 : f32
    %77 = vector.broadcast %cst_27 : f32 to vector<8x128xf32>
    %78 = arith.addf %77, %76 : vector<8x128xf32>
    %79 = arith.divf %77, %78 : vector<8x128xf32>
    %80 = vector.extract_strided_slice %73 {offsets = [0, 128], sizes = [8, 128], strides = [1, 1]} : vector<8x512xf32> to vector<8x128xf32>
    %81 = arith.negf %80 : vector<8x128xf32>
    %82 = math.exp %81 : vector<8x128xf32>
    %cst_28 = arith.constant 1.000000e+00 : f32
    %83 = vector.broadcast %cst_28 : f32 to vector<8x128xf32>
    %84 = arith.addf %83, %82 : vector<8x128xf32>
    %85 = arith.divf %83, %84 : vector<8x128xf32>
    %86 = vector.extract_strided_slice %73 {offsets = [0, 256], sizes = [8, 128], strides = [1, 1]} : vector<8x512xf32> to vector<8x128xf32>
    %87 = math.tanh %86 : vector<8x128xf32>
    %88 = vector.extract_strided_slice %73 {offsets = [0, 384], sizes = [8, 128], strides = [1, 1]} : vector<8x512xf32> to vector<8x128xf32>
    %89 = arith.negf %88 : vector<8x128xf32>
    %90 = math.exp %89 : vector<8x128xf32>
    %cst_29 = arith.constant 1.000000e+00 : f32
    %91 = vector.broadcast %cst_29 : f32 to vector<8x128xf32>
    %92 = arith.addf %91, %90 : vector<8x128xf32>
    %93 = arith.divf %91, %92 : vector<8x128xf32>
    %94 = arith.mulf %85, %9 : vector<8x128xf32>
    %95 = arith.mulf %79, %87 : vector<8x128xf32>
    %96 = arith.addf %94, %95 : vector<8x128xf32>
    %97 = math.tanh %96 : vector<8x128xf32>
    %98 = arith.mulf %93, %97 : vector<8x128xf32>
    %c0_30 = arith.constant 0 : index
    %c0_31 = arith.constant 0 : index
    %99 = vector.load %arg3[%c0_30, %c0_31] : memref<128x512xf32, #tpu.memory_space<vmem>>, vector<128x512xf32>
    %cst_32 = arith.constant dense<0.000000e+00> : vector<8x512xf32>
    %100 = tpu.matmul %67, %99, %cst_32 {dimension_numbers = #tpu.dot_dimension_numbers<[1], [0], [0], [1], [0, 0, 1, 1], [], []>} : vector<8x128xf32>, vector<128x512xf32>, vector<8x512xf32> -> vector<8x512xf32>
    %c16 = arith.constant 16 : index
    %c0_33 = arith.constant 0 : index
    %101 = vector.load %arg11[%c16, %c0_33] : memref<64x512xf32, #tpu.memory_space<vmem>>, vector<8x512xf32>
    %102 = arith.addf %100, %101 : vector<8x512xf32>
    %103 = vector.extract_strided_slice %102 {offsets = [0, 0], sizes = [8, 128], strides = [1, 1]} : vector<8x512xf32> to vector<8x128xf32>
    %104 = arith.negf %103 : vector<8x128xf32>
    %105 = math.exp %104 : vector<8x128xf32>
    %cst_34 = arith.constant 1.000000e+00 : f32
    %106 = vector.broadcast %cst_34 : f32 to vector<8x128xf32>
    %107 = arith.addf %106, %105 : vector<8x128xf32>
    %108 = arith.divf %106, %107 : vector<8x128xf32>
    %109 = vector.extract_strided_slice %102 {offsets = [0, 128], sizes = [8, 128], strides = [1, 1]} : vector<8x512xf32> to vector<8x128xf32>
    %110 = arith.negf %109 : vector<8x128xf32>
    %111 = math.exp %110 : vector<8x128xf32>
    %cst_35 = arith.constant 1.000000e+00 : f32
    %112 = vector.broadcast %cst_35 : f32 to vector<8x128xf32>
    %113 = arith.addf %112, %111 : vector<8x128xf32>
    %114 = arith.divf %112, %113 : vector<8x128xf32>
    %115 = vector.extract_strided_slice %102 {offsets = [0, 256], sizes = [8, 128], strides = [1, 1]} : vector<8x512xf32> to vector<8x128xf32>
    %116 = math.tanh %115 : vector<8x128xf32>
    %117 = vector.extract_strided_slice %102 {offsets = [0, 384], sizes = [8, 128], strides = [1, 1]} : vector<8x512xf32> to vector<8x128xf32>
    %118 = arith.negf %117 : vector<8x128xf32>
    %119 = math.exp %118 : vector<8x128xf32>
    %cst_36 = arith.constant 1.000000e+00 : f32
    %120 = vector.broadcast %cst_36 : f32 to vector<8x128xf32>
    %121 = arith.addf %120, %119 : vector<8x128xf32>
    %122 = arith.divf %120, %121 : vector<8x128xf32>
    %123 = arith.mulf %114, %65 : vector<8x128xf32>
    %124 = arith.mulf %108, %116 : vector<8x128xf32>
    %125 = arith.addf %123, %124 : vector<8x128xf32>
    %126 = math.tanh %125 : vector<8x128xf32>
    %127 = arith.mulf %122, %126 : vector<8x128xf32>
    %128 = tpu.concatenate %67, %98 in 1 : vector<8x128xf32>, vector<8x128xf32> -> vector<8x256xf32>
    %c0_37 = arith.constant 0 : index
    %c0_38 = arith.constant 0 : index
    %129 = vector.load %arg4[%c0_37, %c0_38] : memref<256x512xf32, #tpu.memory_space<vmem>>, vector<256x512xf32>
    %cst_39 = arith.constant dense<0.000000e+00> : vector<8x512xf32>
    %130 = tpu.matmul %128, %129, %cst_39 {dimension_numbers = #tpu.dot_dimension_numbers<[1], [0], [0], [1], [0, 0, 1, 1], [], []>} : vector<8x256xf32>, vector<256x512xf32>, vector<8x512xf32> -> vector<8x512xf32>
    %c0_40 = arith.constant 0 : index
    %c0_41 = arith.constant 0 : index
    %131 = vector.load %arg5[%c0_40, %c0_41] : memref<1x512xf32, #tpu.memory_space<vmem>>, vector<1x512xf32>
    %132 = vector.broadcast %131 : vector<1x512xf32> to vector<8x512xf32>
    %133 = arith.addf %130, %132 : vector<8x512xf32>
    %134 = vector.extract_strided_slice %133 {offsets = [0, 0], sizes = [8, 128], strides = [1, 1]} : vector<8x512xf32> to vector<8x128xf32>
    %135 = arith.negf %134 : vector<8x128xf32>
    %136 = math.exp %135 : vector<8x128xf32>
    %cst_42 = arith.constant 1.000000e+00 : f32
    %137 = vector.broadcast %cst_42 : f32 to vector<8x128xf32>
    %138 = arith.addf %137, %136 : vector<8x128xf32>
    %139 = arith.divf %137, %138 : vector<8x128xf32>
    %140 = vector.extract_strided_slice %133 {offsets = [0, 128], sizes = [8, 128], strides = [1, 1]} : vector<8x512xf32> to vector<8x128xf32>
    %141 = arith.negf %140 : vector<8x128xf32>
    %142 = math.exp %141 : vector<8x128xf32>
    %cst_43 = arith.constant 1.000000e+00 : f32
    %143 = vector.broadcast %cst_43 : f32 to vector<8x128xf32>
    %144 = arith.addf %143, %142 : vector<8x128xf32>
    %145 = arith.divf %143, %144 : vector<8x128xf32>
    %146 = vector.extract_strided_slice %133 {offsets = [0, 256], sizes = [8, 128], strides = [1, 1]} : vector<8x512xf32> to vector<8x128xf32>
    %147 = math.tanh %146 : vector<8x128xf32>
    %148 = vector.extract_strided_slice %133 {offsets = [0, 384], sizes = [8, 128], strides = [1, 1]} : vector<8x512xf32> to vector<8x128xf32>
    %149 = arith.negf %148 : vector<8x128xf32>
    %150 = math.exp %149 : vector<8x128xf32>
    %cst_44 = arith.constant 1.000000e+00 : f32
    %151 = vector.broadcast %cst_44 : f32 to vector<8x128xf32>
    %152 = arith.addf %151, %150 : vector<8x128xf32>
    %153 = arith.divf %151, %152 : vector<8x128xf32>
    %154 = arith.mulf %145, %96 : vector<8x128xf32>
    %155 = arith.mulf %139, %147 : vector<8x128xf32>
    %156 = arith.addf %154, %155 : vector<8x128xf32>
    %157 = math.tanh %156 : vector<8x128xf32>
    %158 = arith.mulf %153, %157 : vector<8x128xf32>
    %159 = tpu.concatenate %98, %9 in 1 : vector<8x128xf32>, vector<8x128xf32> -> vector<8x256xf32>
    %c0_45 = arith.constant 0 : index
    %c0_46 = arith.constant 0 : index
    %160 = vector.load %arg6[%c0_45, %c0_46] : memref<256x512xf32, #tpu.memory_space<vmem>>, vector<256x512xf32>
    %cst_47 = arith.constant dense<0.000000e+00> : vector<8x512xf32>
    %161 = tpu.matmul %159, %160, %cst_47 {dimension_numbers = #tpu.dot_dimension_numbers<[1], [0], [0], [1], [0, 0, 1, 1], [], []>} : vector<8x256xf32>, vector<256x512xf32>, vector<8x512xf32> -> vector<8x512xf32>
    %c0_48 = arith.constant 0 : index
    %c0_49 = arith.constant 0 : index
    %162 = vector.load %arg7[%c0_48, %c0_49] : memref<1x512xf32, #tpu.memory_space<vmem>>, vector<1x512xf32>
    %163 = vector.broadcast %162 : vector<1x512xf32> to vector<8x512xf32>
    %164 = arith.addf %161, %163 : vector<8x512xf32>
    %165 = vector.extract_strided_slice %164 {offsets = [0, 0], sizes = [8, 128], strides = [1, 1]} : vector<8x512xf32> to vector<8x128xf32>
    %166 = arith.negf %165 : vector<8x128xf32>
    %167 = math.exp %166 : vector<8x128xf32>
    %cst_50 = arith.constant 1.000000e+00 : f32
    %168 = vector.broadcast %cst_50 : f32 to vector<8x128xf32>
    %169 = arith.addf %168, %167 : vector<8x128xf32>
    %170 = arith.divf %168, %169 : vector<8x128xf32>
    %171 = vector.extract_strided_slice %164 {offsets = [0, 128], sizes = [8, 128], strides = [1, 1]} : vector<8x512xf32> to vector<8x128xf32>
    %172 = arith.negf %171 : vector<8x128xf32>
    %173 = math.exp %172 : vector<8x128xf32>
    %cst_51 = arith.constant 1.000000e+00 : f32
    %174 = vector.broadcast %cst_51 : f32 to vector<8x128xf32>
    %175 = arith.addf %174, %173 : vector<8x128xf32>
    %176 = arith.divf %174, %175 : vector<8x128xf32>
    %177 = vector.extract_strided_slice %164 {offsets = [0, 256], sizes = [8, 128], strides = [1, 1]} : vector<8x512xf32> to vector<8x128xf32>
    %178 = math.tanh %177 : vector<8x128xf32>
    %179 = vector.extract_strided_slice %164 {offsets = [0, 384], sizes = [8, 128], strides = [1, 1]} : vector<8x512xf32> to vector<8x128xf32>
    %180 = arith.negf %179 : vector<8x128xf32>
    %181 = math.exp %180 : vector<8x128xf32>
    %cst_52 = arith.constant 1.000000e+00 : f32
    %182 = vector.broadcast %cst_52 : f32 to vector<8x128xf32>
    %183 = arith.addf %182, %181 : vector<8x128xf32>
    %184 = arith.divf %182, %183 : vector<8x128xf32>
    %185 = arith.mulf %176, %9 : vector<8x128xf32>
    %186 = arith.mulf %170, %178 : vector<8x128xf32>
    %187 = arith.addf %185, %186 : vector<8x128xf32>
    %188 = math.tanh %187 : vector<8x128xf32>
    %189 = arith.mulf %184, %188 : vector<8x128xf32>
    %c0_53 = arith.constant 0 : index
    %c0_54 = arith.constant 0 : index
    %190 = vector.load %arg3[%c0_53, %c0_54] : memref<128x512xf32, #tpu.memory_space<vmem>>, vector<128x512xf32>
    %cst_55 = arith.constant dense<0.000000e+00> : vector<8x512xf32>
    %191 = tpu.matmul %127, %190, %cst_55 {dimension_numbers = #tpu.dot_dimension_numbers<[1], [0], [0], [1], [0, 0, 1, 1], [], []>} : vector<8x128xf32>, vector<128x512xf32>, vector<8x512xf32> -> vector<8x512xf32>
    %c24 = arith.constant 24 : index
    %c0_56 = arith.constant 0 : index
    %192 = vector.load %arg11[%c24, %c0_56] : memref<64x512xf32, #tpu.memory_space<vmem>>, vector<8x512xf32>
    %193 = arith.addf %191, %192 : vector<8x512xf32>
    %194 = vector.extract_strided_slice %193 {offsets = [0, 0], sizes = [8, 128], strides = [1, 1]} : vector<8x512xf32> to vector<8x128xf32>
    %195 = arith.negf %194 : vector<8x128xf32>
    %196 = math.exp %195 : vector<8x128xf32>
    %cst_57 = arith.constant 1.000000e+00 : f32
    %197 = vector.broadcast %cst_57 : f32 to vector<8x128xf32>
    %198 = arith.addf %197, %196 : vector<8x128xf32>
    %199 = arith.divf %197, %198 : vector<8x128xf32>
    %200 = vector.extract_strided_slice %193 {offsets = [0, 128], sizes = [8, 128], strides = [1, 1]} : vector<8x512xf32> to vector<8x128xf32>
    %201 = arith.negf %200 : vector<8x128xf32>
    %202 = math.exp %201 : vector<8x128xf32>
    %cst_58 = arith.constant 1.000000e+00 : f32
    %203 = vector.broadcast %cst_58 : f32 to vector<8x128xf32>
    %204 = arith.addf %203, %202 : vector<8x128xf32>
    %205 = arith.divf %203, %204 : vector<8x128xf32>
    %206 = vector.extract_strided_slice %193 {offsets = [0, 256], sizes = [8, 128], strides = [1, 1]} : vector<8x512xf32> to vector<8x128xf32>
    %207 = math.tanh %206 : vector<8x128xf32>
    %208 = vector.extract_strided_slice %193 {offsets = [0, 384], sizes = [8, 128], strides = [1, 1]} : vector<8x512xf32> to vector<8x128xf32>
    %209 = arith.negf %208 : vector<8x128xf32>
    %210 = math.exp %209 : vector<8x128xf32>
    %cst_59 = arith.constant 1.000000e+00 : f32
    %211 = vector.broadcast %cst_59 : f32 to vector<8x128xf32>
    %212 = arith.addf %211, %210 : vector<8x128xf32>
    %213 = arith.divf %211, %212 : vector<8x128xf32>
    %214 = arith.mulf %205, %125 : vector<8x128xf32>
    %215 = arith.mulf %199, %207 : vector<8x128xf32>
    %216 = arith.addf %214, %215 : vector<8x128xf32>
    %217 = math.tanh %216 : vector<8x128xf32>
    %218 = arith.mulf %213, %217 : vector<8x128xf32>
    %219 = tpu.concatenate %127, %158 in 1 : vector<8x128xf32>, vector<8x128xf32> -> vector<8x256xf32>
    %c0_60 = arith.constant 0 : index
    %c0_61 = arith.constant 0 : index
    %220 = vector.load %arg4[%c0_60, %c0_61] : memref<256x512xf32, #tpu.memory_space<vmem>>, vector<256x512xf32>
    %cst_62 = arith.constant dense<0.000000e+00> : vector<8x512xf32>
    %221 = tpu.matmul %219, %220, %cst_62 {dimension_numbers = #tpu.dot_dimension_numbers<[1], [0], [0], [1], [0, 0, 1, 1], [], []>} : vector<8x256xf32>, vector<256x512xf32>, vector<8x512xf32> -> vector<8x512xf32>
    %c0_63 = arith.constant 0 : index
    %c0_64 = arith.constant 0 : index
    %222 = vector.load %arg5[%c0_63, %c0_64] : memref<1x512xf32, #tpu.memory_space<vmem>>, vector<1x512xf32>
    %223 = vector.broadcast %222 : vector<1x512xf32> to vector<8x512xf32>
    %224 = arith.addf %221, %223 : vector<8x512xf32>
    %225 = vector.extract_strided_slice %224 {offsets = [0, 0], sizes = [8, 128], strides = [1, 1]} : vector<8x512xf32> to vector<8x128xf32>
    %226 = arith.negf %225 : vector<8x128xf32>
    %227 = math.exp %226 : vector<8x128xf32>
    %cst_65 = arith.constant 1.000000e+00 : f32
    %228 = vector.broadcast %cst_65 : f32 to vector<8x128xf32>
    %229 = arith.addf %228, %227 : vector<8x128xf32>
    %230 = arith.divf %228, %229 : vector<8x128xf32>
    %231 = vector.extract_strided_slice %224 {offsets = [0, 128], sizes = [8, 128], strides = [1, 1]} : vector<8x512xf32> to vector<8x128xf32>
    %232 = arith.negf %231 : vector<8x128xf32>
    %233 = math.exp %232 : vector<8x128xf32>
    %cst_66 = arith.constant 1.000000e+00 : f32
    %234 = vector.broadcast %cst_66 : f32 to vector<8x128xf32>
    %235 = arith.addf %234, %233 : vector<8x128xf32>
    %236 = arith.divf %234, %235 : vector<8x128xf32>
    %237 = vector.extract_strided_slice %224 {offsets = [0, 256], sizes = [8, 128], strides = [1, 1]} : vector<8x512xf32> to vector<8x128xf32>
    %238 = math.tanh %237 : vector<8x128xf32>
    %239 = vector.extract_strided_slice %224 {offsets = [0, 384], sizes = [8, 128], strides = [1, 1]} : vector<8x512xf32> to vector<8x128xf32>
    %240 = arith.negf %239 : vector<8x128xf32>
    %241 = math.exp %240 : vector<8x128xf32>
    %cst_67 = arith.constant 1.000000e+00 : f32
    %242 = vector.broadcast %cst_67 : f32 to vector<8x128xf32>
    %243 = arith.addf %242, %241 : vector<8x128xf32>
    %244 = arith.divf %242, %243 : vector<8x128xf32>
    %245 = arith.mulf %236, %156 : vector<8x128xf32>
    %246 = arith.mulf %230, %238 : vector<8x128xf32>
    %247 = arith.addf %245, %246 : vector<8x128xf32>
    %248 = math.tanh %247 : vector<8x128xf32>
    %249 = arith.mulf %244, %248 : vector<8x128xf32>
    %250 = tpu.concatenate %158, %189 in 1 : vector<8x128xf32>, vector<8x128xf32> -> vector<8x256xf32>
    %c0_68 = arith.constant 0 : index
    %c0_69 = arith.constant 0 : index
    %251 = vector.load %arg6[%c0_68, %c0_69] : memref<256x512xf32, #tpu.memory_space<vmem>>, vector<256x512xf32>
    %cst_70 = arith.constant dense<0.000000e+00> : vector<8x512xf32>
    %252 = tpu.matmul %250, %251, %cst_70 {dimension_numbers = #tpu.dot_dimension_numbers<[1], [0], [0], [1], [0, 0, 1, 1], [], []>} : vector<8x256xf32>, vector<256x512xf32>, vector<8x512xf32> -> vector<8x512xf32>
    %c0_71 = arith.constant 0 : index
    %c0_72 = arith.constant 0 : index
    %253 = vector.load %arg7[%c0_71, %c0_72] : memref<1x512xf32, #tpu.memory_space<vmem>>, vector<1x512xf32>
    %254 = vector.broadcast %253 : vector<1x512xf32> to vector<8x512xf32>
    %255 = arith.addf %252, %254 : vector<8x512xf32>
    %256 = vector.extract_strided_slice %255 {offsets = [0, 0], sizes = [8, 128], strides = [1, 1]} : vector<8x512xf32> to vector<8x128xf32>
    %257 = arith.negf %256 : vector<8x128xf32>
    %258 = math.exp %257 : vector<8x128xf32>
    %cst_73 = arith.constant 1.000000e+00 : f32
    %259 = vector.broadcast %cst_73 : f32 to vector<8x128xf32>
    %260 = arith.addf %259, %258 : vector<8x128xf32>
    %261 = arith.divf %259, %260 : vector<8x128xf32>
    %262 = vector.extract_strided_slice %255 {offsets = [0, 128], sizes = [8, 128], strides = [1, 1]} : vector<8x512xf32> to vector<8x128xf32>
    %263 = arith.negf %262 : vector<8x128xf32>
    %264 = math.exp %263 : vector<8x128xf32>
    %cst_74 = arith.constant 1.000000e+00 : f32
    %265 = vector.broadcast %cst_74 : f32 to vector<8x128xf32>
    %266 = arith.addf %265, %264 : vector<8x128xf32>
    %267 = arith.divf %265, %266 : vector<8x128xf32>
    %268 = vector.extract_strided_slice %255 {offsets = [0, 256], sizes = [8, 128], strides = [1, 1]} : vector<8x512xf32> to vector<8x128xf32>
    %269 = math.tanh %268 : vector<8x128xf32>
    %270 = vector.extract_strided_slice %255 {offsets = [0, 384], sizes = [8, 128], strides = [1, 1]} : vector<8x512xf32> to vector<8x128xf32>
    %271 = arith.negf %270 : vector<8x128xf32>
    %272 = math.exp %271 : vector<8x128xf32>
    %cst_75 = arith.constant 1.000000e+00 : f32
    %273 = vector.broadcast %cst_75 : f32 to vector<8x128xf32>
    %274 = arith.addf %273, %272 : vector<8x128xf32>
    %275 = arith.divf %273, %274 : vector<8x128xf32>
    %276 = arith.mulf %267, %187 : vector<8x128xf32>
    %277 = arith.mulf %261, %269 : vector<8x128xf32>
    %278 = arith.addf %276, %277 : vector<8x128xf32>
    %279 = math.tanh %278 : vector<8x128xf32>
    %280 = arith.mulf %275, %279 : vector<8x128xf32>
    %c0_76 = arith.constant 0 : index
    %c0_77 = arith.constant 0 : index
    %281 = vector.load %arg3[%c0_76, %c0_77] : memref<128x512xf32, #tpu.memory_space<vmem>>, vector<128x512xf32>
    %cst_78 = arith.constant dense<0.000000e+00> : vector<8x512xf32>
    %282 = tpu.matmul %218, %281, %cst_78 {dimension_numbers = #tpu.dot_dimension_numbers<[1], [0], [0], [1], [0, 0, 1, 1], [], []>} : vector<8x128xf32>, vector<128x512xf32>, vector<8x512xf32> -> vector<8x512xf32>
    %c32 = arith.constant 32 : index
    %c0_79 = arith.constant 0 : index
    %283 = vector.load %arg11[%c32, %c0_79] : memref<64x512xf32, #tpu.memory_space<vmem>>, vector<8x512xf32>
    %284 = arith.addf %282, %283 : vector<8x512xf32>
    %285 = vector.extract_strided_slice %284 {offsets = [0, 0], sizes = [8, 128], strides = [1, 1]} : vector<8x512xf32> to vector<8x128xf32>
    %286 = arith.negf %285 : vector<8x128xf32>
    %287 = math.exp %286 : vector<8x128xf32>
    %cst_80 = arith.constant 1.000000e+00 : f32
    %288 = vector.broadcast %cst_80 : f32 to vector<8x128xf32>
    %289 = arith.addf %288, %287 : vector<8x128xf32>
    %290 = arith.divf %288, %289 : vector<8x128xf32>
    %291 = vector.extract_strided_slice %284 {offsets = [0, 128], sizes = [8, 128], strides = [1, 1]} : vector<8x512xf32> to vector<8x128xf32>
    %292 = arith.negf %291 : vector<8x128xf32>
    %293 = math.exp %292 : vector<8x128xf32>
    %cst_81 = arith.constant 1.000000e+00 : f32
    %294 = vector.broadcast %cst_81 : f32 to vector<8x128xf32>
    %295 = arith.addf %294, %293 : vector<8x128xf32>
    %296 = arith.divf %294, %295 : vector<8x128xf32>
    %297 = vector.extract_strided_slice %284 {offsets = [0, 256], sizes = [8, 128], strides = [1, 1]} : vector<8x512xf32> to vector<8x128xf32>
    %298 = math.tanh %297 : vector<8x128xf32>
    %299 = vector.extract_strided_slice %284 {offsets = [0, 384], sizes = [8, 128], strides = [1, 1]} : vector<8x512xf32> to vector<8x128xf32>
    %300 = arith.negf %299 : vector<8x128xf32>
    %301 = math.exp %300 : vector<8x128xf32>
    %cst_82 = arith.constant 1.000000e+00 : f32
    %302 = vector.broadcast %cst_82 : f32 to vector<8x128xf32>
    %303 = arith.addf %302, %301 : vector<8x128xf32>
    %304 = arith.divf %302, %303 : vector<8x128xf32>
    %305 = arith.mulf %296, %216 : vector<8x128xf32>
    %306 = arith.mulf %290, %298 : vector<8x128xf32>
    %307 = arith.addf %305, %306 : vector<8x128xf32>
    %308 = math.tanh %307 : vector<8x128xf32>
    %309 = arith.mulf %304, %308 : vector<8x128xf32>
    %310 = tpu.concatenate %218, %249 in 1 : vector<8x128xf32>, vector<8x128xf32> -> vector<8x256xf32>
    %c0_83 = arith.constant 0 : index
    %c0_84 = arith.constant 0 : index
    %311 = vector.load %arg4[%c0_83, %c0_84] : memref<256x512xf32, #tpu.memory_space<vmem>>, vector<256x512xf32>
    %cst_85 = arith.constant dense<0.000000e+00> : vector<8x512xf32>
    %312 = tpu.matmul %310, %311, %cst_85 {dimension_numbers = #tpu.dot_dimension_numbers<[1], [0], [0], [1], [0, 0, 1, 1], [], []>} : vector<8x256xf32>, vector<256x512xf32>, vector<8x512xf32> -> vector<8x512xf32>
    %c0_86 = arith.constant 0 : index
    %c0_87 = arith.constant 0 : index
    %313 = vector.load %arg5[%c0_86, %c0_87] : memref<1x512xf32, #tpu.memory_space<vmem>>, vector<1x512xf32>
    %314 = vector.broadcast %313 : vector<1x512xf32> to vector<8x512xf32>
    %315 = arith.addf %312, %314 : vector<8x512xf32>
    %316 = vector.extract_strided_slice %315 {offsets = [0, 0], sizes = [8, 128], strides = [1, 1]} : vector<8x512xf32> to vector<8x128xf32>
    %317 = arith.negf %316 : vector<8x128xf32>
    %318 = math.exp %317 : vector<8x128xf32>
    %cst_88 = arith.constant 1.000000e+00 : f32
    %319 = vector.broadcast %cst_88 : f32 to vector<8x128xf32>
    %320 = arith.addf %319, %318 : vector<8x128xf32>
    %321 = arith.divf %319, %320 : vector<8x128xf32>
    %322 = vector.extract_strided_slice %315 {offsets = [0, 128], sizes = [8, 128], strides = [1, 1]} : vector<8x512xf32> to vector<8x128xf32>
    %323 = arith.negf %322 : vector<8x128xf32>
    %324 = math.exp %323 : vector<8x128xf32>
    %cst_89 = arith.constant 1.000000e+00 : f32
    %325 = vector.broadcast %cst_89 : f32 to vector<8x128xf32>
    %326 = arith.addf %325, %324 : vector<8x128xf32>
    %327 = arith.divf %325, %326 : vector<8x128xf32>
    %328 = vector.extract_strided_slice %315 {offsets = [0, 256], sizes = [8, 128], strides = [1, 1]} : vector<8x512xf32> to vector<8x128xf32>
    %329 = math.tanh %328 : vector<8x128xf32>
    %330 = vector.extract_strided_slice %315 {offsets = [0, 384], sizes = [8, 128], strides = [1, 1]} : vector<8x512xf32> to vector<8x128xf32>
    %331 = arith.negf %330 : vector<8x128xf32>
    %332 = math.exp %331 : vector<8x128xf32>
    %cst_90 = arith.constant 1.000000e+00 : f32
    %333 = vector.broadcast %cst_90 : f32 to vector<8x128xf32>
    %334 = arith.addf %333, %332 : vector<8x128xf32>
    %335 = arith.divf %333, %334 : vector<8x128xf32>
    %336 = arith.mulf %327, %247 : vector<8x128xf32>
    %337 = arith.mulf %321, %329 : vector<8x128xf32>
    %338 = arith.addf %336, %337 : vector<8x128xf32>
    %339 = math.tanh %338 : vector<8x128xf32>
    %340 = arith.mulf %335, %339 : vector<8x128xf32>
    %341 = tpu.concatenate %249, %280 in 1 : vector<8x128xf32>, vector<8x128xf32> -> vector<8x256xf32>
    %c0_91 = arith.constant 0 : index
    %c0_92 = arith.constant 0 : index
    %342 = vector.load %arg6[%c0_91, %c0_92] : memref<256x512xf32, #tpu.memory_space<vmem>>, vector<256x512xf32>
    %cst_93 = arith.constant dense<0.000000e+00> : vector<8x512xf32>
    %343 = tpu.matmul %341, %342, %cst_93 {dimension_numbers = #tpu.dot_dimension_numbers<[1], [0], [0], [1], [0, 0, 1, 1], [], []>} : vector<8x256xf32>, vector<256x512xf32>, vector<8x512xf32> -> vector<8x512xf32>
    %c0_94 = arith.constant 0 : index
    %c0_95 = arith.constant 0 : index
    %344 = vector.load %arg7[%c0_94, %c0_95] : memref<1x512xf32, #tpu.memory_space<vmem>>, vector<1x512xf32>
    %345 = vector.broadcast %344 : vector<1x512xf32> to vector<8x512xf32>
    %346 = arith.addf %343, %345 : vector<8x512xf32>
    %347 = vector.extract_strided_slice %346 {offsets = [0, 0], sizes = [8, 128], strides = [1, 1]} : vector<8x512xf32> to vector<8x128xf32>
    %348 = arith.negf %347 : vector<8x128xf32>
    %349 = math.exp %348 : vector<8x128xf32>
    %cst_96 = arith.constant 1.000000e+00 : f32
    %350 = vector.broadcast %cst_96 : f32 to vector<8x128xf32>
    %351 = arith.addf %350, %349 : vector<8x128xf32>
    %352 = arith.divf %350, %351 : vector<8x128xf32>
    %353 = vector.extract_strided_slice %346 {offsets = [0, 128], sizes = [8, 128], strides = [1, 1]} : vector<8x512xf32> to vector<8x128xf32>
    %354 = arith.negf %353 : vector<8x128xf32>
    %355 = math.exp %354 : vector<8x128xf32>
    %cst_97 = arith.constant 1.000000e+00 : f32
    %356 = vector.broadcast %cst_97 : f32 to vector<8x128xf32>
    %357 = arith.addf %356, %355 : vector<8x128xf32>
    %358 = arith.divf %356, %357 : vector<8x128xf32>
    %359 = vector.extract_strided_slice %346 {offsets = [0, 256], sizes = [8, 128], strides = [1, 1]} : vector<8x512xf32> to vector<8x128xf32>
    %360 = math.tanh %359 : vector<8x128xf32>
    %361 = vector.extract_strided_slice %346 {offsets = [0, 384], sizes = [8, 128], strides = [1, 1]} : vector<8x512xf32> to vector<8x128xf32>
    %362 = arith.negf %361 : vector<8x128xf32>
    %363 = math.exp %362 : vector<8x128xf32>
    %cst_98 = arith.constant 1.000000e+00 : f32
    %364 = vector.broadcast %cst_98 : f32 to vector<8x128xf32>
    %365 = arith.addf %364, %363 : vector<8x128xf32>
    %366 = arith.divf %364, %365 : vector<8x128xf32>
    %367 = arith.mulf %358, %278 : vector<8x128xf32>
    %368 = arith.mulf %352, %360 : vector<8x128xf32>
    %369 = arith.addf %367, %368 : vector<8x128xf32>
    %370 = math.tanh %369 : vector<8x128xf32>
    %371 = arith.mulf %366, %370 : vector<8x128xf32>
    %c0_99 = arith.constant 0 : index
    %c0_100 = arith.constant 0 : index
    %372 = vector.load %arg3[%c0_99, %c0_100] : memref<128x512xf32, #tpu.memory_space<vmem>>, vector<128x512xf32>
    %cst_101 = arith.constant dense<0.000000e+00> : vector<8x512xf32>
    %373 = tpu.matmul %309, %372, %cst_101 {dimension_numbers = #tpu.dot_dimension_numbers<[1], [0], [0], [1], [0, 0, 1, 1], [], []>} : vector<8x128xf32>, vector<128x512xf32>, vector<8x512xf32> -> vector<8x512xf32>
    %c40 = arith.constant 40 : index
    %c0_102 = arith.constant 0 : index
    %374 = vector.load %arg11[%c40, %c0_102] : memref<64x512xf32, #tpu.memory_space<vmem>>, vector<8x512xf32>
    %375 = arith.addf %373, %374 : vector<8x512xf32>
    %376 = vector.extract_strided_slice %375 {offsets = [0, 0], sizes = [8, 128], strides = [1, 1]} : vector<8x512xf32> to vector<8x128xf32>
    %377 = arith.negf %376 : vector<8x128xf32>
    %378 = math.exp %377 : vector<8x128xf32>
    %cst_103 = arith.constant 1.000000e+00 : f32
    %379 = vector.broadcast %cst_103 : f32 to vector<8x128xf32>
    %380 = arith.addf %379, %378 : vector<8x128xf32>
    %381 = arith.divf %379, %380 : vector<8x128xf32>
    %382 = vector.extract_strided_slice %375 {offsets = [0, 128], sizes = [8, 128], strides = [1, 1]} : vector<8x512xf32> to vector<8x128xf32>
    %383 = arith.negf %382 : vector<8x128xf32>
    %384 = math.exp %383 : vector<8x128xf32>
    %cst_104 = arith.constant 1.000000e+00 : f32
    %385 = vector.broadcast %cst_104 : f32 to vector<8x128xf32>
    %386 = arith.addf %385, %384 : vector<8x128xf32>
    %387 = arith.divf %385, %386 : vector<8x128xf32>
    %388 = vector.extract_strided_slice %375 {offsets = [0, 256], sizes = [8, 128], strides = [1, 1]} : vector<8x512xf32> to vector<8x128xf32>
    %389 = math.tanh %388 : vector<8x128xf32>
    %390 = vector.extract_strided_slice %375 {offsets = [0, 384], sizes = [8, 128], strides = [1, 1]} : vector<8x512xf32> to vector<8x128xf32>
    %391 = arith.negf %390 : vector<8x128xf32>
    %392 = math.exp %391 : vector<8x128xf32>
    %cst_105 = arith.constant 1.000000e+00 : f32
    %393 = vector.broadcast %cst_105 : f32 to vector<8x128xf32>
    %394 = arith.addf %393, %392 : vector<8x128xf32>
    %395 = arith.divf %393, %394 : vector<8x128xf32>
    %396 = arith.mulf %387, %307 : vector<8x128xf32>
    %397 = arith.mulf %381, %389 : vector<8x128xf32>
    %398 = arith.addf %396, %397 : vector<8x128xf32>
    %399 = math.tanh %398 : vector<8x128xf32>
    %400 = arith.mulf %395, %399 : vector<8x128xf32>
    %401 = tpu.concatenate %309, %340 in 1 : vector<8x128xf32>, vector<8x128xf32> -> vector<8x256xf32>
    %c0_106 = arith.constant 0 : index
    %c0_107 = arith.constant 0 : index
    %402 = vector.load %arg4[%c0_106, %c0_107] : memref<256x512xf32, #tpu.memory_space<vmem>>, vector<256x512xf32>
    %cst_108 = arith.constant dense<0.000000e+00> : vector<8x512xf32>
    %403 = tpu.matmul %401, %402, %cst_108 {dimension_numbers = #tpu.dot_dimension_numbers<[1], [0], [0], [1], [0, 0, 1, 1], [], []>} : vector<8x256xf32>, vector<256x512xf32>, vector<8x512xf32> -> vector<8x512xf32>
    %c0_109 = arith.constant 0 : index
    %c0_110 = arith.constant 0 : index
    %404 = vector.load %arg5[%c0_109, %c0_110] : memref<1x512xf32, #tpu.memory_space<vmem>>, vector<1x512xf32>
    %405 = vector.broadcast %404 : vector<1x512xf32> to vector<8x512xf32>
    %406 = arith.addf %403, %405 : vector<8x512xf32>
    %407 = vector.extract_strided_slice %406 {offsets = [0, 0], sizes = [8, 128], strides = [1, 1]} : vector<8x512xf32> to vector<8x128xf32>
    %408 = arith.negf %407 : vector<8x128xf32>
    %409 = math.exp %408 : vector<8x128xf32>
    %cst_111 = arith.constant 1.000000e+00 : f32
    %410 = vector.broadcast %cst_111 : f32 to vector<8x128xf32>
    %411 = arith.addf %410, %409 : vector<8x128xf32>
    %412 = arith.divf %410, %411 : vector<8x128xf32>
    %413 = vector.extract_strided_slice %406 {offsets = [0, 128], sizes = [8, 128], strides = [1, 1]} : vector<8x512xf32> to vector<8x128xf32>
    %414 = arith.negf %413 : vector<8x128xf32>
    %415 = math.exp %414 : vector<8x128xf32>
    %cst_112 = arith.constant 1.000000e+00 : f32
    %416 = vector.broadcast %cst_112 : f32 to vector<8x128xf32>
    %417 = arith.addf %416, %415 : vector<8x128xf32>
    %418 = arith.divf %416, %417 : vector<8x128xf32>
    %419 = vector.extract_strided_slice %406 {offsets = [0, 256], sizes = [8, 128], strides = [1, 1]} : vector<8x512xf32> to vector<8x128xf32>
    %420 = math.tanh %419 : vector<8x128xf32>
    %421 = vector.extract_strided_slice %406 {offsets = [0, 384], sizes = [8, 128], strides = [1, 1]} : vector<8x512xf32> to vector<8x128xf32>
    %422 = arith.negf %421 : vector<8x128xf32>
    %423 = math.exp %422 : vector<8x128xf32>
    %cst_113 = arith.constant 1.000000e+00 : f32
    %424 = vector.broadcast %cst_113 : f32 to vector<8x128xf32>
    %425 = arith.addf %424, %423 : vector<8x128xf32>
    %426 = arith.divf %424, %425 : vector<8x128xf32>
    %427 = arith.mulf %418, %338 : vector<8x128xf32>
    %428 = arith.mulf %412, %420 : vector<8x128xf32>
    %429 = arith.addf %427, %428 : vector<8x128xf32>
    %430 = math.tanh %429 : vector<8x128xf32>
    %431 = arith.mulf %426, %430 : vector<8x128xf32>
    %432 = tpu.concatenate %340, %371 in 1 : vector<8x128xf32>, vector<8x128xf32> -> vector<8x256xf32>
    %c0_114 = arith.constant 0 : index
    %c0_115 = arith.constant 0 : index
    %433 = vector.load %arg6[%c0_114, %c0_115] : memref<256x512xf32, #tpu.memory_space<vmem>>, vector<256x512xf32>
    %cst_116 = arith.constant dense<0.000000e+00> : vector<8x512xf32>
    %434 = tpu.matmul %432, %433, %cst_116 {dimension_numbers = #tpu.dot_dimension_numbers<[1], [0], [0], [1], [0, 0, 1, 1], [], []>} : vector<8x256xf32>, vector<256x512xf32>, vector<8x512xf32> -> vector<8x512xf32>
    %c0_117 = arith.constant 0 : index
    %c0_118 = arith.constant 0 : index
    %435 = vector.load %arg7[%c0_117, %c0_118] : memref<1x512xf32, #tpu.memory_space<vmem>>, vector<1x512xf32>
    %436 = vector.broadcast %435 : vector<1x512xf32> to vector<8x512xf32>
    %437 = arith.addf %434, %436 : vector<8x512xf32>
    %438 = vector.extract_strided_slice %437 {offsets = [0, 0], sizes = [8, 128], strides = [1, 1]} : vector<8x512xf32> to vector<8x128xf32>
    %439 = arith.negf %438 : vector<8x128xf32>
    %440 = math.exp %439 : vector<8x128xf32>
    %cst_119 = arith.constant 1.000000e+00 : f32
    %441 = vector.broadcast %cst_119 : f32 to vector<8x128xf32>
    %442 = arith.addf %441, %440 : vector<8x128xf32>
    %443 = arith.divf %441, %442 : vector<8x128xf32>
    %444 = vector.extract_strided_slice %437 {offsets = [0, 128], sizes = [8, 128], strides = [1, 1]} : vector<8x512xf32> to vector<8x128xf32>
    %445 = arith.negf %444 : vector<8x128xf32>
    %446 = math.exp %445 : vector<8x128xf32>
    %cst_120 = arith.constant 1.000000e+00 : f32
    %447 = vector.broadcast %cst_120 : f32 to vector<8x128xf32>
    %448 = arith.addf %447, %446 : vector<8x128xf32>
    %449 = arith.divf %447, %448 : vector<8x128xf32>
    %450 = vector.extract_strided_slice %437 {offsets = [0, 256], sizes = [8, 128], strides = [1, 1]} : vector<8x512xf32> to vector<8x128xf32>
    %451 = math.tanh %450 : vector<8x128xf32>
    %452 = vector.extract_strided_slice %437 {offsets = [0, 384], sizes = [8, 128], strides = [1, 1]} : vector<8x512xf32> to vector<8x128xf32>
    %453 = arith.negf %452 : vector<8x128xf32>
    %454 = math.exp %453 : vector<8x128xf32>
    %cst_121 = arith.constant 1.000000e+00 : f32
    %455 = vector.broadcast %cst_121 : f32 to vector<8x128xf32>
    %456 = arith.addf %455, %454 : vector<8x128xf32>
    %457 = arith.divf %455, %456 : vector<8x128xf32>
    %458 = arith.mulf %449, %369 : vector<8x128xf32>
    %459 = arith.mulf %443, %451 : vector<8x128xf32>
    %460 = arith.addf %458, %459 : vector<8x128xf32>
    %461 = math.tanh %460 : vector<8x128xf32>
    %462 = arith.mulf %457, %461 : vector<8x128xf32>
    %c0_122 = arith.constant 0 : index
    %c0_123 = arith.constant 0 : index
    %463 = vector.load %arg3[%c0_122, %c0_123] : memref<128x512xf32, #tpu.memory_space<vmem>>, vector<128x512xf32>
    %cst_124 = arith.constant dense<0.000000e+00> : vector<8x512xf32>
    %464 = tpu.matmul %400, %463, %cst_124 {dimension_numbers = #tpu.dot_dimension_numbers<[1], [0], [0], [1], [0, 0, 1, 1], [], []>} : vector<8x128xf32>, vector<128x512xf32>, vector<8x512xf32> -> vector<8x512xf32>
    %c48 = arith.constant 48 : index
    %c0_125 = arith.constant 0 : index
    %465 = vector.load %arg11[%c48, %c0_125] : memref<64x512xf32, #tpu.memory_space<vmem>>, vector<8x512xf32>
    %466 = arith.addf %464, %465 : vector<8x512xf32>
    %467 = vector.extract_strided_slice %466 {offsets = [0, 0], sizes = [8, 128], strides = [1, 1]} : vector<8x512xf32> to vector<8x128xf32>
    %468 = arith.negf %467 : vector<8x128xf32>
    %469 = math.exp %468 : vector<8x128xf32>
    %cst_126 = arith.constant 1.000000e+00 : f32
    %470 = vector.broadcast %cst_126 : f32 to vector<8x128xf32>
    %471 = arith.addf %470, %469 : vector<8x128xf32>
    %472 = arith.divf %470, %471 : vector<8x128xf32>
    %473 = vector.extract_strided_slice %466 {offsets = [0, 128], sizes = [8, 128], strides = [1, 1]} : vector<8x512xf32> to vector<8x128xf32>
    %474 = arith.negf %473 : vector<8x128xf32>
    %475 = math.exp %474 : vector<8x128xf32>
    %cst_127 = arith.constant 1.000000e+00 : f32
    %476 = vector.broadcast %cst_127 : f32 to vector<8x128xf32>
    %477 = arith.addf %476, %475 : vector<8x128xf32>
    %478 = arith.divf %476, %477 : vector<8x128xf32>
    %479 = vector.extract_strided_slice %466 {offsets = [0, 256], sizes = [8, 128], strides = [1, 1]} : vector<8x512xf32> to vector<8x128xf32>
    %480 = math.tanh %479 : vector<8x128xf32>
    %481 = vector.extract_strided_slice %466 {offsets = [0, 384], sizes = [8, 128], strides = [1, 1]} : vector<8x512xf32> to vector<8x128xf32>
    %482 = arith.negf %481 : vector<8x128xf32>
    %483 = math.exp %482 : vector<8x128xf32>
    %cst_128 = arith.constant 1.000000e+00 : f32
    %484 = vector.broadcast %cst_128 : f32 to vector<8x128xf32>
    %485 = arith.addf %484, %483 : vector<8x128xf32>
    %486 = arith.divf %484, %485 : vector<8x128xf32>
    %487 = arith.mulf %478, %398 : vector<8x128xf32>
    %488 = arith.mulf %472, %480 : vector<8x128xf32>
    %489 = arith.addf %487, %488 : vector<8x128xf32>
    %490 = math.tanh %489 : vector<8x128xf32>
    %491 = arith.mulf %486, %490 : vector<8x128xf32>
    %492 = tpu.concatenate %400, %431 in 1 : vector<8x128xf32>, vector<8x128xf32> -> vector<8x256xf32>
    %c0_129 = arith.constant 0 : index
    %c0_130 = arith.constant 0 : index
    %493 = vector.load %arg4[%c0_129, %c0_130] : memref<256x512xf32, #tpu.memory_space<vmem>>, vector<256x512xf32>
    %cst_131 = arith.constant dense<0.000000e+00> : vector<8x512xf32>
    %494 = tpu.matmul %492, %493, %cst_131 {dimension_numbers = #tpu.dot_dimension_numbers<[1], [0], [0], [1], [0, 0, 1, 1], [], []>} : vector<8x256xf32>, vector<256x512xf32>, vector<8x512xf32> -> vector<8x512xf32>
    %c0_132 = arith.constant 0 : index
    %c0_133 = arith.constant 0 : index
    %495 = vector.load %arg5[%c0_132, %c0_133] : memref<1x512xf32, #tpu.memory_space<vmem>>, vector<1x512xf32>
    %496 = vector.broadcast %495 : vector<1x512xf32> to vector<8x512xf32>
    %497 = arith.addf %494, %496 : vector<8x512xf32>
    %498 = vector.extract_strided_slice %497 {offsets = [0, 0], sizes = [8, 128], strides = [1, 1]} : vector<8x512xf32> to vector<8x128xf32>
    %499 = arith.negf %498 : vector<8x128xf32>
    %500 = math.exp %499 : vector<8x128xf32>
    %cst_134 = arith.constant 1.000000e+00 : f32
    %501 = vector.broadcast %cst_134 : f32 to vector<8x128xf32>
    %502 = arith.addf %501, %500 : vector<8x128xf32>
    %503 = arith.divf %501, %502 : vector<8x128xf32>
    %504 = vector.extract_strided_slice %497 {offsets = [0, 128], sizes = [8, 128], strides = [1, 1]} : vector<8x512xf32> to vector<8x128xf32>
    %505 = arith.negf %504 : vector<8x128xf32>
    %506 = math.exp %505 : vector<8x128xf32>
    %cst_135 = arith.constant 1.000000e+00 : f32
    %507 = vector.broadcast %cst_135 : f32 to vector<8x128xf32>
    %508 = arith.addf %507, %506 : vector<8x128xf32>
    %509 = arith.divf %507, %508 : vector<8x128xf32>
    %510 = vector.extract_strided_slice %497 {offsets = [0, 256], sizes = [8, 128], strides = [1, 1]} : vector<8x512xf32> to vector<8x128xf32>
    %511 = math.tanh %510 : vector<8x128xf32>
    %512 = vector.extract_strided_slice %497 {offsets = [0, 384], sizes = [8, 128], strides = [1, 1]} : vector<8x512xf32> to vector<8x128xf32>
    %513 = arith.negf %512 : vector<8x128xf32>
    %514 = math.exp %513 : vector<8x128xf32>
    %cst_136 = arith.constant 1.000000e+00 : f32
    %515 = vector.broadcast %cst_136 : f32 to vector<8x128xf32>
    %516 = arith.addf %515, %514 : vector<8x128xf32>
    %517 = arith.divf %515, %516 : vector<8x128xf32>
    %518 = arith.mulf %509, %429 : vector<8x128xf32>
    %519 = arith.mulf %503, %511 : vector<8x128xf32>
    %520 = arith.addf %518, %519 : vector<8x128xf32>
    %521 = math.tanh %520 : vector<8x128xf32>
    %522 = arith.mulf %517, %521 : vector<8x128xf32>
    %523 = tpu.concatenate %431, %462 in 1 : vector<8x128xf32>, vector<8x128xf32> -> vector<8x256xf32>
    %c0_137 = arith.constant 0 : index
    %c0_138 = arith.constant 0 : index
    %524 = vector.load %arg6[%c0_137, %c0_138] : memref<256x512xf32, #tpu.memory_space<vmem>>, vector<256x512xf32>
    %cst_139 = arith.constant dense<0.000000e+00> : vector<8x512xf32>
    %525 = tpu.matmul %523, %524, %cst_139 {dimension_numbers = #tpu.dot_dimension_numbers<[1], [0], [0], [1], [0, 0, 1, 1], [], []>} : vector<8x256xf32>, vector<256x512xf32>, vector<8x512xf32> -> vector<8x512xf32>
    %c0_140 = arith.constant 0 : index
    %c0_141 = arith.constant 0 : index
    %526 = vector.load %arg7[%c0_140, %c0_141] : memref<1x512xf32, #tpu.memory_space<vmem>>, vector<1x512xf32>
    %527 = vector.broadcast %526 : vector<1x512xf32> to vector<8x512xf32>
    %528 = arith.addf %525, %527 : vector<8x512xf32>
    %529 = vector.extract_strided_slice %528 {offsets = [0, 0], sizes = [8, 128], strides = [1, 1]} : vector<8x512xf32> to vector<8x128xf32>
    %530 = arith.negf %529 : vector<8x128xf32>
    %531 = math.exp %530 : vector<8x128xf32>
    %cst_142 = arith.constant 1.000000e+00 : f32
    %532 = vector.broadcast %cst_142 : f32 to vector<8x128xf32>
    %533 = arith.addf %532, %531 : vector<8x128xf32>
    %534 = arith.divf %532, %533 : vector<8x128xf32>
    %535 = vector.extract_strided_slice %528 {offsets = [0, 128], sizes = [8, 128], strides = [1, 1]} : vector<8x512xf32> to vector<8x128xf32>
    %536 = arith.negf %535 : vector<8x128xf32>
    %537 = math.exp %536 : vector<8x128xf32>
    %cst_143 = arith.constant 1.000000e+00 : f32
    %538 = vector.broadcast %cst_143 : f32 to vector<8x128xf32>
    %539 = arith.addf %538, %537 : vector<8x128xf32>
    %540 = arith.divf %538, %539 : vector<8x128xf32>
    %541 = vector.extract_strided_slice %528 {offsets = [0, 256], sizes = [8, 128], strides = [1, 1]} : vector<8x512xf32> to vector<8x128xf32>
    %542 = math.tanh %541 : vector<8x128xf32>
    %543 = vector.extract_strided_slice %528 {offsets = [0, 384], sizes = [8, 128], strides = [1, 1]} : vector<8x512xf32> to vector<8x128xf32>
    %544 = arith.negf %543 : vector<8x128xf32>
    %545 = math.exp %544 : vector<8x128xf32>
    %cst_144 = arith.constant 1.000000e+00 : f32
    %546 = vector.broadcast %cst_144 : f32 to vector<8x128xf32>
    %547 = arith.addf %546, %545 : vector<8x128xf32>
    %548 = arith.divf %546, %547 : vector<8x128xf32>
    %549 = arith.mulf %540, %460 : vector<8x128xf32>
    %550 = arith.mulf %534, %542 : vector<8x128xf32>
    %551 = arith.addf %549, %550 : vector<8x128xf32>
    %552 = math.tanh %551 : vector<8x128xf32>
    %553 = arith.mulf %548, %552 : vector<8x128xf32>
    %c0_145 = arith.constant 0 : index
    %c0_146 = arith.constant 0 : index
    %554 = vector.load %arg3[%c0_145, %c0_146] : memref<128x512xf32, #tpu.memory_space<vmem>>, vector<128x512xf32>
    %cst_147 = arith.constant dense<0.000000e+00> : vector<8x512xf32>
    %555 = tpu.matmul %491, %554, %cst_147 {dimension_numbers = #tpu.dot_dimension_numbers<[1], [0], [0], [1], [0, 0, 1, 1], [], []>} : vector<8x128xf32>, vector<128x512xf32>, vector<8x512xf32> -> vector<8x512xf32>
    %c56 = arith.constant 56 : index
    %c0_148 = arith.constant 0 : index
    %556 = vector.load %arg11[%c56, %c0_148] : memref<64x512xf32, #tpu.memory_space<vmem>>, vector<8x512xf32>
    %557 = arith.addf %555, %556 : vector<8x512xf32>
    %558 = vector.extract_strided_slice %557 {offsets = [0, 0], sizes = [8, 128], strides = [1, 1]} : vector<8x512xf32> to vector<8x128xf32>
    %559 = arith.negf %558 : vector<8x128xf32>
    %560 = math.exp %559 : vector<8x128xf32>
    %cst_149 = arith.constant 1.000000e+00 : f32
    %561 = vector.broadcast %cst_149 : f32 to vector<8x128xf32>
    %562 = arith.addf %561, %560 : vector<8x128xf32>
    %563 = arith.divf %561, %562 : vector<8x128xf32>
    %564 = vector.extract_strided_slice %557 {offsets = [0, 128], sizes = [8, 128], strides = [1, 1]} : vector<8x512xf32> to vector<8x128xf32>
    %565 = arith.negf %564 : vector<8x128xf32>
    %566 = math.exp %565 : vector<8x128xf32>
    %cst_150 = arith.constant 1.000000e+00 : f32
    %567 = vector.broadcast %cst_150 : f32 to vector<8x128xf32>
    %568 = arith.addf %567, %566 : vector<8x128xf32>
    %569 = arith.divf %567, %568 : vector<8x128xf32>
    %570 = vector.extract_strided_slice %557 {offsets = [0, 256], sizes = [8, 128], strides = [1, 1]} : vector<8x512xf32> to vector<8x128xf32>
    %571 = math.tanh %570 : vector<8x128xf32>
    %572 = vector.extract_strided_slice %557 {offsets = [0, 384], sizes = [8, 128], strides = [1, 1]} : vector<8x512xf32> to vector<8x128xf32>
    %573 = arith.negf %572 : vector<8x128xf32>
    %574 = math.exp %573 : vector<8x128xf32>
    %cst_151 = arith.constant 1.000000e+00 : f32
    %575 = vector.broadcast %cst_151 : f32 to vector<8x128xf32>
    %576 = arith.addf %575, %574 : vector<8x128xf32>
    %577 = arith.divf %575, %576 : vector<8x128xf32>
    %578 = arith.mulf %569, %489 : vector<8x128xf32>
    %579 = arith.mulf %563, %571 : vector<8x128xf32>
    %580 = arith.addf %578, %579 : vector<8x128xf32>
    %581 = math.tanh %580 : vector<8x128xf32>
    %582 = arith.mulf %577, %581 : vector<8x128xf32>
    %583 = tpu.concatenate %491, %522 in 1 : vector<8x128xf32>, vector<8x128xf32> -> vector<8x256xf32>
    %c0_152 = arith.constant 0 : index
    %c0_153 = arith.constant 0 : index
    %584 = vector.load %arg4[%c0_152, %c0_153] : memref<256x512xf32, #tpu.memory_space<vmem>>, vector<256x512xf32>
    %cst_154 = arith.constant dense<0.000000e+00> : vector<8x512xf32>
    %585 = tpu.matmul %583, %584, %cst_154 {dimension_numbers = #tpu.dot_dimension_numbers<[1], [0], [0], [1], [0, 0, 1, 1], [], []>} : vector<8x256xf32>, vector<256x512xf32>, vector<8x512xf32> -> vector<8x512xf32>
    %c0_155 = arith.constant 0 : index
    %c0_156 = arith.constant 0 : index
    %586 = vector.load %arg5[%c0_155, %c0_156] : memref<1x512xf32, #tpu.memory_space<vmem>>, vector<1x512xf32>
    %587 = vector.broadcast %586 : vector<1x512xf32> to vector<8x512xf32>
    %588 = arith.addf %585, %587 : vector<8x512xf32>
    %589 = vector.extract_strided_slice %588 {offsets = [0, 0], sizes = [8, 128], strides = [1, 1]} : vector<8x512xf32> to vector<8x128xf32>
    %590 = arith.negf %589 : vector<8x128xf32>
    %591 = math.exp %590 : vector<8x128xf32>
    %cst_157 = arith.constant 1.000000e+00 : f32
    %592 = vector.broadcast %cst_157 : f32 to vector<8x128xf32>
    %593 = arith.addf %592, %591 : vector<8x128xf32>
    %594 = arith.divf %592, %593 : vector<8x128xf32>
    %595 = vector.extract_strided_slice %588 {offsets = [0, 128], sizes = [8, 128], strides = [1, 1]} : vector<8x512xf32> to vector<8x128xf32>
    %596 = arith.negf %595 : vector<8x128xf32>
    %597 = math.exp %596 : vector<8x128xf32>
    %cst_158 = arith.constant 1.000000e+00 : f32
    %598 = vector.broadcast %cst_158 : f32 to vector<8x128xf32>
    %599 = arith.addf %598, %597 : vector<8x128xf32>
    %600 = arith.divf %598, %599 : vector<8x128xf32>
    %601 = vector.extract_strided_slice %588 {offsets = [0, 256], sizes = [8, 128], strides = [1, 1]} : vector<8x512xf32> to vector<8x128xf32>
    %602 = math.tanh %601 : vector<8x128xf32>
    %603 = vector.extract_strided_slice %588 {offsets = [0, 384], sizes = [8, 128], strides = [1, 1]} : vector<8x512xf32> to vector<8x128xf32>
    %604 = arith.negf %603 : vector<8x128xf32>
    %605 = math.exp %604 : vector<8x128xf32>
    %cst_159 = arith.constant 1.000000e+00 : f32
    %606 = vector.broadcast %cst_159 : f32 to vector<8x128xf32>
    %607 = arith.addf %606, %605 : vector<8x128xf32>
    %608 = arith.divf %606, %607 : vector<8x128xf32>
    %609 = arith.mulf %600, %520 : vector<8x128xf32>
    %610 = arith.mulf %594, %602 : vector<8x128xf32>
    %611 = arith.addf %609, %610 : vector<8x128xf32>
    %612 = math.tanh %611 : vector<8x128xf32>
    %613 = arith.mulf %608, %612 : vector<8x128xf32>
    %614 = tpu.concatenate %522, %553 in 1 : vector<8x128xf32>, vector<8x128xf32> -> vector<8x256xf32>
    %c0_160 = arith.constant 0 : index
    %c0_161 = arith.constant 0 : index
    %615 = vector.load %arg6[%c0_160, %c0_161] : memref<256x512xf32, #tpu.memory_space<vmem>>, vector<256x512xf32>
    %cst_162 = arith.constant dense<0.000000e+00> : vector<8x512xf32>
    %616 = tpu.matmul %614, %615, %cst_162 {dimension_numbers = #tpu.dot_dimension_numbers<[1], [0], [0], [1], [0, 0, 1, 1], [], []>} : vector<8x256xf32>, vector<256x512xf32>, vector<8x512xf32> -> vector<8x512xf32>
    %c0_163 = arith.constant 0 : index
    %c0_164 = arith.constant 0 : index
    %617 = vector.load %arg7[%c0_163, %c0_164] : memref<1x512xf32, #tpu.memory_space<vmem>>, vector<1x512xf32>
    %618 = vector.broadcast %617 : vector<1x512xf32> to vector<8x512xf32>
    %619 = arith.addf %616, %618 : vector<8x512xf32>
    %620 = vector.extract_strided_slice %619 {offsets = [0, 0], sizes = [8, 128], strides = [1, 1]} : vector<8x512xf32> to vector<8x128xf32>
    %621 = arith.negf %620 : vector<8x128xf32>
    %622 = math.exp %621 : vector<8x128xf32>
    %cst_165 = arith.constant 1.000000e+00 : f32
    %623 = vector.broadcast %cst_165 : f32 to vector<8x128xf32>
    %624 = arith.addf %623, %622 : vector<8x128xf32>
    %625 = arith.divf %623, %624 : vector<8x128xf32>
    %626 = vector.extract_strided_slice %619 {offsets = [0, 128], sizes = [8, 128], strides = [1, 1]} : vector<8x512xf32> to vector<8x128xf32>
    %627 = arith.negf %626 : vector<8x128xf32>
    %628 = math.exp %627 : vector<8x128xf32>
    %cst_166 = arith.constant 1.000000e+00 : f32
    %629 = vector.broadcast %cst_166 : f32 to vector<8x128xf32>
    %630 = arith.addf %629, %628 : vector<8x128xf32>
    %631 = arith.divf %629, %630 : vector<8x128xf32>
    %632 = vector.extract_strided_slice %619 {offsets = [0, 256], sizes = [8, 128], strides = [1, 1]} : vector<8x512xf32> to vector<8x128xf32>
    %633 = math.tanh %632 : vector<8x128xf32>
    %634 = vector.extract_strided_slice %619 {offsets = [0, 384], sizes = [8, 128], strides = [1, 1]} : vector<8x512xf32> to vector<8x128xf32>
    %635 = arith.negf %634 : vector<8x128xf32>
    %636 = math.exp %635 : vector<8x128xf32>
    %cst_167 = arith.constant 1.000000e+00 : f32
    %637 = vector.broadcast %cst_167 : f32 to vector<8x128xf32>
    %638 = arith.addf %637, %636 : vector<8x128xf32>
    %639 = arith.divf %637, %638 : vector<8x128xf32>
    %640 = arith.mulf %631, %551 : vector<8x128xf32>
    %641 = arith.mulf %625, %633 : vector<8x128xf32>
    %642 = arith.addf %640, %641 : vector<8x128xf32>
    %643 = math.tanh %642 : vector<8x128xf32>
    %644 = arith.mulf %639, %643 : vector<8x128xf32>
    %645 = tpu.concatenate %582, %613 in 1 : vector<8x128xf32>, vector<8x128xf32> -> vector<8x256xf32>
    %c0_168 = arith.constant 0 : index
    %c0_169 = arith.constant 0 : index
    %646 = vector.load %arg4[%c0_168, %c0_169] : memref<256x512xf32, #tpu.memory_space<vmem>>, vector<256x512xf32>
    %cst_170 = arith.constant dense<0.000000e+00> : vector<8x512xf32>
    %647 = tpu.matmul %645, %646, %cst_170 {dimension_numbers = #tpu.dot_dimension_numbers<[1], [0], [0], [1], [0, 0, 1, 1], [], []>} : vector<8x256xf32>, vector<256x512xf32>, vector<8x512xf32> -> vector<8x512xf32>
    %c0_171 = arith.constant 0 : index
    %c0_172 = arith.constant 0 : index
    %648 = vector.load %arg5[%c0_171, %c0_172] : memref<1x512xf32, #tpu.memory_space<vmem>>, vector<1x512xf32>
    %649 = vector.broadcast %648 : vector<1x512xf32> to vector<8x512xf32>
    %650 = arith.addf %647, %649 : vector<8x512xf32>
    %651 = vector.extract_strided_slice %650 {offsets = [0, 0], sizes = [8, 128], strides = [1, 1]} : vector<8x512xf32> to vector<8x128xf32>
    %652 = arith.negf %651 : vector<8x128xf32>
    %653 = math.exp %652 : vector<8x128xf32>
    %cst_173 = arith.constant 1.000000e+00 : f32
    %654 = vector.broadcast %cst_173 : f32 to vector<8x128xf32>
    %655 = arith.addf %654, %653 : vector<8x128xf32>
    %656 = arith.divf %654, %655 : vector<8x128xf32>
    %657 = vector.extract_strided_slice %650 {offsets = [0, 128], sizes = [8, 128], strides = [1, 1]} : vector<8x512xf32> to vector<8x128xf32>
    %658 = arith.negf %657 : vector<8x128xf32>
    %659 = math.exp %658 : vector<8x128xf32>
    %cst_174 = arith.constant 1.000000e+00 : f32
    %660 = vector.broadcast %cst_174 : f32 to vector<8x128xf32>
    %661 = arith.addf %660, %659 : vector<8x128xf32>
    %662 = arith.divf %660, %661 : vector<8x128xf32>
    %663 = vector.extract_strided_slice %650 {offsets = [0, 256], sizes = [8, 128], strides = [1, 1]} : vector<8x512xf32> to vector<8x128xf32>
    %664 = math.tanh %663 : vector<8x128xf32>
    %665 = vector.extract_strided_slice %650 {offsets = [0, 384], sizes = [8, 128], strides = [1, 1]} : vector<8x512xf32> to vector<8x128xf32>
    %666 = arith.negf %665 : vector<8x128xf32>
    %667 = math.exp %666 : vector<8x128xf32>
    %cst_175 = arith.constant 1.000000e+00 : f32
    %668 = vector.broadcast %cst_175 : f32 to vector<8x128xf32>
    %669 = arith.addf %668, %667 : vector<8x128xf32>
    %670 = arith.divf %668, %669 : vector<8x128xf32>
    %671 = arith.mulf %662, %611 : vector<8x128xf32>
    %672 = arith.mulf %656, %664 : vector<8x128xf32>
    %673 = arith.addf %671, %672 : vector<8x128xf32>
    %674 = math.tanh %673 : vector<8x128xf32>
    %675 = arith.mulf %670, %674 : vector<8x128xf32>
    %676 = tpu.concatenate %613, %644 in 1 : vector<8x128xf32>, vector<8x128xf32> -> vector<8x256xf32>
    %c0_176 = arith.constant 0 : index
    %c0_177 = arith.constant 0 : index
    %677 = vector.load %arg6[%c0_176, %c0_177] : memref<256x512xf32, #tpu.memory_space<vmem>>, vector<256x512xf32>
    %cst_178 = arith.constant dense<0.000000e+00> : vector<8x512xf32>
    %678 = tpu.matmul %676, %677, %cst_178 {dimension_numbers = #tpu.dot_dimension_numbers<[1], [0], [0], [1], [0, 0, 1, 1], [], []>} : vector<8x256xf32>, vector<256x512xf32>, vector<8x512xf32> -> vector<8x512xf32>
    %c0_179 = arith.constant 0 : index
    %c0_180 = arith.constant 0 : index
    %679 = vector.load %arg7[%c0_179, %c0_180] : memref<1x512xf32, #tpu.memory_space<vmem>>, vector<1x512xf32>
    %680 = vector.broadcast %679 : vector<1x512xf32> to vector<8x512xf32>
    %681 = arith.addf %678, %680 : vector<8x512xf32>
    %682 = vector.extract_strided_slice %681 {offsets = [0, 0], sizes = [8, 128], strides = [1, 1]} : vector<8x512xf32> to vector<8x128xf32>
    %683 = arith.negf %682 : vector<8x128xf32>
    %684 = math.exp %683 : vector<8x128xf32>
    %cst_181 = arith.constant 1.000000e+00 : f32
    %685 = vector.broadcast %cst_181 : f32 to vector<8x128xf32>
    %686 = arith.addf %685, %684 : vector<8x128xf32>
    %687 = arith.divf %685, %686 : vector<8x128xf32>
    %688 = vector.extract_strided_slice %681 {offsets = [0, 128], sizes = [8, 128], strides = [1, 1]} : vector<8x512xf32> to vector<8x128xf32>
    %689 = arith.negf %688 : vector<8x128xf32>
    %690 = math.exp %689 : vector<8x128xf32>
    %cst_182 = arith.constant 1.000000e+00 : f32
    %691 = vector.broadcast %cst_182 : f32 to vector<8x128xf32>
    %692 = arith.addf %691, %690 : vector<8x128xf32>
    %693 = arith.divf %691, %692 : vector<8x128xf32>
    %694 = vector.extract_strided_slice %681 {offsets = [0, 256], sizes = [8, 128], strides = [1, 1]} : vector<8x512xf32> to vector<8x128xf32>
    %695 = math.tanh %694 : vector<8x128xf32>
    %696 = vector.extract_strided_slice %681 {offsets = [0, 384], sizes = [8, 128], strides = [1, 1]} : vector<8x512xf32> to vector<8x128xf32>
    %697 = arith.negf %696 : vector<8x128xf32>
    %698 = math.exp %697 : vector<8x128xf32>
    %cst_183 = arith.constant 1.000000e+00 : f32
    %699 = vector.broadcast %cst_183 : f32 to vector<8x128xf32>
    %700 = arith.addf %699, %698 : vector<8x128xf32>
    %701 = arith.divf %699, %700 : vector<8x128xf32>
    %702 = arith.mulf %693, %642 : vector<8x128xf32>
    %703 = arith.mulf %687, %695 : vector<8x128xf32>
    %704 = arith.addf %702, %703 : vector<8x128xf32>
    %705 = math.tanh %704 : vector<8x128xf32>
    %706 = arith.mulf %701, %705 : vector<8x128xf32>
    %707 = tpu.concatenate %675, %706 in 1 : vector<8x128xf32>, vector<8x128xf32> -> vector<8x256xf32>
    %c0_184 = arith.constant 0 : index
    %c0_185 = arith.constant 0 : index
    %708 = vector.load %arg6[%c0_184, %c0_185] : memref<256x512xf32, #tpu.memory_space<vmem>>, vector<256x512xf32>
    %cst_186 = arith.constant dense<0.000000e+00> : vector<8x512xf32>
    %709 = tpu.matmul %707, %708, %cst_186 {dimension_numbers = #tpu.dot_dimension_numbers<[1], [0], [0], [1], [0, 0, 1, 1], [], []>} : vector<8x256xf32>, vector<256x512xf32>, vector<8x512xf32> -> vector<8x512xf32>
    %c0_187 = arith.constant 0 : index
    %c0_188 = arith.constant 0 : index
    %710 = vector.load %arg7[%c0_187, %c0_188] : memref<1x512xf32, #tpu.memory_space<vmem>>, vector<1x512xf32>
    %711 = vector.broadcast %710 : vector<1x512xf32> to vector<8x512xf32>
    %712 = arith.addf %709, %711 : vector<8x512xf32>
    %713 = vector.extract_strided_slice %712 {offsets = [0, 0], sizes = [8, 128], strides = [1, 1]} : vector<8x512xf32> to vector<8x128xf32>
    %714 = arith.negf %713 : vector<8x128xf32>
    %715 = math.exp %714 : vector<8x128xf32>
    %cst_189 = arith.constant 1.000000e+00 : f32
    %716 = vector.broadcast %cst_189 : f32 to vector<8x128xf32>
    %717 = arith.addf %716, %715 : vector<8x128xf32>
    %718 = arith.divf %716, %717 : vector<8x128xf32>
    %719 = vector.extract_strided_slice %712 {offsets = [0, 128], sizes = [8, 128], strides = [1, 1]} : vector<8x512xf32> to vector<8x128xf32>
    %720 = arith.negf %719 : vector<8x128xf32>
    %721 = math.exp %720 : vector<8x128xf32>
    %cst_190 = arith.constant 1.000000e+00 : f32
    %722 = vector.broadcast %cst_190 : f32 to vector<8x128xf32>
    %723 = arith.addf %722, %721 : vector<8x128xf32>
    %724 = arith.divf %722, %723 : vector<8x128xf32>
    %725 = vector.extract_strided_slice %712 {offsets = [0, 256], sizes = [8, 128], strides = [1, 1]} : vector<8x512xf32> to vector<8x128xf32>
    %726 = math.tanh %725 : vector<8x128xf32>
    %727 = vector.extract_strided_slice %712 {offsets = [0, 384], sizes = [8, 128], strides = [1, 1]} : vector<8x512xf32> to vector<8x128xf32>
    %728 = arith.negf %727 : vector<8x128xf32>
    %729 = math.exp %728 : vector<8x128xf32>
    %cst_191 = arith.constant 1.000000e+00 : f32
    %730 = vector.broadcast %cst_191 : f32 to vector<8x128xf32>
    %731 = arith.addf %730, %729 : vector<8x128xf32>
    %732 = arith.divf %730, %731 : vector<8x128xf32>
    %733 = arith.mulf %724, %704 : vector<8x128xf32>
    %734 = arith.mulf %718, %726 : vector<8x128xf32>
    %735 = arith.addf %733, %734 : vector<8x128xf32>
    %736 = math.tanh %735 : vector<8x128xf32>
    %737 = arith.mulf %732, %736 : vector<8x128xf32>
    %c0_192 = arith.constant 0 : index
    %c0_193 = arith.constant 0 : index
    %738 = vector.load %arg8[%c0_192, %c0_193] : memref<1x128xf32, #tpu.memory_space<vmem>>, vector<1x128xf32>
    %739 = vector.broadcast %738 : vector<1x128xf32> to vector<8x128xf32>
    %740 = arith.mulf %737, %739 : vector<8x128xf32>
    %cst_194 = arith.constant dense<0.000000e+00> : vector<8xf32>
    %741 = vector.multi_reduction <add>, %740, %cst_194 [1] : vector<8x128xf32> to vector<8xf32>
    %742 = vector.shape_cast %741 : vector<8xf32> to vector<8x1xf32>
    %c0_195 = arith.constant 0 : index
    %c0_196 = arith.constant 0 : index
    %743 = vector.load %arg9[%c0_195, %c0_196] : memref<1x1xf32, #tpu.memory_space<vmem>>, vector<1x1xf32>
    %744 = vector.broadcast %743 : vector<1x1xf32> to vector<8x1xf32>
    %745 = arith.addf %742, %744 : vector<8x1xf32>
    %746 = vector.shape_cast %745 : vector<8x1xf32> to vector<8x1xf32>
    %747 = vector.broadcast %746 : vector<8x1xf32> to vector<8x128xf32>
    %c0_197 = arith.constant 0 : index
    %c0_198 = arith.constant 0 : index
    %748 = vector.load %arg10[%c0_197, %c0_198] : memref<8x128xf32, #tpu.memory_space<vmem>>, vector<8x128xf32>
    tpu.vector_store %arg10[%c0_197, %c0_198], %747 {strides = array<i32>} : memref<8x128xf32, #tpu.memory_space<vmem>>, vector<8x128xf32>,
    return
  }
}

</mosaic_0001>

<bundles_post_ra>
// kernel: lstm_net_forward.1
= control target key start
LH: loop header
LB: loop body
LE: loop exit
PB: predicated region body
PF: predicated region fallthrough
CT: control target
= control target key end

     0   :  { %s9902_s0 = inlined_call_operand.vmem [shape: f32[64,1], index: 0, kind: input, shape index: {}]   ;;  %s9903_s1 = inlined_call_operand.vmem [shape: f32[1,512], index: 1, kind: input, shape index: {}]   ;;  %s9904_s2 = inlined_call_operand.vmem [shape: f32[1,512], index: 2, kind: input, shape index: {}]   ;;  %s9905_s3 = inlined_call_operand.hbm [shape: f32[128,512], index: 3, kind: input, shape index: {}]   ;;  %s9906_s4 = inlined_call_operand.hbm [shape: f32[256,512], index: 4, kind: input, shape index: {}]   ;;  %s9907_s5 = inlined_call_operand.vmem [shape: f32[1,512], index: 5, kind: input, shape index: {}]   ;;  %s9908_s6 = inlined_call_operand.hbm [shape: f32[256,512], index: 6, kind: input, shape index: {}]   ;;  %s9909_s7 = inlined_call_operand.vmem [shape: f32[1,512], index: 7, kind: input, shape index: {}]   ;;  %s9910_s8 = inlined_call_operand.vmem [shape: f32[1,128], index: 8, kind: input, shape index: {}]   ;;  %s9911_s9 = inlined_call_operand.<no memory space> [shape: f32[1,1], index: 9, kind: input, shape index: {}]   ;;  %s9912_s10 = inlined_call_operand.vmem [shape: f32[8,128], index: 10, kind: output, shape index: {}]  }
   0x1   :  { %v15_v0 = vstv %s9911_s9 }
   0x2   :  { %16 = vst [vmem:[#allocation3] sm:$0x1] %v15_v0 }
   0x3   :  { %17 = vsyncpa [#allocation5], 0 }
   0x4   :  { %18 = vsyncpa [#allocation7], 0  ;;  %s7773_s15 = smov [#allocation6]   ;;  %s7774_s17 = smov [#allocation4]  }
   0x5   :  { %s42_s16 = sshll.u32 %s7773_s15, 4  ;;  %s30_s18 = sshll.u32 %s7774_s17, 4  ;;  %s43_s16 = int_to_ptr.vmem [resolvable:$true] %s42_s16  ;;  %s7838_s18 = int_to_ptr.vmem [resolvable:$true] %s30_s18 }
   0x6   :  { %s7703_s21 = scalar_lea.hbm %s9906_s4, 16384 }
   0x7   :  { %p7704_p0 = scmp.ne.s32.totalorder %s9906_s4, %s7703_s21  ;;  %p7707_p1 = scmp.lt.u32.totalorder %s7703_s21, %s9906_s4 }
   0x9   :  { %p7709_p2 = pnand %p7707_p1, %p7704_p0 }
   0xb   :  { %7712 = shalt.err (!%p7709_p2)
}
   0xc   :  { %s7713_s25 = scalar_lea.vmem %s43_s16, 16384  ;;  %p7718_p4 = scmp.lt.s32.totalorder %s43_s16, %s43_s16 }
   0xd   :  { %p7714_p3 = scmp.ne.s32.totalorder %s43_s16, %s7713_s25  ;;  %p7719_p5 = scmp.lt.s32.totalorder %s7713_s25, %s7713_s25 }
   0xf   :  { %p7720_p6 = por %p7719_p5, %p7718_p4 }
  0x11   :  { %p7721_p7 = pnand %p7720_p6, %p7714_p3 }
  0x13   :  { %7724 = shalt.err (!%p7721_p7)
}
  0x14   :  { %s7775_s26 = smov 512   ;;  %s7776_s27 = smov 32  }
  0x15   :  { %48 = dma.hbm_to_vmem [thread:$0]  %s9906_s4, 16384, %s43_s16, [#allocation7], %s7775_s26, %s7775_s26, %s7776_s27  }
  0x16   :  { %s7725_s12 = scalar_lea.hbm %s9905_s3, 8192 }
  0x17   :  { %p7726_p8 = scmp.ne.s32.totalorder %s9905_s3, %s7725_s12  ;;  %p7729_p9 = scmp.lt.u32.totalorder %s7725_s12, %s9905_s3 }
  0x19   :  { %p7731_p10 = pnand %p7729_p9, %p7726_p8 }
  0x1b   :  { %7734 = shalt.err (!%p7731_p10)
}
  0x1c   :  { %s7735_s19 = scalar_lea.vmem %s7838_s18, 8192  ;;  %p7740_p12 = scmp.lt.s32.totalorder %s7838_s18, %s7838_s18 }
  0x1d   :  { %p7736_p11 = scmp.ne.s32.totalorder %s7838_s18, %s7735_s19  ;;  %p7741_p13 = scmp.lt.s32.totalorder %s7735_s19, %s7735_s19 }
  0x1f   :  { %p7742_p0 = por %p7741_p13, %p7740_p12 }
  0x21   :  { %p7743_p1 = pnand %p7742_p0, %p7736_p11 }
  0x23   :  { %7746 = shalt.err (!%p7743_p1)
}
  0x24   :  { %36 = dma.hbm_to_vmem [thread:$0]  %s9905_s3, 8192, %s7838_s18, [#allocation5], %s7775_s26, %s7775_s26, %s7776_s27  }
  0x25   :  { %s7777_s20 = smov [#allocation8]   ;;  %s7747_s24 = scalar_lea.hbm %s9908_s6, 16384 }
  0x26   :  { %s56_s21 = sshll.u32 %s7777_s20, 4  ;;  %p7748_p2 = scmp.ne.s32.totalorder %s9908_s6, %s7747_s24  ;;  %s57_s21 = int_to_ptr.vmem [resolvable:$true] %s56_s21 }
  0x27   :  { %p7751_p3 = scmp.lt.u32.totalorder %s7747_s24, %s9908_s6 }
  0x29   :  { %p7753_p4 = pnand %p7751_p3, %p7748_p2 }
  0x2b   :  { %7756 = shalt.err (!%p7753_p4)
}
  0x2c   :  { %s7757_s30 = scalar_lea.vmem %s57_s21, 16384  ;;  %p7762_p6 = scmp.lt.s32.totalorder %s57_s21, %s57_s21 }
  0x2d   :  { %p7758_p5 = scmp.ne.s32.totalorder %s57_s21, %s7757_s30  ;;  %p7763_p7 = scmp.lt.s32.totalorder %s7757_s30, %s7757_s30 }
  0x2f   :  { %p7764_p8 = por %p7763_p7, %p7762_p6 }
  0x31   :  { %p7765_p9 = pnand %p7764_p8, %p7758_p5 }
  0x33   :  { %7768 = shalt.err (!%p7765_p9)
}
  0x34   :  { %62 = dma.hbm_to_vmem [thread:$0]  %s9908_s6, 16384, %s57_s21, [#allocation7], %s7775_s26, %s7775_s26, %s7776_s27  }
  0x35   :  { %7769 = dma.done.wait [#allocation5], 8192  }
  0x36   :  { %7770 = vsyncadd [#allocation5], 4294959104 }
  0x37   :  { %7771 = dma.done.wait [#allocation7], 32768  }
  0x38   :  { %7772 = vsyncadd [#allocation7], 4294934528  ;;  %v9913_v1 = vmov 0.0   ;;  %v7779_v2 = vmov 0   ;;  %v267_v3 = vld [vmem:[#allocation4 + $0x8] sm:$0xff]  ;;  %v269_v5 = vld [vmem:[#allocation4 + $0x18] sm:$0xff] }
  0x39   :  { %398 = vmatprep.mubr.f32.mxu0 %v9913_v1  ;;  %469 = vmatprep.mubr.f32.mxu1 %v9913_v1  ;;  %v271_v4 = vld [vmem:[#allocation4 + $0x28] sm:$0xff]  ;;  %v273_v7 = vld [vmem:[#allocation4 + $0x38] sm:$0xff]  ;;  %v266_v8 = vld [vmem:[#allocation4] sm:$0xff] }
  0x3a   :  { %7317 = vset.pattern.permute.xlu0 %v7779_v2  ;;  %7318 = vset.pattern.permute.xlu1 %v7779_v2  ;;  %v7892_v6 = vpack.c.bf16 %v271_v4, %v267_v3  ;;  %v270_v9 = vld [vmem:[#allocation4 + $0x20] sm:$0xff]  ;;  %v7894_v10 = vpack.c.bf16 %v273_v7, %v269_v5  ;;  %v268_v12 = vld [vmem:[#allocation4 + $0x10] sm:$0xff]  ;;  %v275_v14 = vld [vmem:[#allocation4 + $0x48] sm:$0xff] }
  0x3b   :  { %v7896_v11 = vpack.c.bf16 %v270_v9, %v266_v8  ;;  %v272_v13 = vld [vmem:[#allocation4 + $0x30] sm:$0xff]  ;;  %v279_v16 = vld [vmem:[#allocation4 + $0x68] sm:$0xff]  ;;  %v277_v17 = vld [vmem:[#allocation4 + $0x58] sm:$0xff] }
  0x3c   :  { %10327 = vst [vmem:[#allocation11_spill] sm:$0xff] %v7892_v6  ;;  %10328 = vst [vmem:[#allocation12_spill] sm:$0xff] %v7894_v10  ;;  %4751 = vmatprep.subr.bf16.mxu0 %v7892_v6  ;;  %v7899_v15 = vpack.c.bf16 %v272_v13, %v268_v12  ;;  %v281_v18 = vld [vmem:[#allocation4 + $0x78] sm:$0xff]  ;;  %4783 = vmatprep.subr.bf16.mxu1 %v7894_v10  ;;  %v7903_v19 = vpack.c.bf16 %v279_v16, %v275_v14  ;;  %v274_v21 = vld [vmem:[#allocation4 + $0x40] sm:$0xff] }
  0x3d   :  { %10329 = vst [vmem:[#allocation13_spill] sm:$0xff] %v7896_v11  ;;  %4753 = vmatpush1.bf16.msra.mxu0 %v7896_v11  ;;  %v7905_v20 = vpack.c.bf16 %v281_v18, %v277_v17  ;;  %v278_v22 = vld [vmem:[#allocation4 + $0x60] sm:$0xff]  ;;  %v276_v23 = vld [vmem:[#allocation4 + $0x50] sm:$0xff]  ;;  %v283_v26 = vld [vmem:[#allocation4 + $0x88] sm:$0xff] }
  0x3e   :  { %10330 = vst [vmem:[#allocation14_spill] sm:$0xff] %v7899_v15  ;;  %10331 = vst [vmem:[#allocation15_spill] sm:$0xff] %v7903_v19  ;;  %4785 = vmatpush1.bf16.msra.mxu1 %v7899_v15  ;;  %v7908_v24 = vpack.c.bf16 %v278_v22, %v274_v21  ;;  %v280_v25 = vld [vmem:[#allocation4 + $0x70] sm:$0xff]  ;;  %v287_v27 = vld [vmem:[#allocation4 + $0xa8] sm:$0xff]  ;;  %4755 = vmatprep.subr.bf16.mxu0 %v7903_v19 }
  0x3f   :  { %10332 = vst [vmem:[#allocation16_spill] sm:$0xff] %v7905_v20  ;;  %4787 = vmatprep.subr.bf16.mxu1 %v7905_v20  ;;  %v7912_v28 = vpack.c.bf16 %v280_v25, %v276_v23  ;;  %v7914_v29 = vpack.c.bf16 %v287_v27, %v283_v26  ;;  %v285_v30 = vld [vmem:[#allocation4 + $0x98] sm:$0xff]  ;;  %v282_v32 = vld [vmem:[#allocation4 + $0x80] sm:$0xff]  ;;  %v284_v35 = vld [vmem:[#allocation4 + $0x90] sm:$0xff] }
  0x40   :  { %10333 = vst [vmem:[#allocation17_spill] sm:$0xff] %v7908_v24  ;;  %v289_v31 = vld [vmem:[#allocation4 + $0xb8] sm:$0xff]  ;;  %v286_v34 = vld [vmem:[#allocation4 + $0xa0] sm:$0xff]  ;;  %v288_v36 = vld [vmem:[#allocation4 + $0xb0] sm:$0xff] }
  0x41   :  { %10334 = vst [vmem:[#allocation18_spill] sm:$0xff] %v7912_v28  ;;  %10335 = vst [vmem:[#allocation19_spill] sm:$0xff] %v7914_v29  ;;  %v7916_v33 = vpack.c.bf16 %v289_v31, %v285_v30  ;;  %4757 = vmatpush1.bf16.msra.mxu0 %v7908_v24  ;;  %v7919_v37 = vpack.c.bf16 %v286_v34, %v282_v32  ;;  %v291_v38 = vld [vmem:[#allocation4 + $0xc8] sm:$0xff]  ;;  %v293_v40 = vld [vmem:[#allocation4 + $0xd8] sm:$0xff]  ;;  %v7923_v41 = vpack.c.bf16 %v288_v36, %v284_v35 }
  0x42   :  { %v295_v39 = vld [vmem:[#allocation4 + $0xe8] sm:$0xff]  ;;  %4789 = vmatpush1.bf16.msra.mxu1 %v7912_v28  ;;  %4759 = vmatprep.subr.bf16.mxu0 %v7914_v29  ;;  %v297_v43 = vld [vmem:[#allocation4 + $0xf8] sm:$0xff]  ;;  %v290_v44 = vld [vmem:[#allocation4 + $0xc0] sm:$0xff] }
  0x43   :  { %10336 = vst [vmem:[#allocation20_spill] sm:$0xff] %v7916_v33  ;;  %10337 = vst [vmem:[#allocation21_spill] sm:$0xff] %v7919_v37  ;;  %v7925_v42 = vpack.c.bf16 %v295_v39, %v291_v38  ;;  %v294_v45 = vld [vmem:[#allocation4 + $0xe0] sm:$0xff]  ;;  %4791 = vmatprep.subr.bf16.mxu1 %v7916_v33  ;;  %v7928_v46 = vpack.c.bf16 %v297_v43, %v293_v40  ;;  %v292_v47 = vld [vmem:[#allocation4 + $0xd0] sm:$0xff] }
  0x44   :  { %10338 = vst [vmem:[#allocation22_spill] sm:$0xff] %v7923_v41  ;;  %v296_v48 = vld [vmem:[#allocation4 + $0xf0] sm:$0xff]  ;;  %v299_v49 = vld [vmem:[#allocation4 + $0x108] sm:$0xff]  ;;  %v301_v51 = vld [vmem:[#allocation4 + $0x118] sm:$0xff]  ;;  %v7931_v53 = vpack.c.bf16 %v294_v45, %v290_v44 }
  0x45   :  { %10339 = vst [vmem:[#allocation23_spill] sm:$0xff] %v7925_v42  ;;  %10340 = vst [vmem:[#allocation24_spill] sm:$0xff] %v7928_v46  ;;  %v303_v50 = vld [vmem:[#allocation4 + $0x128] sm:$0xff]  ;;  %v305_v52 = vld [vmem:[#allocation4 + $0x138] sm:$0xff]  ;;  %4761 = vmatpush1.bf16.msra.mxu0 %v7919_v37  ;;  %v7935_v54 = vpack.c.bf16 %v296_v48, %v292_v47 }
  0x46   :  { %10341 = vst [vmem:[#allocation25_spill] sm:$0xff] %v7931_v53  ;;  %4793 = vmatpush1.bf16.msra.mxu1 %v7923_v41  ;;  %4763 = vmatprep.subr.bf16.mxu0 %v7925_v42  ;;  %v7937_v55 = vpack.c.bf16 %v303_v50, %v299_v49  ;;  %v298_v56 = vld [vmem:[#allocation4 + $0x100] sm:$0xff]  ;;  %v300_v58 = vld [vmem:[#allocation4 + $0x110] sm:$0xff]  ;;  %v7940_v59 = vpack.c.bf16 %v305_v52, %v301_v51  ;;  %v307_v61 = vld [vmem:[#allocation4 + $0x148] sm:$0xff] }
  0x47   :  { %10342 = vst [vmem:[#allocation26_spill] sm:$0xff] %v7935_v54  ;;  %v302_v57 = vld [vmem:[#allocation4 + $0x120] sm:$0xff]  ;;  %4795 = vmatprep.subr.bf16.mxu1 %v7928_v46  ;;  %v304_v60 = vld [vmem:[#allocation4 + $0x130] sm:$0xff]  ;;  %v311_v62 = vld [vmem:[#allocation4 + $0x168] sm:$0xff] }
  0x48   :  { %10343 = vst [vmem:[#allocation27_spill] sm:$0xff] %v7937_v55  ;;  %10344 = vst [vmem:[#allocation28_spill] sm:$0xff] %v7940_v59  ;;  %v309_v63 = vld [vmem:[#allocation4 + $0x158] sm:$0xff]  ;;  %v7943_v2 = vpack.c.bf16 %v302_v57, %v298_v56  ;;  %v7947_v3 = vpack.c.bf16 %v304_v60, %v300_v58  ;;  %v7949_v4 = vpack.c.bf16 %v311_v62, %v307_v61  ;;  %v306_v5 = vld [vmem:[#allocation4 + $0x140] sm:$0xff] }
  0x49   :  { %v313_v0 = vld [vmem:[#allocation4 + $0x178] sm:$0xff]  ;;  %4765 = vmatpush1.bf16.msra.mxu0 %v7931_v53  ;;  %v310_v7 = vld [vmem:[#allocation4 + $0x160] sm:$0xff]  ;;  %v308_v8 = vld [vmem:[#allocation4 + $0x150] sm:$0xff] }
  0x4a   :  { %10345 = vst [vmem:[#allocation29_spill] sm:$0xff] %v7943_v2  ;;  %4797 = vmatpush1.bf16.msra.mxu1 %v7935_v54  ;;  %4767 = vmatprep.subr.bf16.mxu0 %v7937_v55  ;;  %10346 = vst [vmem:[#allocation30_spill] sm:$0xff] %v7947_v3  ;;  %v7952_v9 = vpack.c.bf16 %v313_v0, %v309_v63  ;;  %v312_v12 = vld [vmem:[#allocation4 + $0x170] sm:$0xff]  ;;  %v315_v13 = vld [vmem:[#allocation4 + $0x188] sm:$0xff]  ;;  %v7955_v18 = vpack.c.bf16 %v310_v7, %v306_v5  ;;  %v128_v0 = vlaneseq }
  0x4b   :  { %10347 = vst [vmem:[#allocation31_spill] sm:$0xff] %v7949_v4  ;;  %4799 = vmatprep.subr.bf16.mxu1 %v7940_v59  ;;  %v319_v14 = vld [vmem:[#allocation4 + $0x1a8] sm:$0xff]  ;;  %v317_v16 = vld [vmem:[#allocation4 + $0x198] sm:$0xff]  ;;  %v314_v21 = vld [vmem:[#allocation4 + $0x180] sm:$0xff]  ;;  %v7959_v22 = vpack.c.bf16 %v312_v12, %v308_v8 }
  0x4c   :  { %10348 = vst [vmem:[#allocation32_spill] sm:$0xff] %v7952_v9  ;;  %v321_v17 = vld [vmem:[#allocation4 + $0x1b8] sm:$0xff]  ;;  %10349 = vst [vmem:[#allocation33_spill] sm:$0xff] %v7955_v18  ;;  %v7961_v23 = vpack.c.bf16 %v319_v14, %v315_v13  ;;  %v318_v25 = vld [vmem:[#allocation4 + $0x1a0] sm:$0xff]  ;;  %v129_v5 = vshrl.u32 %v128_v0, 7 }
  0x4d   :  { %4769 = vmatpush1.bf16.msra.mxu0 %v7943_v2  ;;  %10350 = vst [vmem:[#allocation34_spill] sm:$0xff] %v7959_v22  ;;  %v316_v26 = vld [vmem:[#allocation4 + $0x190] sm:$0xff]  ;;  %v78_v27 = vld [vmem:[%s9902_s0] sm:$0xff]  ;;  %v7967_v30 = vpack.c.bf16 %v321_v17, %v317_v16  ;;  %v323_v32 = vld [vmem:[#allocation4 + $0x1c8] sm:$0xff]  ;;  %v7973_v39 = vpack.c.bf16 %v318_v25, %v314_v21 }
  0x4e   :  { %4801 = vmatpush1.bf16.msra.mxu1 %v7947_v3  ;;  %4771 = vmatprep.subr.bf16.mxu0 %v7949_v4  ;;  %10351 = vst [vmem:[#allocation35_spill] sm:$0xff] %v7961_v23  ;;  %v320_v31 = vld [vmem:[#allocation4 + $0x1b0] sm:$0xff]  ;;  %v327_v34 = vld [vmem:[#allocation4 + $0x1e8] sm:$0xff]  ;;  %v325_v35 = vld [vmem:[#allocation4 + $0x1d8] sm:$0xff]  ;;  %v8042_v7 = vsub.s32 0, %v129_v5  ;;  %v8047_v12 = vsub.s32 1, %v129_v5 }
  0x4f   :  { %4803 = vmatprep.subr.bf16.mxu1 %v7952_v9  ;;  %10352 = vst [vmem:[#allocation36_spill] sm:$0xff] %v7967_v30  ;;  %89 = vperm.xlu0 %7317, %v78_v27   ;;  %v329_v36 = vld [vmem:[#allocation4 + $0x1f8] sm:$0xff]  ;;  %v79_v38 = vld [vmem:[%s9902_s0 + $0x8] sm:$0xff]  ;;  %10353 = vst [vmem:[#allocation37_spill] sm:$0xff] %v7973_v39  ;;  %v7977_v40 = vpack.c.bf16 %v320_v31, %v316_v26  ;;  %v7979_v43 = vpack.c.bf16 %v327_v34, %v323_v32  ;;  %v8058_v21 = vsub.s32 3, %v129_v5 }
  0x50   :  { %v322_v44 = vld [vmem:[#allocation4 + $0x1c0] sm:$0xff]  ;;  %v7982_v47 = vpack.c.bf16 %v329_v36, %v325_v35  ;;  %v324_v48 = vld [vmem:[#allocation4 + $0x1d0] sm:$0xff]  ;;  %v671_v57 = vld [vmem:[#allocation6 + $0x8] sm:$0xff]  ;;  %10361 = vst [vmem:[#allocation45_spill] sm:$0xff] %v8042_v7  ;;  %v8072_v35 = vsub.s32 2, %v129_v5 }
  0x51   :  { %4773 = vmatpush1.bf16.msra.mxu0 %v7955_v18  ;;  %10354 = vst [vmem:[#allocation38_spill] sm:$0xff] %v7977_v40  ;;  %10355 = vst [vmem:[#allocation39_spill] sm:$0xff] %v7979_v43  ;;  %v326_v45 = vld [vmem:[#allocation4 + $0x1e0] sm:$0xff]  ;;  %v328_v49 = vld [vmem:[#allocation4 + $0x1f0] sm:$0xff] }
  0x52   :  { %4805 = vmatpush1.bf16.msra.mxu1 %v7959_v22  ;;  %4775 = vmatprep.subr.bf16.mxu0 %v7961_v23  ;;  %10356 = vst [vmem:[#allocation40_spill] sm:$0xff] %v7982_v47  ;;  %v82_v50 = vld [vmem:[%s9902_s0 + $0x20] sm:$0xff]  ;;  %v7988_v51 = vpack.c.bf16 %v326_v45, %v322_v44  ;;  %v7992_v52 = vpack.c.bf16 %v328_v49, %v324_v48  ;;  %v84_v56 = vld [vmem:[%s9902_s0 + $0x30] sm:$0xff]  ;;  %10362 = vst [vmem:[#allocation46_spill] sm:$0xff] %v8047_v12 }
  0x53   :  { %4807 = vmatprep.subr.bf16.mxu1 %v7967_v30  ;;  %94 = vperm.xlu0 %7317, %v79_v38   ;;  %v675_v58 = vld [vmem:[#allocation6 + $0x28] sm:$0xff]  ;;  %v673_v60 = vld [vmem:[#allocation6 + $0x18] sm:$0xff]  ;;  %10365 = vst [vmem:[#allocation49_spill] sm:$0xff] %v8058_v21  ;;  %10369 = vst [vmem:[#allocation53_spill] sm:$0xff] %v8072_v35 }
  0x54   :  { %10357 = vst [vmem:[#allocation41_spill] sm:$0xff] %v7988_v51  ;;  %10358 = vst [vmem:[#allocation42_spill] sm:$0xff] %v7992_v52  ;;  %v8036_v61 = vpack.c.bf16 %v675_v58, %v671_v57  ;;  %v677_v62 = vld [vmem:[#allocation6 + $0x38] sm:$0xff] }
  0x55   :  { %4777 = vmatpush1.bf16.msra.mxu0 %v7973_v39  ;;  %v8038_v63 = vpack.c.bf16 %v677_v62, %v673_v60  ;;  %v86_v8 = vld [vmem:[%s9903_s1] sm:$0xf] }
  0x56   :  { %4809 = vmatpush1.bf16.msra.mxu1 %v7977_v40  ;;  %4779 = vmatprep.subr.bf16.mxu0 %v7979_v43  ;;  %10359 = vst [vmem:[#allocation43_spill] sm:$0xff] %v8036_v61  ;;  %v8050_v13 = vrot.slane %v86_v8, %v8042_v7  ;;  %v180_v14 = vld [vmem:[%s9904_s2] sm:$0xf]  ;;  %v8056_v16 = vrot.slane %v86_v8, %v8047_v12 }
  0x57   :  { %4811 = vmatprep.subr.bf16.mxu1 %v7982_v47  ;;  %109 = vperm.xlu0 %7317, %v82_v50   ;;  %10360 = vst [vmem:[#allocation44_spill] sm:$0xff] %v8038_v63  ;;  %v8062_v26 = vrot.slane %v180_v14, %v8042_v7  ;;  %v8066_v31 = vrot.slane %v180_v14, %v8047_v12  ;;  %v687_v12 = vld [vmem:[#allocation6 + $0x88] sm:$0xff] }
  0x58   :  { %10363 = vst [vmem:[#allocation47_spill] sm:$0xff] %v8050_v13  ;;  %10364 = vst [vmem:[#allocation48_spill] sm:$0xff] %v8056_v16  ;;  %v8069_v32 = vrot.slane %v86_v8, %v8058_v21  ;;  %v8077_v45 = vrot.slane %v180_v14, %v8058_v21  ;;  %v8080_v49 = vrot.slane %v86_v8, %v8072_v35  ;;  %v691_v7 = vld [vmem:[#allocation6 + $0xa8] sm:$0xff] }
  0x59   :  { %4781 = vmatpush1.bf16.msra.mxu0 %v7988_v51  ;;  %10366 = vst [vmem:[#allocation50_spill] sm:$0xff] %v8062_v26  ;;  %10367 = vst [vmem:[#allocation51_spill] sm:$0xff] %v8066_v31 }
  0x5a   :  { %4813 = vmatpush1.bf16.msra.mxu1 %v7992_v52  ;;  %4815 = vmatprep.subr.bf16.mxu0 %v7892_v6  ;;  %10368 = vst [vmem:[#allocation52_spill] sm:$0xff] %v8069_v32  ;;  %10370 = vst [vmem:[#allocation54_spill] sm:$0xff] %v8077_v45 }
  0x5b   :  { %119 = vperm.xlu0 %7317, %v84_v56   ;;  %4847 = vmatprep.subr.bf16.mxu1 %v7894_v10  ;;  %10371 = vst [vmem:[#allocation55_spill] sm:$0xff] %v8080_v49 }
  0x5c   :  { %399 = vmatmul.mubr.f32.vlgmr.msra.gmra.mrb[0].mxu0 %v9913_v1 }
  0x5d   :  { %470 = vmatmul.mubr.f32.vlgmr.msra.gmra.mrb[0].mxu1 %v9913_v1  ;;  %4817 = vmatpush1.bf16.msra.mxu0 %v7896_v11 }
  0x5e   :  { %4849 = vmatpush1.bf16.msra.mxu1 %v7899_v15  ;;  %4819 = vmatprep.subr.bf16.mxu0 %v7903_v19 }
  0x5f   :  { %4851 = vmatprep.subr.bf16.mxu1 %v7905_v20  ;;  %568 = vmatprep.mubr.f32.mxu0 %v9913_v1 }
  0x60   :  { %639 = vmatprep.mubr.f32.mxu1 %v9913_v1 }
  0x61   :  { %4821 = vmatpush1.bf16.msra.mxu0 %v7908_v24 }
  0x62   :  { %4853 = vmatpush1.bf16.msra.mxu1 %v7912_v28  ;;  %4823 = vmatprep.subr.bf16.mxu0 %v7914_v29 }
  0x63   :  { %4855 = vmatprep.subr.bf16.mxu1 %v7916_v33 }
  0x65   :  { %4825 = vmatpush1.bf16.msra.mxu0 %v7919_v37 }
  0x66   :  { %4857 = vmatpush1.bf16.msra.mxu1 %v7923_v41  ;;  %4827 = vmatprep.subr.bf16.mxu0 %v7925_v42 }
  0x67   :  { %4859 = vmatprep.subr.bf16.mxu1 %v7928_v46 }
  0x69   :  { %4829 = vmatpush1.bf16.msra.mxu0 %v7931_v53 }
  0x6a   :  { %4861 = vmatpush1.bf16.msra.mxu1 %v7935_v54  ;;  %4831 = vmatprep.subr.bf16.mxu0 %v7937_v55 }
  0x6b   :  { %4863 = vmatprep.subr.bf16.mxu1 %v7940_v59 }
  0x6d   :  { %4833 = vmatpush1.bf16.msra.mxu0 %v7943_v2 }
  0x6e   :  { %4865 = vmatpush1.bf16.msra.mxu1 %v7947_v3  ;;  %4835 = vmatprep.subr.bf16.mxu0 %v7949_v4 }
  0x6f   :  { %4867 = vmatprep.subr.bf16.mxu1 %v7952_v9 }
  0x71   :  { %4837 = vmatpush1.bf16.msra.mxu0 %v7955_v18 }
  0x72   :  { %4869 = vmatpush1.bf16.msra.mxu1 %v7959_v22  ;;  %4839 = vmatprep.subr.bf16.mxu0 %v7961_v23 }
  0x73   :  { %4871 = vmatprep.subr.bf16.mxu1 %v7967_v30 }
  0x75   :  { %4841 = vmatpush1.bf16.msra.mxu0 %v7973_v39 }
  0x76   :  { %4873 = vmatpush1.bf16.msra.mxu1 %v7977_v40  ;;  %4843 = vmatprep.subr.bf16.mxu0 %v7979_v43 }
  0x77   :  { %4875 = vmatprep.subr.bf16.mxu1 %v7982_v47 }
  0x79   :  { %4845 = vmatpush1.bf16.msra.mxu0 %v7988_v51 }
  0x7a   :  { %4877 = vmatpush1.bf16.msra.mxu1 %v7992_v52  ;;  %4879 = vmatprep.subr.bf16.mxu0 %v8036_v61 }
  0x7b   :  { %4943 = vmatprep.subr.bf16.mxu1 %v8038_v63 }
  0xce   :  { %v90_v17 = vpop.permute.xlu0 %89 }
  0xcf   :  { %v148_v25 = vmul.f32 %v8050_v13, %v90_v17  ;;  %v149_v27 = vmul.f32 %v8056_v16, %v90_v17  ;;  %v151_v44 = vmul.f32 %v8069_v32, %v90_v17  ;;  %v150_v5 = vmul.f32 %v8080_v49, %v90_v17  ;;  %v705_v49 = vld [vmem:[#allocation6 + $0x118] sm:$0xff] }
  0xd1   :  { %v202_v34 = vadd.f32 %v8062_v26, %v148_v25  ;;  %v203_v36 = vadd.f32 %v8066_v31, %v149_v27  ;;  %v205_v0 = vadd.f32 %v8077_v45, %v151_v44  ;;  %v8085_v25 = vrot.slane %v180_v14, %v8072_v35  ;;  %v684_v35 = vld [vmem:[#allocation6 + $0x70] sm:$0xff] }
  0xd3   :  { %10372 = vst [vmem:[#allocation56_spill] sm:$0xff] %v8085_v25 }
 0x12f   :  { %v400_v38 = vpop.f32.mrb[0].mxu0 }
 0x130   :  { %v401_v48 = vadd.f32 %v400_v38, %v202_v34  ;;  %v471_v50 = vpop.f32.mrb[0].mxu1  ;;  %v402_v56 = vpop.f32.mrb[1].mxu0  ;;  %v204_v34 = vadd.f32 %v8085_v25, %v150_v5  ;;  %v676_v5 = vld [vmem:[#allocation6 + $0x30] sm:$0xff]  ;;  %v693_v25 = vld [vmem:[#allocation6 + $0xb8] sm:$0xff] }
 0x131   :  { %v403_v57 = vadd.f32 %v402_v56, %v203_v36  ;;  %v473_v58 = vpop.f32.mrb[1].mxu1 }
 0x132   :  { %v4676_v60 = vmul.f32 -1.442695, %v401_v48  ;;  %v474_v27 = vadd.f32 %v473_v58, %v205_v0  ;;  %v472_v38 = vadd.f32 %v471_v50, %v204_v34  ;;  %v670_v50 = vld [vmem:[#allocation6] sm:$0xff]  ;;  %v681_v34 = vld [vmem:[#allocation6 + $0x58] sm:$0xff] }
 0x133   :  { %v4677_v62 = vmul.f32 -1.442695, %v403_v57  ;;  %v674_v0 = vld [vmem:[#allocation6 + $0x20] sm:$0xff] }
 0x134   :  { %7319 = vpow2.f32 %v4676_v60  ;;  %v4678_v8 = vmul.f32 -1.442695, %v474_v27  ;;  %v679_v27 = vld [vmem:[#allocation6 + $0x48] sm:$0xff] }
 0x135   :  { %7321 = vpow2.f32 %v4677_v62 }
 0x136   :  { %7323 = vpow2.f32 %v4678_v8  ;;  %v685_v8 = vld [vmem:[#allocation6 + $0x78] sm:$0xff] }
 0x137   :  { %7325 = vtanh.f32 %v472_v38 }
 0x13e   :  { %v7320_v1 = vpop.eup %7319 }
 0x13f   :  { %v7322_v21 = vpop.eup %7321  ;;  %v479_v36 = vadd.f32 1.0, %v7320_v1  ;;  %v672_v1 = vld [vmem:[#allocation6 + $0x10] sm:$0xff] }
 0x140   :  { %v485_v48 = vadd.f32 1.0, %v7322_v21  ;;  %v7324_v44 = vpop.eup %7323  ;;  %v683_v21 = vld [vmem:[#allocation6 + $0x68] sm:$0xff] }
 0x141   :  { %7327 = vrcp.f32 %v479_v36  ;;  %v7326_v56 = vpop.eup %7325  ;;  %v492_v60 = vadd.f32 1.0, %v7324_v44  ;;  %v678_v44 = vld [vmem:[#allocation6 + $0x40] sm:$0xff] }
 0x142   :  { %7329 = vrcp.f32 %v485_v48  ;;  %v8091_v48 = vpack.c.bf16 %v674_v0, %v670_v50 }
 0x143   :  { %7331 = vrcp.f32 %v492_v60  ;;  %v8099_v60 = vpack.c.bf16 %v685_v8, %v681_v34  ;;  %v688_v34 = vld [vmem:[#allocation6 + $0x90] sm:$0xff] }
 0x144   :  { %10374 = vst [vmem:[#allocation58_spill] sm:$0xff] %v8091_v48  ;;  %v692_v8 = vld [vmem:[#allocation6 + $0xb0] sm:$0xff] }
 0x145   :  { %10377 = vst [vmem:[#allocation61_spill] sm:$0xff] %v8099_v60 }
 0x14b   :  { %v7328_v17 = vpop.eup %7327 }
 0x14c   :  { %v7330_v57 = vpop.eup %7329  ;;  %v496_v14 = vmul.f32 %v7328_v17, %v7326_v56  ;;  %v8093_v56 = vpack.c.bf16 %v676_v5, %v672_v1  ;;  %v682_v17 = vld [vmem:[#allocation6 + $0x60] sm:$0xff] }
 0x14d   :  { %v495_v62 = vmul.f32 0.0, %v7330_v57  ;;  %v7332_v38 = vpop.eup %7331  ;;  %v8105_v50 = vpack.c.bf16 %v682_v17, %v678_v44  ;;  %v686_v1 = vld [vmem:[#allocation6 + $0x80] sm:$0xff]  ;;  %v10382_v44 = vmov 0.0  }
 0x14e   :  { %10375 = vst [vmem:[#allocation59_spill] sm:$0xff] %v8093_v56  ;;  %v690_v5 = vld [vmem:[#allocation6 + $0xa0] sm:$0xff] }
 0x14f   :  { %v8088_v58 = vadd.f32 %v496_v14, %v495_v62  ;;  %v8097_v14 = vpack.c.bf16 %v683_v21, %v679_v27  ;;  %v680_v62 = vld [vmem:[#allocation6 + $0x50] sm:$0xff]  ;;  %10378 = vst [vmem:[#allocation62_spill] sm:$0xff] %v8105_v50  ;;  %v8111_v27 = vpack.c.bf16 %v691_v7, %v687_v12  ;;  %v8121_v7 = vpack.c.bf16 %v692_v8, %v688_v34  ;;  %v694_v12 = vld [vmem:[#allocation6 + $0xc0] sm:$0xff] }
 0x150   :  { %v8107_v0 = vpack.c.bf16 %v684_v35, %v680_v62  ;;  %v8119_v35 = vpack.c.bf16 %v690_v5, %v686_v1  ;;  %v696_v62 = vld [vmem:[#allocation6 + $0xd0] sm:$0xff]  ;;  %v702_v34 = vld [vmem:[#allocation6 + $0x100] sm:$0xff] }
 0x151   :  { %10373 = vst [vmem:[#allocation57_spill] sm:$0xff] %v8088_v58  ;;  %7333 = vtanh.f32 %v8088_v58  ;;  %10376 = vst [vmem:[#allocation60_spill] sm:$0xff] %v8097_v14  ;;  %v689_v58 = vld [vmem:[#allocation6 + $0x98] sm:$0xff]  ;;  %v706_v8 = vld [vmem:[#allocation6 + $0x120] sm:$0xff] }
 0x152   :  { %10379 = vst [vmem:[#allocation63_spill] sm:$0xff] %v8107_v0  ;;  %10380 = vst [vmem:[#allocation64_spill] sm:$0xff] %v8111_v27  ;;  %v8113_v21 = vpack.c.bf16 %v693_v25, %v689_v58  ;;  %v698_v25 = vld [vmem:[#allocation6 + $0xe0] sm:$0xff] }
 0x153   :  { %10383 = vst [vmem:[#allocation66_spill] sm:$0xff] %v8119_v35  ;;  %10384 = vst [vmem:[#allocation67_spill] sm:$0xff] %v8121_v7  ;;  %v8131_v1 = vpack.c.bf16 %v698_v25, %v694_v12  ;;  %v710_v25 = vld [vmem:[#allocation6 + $0x140] sm:$0xff] }
 0x154   :  { %10381 = vst [vmem:[#allocation65_spill] sm:$0xff] %v8113_v21 }
 0x155   :  { %10387 = vst [vmem:[#allocation70_spill] sm:$0xff] %v8131_v1 }
 0x15b   :  { %v7334_v36 = vpop.eup %7333 }
 0x15c   :  { %v8095_v57 = vmul.f32 %v7334_v36, %v7332_v38  ;;  %v695_v38 = vld [vmem:[#allocation6 + $0xc8] sm:$0xff] }
 0x15d   :  { %v699_v36 = vld [vmem:[#allocation6 + $0xe8] sm:$0xff] }
 0x15e   :  { %569 = vmatmul.mubr.f32.vlgmr.msra.gmra.mrb[2].mxu0 %v8095_v57  ;;  %640 = vmatmul.mubr.f32.vlgmr.msra.gmra.mrb[2].mxu1 %v8095_v57  ;;  %v8125_v58 = vpack.c.bf16 %v699_v36, %v695_v38  ;;  %v704_v38 = vld [vmem:[#allocation6 + $0x110] sm:$0xff] }
 0x15f   :  { %4881 = vmatpush1.bf16.msra.mxu0 %v8091_v48  ;;  %4945 = vmatpush1.bf16.msra.mxu1 %v8093_v56  ;;  %v697_v48 = vld [vmem:[#allocation6 + $0xd8] sm:$0xff]  ;;  %v708_v36 = vld [vmem:[#allocation6 + $0x130] sm:$0xff] }
 0x160   :  { %4883 = vmatprep.subr.bf16.mxu0 %v8097_v14  ;;  %4947 = vmatprep.subr.bf16.mxu1 %v8099_v60  ;;  %v701_v56 = vld [vmem:[#allocation6 + $0xf8] sm:$0xff]  ;;  %10385 = vst [vmem:[#allocation68_spill] sm:$0xff] %v8125_v58  ;;  %v700_v60 = vld [vmem:[#allocation6 + $0xf0] sm:$0xff]  ;;  %v703_v14 = vld [vmem:[#allocation6 + $0x108] sm:$0xff]  ;;  %v8145_v12 = vpack.c.bf16 %v708_v36, %v704_v38 }
 0x161   :  { %884 = vmatprep.mubr.f32.mxu0 %v10382_v44  ;;  %955 = vmatprep.mubr.f32.mxu1 %v10382_v44  ;;  %v8127_v17 = vpack.c.bf16 %v701_v56, %v697_v48  ;;  %v8133_v5 = vpack.c.bf16 %v700_v60, %v696_v62  ;;  %v8143_v60 = vpack.c.bf16 %v706_v8, %v702_v34  ;;  %v714_v62 = vld [vmem:[#allocation6 + $0x160] sm:$0xff] }
 0x162   :  { %10392 = vst [vmem:[#allocation75_spill] sm:$0xff] %v8145_v12  ;;  %v8155_v34 = vpack.c.bf16 %v714_v62, %v710_v25  ;;  %v718_v38 = vld [vmem:[#allocation6 + $0x180] sm:$0xff] }
 0x163   :  { %4885 = vmatpush1.bf16.msra.mxu0 %v8105_v50  ;;  %4949 = vmatpush1.bf16.msra.mxu1 %v8107_v0  ;;  %10386 = vst [vmem:[#allocation69_spill] sm:$0xff] %v8127_v17  ;;  %v707_v50 = vld [vmem:[#allocation6 + $0x128] sm:$0xff]  ;;  %v709_v0 = vld [vmem:[#allocation6 + $0x138] sm:$0xff]  ;;  %10388 = vst [vmem:[#allocation71_spill] sm:$0xff] %v8133_v5 }
 0x164   :  { %4887 = vmatprep.subr.bf16.mxu0 %v8111_v27  ;;  %4951 = vmatprep.subr.bf16.mxu1 %v8113_v21  ;;  %v8137_v48 = vpack.c.bf16 %v707_v50, %v703_v14  ;;  %v8139_v56 = vpack.c.bf16 %v709_v0, %v705_v49  ;;  %v711_v21 = vld [vmem:[#allocation6 + $0x148] sm:$0xff]  ;;  %v713_v27 = vld [vmem:[#allocation6 + $0x158] sm:$0xff]  ;;  %10391 = vst [vmem:[#allocation74_spill] sm:$0xff] %v8143_v60  ;;  %v712_v50 = vld [vmem:[#allocation6 + $0x150] sm:$0xff] }
 0x165   :  { %v716_v0 = vld [vmem:[#allocation6 + $0x170] sm:$0xff]  ;;  %10395 = vst [vmem:[#allocation78_spill] sm:$0xff] %v8155_v34  ;;  %v722_v36 = vld [vmem:[#allocation6 + $0x1a0] sm:$0xff] }
 0x166   :  { %10389 = vst [vmem:[#allocation72_spill] sm:$0xff] %v8137_v48  ;;  %10390 = vst [vmem:[#allocation73_spill] sm:$0xff] %v8139_v56  ;;  %v8157_v8 = vpack.c.bf16 %v716_v0, %v712_v50  ;;  %v8167_v25 = vpack.c.bf16 %v722_v36, %v718_v38  ;;  %v726_v50 = vld [vmem:[#allocation6 + $0x1c0] sm:$0xff] }
 0x167   :  { %4889 = vmatpush1.bf16.msra.mxu0 %v8119_v35  ;;  %4953 = vmatpush1.bf16.msra.mxu1 %v8121_v7  ;;  %v715_v35 = vld [vmem:[#allocation6 + $0x168] sm:$0xff]  ;;  %v717_v7 = vld [vmem:[#allocation6 + $0x178] sm:$0xff]  ;;  %v730_v0 = vld [vmem:[#allocation6 + $0x1e0] sm:$0xff] }
 0x168   :  { %4891 = vmatprep.subr.bf16.mxu0 %v8125_v58  ;;  %4955 = vmatprep.subr.bf16.mxu1 %v8127_v17  ;;  %v8149_v49 = vpack.c.bf16 %v715_v35, %v711_v21  ;;  %v8151_v14 = vpack.c.bf16 %v717_v7, %v713_v27  ;;  %v719_v17 = vld [vmem:[#allocation6 + $0x188] sm:$0xff]  ;;  %v721_v58 = vld [vmem:[#allocation6 + $0x198] sm:$0xff]  ;;  %10396 = vst [vmem:[#allocation79_spill] sm:$0xff] %v8157_v8  ;;  %v720_v35 = vld [vmem:[#allocation6 + $0x190] sm:$0xff] }
 0x169   :  { %v724_v7 = vld [vmem:[#allocation6 + $0x1b0] sm:$0xff]  ;;  %10399 = vst [vmem:[#allocation82_spill] sm:$0xff] %v8167_v25  ;;  %v8179_v38 = vpack.c.bf16 %v730_v0, %v726_v50 }
 0x16a   :  { %10393 = vst [vmem:[#allocation76_spill] sm:$0xff] %v8149_v49  ;;  %10394 = vst [vmem:[#allocation77_spill] sm:$0xff] %v8151_v14  ;;  %v8169_v62 = vpack.c.bf16 %v724_v7, %v720_v35  ;;  %v734_v35 = vld [vmem:[#allocation6 + $0x200] sm:$0xff] }
 0x16b   :  { %4893 = vmatpush1.bf16.msra.mxu0 %v8131_v1  ;;  %4957 = vmatpush1.bf16.msra.mxu1 %v8133_v5  ;;  %v723_v1 = vld [vmem:[#allocation6 + $0x1a8] sm:$0xff]  ;;  %v725_v5 = vld [vmem:[#allocation6 + $0x1b8] sm:$0xff]  ;;  %10403 = vst [vmem:[#allocation86_spill] sm:$0xff] %v8179_v38  ;;  %v738_v7 = vld [vmem:[#allocation6 + $0x220] sm:$0xff] }
 0x16c   :  { %4895 = vmatprep.subr.bf16.mxu0 %v8137_v48  ;;  %4959 = vmatprep.subr.bf16.mxu1 %v8139_v56  ;;  %v8161_v27 = vpack.c.bf16 %v723_v1, %v719_v17  ;;  %v8163_v21 = vpack.c.bf16 %v725_v5, %v721_v58  ;;  %v727_v56 = vld [vmem:[#allocation6 + $0x1c8] sm:$0xff]  ;;  %v729_v48 = vld [vmem:[#allocation6 + $0x1d8] sm:$0xff]  ;;  %10400 = vst [vmem:[#allocation83_spill] sm:$0xff] %v8169_v62  ;;  %v728_v1 = vld [vmem:[#allocation6 + $0x1d0] sm:$0xff] }
 0x16d   :  { %v732_v5 = vld [vmem:[#allocation6 + $0x1f0] sm:$0xff]  ;;  %v8191_v50 = vpack.c.bf16 %v738_v7, %v734_v35 }
 0x16e   :  { %10397 = vst [vmem:[#allocation80_spill] sm:$0xff] %v8161_v27  ;;  %10398 = vst [vmem:[#allocation81_spill] sm:$0xff] %v8163_v21  ;;  %v8181_v36 = vpack.c.bf16 %v732_v5, %v728_v1  ;;  %v742_v1 = vld [vmem:[#allocation6 + $0x240] sm:$0xff] }
 0x16f   :  { %4897 = vmatpush1.bf16.msra.mxu0 %v8143_v60  ;;  %4961 = vmatpush1.bf16.msra.mxu1 %v8145_v12  ;;  %v731_v60 = vld [vmem:[#allocation6 + $0x1e8] sm:$0xff]  ;;  %v733_v12 = vld [vmem:[#allocation6 + $0x1f8] sm:$0xff]  ;;  %10407 = vst [vmem:[#allocation90_spill] sm:$0xff] %v8191_v50  ;;  %v746_v5 = vld [vmem:[#allocation6 + $0x260] sm:$0xff] }
 0x170   :  { %4899 = vmatprep.subr.bf16.mxu0 %v8149_v49  ;;  %4963 = vmatprep.subr.bf16.mxu1 %v8151_v14  ;;  %v8173_v58 = vpack.c.bf16 %v731_v60, %v727_v56  ;;  %v8175_v17 = vpack.c.bf16 %v733_v12, %v729_v48  ;;  %v735_v14 = vld [vmem:[#allocation6 + $0x208] sm:$0xff]  ;;  %v737_v49 = vld [vmem:[#allocation6 + $0x218] sm:$0xff]  ;;  %10404 = vst [vmem:[#allocation87_spill] sm:$0xff] %v8181_v36  ;;  %v736_v60 = vld [vmem:[#allocation6 + $0x210] sm:$0xff] }
 0x171   :  { %v740_v12 = vld [vmem:[#allocation6 + $0x230] sm:$0xff]  ;;  %v8203_v35 = vpack.c.bf16 %v746_v5, %v742_v1 }
 0x172   :  { %10401 = vst [vmem:[#allocation84_spill] sm:$0xff] %v8173_v58  ;;  %10402 = vst [vmem:[#allocation85_spill] sm:$0xff] %v8175_v17  ;;  %v8193_v0 = vpack.c.bf16 %v740_v12, %v736_v60  ;;  %v750_v60 = vld [vmem:[#allocation6 + $0x280] sm:$0xff] }
 0x173   :  { %4901 = vmatpush1.bf16.msra.mxu0 %v8155_v34  ;;  %4965 = vmatpush1.bf16.msra.mxu1 %v8157_v8  ;;  %v739_v34 = vld [vmem:[#allocation6 + $0x228] sm:$0xff]  ;;  %v741_v8 = vld [vmem:[#allocation6 + $0x238] sm:$0xff]  ;;  %10411 = vst [vmem:[#allocation94_spill] sm:$0xff] %v8203_v35  ;;  %v754_v12 = vld [vmem:[#allocation6 + $0x2a0] sm:$0xff] }
 0x174   :  { %4903 = vmatprep.subr.bf16.mxu0 %v8161_v27  ;;  %4967 = vmatprep.subr.bf16.mxu1 %v8163_v21  ;;  %v8185_v48 = vpack.c.bf16 %v739_v34, %v735_v14  ;;  %v8187_v56 = vpack.c.bf16 %v741_v8, %v737_v49  ;;  %v743_v21 = vld [vmem:[#allocation6 + $0x248] sm:$0xff]  ;;  %v745_v27 = vld [vmem:[#allocation6 + $0x258] sm:$0xff]  ;;  %10408 = vst [vmem:[#allocation91_spill] sm:$0xff] %v8193_v0  ;;  %v744_v34 = vld [vmem:[#allocation6 + $0x250] sm:$0xff] }
 0x175   :  { %v748_v8 = vld [vmem:[#allocation6 + $0x270] sm:$0xff]  ;;  %v8215_v1 = vpack.c.bf16 %v754_v12, %v750_v60 }
 0x176   :  { %10405 = vst [vmem:[#allocation88_spill] sm:$0xff] %v8185_v48  ;;  %10406 = vst [vmem:[#allocation89_spill] sm:$0xff] %v8187_v56  ;;  %v8205_v7 = vpack.c.bf16 %v748_v8, %v744_v34  ;;  %v758_v34 = vld [vmem:[#allocation6 + $0x2c0] sm:$0xff] }
 0x177   :  { %4905 = vmatpush1.bf16.msra.mxu0 %v8167_v25  ;;  %4969 = vmatpush1.bf16.msra.mxu1 %v8169_v62  ;;  %v747_v25 = vld [vmem:[#allocation6 + $0x268] sm:$0xff]  ;;  %v749_v62 = vld [vmem:[#allocation6 + $0x278] sm:$0xff]  ;;  %10415 = vst [vmem:[#allocation98_spill] sm:$0xff] %v8215_v1  ;;  %v762_v8 = vld [vmem:[#allocation6 + $0x2e0] sm:$0xff] }
 0x178   :  { %4907 = vmatprep.subr.bf16.mxu0 %v8173_v58  ;;  %4971 = vmatprep.subr.bf16.mxu1 %v8175_v17  ;;  %v8197_v49 = vpack.c.bf16 %v747_v25, %v743_v21  ;;  %v8199_v14 = vpack.c.bf16 %v749_v62, %v745_v27  ;;  %v751_v17 = vld [vmem:[#allocation6 + $0x288] sm:$0xff]  ;;  %v753_v58 = vld [vmem:[#allocation6 + $0x298] sm:$0xff]  ;;  %10412 = vst [vmem:[#allocation95_spill] sm:$0xff] %v8205_v7  ;;  %v752_v25 = vld [vmem:[#allocation6 + $0x290] sm:$0xff] }
 0x179   :  { %v756_v62 = vld [vmem:[#allocation6 + $0x2b0] sm:$0xff]  ;;  %v8227_v60 = vpack.c.bf16 %v762_v8, %v758_v34 }
 0x17a   :  { %10409 = vst [vmem:[#allocation92_spill] sm:$0xff] %v8197_v49  ;;  %10410 = vst [vmem:[#allocation93_spill] sm:$0xff] %v8199_v14  ;;  %v8217_v5 = vpack.c.bf16 %v756_v62, %v752_v25  ;;  %v766_v25 = vld [vmem:[#allocation6 + $0x300] sm:$0xff] }
 0x17b   :  { %4909 = vmatpush1.bf16.msra.mxu0 %v8179_v38  ;;  %4973 = vmatpush1.bf16.msra.mxu1 %v8181_v36  ;;  %v755_v38 = vld [vmem:[#allocation6 + $0x2a8] sm:$0xff]  ;;  %v757_v36 = vld [vmem:[#allocation6 + $0x2b8] sm:$0xff]  ;;  %10419 = vst [vmem:[#allocation102_spill] sm:$0xff] %v8227_v60  ;;  %v770_v62 = vld [vmem:[#allocation6 + $0x320] sm:$0xff] }
 0x17c   :  { %4911 = vmatprep.subr.bf16.mxu0 %v8185_v48  ;;  %4975 = vmatprep.subr.bf16.mxu1 %v8187_v56  ;;  %v8209_v27 = vpack.c.bf16 %v755_v38, %v751_v17  ;;  %v8211_v21 = vpack.c.bf16 %v757_v36, %v753_v58  ;;  %v759_v56 = vld [vmem:[#allocation6 + $0x2c8] sm:$0xff]  ;;  %v761_v48 = vld [vmem:[#allocation6 + $0x2d8] sm:$0xff]  ;;  %10416 = vst [vmem:[#allocation99_spill] sm:$0xff] %v8217_v5  ;;  %v760_v38 = vld [vmem:[#allocation6 + $0x2d0] sm:$0xff] }
 0x17d   :  { %v764_v36 = vld [vmem:[#allocation6 + $0x2f0] sm:$0xff]  ;;  %v8239_v34 = vpack.c.bf16 %v770_v62, %v766_v25 }
 0x17e   :  { %10413 = vst [vmem:[#allocation96_spill] sm:$0xff] %v8209_v27  ;;  %10414 = vst [vmem:[#allocation97_spill] sm:$0xff] %v8211_v21  ;;  %v8229_v12 = vpack.c.bf16 %v764_v36, %v760_v38  ;;  %v774_v38 = vld [vmem:[#allocation6 + $0x340] sm:$0xff] }
 0x17f   :  { %4913 = vmatpush1.bf16.msra.mxu0 %v8191_v50  ;;  %4977 = vmatpush1.bf16.msra.mxu1 %v8193_v0  ;;  %v763_v50 = vld [vmem:[#allocation6 + $0x2e8] sm:$0xff]  ;;  %v765_v0 = vld [vmem:[#allocation6 + $0x2f8] sm:$0xff]  ;;  %10423 = vst [vmem:[#allocation106_spill] sm:$0xff] %v8239_v34  ;;  %v778_v36 = vld [vmem:[#allocation6 + $0x360] sm:$0xff] }
 0x180   :  { %4915 = vmatprep.subr.bf16.mxu0 %v8197_v49  ;;  %4979 = vmatprep.subr.bf16.mxu1 %v8199_v14  ;;  %v8221_v58 = vpack.c.bf16 %v763_v50, %v759_v56  ;;  %v8223_v17 = vpack.c.bf16 %v765_v0, %v761_v48  ;;  %v767_v14 = vld [vmem:[#allocation6 + $0x308] sm:$0xff]  ;;  %v769_v49 = vld [vmem:[#allocation6 + $0x318] sm:$0xff]  ;;  %10420 = vst [vmem:[#allocation103_spill] sm:$0xff] %v8229_v12  ;;  %v768_v50 = vld [vmem:[#allocation6 + $0x310] sm:$0xff] }
 0x181   :  { %v772_v0 = vld [vmem:[#allocation6 + $0x330] sm:$0xff]  ;;  %v8251_v25 = vpack.c.bf16 %v778_v36, %v774_v38 }
 0x182   :  { %10417 = vst [vmem:[#allocation100_spill] sm:$0xff] %v8221_v58  ;;  %10418 = vst [vmem:[#allocation101_spill] sm:$0xff] %v8223_v17  ;;  %v8241_v8 = vpack.c.bf16 %v772_v0, %v768_v50  ;;  %v782_v50 = vld [vmem:[#allocation6 + $0x380] sm:$0xff] }
 0x183   :  { %4917 = vmatpush1.bf16.msra.mxu0 %v8203_v35  ;;  %4981 = vmatpush1.bf16.msra.mxu1 %v8205_v7  ;;  %v771_v35 = vld [vmem:[#allocation6 + $0x328] sm:$0xff]  ;;  %v773_v7 = vld [vmem:[#allocation6 + $0x338] sm:$0xff]  ;;  %10427 = vst [vmem:[#allocation110_spill] sm:$0xff] %v8251_v25  ;;  %v786_v0 = vld [vmem:[#allocation6 + $0x3a0] sm:$0xff] }
 0x184   :  { %4919 = vmatprep.subr.bf16.mxu0 %v8209_v27  ;;  %4983 = vmatprep.subr.bf16.mxu1 %v8211_v21  ;;  %v8233_v48 = vpack.c.bf16 %v771_v35, %v767_v14  ;;  %v8235_v56 = vpack.c.bf16 %v773_v7, %v769_v49  ;;  %v775_v21 = vld [vmem:[#allocation6 + $0x348] sm:$0xff]  ;;  %v777_v27 = vld [vmem:[#allocation6 + $0x358] sm:$0xff]  ;;  %10424 = vst [vmem:[#allocation107_spill] sm:$0xff] %v8241_v8  ;;  %v776_v35 = vld [vmem:[#allocation6 + $0x350] sm:$0xff] }
 0x185   :  { %v780_v7 = vld [vmem:[#allocation6 + $0x370] sm:$0xff]  ;;  %v8263_v38 = vpack.c.bf16 %v786_v0, %v782_v50 }
 0x186   :  { %10421 = vst [vmem:[#allocation104_spill] sm:$0xff] %v8233_v48  ;;  %10422 = vst [vmem:[#allocation105_spill] sm:$0xff] %v8235_v56  ;;  %v8253_v62 = vpack.c.bf16 %v780_v7, %v776_v35  ;;  %v790_v35 = vld [vmem:[#allocation6 + $0x3c0] sm:$0xff]  ;;  %v796_v7 = vld [vmem:[#allocation6 + $0x3f0] sm:$0xff] }
 0x187   :  { %4921 = vmatpush1.bf16.msra.mxu0 %v8215_v1  ;;  %4985 = vmatpush1.bf16.msra.mxu1 %v8217_v5  ;;  %v779_v1 = vld [vmem:[#allocation6 + $0x368] sm:$0xff]  ;;  %v781_v5 = vld [vmem:[#allocation6 + $0x378] sm:$0xff]  ;;  %10431 = vst [vmem:[#allocation114_spill] sm:$0xff] %v8263_v38 }
 0x188   :  { %4923 = vmatprep.subr.bf16.mxu0 %v8221_v58  ;;  %4987 = vmatprep.subr.bf16.mxu1 %v8223_v17  ;;  %v8245_v49 = vpack.c.bf16 %v779_v1, %v775_v21  ;;  %v8247_v14 = vpack.c.bf16 %v781_v5, %v777_v27  ;;  %v783_v17 = vld [vmem:[#allocation6 + $0x388] sm:$0xff]  ;;  %v785_v58 = vld [vmem:[#allocation6 + $0x398] sm:$0xff]  ;;  %10428 = vst [vmem:[#allocation111_spill] sm:$0xff] %v8253_v62  ;;  %v784_v1 = vld [vmem:[#allocation6 + $0x390] sm:$0xff] }
 0x189   :  { %v788_v5 = vld [vmem:[#allocation6 + $0x3b0] sm:$0xff] }
 0x18a   :  { %10425 = vst [vmem:[#allocation108_spill] sm:$0xff] %v8245_v49  ;;  %10426 = vst [vmem:[#allocation109_spill] sm:$0xff] %v8247_v14  ;;  %v8265_v36 = vpack.c.bf16 %v788_v5, %v784_v1  ;;  %v83_v1 = vld [vmem:[%s9902_s0 + $0x28] sm:$0xff] }
 0x18b   :  { %4925 = vmatpush1.bf16.msra.mxu0 %v8227_v60  ;;  %4989 = vmatpush1.bf16.msra.mxu1 %v8229_v12  ;;  %v787_v60 = vld [vmem:[#allocation6 + $0x3a8] sm:$0xff]  ;;  %v789_v12 = vld [vmem:[#allocation6 + $0x3b8] sm:$0xff] }
 0x18c   :  { %4927 = vmatprep.subr.bf16.mxu0 %v8233_v48  ;;  %4991 = vmatprep.subr.bf16.mxu1 %v8235_v56  ;;  %v8257_v27 = vpack.c.bf16 %v787_v60, %v783_v17  ;;  %v8259_v21 = vpack.c.bf16 %v789_v12, %v785_v58  ;;  %v791_v56 = vld [vmem:[#allocation6 + $0x3c8] sm:$0xff]  ;;  %v793_v48 = vld [vmem:[#allocation6 + $0x3d8] sm:$0xff]  ;;  %10432 = vst [vmem:[#allocation115_spill] sm:$0xff] %v8265_v36  ;;  %v794_v60 = vld [vmem:[#allocation6 + $0x3e0] sm:$0xff] }
 0x18d   :  { %v792_v12 = vld [vmem:[#allocation6 + $0x3d0] sm:$0xff]  ;;  %v8275_v50 = vpack.c.bf16 %v794_v60, %v790_v35 }
 0x18e   :  { %10429 = vst [vmem:[#allocation112_spill] sm:$0xff] %v8257_v27  ;;  %10430 = vst [vmem:[#allocation113_spill] sm:$0xff] %v8259_v21  ;;  %v8277_v0 = vpack.c.bf16 %v796_v7, %v792_v12 }
 0x18f   :  { %4929 = vmatpush1.bf16.msra.mxu0 %v8239_v34  ;;  %4993 = vmatpush1.bf16.msra.mxu1 %v8241_v8  ;;  %v795_v34 = vld [vmem:[#allocation6 + $0x3e8] sm:$0xff]  ;;  %v797_v8 = vld [vmem:[#allocation6 + $0x3f8] sm:$0xff]  ;;  %10435 = vst [vmem:[#allocation118_spill] sm:$0xff] %v8275_v50 }
 0x190   :  { %4931 = vmatprep.subr.bf16.mxu0 %v8245_v49  ;;  %4995 = vmatprep.subr.bf16.mxu1 %v8247_v14  ;;  %v8269_v58 = vpack.c.bf16 %v795_v34, %v791_v56  ;;  %v8271_v17 = vpack.c.bf16 %v797_v8, %v793_v48  ;;  %10436 = vst [vmem:[#allocation119_spill] sm:$0xff] %v8277_v0  ;;  %v81_v48 = vld [vmem:[%s9902_s0 + $0x18] sm:$0xff]  ;;  %v95_v56 = vpop.permute.xlu0 %94 }
 0x191   :  { %v152_v34 = vmul.f32 %v8050_v13, %v95_v56  ;;  %v153_v8 = vmul.f32 %v8056_v16, %v95_v56  ;;  %v155_v16 = vmul.f32 %v8069_v32, %v95_v56 }
 0x192   :  { %10433 = vst [vmem:[#allocation116_spill] sm:$0xff] %v8269_v58  ;;  %10434 = vst [vmem:[#allocation117_spill] sm:$0xff] %v8271_v17 }
 0x193   :  { %4933 = vmatpush1.bf16.msra.mxu0 %v8251_v25  ;;  %4997 = vmatpush1.bf16.msra.mxu1 %v8253_v62  ;;  %v206_v5 = vadd.f32 %v8062_v26, %v152_v34  ;;  %v207_v12 = vadd.f32 %v8066_v31, %v153_v8  ;;  %v209_v34 = vadd.f32 %v8077_v45, %v155_v16 }
 0x194   :  { %4935 = vmatprep.subr.bf16.mxu0 %v8257_v27  ;;  %4999 = vmatprep.subr.bf16.mxu1 %v8259_v21 }
 0x197   :  { %4937 = vmatpush1.bf16.msra.mxu0 %v8263_v38  ;;  %5001 = vmatpush1.bf16.msra.mxu1 %v8265_v36 }
 0x198   :  { %4939 = vmatprep.subr.bf16.mxu0 %v8269_v58  ;;  %5003 = vmatprep.subr.bf16.mxu1 %v8271_v17 }
 0x19b   :  { %4941 = vmatpush1.bf16.msra.mxu0 %v8275_v50  ;;  %5005 = vmatpush1.bf16.msra.mxu1 %v8277_v0 }
 0x19c   :  { %5007 = vmatprep.subr.bf16.mxu0 %v7892_v6  ;;  %5039 = vmatprep.subr.bf16.mxu1 %v7894_v10 }
 0x19e   :  { %885 = vmatmul.mubr.f32.vlgmr.msra.gmra.mrb[4].mxu0 %v8095_v57  ;;  %956 = vmatmul.mubr.f32.vlgmr.msra.gmra.mrb[4].mxu1 %v8095_v57  ;;  %v80_v57 = vld [vmem:[%s9902_s0 + $0x10] sm:$0xff] }
 0x19f   :  { %5009 = vmatpush1.bf16.msra.mxu0 %v7896_v11  ;;  %5041 = vmatpush1.bf16.msra.mxu1 %v7899_v15 }
 0x1a0   :  { %5011 = vmatprep.subr.bf16.mxu0 %v7903_v19  ;;  %5043 = vmatprep.subr.bf16.mxu1 %v7905_v20 }
 0x1a1   :  { %1054 = vmatprep.mubr.f32.mxu0 %v10382_v44  ;;  %1125 = vmatprep.mubr.f32.mxu1 %v10382_v44 }
 0x1a2   :  { %99 = vperm.xlu1 %7318, %v80_v57  }
 0x1a3   :  { %5013 = vmatpush1.bf16.msra.mxu0 %v7908_v24  ;;  %5045 = vmatpush1.bf16.msra.mxu1 %v7912_v28 }
 0x1a4   :  { %5015 = vmatprep.subr.bf16.mxu0 %v7914_v29  ;;  %5047 = vmatprep.subr.bf16.mxu1 %v7916_v33 }
 0x1a6   :  { %104 = vperm.xlu1 %7318, %v81_v48   ;;  %v85_v48 = vld [vmem:[%s9902_s0 + $0x38] sm:$0xff] }
 0x1a7   :  { %5017 = vmatpush1.bf16.msra.mxu0 %v7919_v37  ;;  %5049 = vmatpush1.bf16.msra.mxu1 %v7923_v41 }
 0x1a8   :  { %5019 = vmatprep.subr.bf16.mxu0 %v7925_v42  ;;  %5051 = vmatprep.subr.bf16.mxu1 %v7928_v46 }
 0x1aa   :  { %114 = vperm.xlu1 %7318, %v83_v1   ;;  %v10437_v1 = vld [vmem:[#allocation55_spill] sm:$0xff] }
 0x1ab   :  { %5021 = vmatpush1.bf16.msra.mxu0 %v7931_v53  ;;  %5053 = vmatpush1.bf16.msra.mxu1 %v7935_v54  ;;  %v154_v26 = vmul.f32 %v10437_v1, %v95_v56  ;;  %v10439_v56 = vld [vmem:[#allocation57_spill] sm:$0xff] }
 0x1ac   :  { %5023 = vmatprep.subr.bf16.mxu0 %v7937_v55  ;;  %5055 = vmatprep.subr.bf16.mxu1 %v7940_v59 }
 0x1ae   :  { %124 = vperm.xlu1 %7318, %v85_v48  }
 0x1af   :  { %5025 = vmatpush1.bf16.msra.mxu0 %v7943_v2  ;;  %5057 = vmatpush1.bf16.msra.mxu1 %v7947_v3 }
 0x1b0   :  { %5027 = vmatprep.subr.bf16.mxu0 %v7949_v4  ;;  %5059 = vmatprep.subr.bf16.mxu1 %v7952_v9 }
 0x1b3   :  { %5029 = vmatpush1.bf16.msra.mxu0 %v7955_v18  ;;  %5061 = vmatpush1.bf16.msra.mxu1 %v7959_v22 }
 0x1b4   :  { %5031 = vmatprep.subr.bf16.mxu0 %v7961_v23  ;;  %5063 = vmatprep.subr.bf16.mxu1 %v7967_v30 }
 0x1b7   :  { %5033 = vmatpush1.bf16.msra.mxu0 %v7973_v39  ;;  %5065 = vmatpush1.bf16.msra.mxu1 %v7977_v40 }
 0x1b8   :  { %5035 = vmatprep.subr.bf16.mxu0 %v7979_v43  ;;  %5067 = vmatprep.subr.bf16.mxu1 %v7982_v47 }
 0x1bb   :  { %5037 = vmatpush1.bf16.msra.mxu0 %v7988_v51  ;;  %5069 = vmatpush1.bf16.msra.mxu1 %v7992_v52 }
 0x1bc   :  { %5071 = vmatprep.subr.bf16.mxu0 %v8036_v61  ;;  %5135 = vmatprep.subr.bf16.mxu1 %v8038_v63 }
 0x231   :  { %v570_v35 = vpop.f32.mrb[2].mxu0  ;;  %v641_v60 = vpop.f32.mrb[2].mxu1 }
 0x232   :  { %v571_v7 = vadd.f32 %v570_v35, %v206_v5  ;;  %v572_v57 = vpop.f32.mrb[3].mxu0  ;;  %v643_v63 = vpop.f32.mrb[3].mxu1  ;;  %v10438_v5 = vld [vmem:[#allocation56_spill] sm:$0xff] }
 0x233   :  { %v573_v13 = vadd.f32 %v572_v57, %v207_v12  ;;  %v644_v8 = vadd.f32 %v643_v63, %v209_v34  ;;  %v208_v35 = vadd.f32 %v10438_v5, %v154_v26  ;;  %v10444_v34 = vld [vmem:[#allocation62_spill] sm:$0xff] }
 0x234   :  { %v4679_v61 = vmul.f32 -1.442695, %v571_v7 }
 0x235   :  { %v4680_v52 = vmul.f32 -1.442695, %v573_v13  ;;  %v4681_v31 = vmul.f32 -1.442695, %v644_v8  ;;  %v642_v51 = vadd.f32 %v641_v60, %v208_v35  ;;  %v10443_v60 = vld [vmem:[#allocation61_spill] sm:$0xff]  ;;  %v10445_v8 = vld [vmem:[#allocation63_spill] sm:$0xff] }
 0x236   :  { %7335 = vpow2.f32 %v4679_v61  ;;  %v10446_v35 = vld [vmem:[#allocation64_spill] sm:$0xff] }
 0x237   :  { %7337 = vpow2.f32 %v4680_v52 }
 0x238   :  { %7339 = vpow2.f32 %v4681_v31 }
 0x239   :  { %7341 = vtanh.f32 %v642_v51  ;;  %v10442_v51 = vld [vmem:[#allocation60_spill] sm:$0xff] }
 0x240   :  { %v7336_v47 = vpop.eup %7335 }
 0x241   :  { %v7338_v43 = vpop.eup %7337  ;;  %v649_v40 = vadd.f32 1.0, %v7336_v47 }
 0x242   :  { %v655_v12 = vadd.f32 1.0, %v7338_v43  ;;  %v7340_v13 = vpop.eup %7339  ;;  %v10441_v43 = vld [vmem:[#allocation59_spill] sm:$0xff] }
 0x243   :  { %7343 = vrcp.f32 %v649_v40  ;;  %v7342_v61 = vpop.eup %7341  ;;  %v662_v57 = vadd.f32 1.0, %v7340_v13  ;;  %v10440_v40 = vld [vmem:[#allocation58_spill] sm:$0xff] }
 0x244   :  { %7345 = vrcp.f32 %v655_v12  ;;  %v10447_v12 = vld [vmem:[#allocation65_spill] sm:$0xff]  ;;  %v10448_v13 = vld [vmem:[#allocation66_spill] sm:$0xff] }
 0x245   :  { %7347 = vrcp.f32 %v662_v57  ;;  %v10452_v57 = vld [vmem:[#allocation70_spill] sm:$0xff] }
 0x24d   :  { %v7344_v52 = vpop.eup %7343 }
 0x24e   :  { %v7346_v7 = vpop.eup %7345  ;;  %v666_v16 = vmul.f32 %v7344_v52, %v7342_v61  ;;  %v10449_v61 = vld [vmem:[#allocation67_spill] sm:$0xff]  ;;  %v10450_v52 = vld [vmem:[#allocation68_spill] sm:$0xff] }
 0x24f   :  { %v665_v63 = vmul.f32 %v7346_v7, %v10439_v56  ;;  %v7348_v26 = vpop.eup %7347  ;;  %v10451_v7 = vld [vmem:[#allocation69_spill] sm:$0xff]  ;;  %v10453_v56 = vld [vmem:[#allocation71_spill] sm:$0xff] }
 0x251   :  { %v8342_v48 = vadd.f32 %v666_v16, %v665_v63  ;;  %v798_v16 = vld [vmem:[%s9907_s5] sm:$0xf]  ;;  %v10454_v63 = vld [vmem:[#allocation72_spill] sm:$0xff] }
 0x253   :  { %7349 = vtanh.f32 %v8342_v48 }
 0x25d   :  { %v7350_v47 = vpop.eup %7349 }
 0x25e   :  { %v8345_v31 = vmul.f32 %v7350_v47, %v7348_v26  ;;  %v10455_v26 = vld [vmem:[#allocation73_spill] sm:$0xff] }
 0x25f   :  { %v10456_v47 = vld [vmem:[#allocation45_spill] sm:$0xff] }
 0x260   :  { %1055 = vmatmul.mubr.f32.vlgmr.msra.gmra.mrb[6].mxu0 %v8345_v31  ;;  %1126 = vmatmul.mubr.f32.vlgmr.msra.gmra.mrb[6].mxu1 %v8345_v31 }
 0x261   :  { %5073 = vmatpush1.bf16.msra.mxu0 %v10440_v40  ;;  %5137 = vmatpush1.bf16.msra.mxu1 %v10441_v43  ;;  %v10466_v40 = vld [vmem:[#allocation78_spill] sm:$0xff] }
 0x262   :  { %5075 = vmatprep.subr.bf16.mxu0 %v10442_v51  ;;  %5139 = vmatprep.subr.bf16.mxu1 %v10443_v60  ;;  %v10462_v60 = vld [vmem:[#allocation76_spill] sm:$0xff] }
 0x265   :  { %5077 = vmatpush1.bf16.msra.mxu0 %v10444_v34  ;;  %5141 = vmatpush1.bf16.msra.mxu1 %v10445_v8  ;;  %v10461_v8 = vld [vmem:[#allocation75_spill] sm:$0xff] }
 0x266   :  { %5079 = vmatprep.subr.bf16.mxu0 %v10446_v35  ;;  %5143 = vmatprep.subr.bf16.mxu1 %v10447_v12  ;;  %v10460_v35 = vld [vmem:[#allocation74_spill] sm:$0xff] }
 0x269   :  { %5081 = vmatpush1.bf16.msra.mxu0 %v10448_v13  ;;  %5145 = vmatpush1.bf16.msra.mxu1 %v10449_v61  ;;  %v8369_v13 = vrot.slane %v798_v16, %v10456_v47  ;;  %v10458_v61 = vld [vmem:[#allocation46_spill] sm:$0xff] }
 0x26a   :  { %5083 = vmatprep.subr.bf16.mxu0 %v10450_v52  ;;  %5147 = vmatprep.subr.bf16.mxu1 %v10451_v7  ;;  %v8372_v12 = vrot.slane %v798_v16, %v10458_v61  ;;  %v10464_v61 = vld [vmem:[#allocation49_spill] sm:$0xff] }
 0x26b   :  { %10457 = vst [vmem:[#allocation57_spill] sm:$0xff] %v8369_v13  ;;  %v8381_v43 = vrot.slane %v798_v16, %v10464_v61  ;;  %v10474_v61 = vld [vmem:[#allocation84_spill] sm:$0xff] }
 0x26c   :  { %10459 = vst [vmem:[#allocation120_spill] sm:$0xff] %v8372_v12 }
 0x26d   :  { %5085 = vmatpush1.bf16.msra.mxu0 %v10452_v57  ;;  %5149 = vmatpush1.bf16.msra.mxu1 %v10453_v56  ;;  %10465 = vst [vmem:[#allocation121_spill] sm:$0xff] %v8381_v43 }
 0x26e   :  { %5087 = vmatprep.subr.bf16.mxu0 %v10454_v63  ;;  %5151 = vmatprep.subr.bf16.mxu1 %v10455_v26  ;;  %v10463_v63 = vld [vmem:[#allocation77_spill] sm:$0xff] }
 0x271   :  { %v886_v52 = vpop.f32.mrb[4].mxu0  ;;  %v957_v7 = vpop.f32.mrb[4].mxu1  ;;  %5089 = vmatpush1.bf16.msra.mxu0 %v10460_v35  ;;  %5153 = vmatpush1.bf16.msra.mxu1 %v10461_v8  ;;  %v10467_v35 = vld [vmem:[#allocation79_spill] sm:$0xff]  ;;  %v10468_v8 = vld [vmem:[#allocation80_spill] sm:$0xff] }
 0x272   :  { %v887_v57 = vadd.f32 %v886_v52, %v8369_v13  ;;  %v888_v34 = vpop.f32.mrb[5].mxu0  ;;  %v959_v56 = vpop.f32.mrb[5].mxu1  ;;  %5091 = vmatprep.subr.bf16.mxu0 %v10462_v60  ;;  %5155 = vmatprep.subr.bf16.mxu1 %v10463_v63  ;;  %v10469_v52 = vld [vmem:[#allocation81_spill] sm:$0xff]  ;;  %v10470_v63 = vld [vmem:[#allocation82_spill] sm:$0xff] }
 0x273   :  { %v889_v47 = vadd.f32 %v888_v34, %v8372_v12  ;;  %v960_v13 = vadd.f32 %v959_v56, %v8381_v43  ;;  %v10471_v34 = vld [vmem:[#allocation83_spill] sm:$0xff]  ;;  %v10479_v56 = vld [vmem:[#allocation89_spill] sm:$0xff] }
 0x274   :  { %v4682_v26 = vmul.f32 -1.442695, %v887_v57  ;;  %v10472_v57 = vld [vmem:[#allocation53_spill] sm:$0xff] }
 0x275   :  { %v4683_v51 = vmul.f32 -1.442695, %v889_v47  ;;  %5093 = vmatpush1.bf16.msra.mxu0 %v10466_v40  ;;  %5157 = vmatpush1.bf16.msra.mxu1 %v10467_v35  ;;  %v8391_v47 = vrot.slane %v798_v16, %v10472_v57  ;;  %v10475_v40 = vld [vmem:[#allocation85_spill] sm:$0xff]  ;;  %v4684_v35 = vmul.f32 -1.442695, %v960_v13  ;;  %v10480_v16 = vld [vmem:[#allocation90_spill] sm:$0xff] }
 0x276   :  { %7351 = vpow2.f32 %v4682_v26  ;;  %5095 = vmatprep.subr.bf16.mxu0 %v10468_v8  ;;  %5159 = vmatprep.subr.bf16.mxu1 %v10469_v52  ;;  %v10476_v26 = vld [vmem:[#allocation86_spill] sm:$0xff]  ;;  %v10477_v8 = vld [vmem:[#allocation87_spill] sm:$0xff]  ;;  %v10478_v52 = vld [vmem:[#allocation88_spill] sm:$0xff] }
 0x277   :  { %7353 = vpow2.f32 %v4683_v51  ;;  %10473 = vst [vmem:[#allocation122_spill] sm:$0xff] %v8391_v47  ;;  %v958_v51 = vadd.f32 %v957_v7, %v8391_v47  ;;  %v10481_v57 = vld [vmem:[#allocation91_spill] sm:$0xff]  ;;  %v10484_v7 = vld [vmem:[#allocation94_spill] sm:$0xff] }
 0x278   :  { %7355 = vpow2.f32 %v4684_v35  ;;  %v10485_v47 = vld [vmem:[#allocation95_spill] sm:$0xff]  ;;  %v10488_v35 = vld [vmem:[#allocation98_spill] sm:$0xff] }
 0x279   :  { %5097 = vmatpush1.bf16.msra.mxu0 %v10470_v63  ;;  %5161 = vmatpush1.bf16.msra.mxu1 %v10471_v34  ;;  %7357 = vtanh.f32 %v958_v51  ;;  %v10490_v51 = vld [vmem:[#allocation100_spill] sm:$0xff] }
 0x27a   :  { %5099 = vmatprep.subr.bf16.mxu0 %v10474_v61  ;;  %5163 = vmatprep.subr.bf16.mxu1 %v10475_v40  ;;  %v10482_v40 = vld [vmem:[#allocation92_spill] sm:$0xff] }
 0x27d   :  { %5101 = vmatpush1.bf16.msra.mxu0 %v10476_v26  ;;  %5165 = vmatpush1.bf16.msra.mxu1 %v10477_v8  ;;  %v10483_v26 = vld [vmem:[#allocation93_spill] sm:$0xff] }
 0x27e   :  { %5103 = vmatprep.subr.bf16.mxu0 %v10478_v52  ;;  %5167 = vmatprep.subr.bf16.mxu1 %v10479_v56  ;;  %v10486_v56 = vld [vmem:[#allocation96_spill] sm:$0xff] }
 0x27f   :  { %v10494_v52 = vld [vmem:[#allocation104_spill] sm:$0xff] }
 0x280   :  { %v7352_v43 = vpop.eup %7351 }
 0x281   :  { %v7354_v34 = vpop.eup %7353  ;;  %v965_v63 = vadd.f32 1.0, %v7352_v43  ;;  %5105 = vmatpush1.bf16.msra.mxu0 %v10480_v16  ;;  %5169 = vmatpush1.bf16.msra.mxu1 %v10481_v57  ;;  %v10487_v43 = vld [vmem:[#allocation97_spill] sm:$0xff]  ;;  %v10489_v16 = vld [vmem:[#allocation99_spill] sm:$0xff] }
 0x282   :  { %v971_v13 = vadd.f32 1.0, %v7354_v34  ;;  %5107 = vmatprep.subr.bf16.mxu0 %v10482_v40  ;;  %5171 = vmatprep.subr.bf16.mxu1 %v10483_v26  ;;  %v10491_v34 = vld [vmem:[#allocation101_spill] sm:$0xff]  ;;  %v7356_v40 = vpop.eup %7355 }
 0x283   :  { %7359 = vrcp.f32 %v965_v63  ;;  %v7358_v26 = vpop.eup %7357 }
 0x284   :  { %7361 = vrcp.f32 %v971_v13  ;;  %v10492_v13 = vld [vmem:[#allocation102_spill] sm:$0xff] }
 0x285   :  { %5109 = vmatpush1.bf16.msra.mxu0 %v10484_v7  ;;  %5173 = vmatpush1.bf16.msra.mxu1 %v10485_v47  ;;  %v10493_v7 = vld [vmem:[#allocation103_spill] sm:$0xff] }
 0x286   :  { %5111 = vmatprep.subr.bf16.mxu0 %v10486_v56  ;;  %5175 = vmatprep.subr.bf16.mxu1 %v10487_v43  ;;  %v978_v56 = vadd.f32 1.0, %v7356_v40  ;;  %v10495_v43 = vld [vmem:[#allocation105_spill] sm:$0xff]  ;;  %v1323_v40 = vld [vmem:[#allocation8 + $0x8] sm:$0xff] }
 0x288   :  { %7363 = vrcp.f32 %v978_v56 }
 0x289   :  { %5113 = vmatpush1.bf16.msra.mxu0 %v10488_v35  ;;  %5177 = vmatpush1.bf16.msra.mxu1 %v10489_v16 }
 0x28a   :  { %5115 = vmatprep.subr.bf16.mxu0 %v10490_v51  ;;  %5179 = vmatprep.subr.bf16.mxu1 %v10491_v34  ;;  %v10497_v51 = vld [vmem:[#allocation106_spill] sm:$0xff]  ;;  %v10498_v34 = vld [vmem:[#allocation107_spill] sm:$0xff] }
 0x28d   :  { %v7360_v63 = vpop.eup %7359  ;;  %5117 = vmatpush1.bf16.msra.mxu0 %v10492_v13  ;;  %5181 = vmatpush1.bf16.msra.mxu1 %v10493_v7 }
 0x28e   :  { %v7362_v47 = vpop.eup %7361  ;;  %v982_v57 = vmul.f32 %v7360_v63, %v7358_v26  ;;  %5119 = vmatprep.subr.bf16.mxu0 %v10494_v52  ;;  %5183 = vmatprep.subr.bf16.mxu1 %v10495_v43  ;;  %v1329_v26 = vld [vmem:[#allocation8 + $0x38] sm:$0xff]  ;;  %v1322_v63 = vld [vmem:[#allocation8] sm:$0xff]  ;;  %v1339_v43 = vld [vmem:[#allocation8 + $0x88] sm:$0xff] }
 0x28f   :  { %v981_v35 = vmul.f32 0.0, %v7362_v47  ;;  %v1325_v47 = vld [vmem:[#allocation8 + $0x18] sm:$0xff] }
 0x291   :  { %v8416_v16 = vadd.f32 %v982_v57, %v981_v35  ;;  %5121 = vmatpush1.bf16.msra.mxu0 %v10497_v51  ;;  %5185 = vmatpush1.bf16.msra.mxu1 %v10498_v34  ;;  %v1327_v57 = vld [vmem:[#allocation8 + $0x28] sm:$0xff]  ;;  %v8433_v35 = vpack.c.bf16 %v1329_v26, %v1325_v47  ;;  %v1333_v34 = vld [vmem:[#allocation8 + $0x58] sm:$0xff]  ;;  %v1330_v47 = vld [vmem:[#allocation8 + $0x40] sm:$0xff] }
 0x292   :  { %5123 = vmatprep.subr.bf16.mxu0 %v8245_v49  ;;  %5187 = vmatprep.subr.bf16.mxu1 %v8247_v14  ;;  %v8431_v56 = vpack.c.bf16 %v1327_v57, %v1323_v40  ;;  %v7364_v14 = vpop.eup %7363  ;;  %v1335_v49 = vld [vmem:[#allocation8 + $0x68] sm:$0xff]  ;;  %v1337_v51 = vld [vmem:[#allocation8 + $0x78] sm:$0xff]  ;;  %v1334_v26 = vld [vmem:[#allocation8 + $0x60] sm:$0xff] }
 0x293   :  { %10496 = vst [vmem:[#allocation123_spill] sm:$0xff] %v8416_v16  ;;  %7365 = vtanh.f32 %v8416_v16  ;;  %10500 = vst [vmem:[#allocation125_spill] sm:$0xff] %v8433_v35  ;;  %v1332_v16 = vld [vmem:[#allocation8 + $0x50] sm:$0xff] }
 0x294   :  { %10499 = vst [vmem:[#allocation124_spill] sm:$0xff] %v8431_v56 }
 0x295   :  { %5125 = vmatpush1.bf16.msra.mxu0 %v8251_v25  ;;  %5189 = vmatpush1.bf16.msra.mxu1 %v8253_v62  ;;  %v1324_v62 = vld [vmem:[#allocation8 + $0x10] sm:$0xff]  ;;  %v1331_v25 = vld [vmem:[#allocation8 + $0x48] sm:$0xff] }
 0x296   :  { %5127 = vmatprep.subr.bf16.mxu0 %v8257_v27  ;;  %5191 = vmatprep.subr.bf16.mxu1 %v8259_v21  ;;  %v1326_v27 = vld [vmem:[#allocation8 + $0x20] sm:$0xff]  ;;  %v1328_v21 = vld [vmem:[#allocation8 + $0x30] sm:$0xff] }
 0x297   :  { %v8441_v40 = vpack.c.bf16 %v1326_v27, %v1322_v63  ;;  %v8443_v57 = vpack.c.bf16 %v1328_v21, %v1324_v62  ;;  %v1338_v62 = vld [vmem:[#allocation8 + $0x80] sm:$0xff]  ;;  %v1347_v63 = vld [vmem:[#allocation8 + $0xc8] sm:$0xff] }
 0x298   :  { %v1342_v27 = vld [vmem:[#allocation8 + $0xa0] sm:$0xff] }
 0x299   :  { %5129 = vmatpush1.bf16.msra.mxu0 %v8263_v38  ;;  %5193 = vmatpush1.bf16.msra.mxu1 %v8265_v36  ;;  %10501 = vst [vmem:[#allocation126_spill] sm:$0xff] %v8441_v40  ;;  %10502 = vst [vmem:[#allocation127_spill] sm:$0xff] %v8443_v57  ;;  %v8447_v36 = vpack.c.bf16 %v1337_v51, %v1333_v34  ;;  %v1340_v34 = vld [vmem:[#allocation8 + $0x90] sm:$0xff] }
 0x29a   :  { %5131 = vmatprep.subr.bf16.mxu0 %v8269_v58  ;;  %5195 = vmatprep.subr.bf16.mxu1 %v8271_v17  ;;  %v8445_v17 = vpack.c.bf16 %v1335_v49, %v1331_v25  ;;  %v8455_v49 = vpack.c.bf16 %v1334_v26, %v1330_v47 }
 0x29b   :  { %10504 = vst [vmem:[#allocation129_spill] sm:$0xff] %v8447_v36 }
 0x29c   :  { %10503 = vst [vmem:[#allocation128_spill] sm:$0xff] %v8445_v17  ;;  %10505 = vst [vmem:[#allocation130_spill] sm:$0xff] %v8455_v49 }
 0x29d   :  { %v7366_v38 = vpop.eup %7365  ;;  %5133 = vmatpush1.bf16.msra.mxu0 %v8275_v50  ;;  %5197 = vmatpush1.bf16.msra.mxu1 %v8277_v0  ;;  %v1336_v50 = vld [vmem:[#allocation8 + $0x70] sm:$0xff] }
 0x29e   :  { %v8437_v58 = vmul.f32 %v7366_v38, %v7364_v14  ;;  %5199 = vmatprep.subr.bf16.mxu0 %v8431_v56  ;;  %5263 = vmatprep.subr.bf16.mxu1 %v8433_v35  ;;  %v1343_v14 = vld [vmem:[#allocation8 + $0xa8] sm:$0xff]  ;;  %v1341_v38 = vld [vmem:[#allocation8 + $0x98] sm:$0xff]  ;;  %v8457_v25 = vpack.c.bf16 %v1336_v50, %v1332_v16  ;;  %v8469_v50 = vpack.c.bf16 %v1342_v27, %v1338_v62 }
 0x29f   :  { %v1345_v35 = vld [vmem:[#allocation8 + $0xb8] sm:$0xff]  ;;  %v8461_v21 = vpack.c.bf16 %v1343_v14, %v1339_v43  ;;  %v1346_v43 = vld [vmem:[#allocation8 + $0xc0] sm:$0xff]  ;;  %v1348_v14 = vld [vmem:[#allocation8 + $0xd0] sm:$0xff] }
 0x2a0   :  { %1220 = vmatprep.mubr.f32.mxu0 %v8437_v58  ;;  %1291 = vmatprep.mubr.f32.mxu1 %v8437_v58  ;;  %10506 = vst [vmem:[#allocation131_spill] sm:$0xff] %v8457_v25  ;;  %v8463_v51 = vpack.c.bf16 %v1345_v35, %v1341_v38  ;;  %v1349_v56 = vld [vmem:[#allocation8 + $0xd8] sm:$0xff]  ;;  %10509 = vst [vmem:[#allocation134_spill] sm:$0xff] %v8469_v50  ;;  %v1350_v35 = vld [vmem:[#allocation8 + $0xe0] sm:$0xff] }
 0x2a1   :  { %1221 = vmatmul.mubr.f32.vlgmr.msra.gmra.mrb[8].mxu0 %v8345_v31  ;;  %1292 = vmatmul.mubr.f32.vlgmr.msra.gmra.mrb[8].mxu1 %v8345_v31  ;;  %10507 = vst [vmem:[#allocation132_spill] sm:$0xff] %v8461_v21  ;;  %v1344_v31 = vld [vmem:[#allocation8 + $0xb0] sm:$0xff]  ;;  %v8481_v62 = vpack.c.bf16 %v1350_v35, %v1346_v43 }
 0x2a2   :  { %5201 = vmatpush1.bf16.msra.mxu0 %v8441_v40  ;;  %5265 = vmatpush1.bf16.msra.mxu1 %v8443_v57  ;;  %10508 = vst [vmem:[#allocation133_spill] sm:$0xff] %v8463_v51  ;;  %v1351_v40 = vld [vmem:[#allocation8 + $0xe8] sm:$0xff]  ;;  %v1353_v57 = vld [vmem:[#allocation8 + $0xf8] sm:$0xff]  ;;  %v8471_v16 = vpack.c.bf16 %v1344_v31, %v1340_v34  ;;  %v1352_v38 = vld [vmem:[#allocation8 + $0xf0] sm:$0xff] }
 0x2a3   :  { %5203 = vmatprep.subr.bf16.mxu0 %v8445_v17  ;;  %5267 = vmatprep.subr.bf16.mxu1 %v8447_v36  ;;  %v8475_v47 = vpack.c.bf16 %v1351_v40, %v1347_v63  ;;  %v8477_v26 = vpack.c.bf16 %v1353_v57, %v1349_v56  ;;  %v1355_v36 = vld [vmem:[#allocation8 + $0x108] sm:$0xff]  ;;  %v1357_v17 = vld [vmem:[#allocation8 + $0x118] sm:$0xff]  ;;  %10513 = vst [vmem:[#allocation138_spill] sm:$0xff] %v8481_v62  ;;  %v1354_v34 = vld [vmem:[#allocation8 + $0x100] sm:$0xff] }
 0x2a4   :  { %1536 = vmatprep.mubr.f32.mxu0 %v10382_v44  ;;  %1607 = vmatprep.mubr.f32.mxu1 %v10382_v44  ;;  %10510 = vst [vmem:[#allocation135_spill] sm:$0xff] %v8471_v16  ;;  %v8483_v27 = vpack.c.bf16 %v1352_v38, %v1348_v14  ;;  %v1358_v31 = vld [vmem:[#allocation8 + $0x120] sm:$0xff]  ;;  %v1356_v57 = vld [vmem:[#allocation8 + $0x110] sm:$0xff] }
 0x2a5   :  { %10511 = vst [vmem:[#allocation136_spill] sm:$0xff] %v8475_v47  ;;  %10512 = vst [vmem:[#allocation137_spill] sm:$0xff] %v8477_v26  ;;  %v1360_v63 = vld [vmem:[#allocation8 + $0x130] sm:$0xff]  ;;  %v8493_v43 = vpack.c.bf16 %v1358_v31, %v1354_v34  ;;  %v1362_v14 = vld [vmem:[#allocation8 + $0x140] sm:$0xff] }
 0x2a6   :  { %5205 = vmatpush1.bf16.msra.mxu0 %v8455_v49  ;;  %5269 = vmatpush1.bf16.msra.mxu1 %v8457_v25  ;;  %v1359_v49 = vld [vmem:[#allocation8 + $0x128] sm:$0xff]  ;;  %v1361_v25 = vld [vmem:[#allocation8 + $0x138] sm:$0xff]  ;;  %10514 = vst [vmem:[#allocation139_spill] sm:$0xff] %v8483_v27  ;;  %v8495_v35 = vpack.c.bf16 %v1360_v63, %v1356_v57  ;;  %v1366_v38 = vld [vmem:[#allocation8 + $0x160] sm:$0xff] }
 0x2a7   :  { %5207 = vmatprep.subr.bf16.mxu0 %v8461_v21  ;;  %5271 = vmatprep.subr.bf16.mxu1 %v8463_v51  ;;  %v8487_v56 = vpack.c.bf16 %v1359_v49, %v1355_v36  ;;  %v8489_v40 = vpack.c.bf16 %v1361_v25, %v1357_v17  ;;  %v1363_v51 = vld [vmem:[#allocation8 + $0x148] sm:$0xff]  ;;  %v1365_v21 = vld [vmem:[#allocation8 + $0x158] sm:$0xff]  ;;  %10517 = vst [vmem:[#allocation142_spill] sm:$0xff] %v8493_v43  ;;  %v1364_v49 = vld [vmem:[#allocation8 + $0x150] sm:$0xff] }
 0x2a8   :  { %10518 = vst [vmem:[#allocation143_spill] sm:$0xff] %v8495_v35  ;;  %v1368_v25 = vld [vmem:[#allocation8 + $0x170] sm:$0xff]  ;;  %v8505_v34 = vpack.c.bf16 %v1366_v38, %v1362_v14  ;;  %v1370_v57 = vld [vmem:[#allocation8 + $0x180] sm:$0xff] }
 0x2a9   :  { %10515 = vst [vmem:[#allocation140_spill] sm:$0xff] %v8487_v56  ;;  %10516 = vst [vmem:[#allocation141_spill] sm:$0xff] %v8489_v40  ;;  %v8507_v31 = vpack.c.bf16 %v1368_v25, %v1364_v49  ;;  %v1374_v63 = vld [vmem:[#allocation8 + $0x1a0] sm:$0xff] }
 0x2aa   :  { %5209 = vmatpush1.bf16.msra.mxu0 %v8469_v50  ;;  %5273 = vmatpush1.bf16.msra.mxu1 %v8471_v16  ;;  %v1367_v50 = vld [vmem:[#allocation8 + $0x168] sm:$0xff]  ;;  %v1369_v16 = vld [vmem:[#allocation8 + $0x178] sm:$0xff]  ;;  %10521 = vst [vmem:[#allocation146_spill] sm:$0xff] %v8505_v34  ;;  %v8517_v14 = vpack.c.bf16 %v1374_v63, %v1370_v57  ;;  %v1378_v49 = vld [vmem:[#allocation8 + $0x1c0] sm:$0xff] }
 0x2ab   :  { %5211 = vmatprep.subr.bf16.mxu0 %v8475_v47  ;;  %5275 = vmatprep.subr.bf16.mxu1 %v8477_v26  ;;  %v8499_v36 = vpack.c.bf16 %v1367_v50, %v1363_v51  ;;  %v8501_v17 = vpack.c.bf16 %v1369_v16, %v1365_v21  ;;  %v1371_v26 = vld [vmem:[#allocation8 + $0x188] sm:$0xff]  ;;  %v1373_v47 = vld [vmem:[#allocation8 + $0x198] sm:$0xff]  ;;  %10522 = vst [vmem:[#allocation147_spill] sm:$0xff] %v8507_v31  ;;  %v1372_v50 = vld [vmem:[#allocation8 + $0x190] sm:$0xff] }
 0x2ac   :  { %v1376_v16 = vld [vmem:[#allocation8 + $0x1b0] sm:$0xff]  ;;  %10525 = vst [vmem:[#allocation150_spill] sm:$0xff] %v8517_v14  ;;  %v1382_v25 = vld [vmem:[#allocation8 + $0x1e0] sm:$0xff] }
 0x2ad   :  { %10519 = vst [vmem:[#allocation144_spill] sm:$0xff] %v8499_v36  ;;  %10520 = vst [vmem:[#allocation145_spill] sm:$0xff] %v8501_v17  ;;  %v8519_v38 = vpack.c.bf16 %v1376_v16, %v1372_v50  ;;  %v8529_v57 = vpack.c.bf16 %v1382_v25, %v1378_v49  ;;  %v1386_v50 = vld [vmem:[#allocation8 + $0x200] sm:$0xff] }
 0x2ae   :  { %5213 = vmatpush1.bf16.msra.mxu0 %v8481_v62  ;;  %5277 = vmatpush1.bf16.msra.mxu1 %v8483_v27  ;;  %v1375_v62 = vld [vmem:[#allocation8 + $0x1a8] sm:$0xff]  ;;  %v1377_v27 = vld [vmem:[#allocation8 + $0x1b8] sm:$0xff]  ;;  %v1390_v16 = vld [vmem:[#allocation8 + $0x220] sm:$0xff] }
 0x2af   :  { %5215 = vmatprep.subr.bf16.mxu0 %v8487_v56  ;;  %5279 = vmatprep.subr.bf16.mxu1 %v8489_v40  ;;  %v8511_v21 = vpack.c.bf16 %v1375_v62, %v1371_v26  ;;  %v8513_v51 = vpack.c.bf16 %v1377_v27, %v1373_v47  ;;  %v1379_v40 = vld [vmem:[#allocation8 + $0x1c8] sm:$0xff]  ;;  %v1381_v56 = vld [vmem:[#allocation8 + $0x1d8] sm:$0xff]  ;;  %10526 = vst [vmem:[#allocation151_spill] sm:$0xff] %v8519_v38  ;;  %v1380_v62 = vld [vmem:[#allocation8 + $0x1d0] sm:$0xff] }
 0x2b0   :  { %v1384_v27 = vld [vmem:[#allocation8 + $0x1f0] sm:$0xff]  ;;  %10529 = vst [vmem:[#allocation154_spill] sm:$0xff] %v8529_v57  ;;  %v8541_v49 = vpack.c.bf16 %v1390_v16, %v1386_v50 }
 0x2b1   :  { %10523 = vst [vmem:[#allocation148_spill] sm:$0xff] %v8511_v21  ;;  %10524 = vst [vmem:[#allocation149_spill] sm:$0xff] %v8513_v51  ;;  %v8531_v63 = vpack.c.bf16 %v1384_v27, %v1380_v62  ;;  %v1394_v62 = vld [vmem:[#allocation8 + $0x240] sm:$0xff] }
 0x2b2   :  { %5217 = vmatpush1.bf16.msra.mxu0 %v8493_v43  ;;  %5281 = vmatpush1.bf16.msra.mxu1 %v8495_v35  ;;  %v1383_v43 = vld [vmem:[#allocation8 + $0x1e8] sm:$0xff]  ;;  %v1385_v35 = vld [vmem:[#allocation8 + $0x1f8] sm:$0xff]  ;;  %10533 = vst [vmem:[#allocation158_spill] sm:$0xff] %v8541_v49  ;;  %v1398_v27 = vld [vmem:[#allocation8 + $0x260] sm:$0xff] }
 0x2b3   :  { %5219 = vmatprep.subr.bf16.mxu0 %v8499_v36  ;;  %5283 = vmatprep.subr.bf16.mxu1 %v8501_v17  ;;  %v8523_v47 = vpack.c.bf16 %v1383_v43, %v1379_v40  ;;  %v8525_v26 = vpack.c.bf16 %v1385_v35, %v1381_v56  ;;  %v1387_v17 = vld [vmem:[#allocation8 + $0x208] sm:$0xff]  ;;  %v1389_v36 = vld [vmem:[#allocation8 + $0x218] sm:$0xff]  ;;  %10530 = vst [vmem:[#allocation155_spill] sm:$0xff] %v8531_v63  ;;  %v1388_v43 = vld [vmem:[#allocation8 + $0x210] sm:$0xff] }
 0x2b4   :  { %v1392_v35 = vld [vmem:[#allocation8 + $0x230] sm:$0xff]  ;;  %v8553_v50 = vpack.c.bf16 %v1398_v27, %v1394_v62 }
 0x2b5   :  { %10527 = vst [vmem:[#allocation152_spill] sm:$0xff] %v8523_v47  ;;  %10528 = vst [vmem:[#allocation153_spill] sm:$0xff] %v8525_v26  ;;  %v8543_v25 = vpack.c.bf16 %v1392_v35, %v1388_v43  ;;  %v1402_v43 = vld [vmem:[#allocation8 + $0x280] sm:$0xff] }
 0x2b6   :  { %5221 = vmatpush1.bf16.msra.mxu0 %v8505_v34  ;;  %5285 = vmatpush1.bf16.msra.mxu1 %v8507_v31  ;;  %v1391_v34 = vld [vmem:[#allocation8 + $0x228] sm:$0xff]  ;;  %v1393_v31 = vld [vmem:[#allocation8 + $0x238] sm:$0xff]  ;;  %10537 = vst [vmem:[#allocation162_spill] sm:$0xff] %v8553_v50  ;;  %v1406_v35 = vld [vmem:[#allocation8 + $0x2a0] sm:$0xff] }
 0x2b7   :  { %5223 = vmatprep.subr.bf16.mxu0 %v8511_v21  ;;  %5287 = vmatprep.subr.bf16.mxu1 %v8513_v51  ;;  %v8535_v56 = vpack.c.bf16 %v1391_v34, %v1387_v17  ;;  %v8537_v40 = vpack.c.bf16 %v1393_v31, %v1389_v36  ;;  %v1395_v51 = vld [vmem:[#allocation8 + $0x248] sm:$0xff]  ;;  %v1397_v21 = vld [vmem:[#allocation8 + $0x258] sm:$0xff]  ;;  %10534 = vst [vmem:[#allocation159_spill] sm:$0xff] %v8543_v25  ;;  %v1396_v34 = vld [vmem:[#allocation8 + $0x250] sm:$0xff] }
 0x2b8   :  { %v1400_v31 = vld [vmem:[#allocation8 + $0x270] sm:$0xff]  ;;  %v8565_v62 = vpack.c.bf16 %v1406_v35, %v1402_v43 }
 0x2b9   :  { %10531 = vst [vmem:[#allocation156_spill] sm:$0xff] %v8535_v56  ;;  %10532 = vst [vmem:[#allocation157_spill] sm:$0xff] %v8537_v40  ;;  %v8555_v16 = vpack.c.bf16 %v1400_v31, %v1396_v34  ;;  %v1410_v34 = vld [vmem:[#allocation8 + $0x2c0] sm:$0xff] }
 0x2ba   :  { %5225 = vmatpush1.bf16.msra.mxu0 %v8517_v14  ;;  %5289 = vmatpush1.bf16.msra.mxu1 %v8519_v38  ;;  %v1399_v14 = vld [vmem:[#allocation8 + $0x268] sm:$0xff]  ;;  %v1401_v38 = vld [vmem:[#allocation8 + $0x278] sm:$0xff]  ;;  %10541 = vst [vmem:[#allocation166_spill] sm:$0xff] %v8565_v62  ;;  %v1414_v31 = vld [vmem:[#allocation8 + $0x2e0] sm:$0xff] }
 0x2bb   :  { %5227 = vmatprep.subr.bf16.mxu0 %v8523_v47  ;;  %5291 = vmatprep.subr.bf16.mxu1 %v8525_v26  ;;  %v8547_v36 = vpack.c.bf16 %v1399_v14, %v1395_v51  ;;  %v8549_v17 = vpack.c.bf16 %v1401_v38, %v1397_v21  ;;  %v1403_v26 = vld [vmem:[#allocation8 + $0x288] sm:$0xff]  ;;  %v1405_v47 = vld [vmem:[#allocation8 + $0x298] sm:$0xff]  ;;  %10538 = vst [vmem:[#allocation163_spill] sm:$0xff] %v8555_v16  ;;  %v1404_v14 = vld [vmem:[#allocation8 + $0x290] sm:$0xff] }
 0x2bc   :  { %v1408_v38 = vld [vmem:[#allocation8 + $0x2b0] sm:$0xff]  ;;  %v8577_v43 = vpack.c.bf16 %v1414_v31, %v1410_v34 }
 0x2bd   :  { %10535 = vst [vmem:[#allocation160_spill] sm:$0xff] %v8547_v36  ;;  %10536 = vst [vmem:[#allocation161_spill] sm:$0xff] %v8549_v17  ;;  %v8567_v27 = vpack.c.bf16 %v1408_v38, %v1404_v14  ;;  %v1418_v14 = vld [vmem:[#allocation8 + $0x300] sm:$0xff] }
 0x2be   :  { %5229 = vmatpush1.bf16.msra.mxu0 %v8529_v57  ;;  %5293 = vmatpush1.bf16.msra.mxu1 %v8531_v63  ;;  %v1407_v57 = vld [vmem:[#allocation8 + $0x2a8] sm:$0xff]  ;;  %v1409_v63 = vld [vmem:[#allocation8 + $0x2b8] sm:$0xff]  ;;  %10545 = vst [vmem:[#allocation170_spill] sm:$0xff] %v8577_v43  ;;  %v1422_v38 = vld [vmem:[#allocation8 + $0x320] sm:$0xff] }
 0x2bf   :  { %5231 = vmatprep.subr.bf16.mxu0 %v8535_v56  ;;  %5295 = vmatprep.subr.bf16.mxu1 %v8537_v40  ;;  %v8559_v21 = vpack.c.bf16 %v1407_v57, %v1403_v26  ;;  %v8561_v51 = vpack.c.bf16 %v1409_v63, %v1405_v47  ;;  %v1411_v40 = vld [vmem:[#allocation8 + $0x2c8] sm:$0xff]  ;;  %v1413_v56 = vld [vmem:[#allocation8 + $0x2d8] sm:$0xff]  ;;  %10542 = vst [vmem:[#allocation167_spill] sm:$0xff] %v8567_v27  ;;  %v1412_v57 = vld [vmem:[#allocation8 + $0x2d0] sm:$0xff] }
 0x2c0   :  { %v1416_v63 = vld [vmem:[#allocation8 + $0x2f0] sm:$0xff]  ;;  %v8589_v34 = vpack.c.bf16 %v1422_v38, %v1418_v14 }
 0x2c1   :  { %10539 = vst [vmem:[#allocation164_spill] sm:$0xff] %v8559_v21  ;;  %10540 = vst [vmem:[#allocation165_spill] sm:$0xff] %v8561_v51  ;;  %v8579_v35 = vpack.c.bf16 %v1416_v63, %v1412_v57  ;;  %v1426_v57 = vld [vmem:[#allocation8 + $0x340] sm:$0xff] }
 0x2c2   :  { %5233 = vmatpush1.bf16.msra.mxu0 %v8541_v49  ;;  %5297 = vmatpush1.bf16.msra.mxu1 %v8543_v25  ;;  %v1415_v49 = vld [vmem:[#allocation8 + $0x2e8] sm:$0xff]  ;;  %v1417_v25 = vld [vmem:[#allocation8 + $0x2f8] sm:$0xff]  ;;  %10549 = vst [vmem:[#allocation174_spill] sm:$0xff] %v8589_v34  ;;  %v1430_v63 = vld [vmem:[#allocation8 + $0x360] sm:$0xff] }
 0x2c3   :  { %5235 = vmatprep.subr.bf16.mxu0 %v8547_v36  ;;  %5299 = vmatprep.subr.bf16.mxu1 %v8549_v17  ;;  %v8571_v47 = vpack.c.bf16 %v1415_v49, %v1411_v40  ;;  %v8573_v26 = vpack.c.bf16 %v1417_v25, %v1413_v56  ;;  %v1419_v17 = vld [vmem:[#allocation8 + $0x308] sm:$0xff]  ;;  %v1421_v36 = vld [vmem:[#allocation8 + $0x318] sm:$0xff]  ;;  %10546 = vst [vmem:[#allocation171_spill] sm:$0xff] %v8579_v35  ;;  %v1420_v49 = vld [vmem:[#allocation8 + $0x310] sm:$0xff] }
 0x2c4   :  { %v1424_v25 = vld [vmem:[#allocation8 + $0x330] sm:$0xff]  ;;  %v8601_v14 = vpack.c.bf16 %v1430_v63, %v1426_v57 }
 0x2c5   :  { %10543 = vst [vmem:[#allocation168_spill] sm:$0xff] %v8571_v47  ;;  %10544 = vst [vmem:[#allocation169_spill] sm:$0xff] %v8573_v26  ;;  %v8591_v31 = vpack.c.bf16 %v1424_v25, %v1420_v49  ;;  %v1434_v49 = vld [vmem:[#allocation8 + $0x380] sm:$0xff] }
 0x2c6   :  { %5237 = vmatpush1.bf16.msra.mxu0 %v8553_v50  ;;  %5301 = vmatpush1.bf16.msra.mxu1 %v8555_v16  ;;  %v1423_v50 = vld [vmem:[#allocation8 + $0x328] sm:$0xff]  ;;  %v1425_v16 = vld [vmem:[#allocation8 + $0x338] sm:$0xff]  ;;  %10553 = vst [vmem:[#allocation178_spill] sm:$0xff] %v8601_v14  ;;  %v1438_v25 = vld [vmem:[#allocation8 + $0x3a0] sm:$0xff] }
 0x2c7   :  { %5239 = vmatprep.subr.bf16.mxu0 %v8559_v21  ;;  %5303 = vmatprep.subr.bf16.mxu1 %v8561_v51  ;;  %v8583_v56 = vpack.c.bf16 %v1423_v50, %v1419_v17  ;;  %v8585_v40 = vpack.c.bf16 %v1425_v16, %v1421_v36  ;;  %v1427_v51 = vld [vmem:[#allocation8 + $0x348] sm:$0xff]  ;;  %v1429_v21 = vld [vmem:[#allocation8 + $0x358] sm:$0xff]  ;;  %10550 = vst [vmem:[#allocation175_spill] sm:$0xff] %v8591_v31  ;;  %v1428_v50 = vld [vmem:[#allocation8 + $0x350] sm:$0xff] }
 0x2c8   :  { %v1432_v16 = vld [vmem:[#allocation8 + $0x370] sm:$0xff]  ;;  %v8613_v57 = vpack.c.bf16 %v1438_v25, %v1434_v49 }
 0x2c9   :  { %10547 = vst [vmem:[#allocation172_spill] sm:$0xff] %v8583_v56  ;;  %10548 = vst [vmem:[#allocation173_spill] sm:$0xff] %v8585_v40  ;;  %v8603_v38 = vpack.c.bf16 %v1432_v16, %v1428_v50  ;;  %v1442_v50 = vld [vmem:[#allocation8 + $0x3c0] sm:$0xff]  ;;  %v1448_v16 = vld [vmem:[#allocation8 + $0x3f0] sm:$0xff] }
 0x2ca   :  { %5241 = vmatpush1.bf16.msra.mxu0 %v8565_v62  ;;  %5305 = vmatpush1.bf16.msra.mxu1 %v8567_v27  ;;  %v1431_v62 = vld [vmem:[#allocation8 + $0x368] sm:$0xff]  ;;  %v1433_v27 = vld [vmem:[#allocation8 + $0x378] sm:$0xff]  ;;  %10557 = vst [vmem:[#allocation182_spill] sm:$0xff] %v8613_v57 }
 0x2cb   :  { %5243 = vmatprep.subr.bf16.mxu0 %v8571_v47  ;;  %5307 = vmatprep.subr.bf16.mxu1 %v8573_v26  ;;  %v8595_v36 = vpack.c.bf16 %v1431_v62, %v1427_v51  ;;  %v8597_v17 = vpack.c.bf16 %v1433_v27, %v1429_v21  ;;  %v1435_v26 = vld [vmem:[#allocation8 + $0x388] sm:$0xff]  ;;  %v1437_v47 = vld [vmem:[#allocation8 + $0x398] sm:$0xff]  ;;  %10554 = vst [vmem:[#allocation179_spill] sm:$0xff] %v8603_v38  ;;  %v1436_v62 = vld [vmem:[#allocation8 + $0x390] sm:$0xff] }
 0x2cc   :  { %v1440_v27 = vld [vmem:[#allocation8 + $0x3b0] sm:$0xff] }
 0x2cd   :  { %10551 = vst [vmem:[#allocation176_spill] sm:$0xff] %v8595_v36  ;;  %10552 = vst [vmem:[#allocation177_spill] sm:$0xff] %v8597_v17  ;;  %v8615_v63 = vpack.c.bf16 %v1440_v27, %v1436_v62  ;;  %v10568_v62 = vld [vmem:[#allocation43_spill] sm:$0xff]  ;;  %v10569_v27 = vld [vmem:[#allocation44_spill] sm:$0xff] }
 0x2ce   :  { %5245 = vmatpush1.bf16.msra.mxu0 %v8577_v43  ;;  %5309 = vmatpush1.bf16.msra.mxu1 %v8579_v35  ;;  %v1439_v43 = vld [vmem:[#allocation8 + $0x3a8] sm:$0xff]  ;;  %v1441_v35 = vld [vmem:[#allocation8 + $0x3b8] sm:$0xff] }
 0x2cf   :  { %5247 = vmatprep.subr.bf16.mxu0 %v8583_v56  ;;  %5311 = vmatprep.subr.bf16.mxu1 %v8585_v40  ;;  %v8607_v21 = vpack.c.bf16 %v1439_v43, %v1435_v26  ;;  %v8609_v51 = vpack.c.bf16 %v1441_v35, %v1437_v47  ;;  %v1443_v40 = vld [vmem:[#allocation8 + $0x3c8] sm:$0xff]  ;;  %v1445_v56 = vld [vmem:[#allocation8 + $0x3d8] sm:$0xff]  ;;  %10558 = vst [vmem:[#allocation183_spill] sm:$0xff] %v8615_v63  ;;  %v1446_v43 = vld [vmem:[#allocation8 + $0x3e0] sm:$0xff] }
 0x2d0   :  { %v1444_v35 = vld [vmem:[#allocation8 + $0x3d0] sm:$0xff]  ;;  %v8625_v49 = vpack.c.bf16 %v1446_v43, %v1442_v50  ;;  %v100_v50 = vpop.permute.xlu1 %99  ;;  %v10570_v43 = vld [vmem:[#allocation47_spill] sm:$0xff] }
 0x2d1   :  { %10555 = vst [vmem:[#allocation180_spill] sm:$0xff] %v8607_v21  ;;  %10556 = vst [vmem:[#allocation181_spill] sm:$0xff] %v8609_v51  ;;  %v8627_v25 = vpack.c.bf16 %v1448_v16, %v1444_v35  ;;  %v156_v35 = vmul.f32 %v10570_v43, %v100_v50  ;;  %v10571_v16 = vld [vmem:[#allocation48_spill] sm:$0xff]  ;;  %v158_v43 = vmul.f32 %v10437_v1, %v100_v50 }
 0x2d2   :  { %5249 = vmatpush1.bf16.msra.mxu0 %v8589_v34  ;;  %5313 = vmatpush1.bf16.msra.mxu1 %v8591_v31  ;;  %v1447_v34 = vld [vmem:[#allocation8 + $0x3e8] sm:$0xff]  ;;  %v1449_v31 = vld [vmem:[#allocation8 + $0x3f8] sm:$0xff]  ;;  %10561 = vst [vmem:[#allocation186_spill] sm:$0xff] %v8625_v49 }
 0x2d3   :  { %5251 = vmatprep.subr.bf16.mxu0 %v8595_v36  ;;  %5315 = vmatprep.subr.bf16.mxu1 %v8597_v17  ;;  %v8619_v47 = vpack.c.bf16 %v1447_v34, %v1443_v40  ;;  %v8621_v26 = vpack.c.bf16 %v1449_v31, %v1445_v56  ;;  %10562 = vst [vmem:[#allocation187_spill] sm:$0xff] %v8627_v25  ;;  %v10564_v56 = vld [vmem:[#allocation39_spill] sm:$0xff]  ;;  %v10565_v40 = vld [vmem:[#allocation40_spill] sm:$0xff]  ;;  %v10566_v34 = vld [vmem:[#allocation41_spill] sm:$0xff] }
 0x2d4   :  { %v10567_v31 = vld [vmem:[#allocation42_spill] sm:$0xff] }
 0x2d5   :  { %10559 = vst [vmem:[#allocation184_spill] sm:$0xff] %v8619_v47  ;;  %10560 = vst [vmem:[#allocation185_spill] sm:$0xff] %v8621_v26 }
 0x2d6   :  { %5253 = vmatpush1.bf16.msra.mxu0 %v8601_v14  ;;  %5317 = vmatpush1.bf16.msra.mxu1 %v8603_v38 }
 0x2d7   :  { %5255 = vmatprep.subr.bf16.mxu0 %v8607_v21  ;;  %5319 = vmatprep.subr.bf16.mxu1 %v8609_v51 }
 0x2da   :  { %5257 = vmatpush1.bf16.msra.mxu0 %v8613_v57  ;;  %5321 = vmatpush1.bf16.msra.mxu1 %v8615_v63 }
 0x2db   :  { %5259 = vmatprep.subr.bf16.mxu0 %v8619_v47  ;;  %5323 = vmatprep.subr.bf16.mxu1 %v8621_v26 }
 0x2de   :  { %5261 = vmatpush1.bf16.msra.mxu0 %v8625_v49  ;;  %5325 = vmatpush1.bf16.msra.mxu1 %v8627_v25 }
 0x2df   :  { %5327 = vmatprep.subr.bf16.mxu0 %v7892_v6  ;;  %5359 = vmatprep.subr.bf16.mxu1 %v7894_v10 }
 0x2e1   :  { %1537 = vmatmul.mubr.f32.vlgmr.msra.gmra.mrb[10].mxu0 %v8437_v58  ;;  %1608 = vmatmul.mubr.f32.vlgmr.msra.gmra.mrb[10].mxu1 %v8437_v58  ;;  %v10563_v58 = vld [vmem:[#allocation38_spill] sm:$0xff] }
 0x2e2   :  { %5329 = vmatpush1.bf16.msra.mxu0 %v7896_v11  ;;  %5361 = vmatpush1.bf16.msra.mxu1 %v7899_v15 }
 0x2e3   :  { %5331 = vmatprep.subr.bf16.mxu0 %v7903_v19  ;;  %5363 = vmatprep.subr.bf16.mxu1 %v7905_v20 }
 0x2e4   :  { %1706 = vmatprep.mubr.f32.mxu0 %v10382_v44  ;;  %1777 = vmatprep.mubr.f32.mxu1 %v10382_v44 }
 0x2e6   :  { %5333 = vmatpush1.bf16.msra.mxu0 %v7908_v24  ;;  %5365 = vmatpush1.bf16.msra.mxu1 %v7912_v28 }
 0x2e7   :  { %5335 = vmatprep.subr.bf16.mxu0 %v7914_v29  ;;  %5367 = vmatprep.subr.bf16.mxu1 %v7916_v33 }
 0x2ea   :  { %5337 = vmatpush1.bf16.msra.mxu0 %v7919_v37  ;;  %5369 = vmatpush1.bf16.msra.mxu1 %v7923_v41 }
 0x2eb   :  { %5339 = vmatprep.subr.bf16.mxu0 %v7925_v42  ;;  %5371 = vmatprep.subr.bf16.mxu1 %v7928_v46 }
 0x2ee   :  { %5341 = vmatpush1.bf16.msra.mxu0 %v7931_v53  ;;  %5373 = vmatpush1.bf16.msra.mxu1 %v7935_v54 }
 0x2ef   :  { %5343 = vmatprep.subr.bf16.mxu0 %v7937_v55  ;;  %5375 = vmatprep.subr.bf16.mxu1 %v7940_v59 }
 0x2f2   :  { %5345 = vmatpush1.bf16.msra.mxu0 %v7943_v2  ;;  %5377 = vmatpush1.bf16.msra.mxu1 %v7947_v3 }
 0x2f3   :  { %5347 = vmatprep.subr.bf16.mxu0 %v7949_v4  ;;  %5379 = vmatprep.subr.bf16.mxu1 %v7952_v9 }
 0x2f6   :  { %5349 = vmatpush1.bf16.msra.mxu0 %v7955_v18  ;;  %5381 = vmatpush1.bf16.msra.mxu1 %v7959_v22 }
 0x2f7   :  { %5351 = vmatprep.subr.bf16.mxu0 %v7961_v23  ;;  %5383 = vmatprep.subr.bf16.mxu1 %v7967_v30  ;;  %v157_v30 = vmul.f32 %v10571_v16, %v100_v50 }
 0x2fa   :  { %5353 = vmatpush1.bf16.msra.mxu0 %v7973_v39  ;;  %5385 = vmatpush1.bf16.msra.mxu1 %v10563_v58  ;;  %v10572_v39 = vld [vmem:[#allocation50_spill] sm:$0xff]  ;;  %v10573_v58 = vld [vmem:[#allocation51_spill] sm:$0xff] }
 0x2fb   :  { %5355 = vmatprep.subr.bf16.mxu0 %v10564_v56  ;;  %5387 = vmatprep.subr.bf16.mxu1 %v10565_v40  ;;  %v210_v23 = vadd.f32 %v10572_v39, %v156_v35  ;;  %v211_v22 = vadd.f32 %v10573_v58, %v157_v30  ;;  %v159_v40 = vmul.f32 %v8069_v32, %v100_v50  ;;  %v10579_v50 = vld [vmem:[#allocation63_spill] sm:$0xff] }
 0x2fc   :  { %v212_v35 = vadd.f32 %v10438_v5, %v158_v43  ;;  %v10580_v43 = vld [vmem:[#allocation64_spill] sm:$0xff] }
 0x2fe   :  { %5357 = vmatpush1.bf16.msra.mxu0 %v10566_v34  ;;  %5389 = vmatpush1.bf16.msra.mxu1 %v10567_v31 }
 0x2ff   :  { %5391 = vmatprep.subr.bf16.mxu0 %v10568_v62  ;;  %5455 = vmatprep.subr.bf16.mxu1 %v10569_v27  ;;  %v213_v27 = vadd.f32 %v8077_v45, %v159_v40 }
 0x333   :  { %v1056_v56 = vpop.f32.mrb[6].mxu0  ;;  %v1127_v18 = vpop.f32.mrb[6].mxu1 }
 0x334   :  { %v1057_v34 = vadd.f32 %v1056_v56, %v210_v23  ;;  %v1058_v9 = vpop.f32.mrb[7].mxu0  ;;  %v1129_v31 = vpop.f32.mrb[7].mxu1  ;;  %v1128_v58 = vadd.f32 %v1127_v18, %v212_v35  ;;  %v10582_v35 = vld [vmem:[#allocation66_spill] sm:$0xff] }
 0x335   :  { %v1059_v4 = vadd.f32 %v1058_v9, %v211_v22  ;;  %v1130_v16 = vadd.f32 %v1129_v31, %v213_v27  ;;  %v10578_v27 = vld [vmem:[#allocation62_spill] sm:$0xff] }
 0x336   :  { %v4685_v62 = vmul.f32 -1.442695, %v1057_v34 }
 0x337   :  { %v4686_v3 = vmul.f32 -1.442695, %v1059_v4  ;;  %v4687_v30 = vmul.f32 -1.442695, %v1130_v16  ;;  %v10581_v16 = vld [vmem:[#allocation65_spill] sm:$0xff] }
 0x338   :  { %7367 = vpow2.f32 %v4685_v62 }
 0x339   :  { %7369 = vpow2.f32 %v4686_v3 }
 0x33a   :  { %7371 = vpow2.f32 %v4687_v30  ;;  %v10583_v30 = vld [vmem:[#allocation67_spill] sm:$0xff] }
 0x33b   :  { %7373 = vtanh.f32 %v1128_v58  ;;  %v10576_v58 = vld [vmem:[#allocation60_spill] sm:$0xff] }
 0x342   :  { %v7368_v39 = vpop.eup %7367 }
 0x343   :  { %v7370_v2 = vpop.eup %7369  ;;  %v1135_v32 = vadd.f32 1.0, %v7368_v39 }
 0x344   :  { %v1141_v23 = vadd.f32 1.0, %v7370_v2  ;;  %v7372_v4 = vpop.eup %7371  ;;  %v10574_v2 = vld [vmem:[#allocation58_spill] sm:$0xff] }
 0x345   :  { %7375 = vrcp.f32 %v1135_v32  ;;  %v7374_v9 = vpop.eup %7373  ;;  %v1148_v34 = vadd.f32 1.0, %v7372_v4  ;;  %v10575_v32 = vld [vmem:[#allocation59_spill] sm:$0xff]  ;;  %v10585_v4 = vld [vmem:[#allocation69_spill] sm:$0xff] }
 0x346   :  { %7377 = vrcp.f32 %v1141_v23  ;;  %v10584_v23 = vld [vmem:[#allocation68_spill] sm:$0xff] }
 0x347   :  { %7379 = vrcp.f32 %v1148_v34  ;;  %v10590_v34 = vld [vmem:[#allocation74_spill] sm:$0xff] }
 0x34f   :  { %v7376_v22 = vpop.eup %7375 }
 0x350   :  { %v7378_v56 = vpop.eup %7377  ;;  %v1152_v40 = vmul.f32 %v7376_v22, %v7374_v9  ;;  %v10586_v9 = vld [vmem:[#allocation70_spill] sm:$0xff]  ;;  %v10587_v22 = vld [vmem:[#allocation71_spill] sm:$0xff] }
 0x351   :  { %v1151_v3 = vmul.f32 %v7378_v56, %v8342_v48  ;;  %v7380_v18 = vpop.eup %7379  ;;  %v10577_v48 = vld [vmem:[#allocation61_spill] sm:$0xff]  ;;  %v10588_v56 = vld [vmem:[#allocation72_spill] sm:$0xff] }
 0x353   :  { %v8680_v31 = vadd.f32 %v1152_v40, %v1151_v3  ;;  %v10589_v40 = vld [vmem:[#allocation73_spill] sm:$0xff]  ;;  %v10591_v3 = vld [vmem:[#allocation75_spill] sm:$0xff] }
 0x355   :  { %7381 = vtanh.f32 %v8680_v31 }
 0x35f   :  { %v7382_v39 = vpop.eup %7381 }
 0x360   :  { %v8683_v62 = vmul.f32 %v7382_v39, %v7380_v18 }
 0x362   :  { %1707 = vmatmul.mubr.f32.vlgmr.msra.gmra.mrb[12].mxu0 %v8683_v62  ;;  %1778 = vmatmul.mubr.f32.vlgmr.msra.gmra.mrb[12].mxu1 %v8683_v62 }
 0x363   :  { %5393 = vmatpush1.bf16.msra.mxu0 %v10574_v2  ;;  %5457 = vmatpush1.bf16.msra.mxu1 %v10575_v32 }
 0x364   :  { %5395 = vmatprep.subr.bf16.mxu0 %v10576_v58  ;;  %5459 = vmatprep.subr.bf16.mxu1 %v10577_v48 }
 0x367   :  { %5397 = vmatpush1.bf16.msra.mxu0 %v10578_v27  ;;  %5461 = vmatpush1.bf16.msra.mxu1 %v10579_v50 }
 0x368   :  { %5399 = vmatprep.subr.bf16.mxu0 %v10580_v43  ;;  %5463 = vmatprep.subr.bf16.mxu1 %v10581_v16  ;;  %v10596_v43 = vld [vmem:[#allocation80_spill] sm:$0xff] }
 0x36b   :  { %5401 = vmatpush1.bf16.msra.mxu0 %v10582_v35  ;;  %5465 = vmatpush1.bf16.msra.mxu1 %v10583_v30  ;;  %v10592_v30 = vld [vmem:[#allocation77_spill] sm:$0xff] }
 0x36c   :  { %5403 = vmatprep.subr.bf16.mxu0 %v10584_v23  ;;  %5467 = vmatprep.subr.bf16.mxu1 %v10585_v4  ;;  %v10593_v23 = vld [vmem:[#allocation57_spill] sm:$0xff] }
 0x36f   :  { %5405 = vmatpush1.bf16.msra.mxu0 %v10586_v9  ;;  %5469 = vmatpush1.bf16.msra.mxu1 %v10587_v22 }
 0x370   :  { %5407 = vmatprep.subr.bf16.mxu0 %v10588_v56  ;;  %5471 = vmatprep.subr.bf16.mxu1 %v10589_v40  ;;  %v10594_v56 = vld [vmem:[#allocation78_spill] sm:$0xff]  ;;  %v10595_v40 = vld [vmem:[#allocation79_spill] sm:$0xff] }
 0x373   :  { %5409 = vmatpush1.bf16.msra.mxu0 %v10590_v34  ;;  %5473 = vmatpush1.bf16.msra.mxu1 %v10591_v3  ;;  %v10597_v3 = vld [vmem:[#allocation81_spill] sm:$0xff] }
 0x374   :  { %v1222_v18 = vpop.f32.mrb[8].mxu0  ;;  %v1293_v39 = vpop.f32.mrb[8].mxu1  ;;  %5411 = vmatprep.subr.bf16.mxu0 %v10462_v60  ;;  %5475 = vmatprep.subr.bf16.mxu1 %v10592_v30  ;;  %v10598_v60 = vld [vmem:[#allocation82_spill] sm:$0xff]  ;;  %v10599_v30 = vld [vmem:[#allocation83_spill] sm:$0xff] }
 0x375   :  { %v1223_v4 = vadd.f32 %v1222_v18, %v10593_v23  ;;  %v1224_v35 = vpop.f32.mrb[9].mxu0  ;;  %v1295_v9 = vpop.f32.mrb[9].mxu1  ;;  %v10600_v18 = vld [vmem:[#allocation121_spill] sm:$0xff] }
 0x376   :  { %v1225_v22 = vadd.f32 %v1224_v35, %v8372_v12  ;;  %v1296_v23 = vadd.f32 %v1295_v9, %v10600_v18  ;;  %v10601_v35 = vld [vmem:[#allocation85_spill] sm:$0xff] }
 0x377   :  { %v4688_v16 = vmul.f32 -1.442695, %v1223_v4  ;;  %5413 = vmatpush1.bf16.msra.mxu0 %v10594_v56  ;;  %5477 = vmatpush1.bf16.msra.mxu1 %v10595_v40  ;;  %v10602_v4 = vld [vmem:[#allocation86_spill] sm:$0xff] }
 0x378   :  { %v4689_v34 = vmul.f32 -1.442695, %v1225_v22  ;;  %5415 = vmatprep.subr.bf16.mxu0 %v10596_v43  ;;  %5479 = vmatprep.subr.bf16.mxu1 %v10597_v3  ;;  %v4690_v22 = vmul.f32 -1.442695, %v1296_v23  ;;  %v10603_v43 = vld [vmem:[#allocation88_spill] sm:$0xff]  ;;  %v10604_v3 = vld [vmem:[#allocation89_spill] sm:$0xff] }
 0x379   :  { %7383 = vpow2.f32 %v4688_v16  ;;  %v10605_v16 = vld [vmem:[#allocation122_spill] sm:$0xff] }
 0x37a   :  { %7385 = vpow2.f32 %v4689_v34  ;;  %v1294_v34 = vadd.f32 %v1293_v39, %v10605_v16  ;;  %v10606_v40 = vld [vmem:[#allocation90_spill] sm:$0xff]  ;;  %v10612_v39 = vld [vmem:[#allocation96_spill] sm:$0xff] }
 0x37b   :  { %5417 = vmatpush1.bf16.msra.mxu0 %v10598_v60  ;;  %5481 = vmatpush1.bf16.msra.mxu1 %v10599_v30  ;;  %v10607_v30 = vld [vmem:[#allocation91_spill] sm:$0xff]  ;;  %7387 = vpow2.f32 %v4690_v22  ;;  %v10616_v22 = vld [vmem:[#allocation100_spill] sm:$0xff]  ;;  %v10662_v16 = vld [vmem:[#allocation146_spill] sm:$0xff] }
 0x37c   :  { %5419 = vmatprep.subr.bf16.mxu0 %v10474_v61  ;;  %5483 = vmatprep.subr.bf16.mxu1 %v10601_v35  ;;  %v10608_v35 = vld [vmem:[#allocation92_spill] sm:$0xff]  ;;  %7389 = vtanh.f32 %v1294_v34 }
 0x37f   :  { %5421 = vmatpush1.bf16.msra.mxu0 %v10602_v4  ;;  %5485 = vmatpush1.bf16.msra.mxu1 %v10477_v8  ;;  %v10609_v4 = vld [vmem:[#allocation93_spill] sm:$0xff] }
 0x380   :  { %5423 = vmatprep.subr.bf16.mxu0 %v10603_v43  ;;  %5487 = vmatprep.subr.bf16.mxu1 %v10604_v3  ;;  %v10610_v43 = vld [vmem:[#allocation94_spill] sm:$0xff]  ;;  %v10611_v3 = vld [vmem:[#allocation95_spill] sm:$0xff] }
 0x383   :  { %v7384_v60 = vpop.eup %7383  ;;  %5425 = vmatpush1.bf16.msra.mxu0 %v10606_v40  ;;  %5489 = vmatpush1.bf16.msra.mxu1 %v10607_v30  ;;  %v10613_v40 = vld [vmem:[#allocation97_spill] sm:$0xff]  ;;  %v10614_v30 = vld [vmem:[#allocation98_spill] sm:$0xff] }
 0x384   :  { %v7386_v9 = vpop.eup %7385  ;;  %v1301_v18 = vadd.f32 1.0, %v7384_v60  ;;  %5427 = vmatprep.subr.bf16.mxu0 %v10608_v35  ;;  %5491 = vmatprep.subr.bf16.mxu1 %v10609_v4  ;;  %v10615_v60 = vld [vmem:[#allocation99_spill] sm:$0xff]  ;;  %v10617_v35 = vld [vmem:[#allocation101_spill] sm:$0xff]  ;;  %v10623_v4 = vld [vmem:[#allocation108_spill] sm:$0xff] }
 0x385   :  { %v1307_v23 = vadd.f32 1.0, %v7386_v9  ;;  %v7388_v34 = vpop.eup %7387 }
 0x386   :  { %7391 = vrcp.f32 %v1301_v18  ;;  %v7390_v9 = vpop.eup %7389 }
 0x387   :  { %7393 = vrcp.f32 %v1307_v23  ;;  %5429 = vmatpush1.bf16.msra.mxu0 %v10610_v43  ;;  %5493 = vmatpush1.bf16.msra.mxu1 %v10611_v3  ;;  %v10618_v23 = vld [vmem:[#allocation105_spill] sm:$0xff]  ;;  %v10619_v3 = vld [vmem:[#allocation123_spill] sm:$0xff]  ;;  %v10620_v43 = vld [vmem:[#allocation106_spill] sm:$0xff] }
 0x388   :  { %5431 = vmatprep.subr.bf16.mxu0 %v10612_v39  ;;  %5495 = vmatprep.subr.bf16.mxu1 %v10613_v40 }
 0x38b   :  { %5433 = vmatpush1.bf16.msra.mxu0 %v10614_v30  ;;  %5497 = vmatpush1.bf16.msra.mxu1 %v10615_v60  ;;  %v1314_v30 = vadd.f32 1.0, %v7388_v34  ;;  %v10627_v34 = vld [vmem:[#allocation112_spill] sm:$0xff] }
 0x38c   :  { %5435 = vmatprep.subr.bf16.mxu0 %v10616_v22  ;;  %5499 = vmatprep.subr.bf16.mxu1 %v10617_v35  ;;  %v10621_v22 = vld [vmem:[#allocation107_spill] sm:$0xff] }
 0x38d   :  { %7395 = vrcp.f32 %v1314_v30  ;;  %v10633_v30 = vld [vmem:[#allocation118_spill] sm:$0xff] }
 0x38f   :  { %5437 = vmatpush1.bf16.msra.mxu0 %v10492_v13  ;;  %5501 = vmatpush1.bf16.msra.mxu1 %v10493_v7  ;;  %v10624_v13 = vld [vmem:[#allocation109_spill] sm:$0xff] }
 0x390   :  { %v7392_v18 = vpop.eup %7391  ;;  %5439 = vmatprep.subr.bf16.mxu0 %v10494_v52  ;;  %5503 = vmatprep.subr.bf16.mxu1 %v10618_v23  ;;  %v10625_v52 = vld [vmem:[#allocation110_spill] sm:$0xff]  ;;  %v10626_v23 = vld [vmem:[#allocation111_spill] sm:$0xff] }
 0x391   :  { %v7394_v40 = vpop.eup %7393  ;;  %v1318_v39 = vmul.f32 %v7392_v18, %v7390_v9  ;;  %v10630_v9 = vld [vmem:[#allocation115_spill] sm:$0xff] }
 0x392   :  { %v1317_v60 = vmul.f32 %v7394_v40, %v10619_v3  ;;  %v10628_v40 = vld [vmem:[#allocation113_spill] sm:$0xff]  ;;  %v10629_v3 = vld [vmem:[#allocation114_spill] sm:$0xff] }
 0x393   :  { %5441 = vmatpush1.bf16.msra.mxu0 %v10620_v43  ;;  %5505 = vmatpush1.bf16.msra.mxu1 %v10621_v22  ;;  %v10656_v43 = vld [vmem:[#allocation142_spill] sm:$0xff] }
 0x394   :  { %v8742_v35 = vadd.f32 %v1318_v39, %v1317_v60  ;;  %5443 = vmatprep.subr.bf16.mxu0 %v10623_v4  ;;  %5507 = vmatprep.subr.bf16.mxu1 %v10624_v13  ;;  %v10631_v39 = vld [vmem:[#allocation116_spill] sm:$0xff]  ;;  %v10632_v60 = vld [vmem:[#allocation117_spill] sm:$0xff] }
 0x395   :  { %v10634_v13 = vld [vmem:[#allocation124_spill] sm:$0xff] }
 0x396   :  { %10622 = vst [vmem:[#allocation58_spill] sm:$0xff] %v8742_v35  ;;  %7397 = vtanh.f32 %v8742_v35 }
 0x397   :  { %5445 = vmatpush1.bf16.msra.mxu0 %v10625_v52  ;;  %5509 = vmatpush1.bf16.msra.mxu1 %v10626_v23  ;;  %v7396_v18 = vpop.eup %7395  ;;  %v10635_v23 = vld [vmem:[#allocation125_spill] sm:$0xff] }
 0x398   :  { %5447 = vmatprep.subr.bf16.mxu0 %v10627_v34  ;;  %5511 = vmatprep.subr.bf16.mxu1 %v10628_v40 }
 0x39b   :  { %5449 = vmatpush1.bf16.msra.mxu0 %v10629_v3  ;;  %5513 = vmatpush1.bf16.msra.mxu1 %v10630_v9  ;;  %v10644_v9 = vld [vmem:[#allocation134_spill] sm:$0xff]  ;;  %v10645_v3 = vld [vmem:[#allocation135_spill] sm:$0xff] }
 0x39c   :  { %5451 = vmatprep.subr.bf16.mxu0 %v10631_v39  ;;  %5515 = vmatprep.subr.bf16.mxu1 %v10632_v60  ;;  %v10636_v60 = vld [vmem:[#allocation126_spill] sm:$0xff]  ;;  %v10639_v39 = vld [vmem:[#allocation129_spill] sm:$0xff] }
 0x39f   :  { %5453 = vmatpush1.bf16.msra.mxu0 %v10633_v30  ;;  %5517 = vmatpush1.bf16.msra.mxu1 %v8277_v0  ;;  %v10637_v30 = vld [vmem:[#allocation127_spill] sm:$0xff]  ;;  %v10638_v0 = vld [vmem:[#allocation128_spill] sm:$0xff] }
 0x3a0   :  { %v7398_v52 = vpop.eup %7397  ;;  %5519 = vmatprep.subr.bf16.mxu0 %v10634_v13  ;;  %5583 = vmatprep.subr.bf16.mxu1 %v10635_v23  ;;  %v10640_v13 = vld [vmem:[#allocation130_spill] sm:$0xff]  ;;  %v10643_v23 = vld [vmem:[#allocation133_spill] sm:$0xff] }
 0x3a1   :  { %v8759_v34 = vmul.f32 %v7398_v52, %v7396_v18  ;;  %v10641_v52 = vld [vmem:[#allocation131_spill] sm:$0xff]  ;;  %v10642_v18 = vld [vmem:[#allocation132_spill] sm:$0xff] }
 0x3a3   :  { %1872 = vmatprep.mubr.f32.mxu0 %v8759_v34  ;;  %1943 = vmatprep.mubr.f32.mxu1 %v8759_v34 }
 0x3a4   :  { %1873 = vmatmul.mubr.f32.vlgmr.msra.gmra.mrb[14].mxu0 %v8683_v62  ;;  %1944 = vmatmul.mubr.f32.vlgmr.msra.gmra.mrb[14].mxu1 %v8683_v62  ;;  %v10646_v62 = vld [vmem:[#allocation136_spill] sm:$0xff] }
 0x3a5   :  { %5521 = vmatpush1.bf16.msra.mxu0 %v10636_v60  ;;  %5585 = vmatpush1.bf16.msra.mxu1 %v10637_v30  ;;  %v10647_v60 = vld [vmem:[#allocation137_spill] sm:$0xff] }
 0x3a6   :  { %5523 = vmatprep.subr.bf16.mxu0 %v10638_v0  ;;  %5587 = vmatprep.subr.bf16.mxu1 %v10639_v39  ;;  %v1450_v39 = vld [vmem:[%s9909_s7] sm:$0xf] }
 0x3a7   :  { %v10648_v0 = vld [vmem:[#allocation138_spill] sm:$0xff] }
 0x3a9   :  { %5525 = vmatpush1.bf16.msra.mxu0 %v10640_v13  ;;  %5589 = vmatpush1.bf16.msra.mxu1 %v10641_v52  ;;  %v10649_v13 = vld [vmem:[#allocation139_spill] sm:$0xff]  ;;  %v10650_v52 = vld [vmem:[#allocation45_spill] sm:$0xff] }
 0x3aa   :  { %5527 = vmatprep.subr.bf16.mxu0 %v10642_v18  ;;  %5591 = vmatprep.subr.bf16.mxu1 %v10643_v23  ;;  %v8783_v18 = vrot.slane %v1450_v39, %v10650_v52  ;;  %v10652_v23 = vld [vmem:[#allocation140_spill] sm:$0xff] }
 0x3ac   :  { %10651 = vst [vmem:[#allocation59_spill] sm:$0xff] %v8783_v18 }
 0x3ad   :  { %5529 = vmatpush1.bf16.msra.mxu0 %v10644_v9  ;;  %5593 = vmatpush1.bf16.msra.mxu1 %v10645_v3  ;;  %v10653_v9 = vld [vmem:[#allocation141_spill] sm:$0xff]  ;;  %v10654_v3 = vld [vmem:[#allocation46_spill] sm:$0xff] }
 0x3ae   :  { %5531 = vmatprep.subr.bf16.mxu0 %v10646_v62  ;;  %5595 = vmatprep.subr.bf16.mxu1 %v10647_v60  ;;  %v8788_v30 = vrot.slane %v1450_v39, %v10654_v3  ;;  %v10660_v3 = vld [vmem:[#allocation49_spill] sm:$0xff] }
 0x3af   :  { %v8797_v7 = vrot.slane %v1450_v39, %v10660_v3  ;;  %v10670_v3 = vld [vmem:[#allocation152_spill] sm:$0xff] }
 0x3b0   :  { %10655 = vst [vmem:[#allocation60_spill] sm:$0xff] %v8788_v30 }
 0x3b1   :  { %5533 = vmatpush1.bf16.msra.mxu0 %v10648_v0  ;;  %5597 = vmatpush1.bf16.msra.mxu1 %v10649_v13  ;;  %v10657_v0 = vld [vmem:[#allocation143_spill] sm:$0xff]  ;;  %v10658_v13 = vld [vmem:[#allocation144_spill] sm:$0xff]  ;;  %10661 = vst [vmem:[#allocation61_spill] sm:$0xff] %v8797_v7 }
 0x3b2   :  { %5535 = vmatprep.subr.bf16.mxu0 %v10652_v23  ;;  %5599 = vmatprep.subr.bf16.mxu1 %v10653_v9  ;;  %v10659_v23 = vld [vmem:[#allocation145_spill] sm:$0xff] }
 0x3b4   :  { %v1538_v62 = vpop.f32.mrb[10].mxu0  ;;  %v1609_v60 = vpop.f32.mrb[10].mxu1 }
 0x3b5   :  { %v1539_v40 = vadd.f32 %v1538_v62, %v8783_v18  ;;  %v1540_v4 = vpop.f32.mrb[11].mxu0  ;;  %v1611_v22 = vpop.f32.mrb[11].mxu1  ;;  %5537 = vmatpush1.bf16.msra.mxu0 %v10656_v43  ;;  %5601 = vmatpush1.bf16.msra.mxu1 %v10657_v0  ;;  %v10663_v62 = vld [vmem:[#allocation147_spill] sm:$0xff]  ;;  %v10664_v43 = vld [vmem:[#allocation148_spill] sm:$0xff]  ;;  %v10665_v0 = vld [vmem:[#allocation149_spill] sm:$0xff] }
 0x3b6   :  { %v1541_v52 = vadd.f32 %v1540_v4, %v8788_v30  ;;  %5539 = vmatprep.subr.bf16.mxu0 %v10658_v13  ;;  %5603 = vmatprep.subr.bf16.mxu1 %v10659_v23  ;;  %v1612_v4 = vadd.f32 %v1611_v22, %v8797_v7  ;;  %v10666_v13 = vld [vmem:[#allocation53_spill] sm:$0xff] }
 0x3b7   :  { %v4691_v9 = vmul.f32 -1.442695, %v1539_v40  ;;  %v8805_v30 = vrot.slane %v1450_v39, %v10666_v13  ;;  %v10668_v40 = vld [vmem:[#allocation150_spill] sm:$0xff]  ;;  %v10675_v22 = vld [vmem:[#allocation157_spill] sm:$0xff] }
 0x3b8   :  { %v4692_v35 = vmul.f32 -1.442695, %v1541_v52  ;;  %v10669_v52 = vld [vmem:[#allocation151_spill] sm:$0xff] }
 0x3b9   :  { %7399 = vpow2.f32 %v4691_v9  ;;  %5541 = vmatpush1.bf16.msra.mxu0 %v10662_v16  ;;  %5605 = vmatpush1.bf16.msra.mxu1 %v10663_v62  ;;  %10667 = vst [vmem:[#allocation62_spill] sm:$0xff] %v8805_v30  ;;  %v10671_v9 = vld [vmem:[#allocation153_spill] sm:$0xff]  ;;  %v4693_v16 = vmul.f32 -1.442695, %v1612_v4  ;;  %v10672_v62 = vld [vmem:[#allocation154_spill] sm:$0xff] }
 0x3ba   :  { %7401 = vpow2.f32 %v4692_v35  ;;  %5543 = vmatprep.subr.bf16.mxu0 %v10664_v43  ;;  %5607 = vmatprep.subr.bf16.mxu1 %v10665_v0  ;;  %v1610_v35 = vadd.f32 %v1609_v60, %v8805_v30  ;;  %v10673_v43 = vld [vmem:[#allocation155_spill] sm:$0xff]  ;;  %v10674_v0 = vld [vmem:[#allocation156_spill] sm:$0xff]  ;;  %v10679_v4 = vld [vmem:[#allocation161_spill] sm:$0xff] }
 0x3bb   :  { %7403 = vpow2.f32 %v4693_v16  ;;  %v10678_v60 = vld [vmem:[#allocation160_spill] sm:$0xff]  ;;  %v10684_v16 = vld [vmem:[#allocation166_spill] sm:$0xff] }
 0x3bc   :  { %7405 = vtanh.f32 %v1610_v35  ;;  %v10685_v35 = vld [vmem:[#allocation167_spill] sm:$0xff] }
 0x3bd   :  { %5545 = vmatpush1.bf16.msra.mxu0 %v10668_v40  ;;  %5609 = vmatpush1.bf16.msra.mxu1 %v10669_v52 }
 0x3be   :  { %5547 = vmatprep.subr.bf16.mxu0 %v10670_v3  ;;  %5611 = vmatprep.subr.bf16.mxu1 %v10671_v9  ;;  %v10676_v3 = vld [vmem:[#allocation158_spill] sm:$0xff]  ;;  %v10677_v9 = vld [vmem:[#allocation159_spill] sm:$0xff] }
 0x3c1   :  { %5549 = vmatpush1.bf16.msra.mxu0 %v10672_v62  ;;  %5613 = vmatpush1.bf16.msra.mxu1 %v10673_v43  ;;  %v10680_v43 = vld [vmem:[#allocation162_spill] sm:$0xff] }
 0x3c2   :  { %5551 = vmatprep.subr.bf16.mxu0 %v10674_v0  ;;  %5615 = vmatprep.subr.bf16.mxu1 %v10675_v22  ;;  %v10681_v0 = vld [vmem:[#allocation163_spill] sm:$0xff]  ;;  %v10682_v22 = vld [vmem:[#allocation164_spill] sm:$0xff]  ;;  %v10688_v62 = vld [vmem:[#allocation170_spill] sm:$0xff] }
 0x3c3   :  { %v7400_v13 = vpop.eup %7399 }
 0x3c4   :  { %v7402_v39 = vpop.eup %7401  ;;  %v1617_v40 = vadd.f32 1.0, %v7400_v13  ;;  %v10683_v13 = vld [vmem:[#allocation165_spill] sm:$0xff] }
 0x3c5   :  { %v1623_v52 = vadd.f32 1.0, %v7402_v39  ;;  %5553 = vmatpush1.bf16.msra.mxu0 %v10676_v3  ;;  %5617 = vmatpush1.bf16.msra.mxu1 %v10677_v9  ;;  %v7404_v39 = vpop.eup %7403  ;;  %v10686_v9 = vld [vmem:[#allocation168_spill] sm:$0xff] }
 0x3c6   :  { %7407 = vrcp.f32 %v1617_v40  ;;  %5555 = vmatprep.subr.bf16.mxu0 %v10678_v60  ;;  %5619 = vmatprep.subr.bf16.mxu1 %v10679_v4  ;;  %v10687_v40 = vld [vmem:[#allocation169_spill] sm:$0xff]  ;;  %v7406_v60 = vpop.eup %7405 }
 0x3c7   :  { %7409 = vrcp.f32 %v1623_v52 }
 0x3c9   :  { %5557 = vmatpush1.bf16.msra.mxu0 %v10680_v43  ;;  %5621 = vmatpush1.bf16.msra.mxu1 %v10681_v0  ;;  %v1630_v43 = vadd.f32 1.0, %v7404_v39  ;;  %v10689_v0 = vld [vmem:[#allocation171_spill] sm:$0xff]  ;;  %v10697_v39 = vld [vmem:[#allocation32_spill] sm:$0xff] }
 0x3ca   :  { %5559 = vmatprep.subr.bf16.mxu0 %v10682_v22  ;;  %5623 = vmatprep.subr.bf16.mxu1 %v10683_v13  ;;  %v10690_v13 = vld [vmem:[#allocation172_spill] sm:$0xff] }
 0x3cb   :  { %7411 = vrcp.f32 %v1630_v43 }
 0x3cd   :  { %5561 = vmatpush1.bf16.msra.mxu0 %v10684_v16  ;;  %5625 = vmatpush1.bf16.msra.mxu1 %v10685_v35  ;;  %v10691_v16 = vld [vmem:[#allocation173_spill] sm:$0xff] }
 0x3ce   :  { %5563 = vmatprep.subr.bf16.mxu0 %v10686_v9  ;;  %5627 = vmatprep.subr.bf16.mxu1 %v10687_v40  ;;  %v10692_v9 = vld [vmem:[#allocation174_spill] sm:$0xff]  ;;  %v10693_v40 = vld [vmem:[#allocation175_spill] sm:$0xff] }
 0x3d0   :  { %v7408_v4 = vpop.eup %7407 }
 0x3d1   :  { %v7410_v52 = vpop.eup %7409  ;;  %v1634_v3 = vmul.f32 %v7408_v4, %v7406_v60  ;;  %5565 = vmatpush1.bf16.msra.mxu0 %v10688_v62  ;;  %5629 = vmatpush1.bf16.msra.mxu1 %v10689_v0  ;;  %v10695_v60 = vld [vmem:[#allocation30_spill] sm:$0xff]  ;;  %v10696_v4 = vld [vmem:[#allocation31_spill] sm:$0xff] }
 0x3d2   :  { %v1633_v22 = vmul.f32 0.0, %v7410_v52  ;;  %5567 = vmatprep.subr.bf16.mxu0 %v10690_v13  ;;  %5631 = vmatprep.subr.bf16.mxu1 %v10691_v16  ;;  %v10698_v52 = vld [vmem:[#allocation33_spill] sm:$0xff] }
 0x3d4   :  { %v8832_v35 = vadd.f32 %v1634_v3, %v1633_v22 }
 0x3d5   :  { %5569 = vmatpush1.bf16.msra.mxu0 %v10692_v9  ;;  %5633 = vmatpush1.bf16.msra.mxu1 %v10693_v40  ;;  %v7412_v43 = vpop.eup %7411 }
 0x3d6   :  { %7413 = vtanh.f32 %v8832_v35  ;;  %5571 = vmatprep.subr.bf16.mxu0 %v8595_v36  ;;  %5635 = vmatprep.subr.bf16.mxu1 %v8597_v17 }
 0x3d9   :  { %5573 = vmatpush1.bf16.msra.mxu0 %v8601_v14  ;;  %5637 = vmatpush1.bf16.msra.mxu1 %v8603_v38 }
 0x3da   :  { %5575 = vmatprep.subr.bf16.mxu0 %v8607_v21  ;;  %5639 = vmatprep.subr.bf16.mxu1 %v8609_v51 }
 0x3dd   :  { %5577 = vmatpush1.bf16.msra.mxu0 %v8613_v57  ;;  %5641 = vmatpush1.bf16.msra.mxu1 %v8615_v63 }
 0x3de   :  { %5579 = vmatprep.subr.bf16.mxu0 %v8619_v47  ;;  %5643 = vmatprep.subr.bf16.mxu1 %v8621_v26 }
 0x3e0   :  { %v7414_v3 = vpop.eup %7413 }
 0x3e1   :  { %5581 = vmatpush1.bf16.msra.mxu0 %v8625_v49  ;;  %5645 = vmatpush1.bf16.msra.mxu1 %v8627_v25  ;;  %v1637_v22 = vmul.f32 %v7414_v3, %v7412_v43  ;;  %v10699_v43 = vld [vmem:[#allocation34_spill] sm:$0xff]  ;;  %v10700_v3 = vld [vmem:[#allocation35_spill] sm:$0xff] }
 0x3e2   :  { %5647 = vmatprep.subr.bf16.mxu0 %v7892_v6  ;;  %5679 = vmatprep.subr.bf16.mxu1 %v7894_v10 }
 0x3e3   :  { %2038 = vmatprep.mubr.f32.mxu0 %v1637_v22  ;;  %2109 = vmatprep.mubr.f32.mxu1 %v1637_v22  ;;  %v10701_v22 = vld [vmem:[#allocation36_spill] sm:$0xff] }
 0x3e4   :  { %2039 = vmatmul.mubr.f32.vlgmr.msra.gmra.mrb[16].mxu0 %v8759_v34  ;;  %2110 = vmatmul.mubr.f32.vlgmr.msra.gmra.mrb[16].mxu1 %v8759_v34  ;;  %v10694_v34 = vld [vmem:[#allocation29_spill] sm:$0xff] }
 0x3e5   :  { %5649 = vmatpush1.bf16.msra.mxu0 %v7896_v11  ;;  %5681 = vmatpush1.bf16.msra.mxu1 %v7899_v15 }
 0x3e6   :  { %5651 = vmatprep.subr.bf16.mxu0 %v7903_v19  ;;  %5683 = vmatprep.subr.bf16.mxu1 %v7905_v20 }
 0x3e7   :  { %2208 = vmatprep.mubr.f32.mxu0 %v10382_v44  ;;  %2279 = vmatprep.mubr.f32.mxu1 %v10382_v44 }
 0x3e9   :  { %5653 = vmatpush1.bf16.msra.mxu0 %v7908_v24  ;;  %5685 = vmatpush1.bf16.msra.mxu1 %v7912_v28 }
 0x3ea   :  { %5655 = vmatprep.subr.bf16.mxu0 %v7914_v29  ;;  %5687 = vmatprep.subr.bf16.mxu1 %v7916_v33 }
 0x3ed   :  { %5657 = vmatpush1.bf16.msra.mxu0 %v7919_v37  ;;  %5689 = vmatpush1.bf16.msra.mxu1 %v7923_v41 }
 0x3ee   :  { %5659 = vmatprep.subr.bf16.mxu0 %v7925_v42  ;;  %5691 = vmatprep.subr.bf16.mxu1 %v7928_v46 }
 0x3f1   :  { %5661 = vmatpush1.bf16.msra.mxu0 %v7931_v53  ;;  %5693 = vmatpush1.bf16.msra.mxu1 %v7935_v54  ;;  %v10702_v54 = vld [vmem:[#allocation37_spill] sm:$0xff] }
 0x3f2   :  { %5663 = vmatprep.subr.bf16.mxu0 %v7937_v55  ;;  %5695 = vmatprep.subr.bf16.mxu1 %v7940_v59  ;;  %v10703_v55 = vld [vmem:[#allocation38_spill] sm:$0xff]  ;;  %v10704_v59 = vld [vmem:[#allocation39_spill] sm:$0xff] }
 0x3f5   :  { %5665 = vmatpush1.bf16.msra.mxu0 %v10694_v34  ;;  %5697 = vmatpush1.bf16.msra.mxu1 %v10695_v60  ;;  %v10705_v34 = vld [vmem:[#allocation40_spill] sm:$0xff]  ;;  %v10706_v60 = vld [vmem:[#allocation41_spill] sm:$0xff] }
 0x3f6   :  { %5667 = vmatprep.subr.bf16.mxu0 %v10696_v4  ;;  %5699 = vmatprep.subr.bf16.mxu1 %v10697_v39  ;;  %v10707_v4 = vld [vmem:[#allocation42_spill] sm:$0xff]  ;;  %v10708_v39 = vld [vmem:[#allocation43_spill] sm:$0xff] }
 0x3f9   :  { %5669 = vmatpush1.bf16.msra.mxu0 %v10698_v52  ;;  %5701 = vmatpush1.bf16.msra.mxu1 %v10699_v43  ;;  %v10709_v52 = vld [vmem:[#allocation44_spill] sm:$0xff]  ;;  %v105_v43 = vpop.permute.xlu1 %104 }
 0x3fa   :  { %5671 = vmatprep.subr.bf16.mxu0 %v10700_v3  ;;  %5703 = vmatprep.subr.bf16.mxu1 %v10701_v22  ;;  %v10710_v3 = vld [vmem:[#allocation47_spill] sm:$0xff]  ;;  %v10711_v22 = vld [vmem:[#allocation48_spill] sm:$0xff] }
 0x3fb   :  { %v160_v53 = vmul.f32 %v10710_v3, %v105_v43  ;;  %v161_v46 = vmul.f32 %v10711_v22, %v105_v43  ;;  %v162_v22 = vmul.f32 %v10437_v1, %v105_v43 }
 0x3fd   :  { %5673 = vmatpush1.bf16.msra.mxu0 %v10702_v54  ;;  %5705 = vmatpush1.bf16.msra.mxu1 %v10703_v55  ;;  %v10712_v54 = vld [vmem:[#allocation50_spill] sm:$0xff] }
 0x3fe   :  { %5675 = vmatprep.subr.bf16.mxu0 %v10704_v59  ;;  %5707 = vmatprep.subr.bf16.mxu1 %v10705_v34  ;;  %v214_v42 = vadd.f32 %v10712_v54, %v160_v53  ;;  %v10713_v59 = vld [vmem:[#allocation51_spill] sm:$0xff]  ;;  %v216_v53 = vadd.f32 %v10438_v5, %v162_v22 }
 0x3ff   :  { %v215_v37 = vadd.f32 %v10713_v59, %v161_v46  ;;  %v10718_v22 = vld [vmem:[#allocation67_spill] sm:$0xff] }
 0x401   :  { %5677 = vmatpush1.bf16.msra.mxu0 %v10706_v60  ;;  %5709 = vmatpush1.bf16.msra.mxu1 %v10707_v4  ;;  %v10714_v4 = vld [vmem:[#allocation52_spill] sm:$0xff] }
 0x402   :  { %5711 = vmatprep.subr.bf16.mxu0 %v10708_v39  ;;  %5775 = vmatprep.subr.bf16.mxu1 %v10709_v52  ;;  %v163_v28 = vmul.f32 %v10714_v4, %v105_v43 }
 0x404   :  { %v217_v3 = vadd.f32 %v8077_v45, %v163_v28 }
 0x435   :  { %v1708_v55 = vpop.f32.mrb[12].mxu0  ;;  %v1779_v41 = vpop.f32.mrb[12].mxu1 }
 0x436   :  { %v1709_v34 = vadd.f32 %v1708_v55, %v214_v42  ;;  %v1710_v33 = vpop.f32.mrb[13].mxu0  ;;  %v1781_v60 = vpop.f32.mrb[13].mxu1  ;;  %v1780_v44 = vadd.f32 %v1779_v41, %v216_v53  ;;  %v10719_v53 = vld [vmem:[#allocation68_spill] sm:$0xff] }
 0x437   :  { %v1711_v29 = vadd.f32 %v1710_v33, %v215_v37  ;;  %v1782_v52 = vadd.f32 %v1781_v60, %v217_v3  ;;  %v10717_v3 = vld [vmem:[#allocation66_spill] sm:$0xff] }
 0x438   :  { %v4694_v39 = vmul.f32 -1.442695, %v1709_v34 }
 0x439   :  { %v4695_v24 = vmul.f32 -1.442695, %v1711_v29  ;;  %v4696_v54 = vmul.f32 -1.442695, %v1782_v52 }
 0x43a   :  { %7415 = vpow2.f32 %v4694_v39 }
 0x43b   :  { %7417 = vpow2.f32 %v4695_v24 }
 0x43c   :  { %7419 = vpow2.f32 %v4696_v54 }
 0x43d   :  { %7421 = vtanh.f32 %v1780_v44  ;;  %v10715_v44 = vld [vmem:[#allocation64_spill] sm:$0xff] }
 0x444   :  { %v7416_v46 = vpop.eup %7415 }
 0x445   :  { %v7418_v42 = vpop.eup %7417  ;;  %v1787_v55 = vadd.f32 1.0, %v7416_v46  ;;  %v10720_v46 = vld [vmem:[#allocation69_spill] sm:$0xff] }
 0x446   :  { %v1793_v33 = vadd.f32 1.0, %v7418_v42  ;;  %v7420_v29 = vpop.eup %7419  ;;  %v10721_v42 = vld [vmem:[#allocation70_spill] sm:$0xff] }
 0x447   :  { %7423 = vrcp.f32 %v1787_v55  ;;  %v7422_v37 = vpop.eup %7421  ;;  %v1800_v39 = vadd.f32 1.0, %v7420_v29  ;;  %v10722_v55 = vld [vmem:[#allocation71_spill] sm:$0xff]  ;;  %v10724_v29 = vld [vmem:[#allocation73_spill] sm:$0xff] }
 0x448   :  { %7425 = vrcp.f32 %v1793_v33  ;;  %v10723_v33 = vld [vmem:[#allocation72_spill] sm:$0xff] }
 0x449   :  { %7427 = vrcp.f32 %v1800_v39 }
 0x451   :  { %v7424_v24 = vpop.eup %7423 }
 0x452   :  { %v7426_v34 = vpop.eup %7425  ;;  %v1804_v28 = vmul.f32 %v7424_v24, %v7422_v37  ;;  %v10725_v37 = vld [vmem:[#allocation74_spill] sm:$0xff]  ;;  %v10726_v24 = vld [vmem:[#allocation75_spill] sm:$0xff] }
 0x453   :  { %v1803_v60 = vmul.f32 %v7426_v34, %v8680_v31  ;;  %v7428_v41 = vpop.eup %7427  ;;  %v10716_v31 = vld [vmem:[#allocation65_spill] sm:$0xff]  ;;  %v10727_v34 = vld [vmem:[#allocation76_spill] sm:$0xff] }
 0x455   :  { %v8896_v43 = vadd.f32 %v1804_v28, %v1803_v60  ;;  %v10728_v28 = vld [vmem:[#allocation77_spill] sm:$0xff] }
 0x457   :  { %7429 = vtanh.f32 %v8896_v43 }
 0x461   :  { %v7430_v52 = vpop.eup %7429 }
 0x462   :  { %v8899_v54 = vmul.f32 %v7430_v52, %v7428_v41  ;;  %v10729_v41 = vld [vmem:[#allocation57_spill] sm:$0xff] }
 0x464   :  { %2209 = vmatmul.mubr.f32.vlgmr.msra.gmra.mrb[18].mxu0 %v8899_v54  ;;  %2280 = vmatmul.mubr.f32.vlgmr.msra.gmra.mrb[18].mxu1 %v8899_v54 }
 0x465   :  { %5713 = vmatpush1.bf16.msra.mxu0 %v10574_v2  ;;  %5777 = vmatpush1.bf16.msra.mxu1 %v10575_v32 }
 0x466   :  { %5715 = vmatprep.subr.bf16.mxu0 %v10576_v58  ;;  %5779 = vmatprep.subr.bf16.mxu1 %v10577_v48 }
 0x469   :  { %5717 = vmatpush1.bf16.msra.mxu0 %v10578_v27  ;;  %5781 = vmatpush1.bf16.msra.mxu1 %v10579_v50 }
 0x46a   :  { %5719 = vmatprep.subr.bf16.mxu0 %v10715_v44  ;;  %5783 = vmatprep.subr.bf16.mxu1 %v10716_v31 }
 0x46d   :  { %5721 = vmatpush1.bf16.msra.mxu0 %v10717_v3  ;;  %5785 = vmatpush1.bf16.msra.mxu1 %v10718_v22 }
 0x46e   :  { %5723 = vmatprep.subr.bf16.mxu0 %v10719_v53  ;;  %5787 = vmatprep.subr.bf16.mxu1 %v10720_v46  ;;  %v10734_v53 = vld [vmem:[#allocation83_spill] sm:$0xff] }
 0x471   :  { %5725 = vmatpush1.bf16.msra.mxu0 %v10721_v42  ;;  %5789 = vmatpush1.bf16.msra.mxu1 %v10722_v55 }
 0x472   :  { %5727 = vmatprep.subr.bf16.mxu0 %v10723_v33  ;;  %5791 = vmatprep.subr.bf16.mxu1 %v10724_v29  ;;  %v10730_v33 = vld [vmem:[#allocation79_spill] sm:$0xff] }
 0x475   :  { %5729 = vmatpush1.bf16.msra.mxu0 %v10725_v37  ;;  %5793 = vmatpush1.bf16.msra.mxu1 %v10726_v24  ;;  %v10731_v37 = vld [vmem:[#allocation80_spill] sm:$0xff]  ;;  %v10732_v24 = vld [vmem:[#allocation81_spill] sm:$0xff] }
 0x476   :  { %5731 = vmatprep.subr.bf16.mxu0 %v10727_v34  ;;  %5795 = vmatprep.subr.bf16.mxu1 %v10728_v28  ;;  %v10733_v28 = vld [vmem:[#allocation82_spill] sm:$0xff] }
 0x477   :  { %v1874_v39 = vpop.f32.mrb[14].mxu0  ;;  %v1945_v60 = vpop.f32.mrb[14].mxu1 }
 0x478   :  { %v1875_v52 = vadd.f32 %v1874_v39, %v10729_v41  ;;  %v1876_v46 = vpop.f32.mrb[15].mxu0  ;;  %v1947_v42 = vpop.f32.mrb[15].mxu1  ;;  %v10735_v39 = vld [vmem:[#allocation85_spill] sm:$0xff] }
 0x479   :  { %v1877_v55 = vadd.f32 %v1876_v46, %v8372_v12  ;;  %5733 = vmatpush1.bf16.msra.mxu0 %v10594_v56  ;;  %5797 = vmatpush1.bf16.msra.mxu1 %v10730_v33  ;;  %v10736_v46 = vld [vmem:[#allocation121_spill] sm:$0xff]  ;;  %v10737_v56 = vld [vmem:[#allocation86_spill] sm:$0xff] }
 0x47a   :  { %v4697_v29 = vmul.f32 -1.442695, %v1875_v52  ;;  %5735 = vmatprep.subr.bf16.mxu0 %v10731_v37  ;;  %5799 = vmatprep.subr.bf16.mxu1 %v10732_v24  ;;  %v1948_v12 = vadd.f32 %v1947_v42, %v10736_v46  ;;  %v10738_v52 = vld [vmem:[#allocation88_spill] sm:$0xff]  ;;  %v10739_v24 = vld [vmem:[#allocation89_spill] sm:$0xff] }
 0x47b   :  { %v4698_v34 = vmul.f32 -1.442695, %v1877_v55  ;;  %v10743_v37 = vld [vmem:[#allocation92_spill] sm:$0xff] }
 0x47c   :  { %7431 = vpow2.f32 %v4697_v29  ;;  %v4699_v55 = vmul.f32 -1.442695, %v1948_v12  ;;  %v10740_v29 = vld [vmem:[#allocation122_spill] sm:$0xff]  ;;  %v10746_v12 = vld [vmem:[#allocation95_spill] sm:$0xff] }
 0x47d   :  { %7433 = vpow2.f32 %v4698_v34  ;;  %5737 = vmatpush1.bf16.msra.mxu0 %v10733_v28  ;;  %5801 = vmatpush1.bf16.msra.mxu1 %v10734_v53  ;;  %v1946_v34 = vadd.f32 %v1945_v60, %v10740_v29  ;;  %v10741_v28 = vld [vmem:[#allocation90_spill] sm:$0xff]  ;;  %v10742_v53 = vld [vmem:[#allocation91_spill] sm:$0xff]  ;;  %v10747_v60 = vld [vmem:[#allocation96_spill] sm:$0xff] }
 0x47e   :  { %5739 = vmatprep.subr.bf16.mxu0 %v10474_v61  ;;  %5803 = vmatprep.subr.bf16.mxu1 %v10735_v39  ;;  %v10744_v39 = vld [vmem:[#allocation93_spill] sm:$0xff]  ;;  %7435 = vpow2.f32 %v4699_v55  ;;  %v10757_v29 = vld [vmem:[#allocation58_spill] sm:$0xff] }
 0x47f   :  { %7437 = vtanh.f32 %v1946_v34  ;;  %v10753_v34 = vld [vmem:[#allocation102_spill] sm:$0xff] }
 0x481   :  { %5741 = vmatpush1.bf16.msra.mxu0 %v10737_v56  ;;  %5805 = vmatpush1.bf16.msra.mxu1 %v10477_v8 }
 0x482   :  { %5743 = vmatprep.subr.bf16.mxu0 %v10738_v52  ;;  %5807 = vmatprep.subr.bf16.mxu1 %v10739_v24  ;;  %v10745_v52 = vld [vmem:[#allocation94_spill] sm:$0xff] }
 0x483   :  { %v10758_v24 = vld [vmem:[#allocation106_spill] sm:$0xff] }
 0x485   :  { %5745 = vmatpush1.bf16.msra.mxu0 %v10741_v28  ;;  %5809 = vmatpush1.bf16.msra.mxu1 %v10742_v53  ;;  %v10748_v28 = vld [vmem:[#allocation97_spill] sm:$0xff]  ;;  %v10749_v53 = vld [vmem:[#allocation98_spill] sm:$0xff] }
 0x486   :  { %v7432_v61 = vpop.eup %7431  ;;  %5747 = vmatprep.subr.bf16.mxu0 %v10743_v37  ;;  %5811 = vmatprep.subr.bf16.mxu1 %v10744_v39  ;;  %v10750_v37 = vld [vmem:[#allocation99_spill] sm:$0xff]  ;;  %v10751_v39 = vld [vmem:[#allocation100_spill] sm:$0xff] }
 0x487   :  { %v7434_v42 = vpop.eup %7433  ;;  %v1953_v56 = vadd.f32 1.0, %v7432_v61  ;;  %v10752_v61 = vld [vmem:[#allocation101_spill] sm:$0xff] }
 0x488   :  { %v1959_v8 = vadd.f32 1.0, %v7434_v42  ;;  %v7436_v55 = vpop.eup %7435 }
 0x489   :  { %7439 = vrcp.f32 %v1953_v56  ;;  %5749 = vmatpush1.bf16.msra.mxu0 %v10745_v52  ;;  %5813 = vmatpush1.bf16.msra.mxu1 %v10746_v12  ;;  %v10754_v56 = vld [vmem:[#allocation103_spill] sm:$0xff]  ;;  %v7438_v42 = vpop.eup %7437  ;;  %v10755_v12 = vld [vmem:[#allocation104_spill] sm:$0xff] }
 0x48a   :  { %7441 = vrcp.f32 %v1959_v8  ;;  %5751 = vmatprep.subr.bf16.mxu0 %v10747_v60  ;;  %5815 = vmatprep.subr.bf16.mxu1 %v10748_v28  ;;  %v10756_v8 = vld [vmem:[#allocation105_spill] sm:$0xff] }
 0x48d   :  { %5753 = vmatpush1.bf16.msra.mxu0 %v10749_v53  ;;  %5817 = vmatpush1.bf16.msra.mxu1 %v10750_v37  ;;  %v1966_v53 = vadd.f32 1.0, %v7436_v55  ;;  %v10768_v55 = vld [vmem:[#allocation115_spill] sm:$0xff] }
 0x48e   :  { %5755 = vmatprep.subr.bf16.mxu0 %v10751_v39  ;;  %5819 = vmatprep.subr.bf16.mxu1 %v10752_v61  ;;  %v10759_v39 = vld [vmem:[#allocation107_spill] sm:$0xff]  ;;  %v10760_v61 = vld [vmem:[#allocation108_spill] sm:$0xff] }
 0x48f   :  { %7443 = vrcp.f32 %v1966_v53  ;;  %v10772_v53 = vld [vmem:[#allocation119_spill] sm:$0xff] }
 0x491   :  { %5757 = vmatpush1.bf16.msra.mxu0 %v10753_v34  ;;  %5821 = vmatpush1.bf16.msra.mxu1 %v10754_v56  ;;  %v10761_v34 = vld [vmem:[#allocation109_spill] sm:$0xff] }
 0x492   :  { %5759 = vmatprep.subr.bf16.mxu0 %v10755_v12  ;;  %5823 = vmatprep.subr.bf16.mxu1 %v10756_v8  ;;  %v10763_v12 = vld [vmem:[#allocation110_spill] sm:$0xff]  ;;  %v10764_v8 = vld [vmem:[#allocation111_spill] sm:$0xff] }
 0x493   :  { %v7440_v60 = vpop.eup %7439 }
 0x494   :  { %v7442_v28 = vpop.eup %7441  ;;  %v1970_v52 = vmul.f32 %v7440_v60, %v7438_v42  ;;  %v10765_v60 = vld [vmem:[#allocation112_spill] sm:$0xff] }
 0x495   :  { %v1969_v37 = vmul.f32 %v7442_v28, %v10757_v29  ;;  %5761 = vmatpush1.bf16.msra.mxu0 %v10758_v24  ;;  %5825 = vmatpush1.bf16.msra.mxu1 %v10759_v39  ;;  %v10766_v28 = vld [vmem:[#allocation113_spill] sm:$0xff]  ;;  %v10767_v29 = vld [vmem:[#allocation114_spill] sm:$0xff]  ;;  %v10769_v42 = vld [vmem:[#allocation116_spill] sm:$0xff] }
 0x496   :  { %5763 = vmatprep.subr.bf16.mxu0 %v10760_v61  ;;  %5827 = vmatprep.subr.bf16.mxu1 %v10761_v34  ;;  %v10770_v34 = vld [vmem:[#allocation117_spill] sm:$0xff]  ;;  %v10794_v39 = vld [vmem:[#allocation144_spill] sm:$0xff] }
 0x497   :  { %v8960_v56 = vadd.f32 %v1970_v52, %v1969_v37  ;;  %v10771_v37 = vld [vmem:[#allocation118_spill] sm:$0xff] }
 0x499   :  { %10762 = vst [vmem:[#allocation63_spill] sm:$0xff] %v8960_v56  ;;  %5765 = vmatpush1.bf16.msra.mxu0 %v10763_v12  ;;  %5829 = vmatpush1.bf16.msra.mxu1 %v10764_v8  ;;  %7445 = vtanh.f32 %v8960_v56  ;;  %v7444_v52 = vpop.eup %7443  ;;  %v10773_v8 = vld [vmem:[#allocation124_spill] sm:$0xff]  ;;  %v10774_v12 = vld [vmem:[#allocation125_spill] sm:$0xff]  ;;  %v10791_v56 = vld [vmem:[#allocation142_spill] sm:$0xff] }
 0x49a   :  { %5767 = vmatprep.subr.bf16.mxu0 %v10765_v60  ;;  %5831 = vmatprep.subr.bf16.mxu1 %v10766_v28 }
 0x49d   :  { %5769 = vmatpush1.bf16.msra.mxu0 %v10767_v29  ;;  %5833 = vmatpush1.bf16.msra.mxu1 %v10768_v55  ;;  %v10783_v55 = vld [vmem:[#allocation134_spill] sm:$0xff]  ;;  %v10784_v29 = vld [vmem:[#allocation135_spill] sm:$0xff] }
 0x49e   :  { %5771 = vmatprep.subr.bf16.mxu0 %v10769_v42  ;;  %5835 = vmatprep.subr.bf16.mxu1 %v10770_v34  ;;  %v10775_v34 = vld [vmem:[#allocation126_spill] sm:$0xff]  ;;  %v10782_v42 = vld [vmem:[#allocation133_spill] sm:$0xff] }
 0x4a1   :  { %5773 = vmatpush1.bf16.msra.mxu0 %v10771_v37  ;;  %5837 = vmatpush1.bf16.msra.mxu1 %v10772_v53  ;;  %v10776_v37 = vld [vmem:[#allocation127_spill] sm:$0xff]  ;;  %v10777_v53 = vld [vmem:[#allocation128_spill] sm:$0xff] }
 0x4a2   :  { %5839 = vmatprep.subr.bf16.mxu0 %v10773_v8  ;;  %5903 = vmatprep.subr.bf16.mxu1 %v10774_v12  ;;  %v10778_v8 = vld [vmem:[#allocation129_spill] sm:$0xff]  ;;  %v10779_v12 = vld [vmem:[#allocation130_spill] sm:$0xff] }
 0x4a3   :  { %v7446_v60 = vpop.eup %7445 }
 0x4a4   :  { %v8975_v61 = vmul.f32 %v7446_v60, %v7444_v52  ;;  %v10780_v60 = vld [vmem:[#allocation131_spill] sm:$0xff]  ;;  %v10781_v52 = vld [vmem:[#allocation132_spill] sm:$0xff] }
 0x4a6   :  { %2374 = vmatprep.mubr.f32.mxu0 %v8975_v61  ;;  %2445 = vmatprep.mubr.f32.mxu1 %v8975_v61 }
 0x4a7   :  { %2375 = vmatmul.mubr.f32.vlgmr.msra.gmra.mrb[20].mxu0 %v8899_v54  ;;  %2446 = vmatmul.mubr.f32.vlgmr.msra.gmra.mrb[20].mxu1 %v8899_v54  ;;  %v10785_v54 = vld [vmem:[#allocation136_spill] sm:$0xff] }
 0x4a8   :  { %5841 = vmatpush1.bf16.msra.mxu0 %v10775_v34  ;;  %5905 = vmatpush1.bf16.msra.mxu1 %v10776_v37  ;;  %v10786_v34 = vld [vmem:[#allocation137_spill] sm:$0xff]  ;;  %v10787_v37 = vld [vmem:[#allocation138_spill] sm:$0xff] }
 0x4a9   :  { %5843 = vmatprep.subr.bf16.mxu0 %v10777_v53  ;;  %5907 = vmatprep.subr.bf16.mxu1 %v10778_v8  ;;  %v10788_v53 = vld [vmem:[#allocation139_spill] sm:$0xff]  ;;  %v10789_v8 = vld [vmem:[#allocation140_spill] sm:$0xff] }
 0x4ac   :  { %5845 = vmatpush1.bf16.msra.mxu0 %v10779_v12  ;;  %5909 = vmatpush1.bf16.msra.mxu1 %v10780_v60  ;;  %v10790_v12 = vld [vmem:[#allocation141_spill] sm:$0xff] }
 0x4ad   :  { %5847 = vmatprep.subr.bf16.mxu0 %v10781_v52  ;;  %5911 = vmatprep.subr.bf16.mxu1 %v10782_v42 }
 0x4b0   :  { %5849 = vmatpush1.bf16.msra.mxu0 %v10783_v55  ;;  %5913 = vmatpush1.bf16.msra.mxu1 %v10784_v29  ;;  %v10792_v29 = vld [vmem:[#allocation143_spill] sm:$0xff] }
 0x4b1   :  { %5851 = vmatprep.subr.bf16.mxu0 %v10785_v54  ;;  %5915 = vmatprep.subr.bf16.mxu1 %v10786_v34  ;;  %v10793_v54 = vld [vmem:[#allocation60_spill] sm:$0xff] }
 0x4b4   :  { %5853 = vmatpush1.bf16.msra.mxu0 %v10787_v37  ;;  %5917 = vmatpush1.bf16.msra.mxu1 %v10788_v53  ;;  %v10796_v37 = vld [vmem:[#allocation147_spill] sm:$0xff] }
 0x4b5   :  { %5855 = vmatprep.subr.bf16.mxu0 %v10789_v8  ;;  %5919 = vmatprep.subr.bf16.mxu1 %v10790_v12  ;;  %v10795_v12 = vld [vmem:[#allocation146_spill] sm:$0xff] }
 0x4b7   :  { %v2040_v60 = vpop.f32.mrb[16].mxu0  ;;  %v2111_v52 = vpop.f32.mrb[16].mxu1 }
 0x4b8   :  { %v2041_v42 = vadd.f32 %v2040_v60, %v8783_v18  ;;  %v2042_v28 = vpop.f32.mrb[17].mxu0  ;;  %v2113_v55 = vpop.f32.mrb[17].mxu1  ;;  %5857 = vmatpush1.bf16.msra.mxu0 %v10791_v56  ;;  %5921 = vmatpush1.bf16.msra.mxu1 %v10792_v29  ;;  %v10797_v60 = vld [vmem:[#allocation148_spill] sm:$0xff]  ;;  %v10798_v18 = vld [vmem:[#allocation149_spill] sm:$0xff]  ;;  %v10799_v56 = vld [vmem:[#allocation150_spill] sm:$0xff] }
 0x4b9   :  { %v2043_v34 = vadd.f32 %v2042_v28, %v10793_v54  ;;  %5859 = vmatprep.subr.bf16.mxu0 %v10794_v39  ;;  %5923 = vmatprep.subr.bf16.mxu1 %v10659_v23  ;;  %v2114_v29 = vadd.f32 %v2113_v55, %v8797_v7  ;;  %v10800_v28 = vld [vmem:[#allocation151_spill] sm:$0xff]  ;;  %v10801_v39 = vld [vmem:[#allocation152_spill] sm:$0xff] }
 0x4ba   :  { %v4700_v53 = vmul.f32 -1.442695, %v2041_v42  ;;  %v10802_v42 = vld [vmem:[#allocation153_spill] sm:$0xff] }
 0x4bb   :  { %v4701_v8 = vmul.f32 -1.442695, %v2043_v34  ;;  %v4702_v34 = vmul.f32 -1.442695, %v2114_v29  ;;  %v10809_v29 = vld [vmem:[#allocation160_spill] sm:$0xff] }
 0x4bc   :  { %7447 = vpow2.f32 %v4700_v53  ;;  %5861 = vmatpush1.bf16.msra.mxu0 %v10795_v12  ;;  %5925 = vmatpush1.bf16.msra.mxu1 %v10796_v37  ;;  %v2112_v53 = vadd.f32 %v2111_v52, %v8805_v30  ;;  %v10803_v12 = vld [vmem:[#allocation154_spill] sm:$0xff]  ;;  %v10810_v52 = vld [vmem:[#allocation161_spill] sm:$0xff] }
 0x4bd   :  { %7449 = vpow2.f32 %v4701_v8  ;;  %5863 = vmatprep.subr.bf16.mxu0 %v10797_v60  ;;  %5927 = vmatprep.subr.bf16.mxu1 %v10798_v18  ;;  %v10804_v8 = vld [vmem:[#allocation155_spill] sm:$0xff]  ;;  %v10805_v60 = vld [vmem:[#allocation156_spill] sm:$0xff]  ;;  %v10806_v18 = vld [vmem:[#allocation157_spill] sm:$0xff] }
 0x4be   :  { %7451 = vpow2.f32 %v4702_v34  ;;  %v10815_v34 = vld [vmem:[#allocation166_spill] sm:$0xff] }
 0x4bf   :  { %7453 = vtanh.f32 %v2112_v53 }
 0x4c0   :  { %5865 = vmatpush1.bf16.msra.mxu0 %v10799_v56  ;;  %5929 = vmatpush1.bf16.msra.mxu1 %v10800_v28 }
 0x4c1   :  { %5867 = vmatprep.subr.bf16.mxu0 %v10801_v39  ;;  %5931 = vmatprep.subr.bf16.mxu1 %v10802_v42  ;;  %v10807_v39 = vld [vmem:[#allocation158_spill] sm:$0xff]  ;;  %v10808_v42 = vld [vmem:[#allocation159_spill] sm:$0xff] }
 0x4c4   :  { %5869 = vmatpush1.bf16.msra.mxu0 %v10803_v12  ;;  %5933 = vmatpush1.bf16.msra.mxu1 %v10804_v8  ;;  %v10811_v8 = vld [vmem:[#allocation162_spill] sm:$0xff] }
 0x4c5   :  { %5871 = vmatprep.subr.bf16.mxu0 %v10805_v60  ;;  %5935 = vmatprep.subr.bf16.mxu1 %v10806_v18  ;;  %v10812_v60 = vld [vmem:[#allocation163_spill] sm:$0xff]  ;;  %v10813_v18 = vld [vmem:[#allocation164_spill] sm:$0xff] }
 0x4c6   :  { %v7448_v55 = vpop.eup %7447 }
 0x4c7   :  { %v7450_v7 = vpop.eup %7449  ;;  %v2119_v56 = vadd.f32 1.0, %v7448_v55  ;;  %v10814_v55 = vld [vmem:[#allocation165_spill] sm:$0xff] }
 0x4c8   :  { %v2125_v28 = vadd.f32 1.0, %v7450_v7  ;;  %5873 = vmatpush1.bf16.msra.mxu0 %v10807_v39  ;;  %5937 = vmatpush1.bf16.msra.mxu1 %v10808_v42  ;;  %v10816_v7 = vld [vmem:[#allocation167_spill] sm:$0xff]  ;;  %v7452_v53 = vpop.eup %7451  ;;  %v10817_v42 = vld [vmem:[#allocation168_spill] sm:$0xff] }
 0x4c9   :  { %7455 = vrcp.f32 %v2119_v56  ;;  %5875 = vmatprep.subr.bf16.mxu0 %v10809_v29  ;;  %5939 = vmatprep.subr.bf16.mxu1 %v10810_v52  ;;  %v10818_v56 = vld [vmem:[#allocation169_spill] sm:$0xff]  ;;  %v7454_v29 = vpop.eup %7453 }
 0x4ca   :  { %7457 = vrcp.f32 %v2125_v28 }
 0x4cc   :  { %5877 = vmatpush1.bf16.msra.mxu0 %v10811_v8  ;;  %5941 = vmatpush1.bf16.msra.mxu1 %v10812_v60  ;;  %v2132_v8 = vadd.f32 1.0, %v7452_v53  ;;  %v10822_v53 = vld [vmem:[#allocation19_spill] sm:$0xff] }
 0x4cd   :  { %5879 = vmatprep.subr.bf16.mxu0 %v10813_v18  ;;  %5943 = vmatprep.subr.bf16.mxu1 %v10814_v55 }
 0x4ce   :  { %7459 = vrcp.f32 %v2132_v8 }
 0x4d0   :  { %5881 = vmatpush1.bf16.msra.mxu0 %v10815_v34  ;;  %5945 = vmatpush1.bf16.msra.mxu1 %v10816_v7 }
 0x4d1   :  { %5883 = vmatprep.subr.bf16.mxu0 %v10817_v42  ;;  %5947 = vmatprep.subr.bf16.mxu1 %v10818_v56 }
 0x4d3   :  { %v7456_v52 = vpop.eup %7455 }
 0x4d4   :  { %v7458_v28 = vpop.eup %7457  ;;  %v2136_v39 = vmul.f32 %v7456_v52, %v7454_v29  ;;  %5885 = vmatpush1.bf16.msra.mxu0 %v10688_v62  ;;  %5949 = vmatpush1.bf16.msra.mxu1 %v10689_v0  ;;  %v10819_v29 = vmov 0.0   ;;  %v10820_v52 = vld [vmem:[#allocation17_spill] sm:$0xff] }
 0x4d5   :  { %v2135_v55 = vmul.f32 %v7458_v28, %v8832_v35  ;;  %5887 = vmatprep.subr.bf16.mxu0 %v10690_v13  ;;  %5951 = vmatprep.subr.bf16.mxu1 %v10691_v16  ;;  %v10823_v28 = vld [vmem:[#allocation20_spill] sm:$0xff] }
 0x4d7   :  { %v9034_v7 = vadd.f32 %v2136_v39, %v2135_v55  ;;  %v10821_v55 = vld [vmem:[#allocation18_spill] sm:$0xff] }
 0x4d8   :  { %5889 = vmatpush1.bf16.msra.mxu0 %v10692_v9  ;;  %5953 = vmatpush1.bf16.msra.mxu1 %v10693_v40  ;;  %v7460_v35 = vpop.eup %7459 }
 0x4d9   :  { %5891 = vmatprep.subr.bf16.mxu0 %v8595_v36  ;;  %5955 = vmatprep.subr.bf16.mxu1 %v8597_v17  ;;  %7461 = vtanh.f32 %v9034_v7 }
 0x4dc   :  { %5893 = vmatpush1.bf16.msra.mxu0 %v8601_v14  ;;  %5957 = vmatpush1.bf16.msra.mxu1 %v8603_v38 }
 0x4dd   :  { %5895 = vmatprep.subr.bf16.mxu0 %v8607_v21  ;;  %5959 = vmatprep.subr.bf16.mxu1 %v8609_v51 }
 0x4e0   :  { %5897 = vmatpush1.bf16.msra.mxu0 %v8613_v57  ;;  %5961 = vmatpush1.bf16.msra.mxu1 %v8615_v63 }
 0x4e1   :  { %5899 = vmatprep.subr.bf16.mxu0 %v8619_v47  ;;  %5963 = vmatprep.subr.bf16.mxu1 %v8621_v26 }
 0x4e3   :  { %v7462_v39 = vpop.eup %7461 }
 0x4e4   :  { %5901 = vmatpush1.bf16.msra.mxu0 %v8625_v49  ;;  %5965 = vmatpush1.bf16.msra.mxu1 %v8627_v25  ;;  %v2139_v8 = vmul.f32 %v7462_v39, %v7460_v35  ;;  %v10825_v35 = vld [vmem:[#allocation22_spill] sm:$0xff]  ;;  %v10826_v39 = vld [vmem:[#allocation23_spill] sm:$0xff] }
 0x4e5   :  { %5967 = vmatprep.subr.bf16.mxu0 %v7892_v6  ;;  %5999 = vmatprep.subr.bf16.mxu1 %v7894_v10 }
 0x4e6   :  { %2540 = vmatprep.mubr.f32.mxu0 %v2139_v8  ;;  %2611 = vmatprep.mubr.f32.mxu1 %v2139_v8  ;;  %v10827_v8 = vld [vmem:[#allocation24_spill] sm:$0xff] }
 0x4e7   :  { %2541 = vmatmul.mubr.f32.vlgmr.msra.gmra.mrb[22].mxu0 %v8975_v61  ;;  %2612 = vmatmul.mubr.f32.vlgmr.msra.gmra.mrb[22].mxu1 %v8975_v61  ;;  %v10824_v61 = vld [vmem:[#allocation21_spill] sm:$0xff] }
 0x4e8   :  { %5969 = vmatpush1.bf16.msra.mxu0 %v7896_v11  ;;  %6001 = vmatpush1.bf16.msra.mxu1 %v7899_v15 }
 0x4e9   :  { %5971 = vmatprep.subr.bf16.mxu0 %v7903_v19  ;;  %6003 = vmatprep.subr.bf16.mxu1 %v7905_v20  ;;  %v10828_v20 = vld [vmem:[#allocation25_spill] sm:$0xff]  ;;  %v10829_v19 = vld [vmem:[#allocation26_spill] sm:$0xff] }
 0x4ea   :  { %2710 = vmatprep.mubr.f32.mxu0 %v10819_v29  ;;  %2781 = vmatprep.mubr.f32.mxu1 %v10819_v29  ;;  %v10830_v29 = vld [vmem:[#allocation27_spill] sm:$0xff] }
 0x4ec   :  { %5973 = vmatpush1.bf16.msra.mxu0 %v10820_v52  ;;  %6005 = vmatpush1.bf16.msra.mxu1 %v10821_v55  ;;  %v10831_v52 = vld [vmem:[#allocation28_spill] sm:$0xff]  ;;  %v10832_v55 = vld [vmem:[#allocation29_spill] sm:$0xff] }
 0x4ed   :  { %5975 = vmatprep.subr.bf16.mxu0 %v10822_v53  ;;  %6007 = vmatprep.subr.bf16.mxu1 %v10823_v28  ;;  %v10833_v53 = vld [vmem:[#allocation30_spill] sm:$0xff]  ;;  %v10834_v28 = vld [vmem:[#allocation31_spill] sm:$0xff] }
 0x4f0   :  { %5977 = vmatpush1.bf16.msra.mxu0 %v10824_v61  ;;  %6009 = vmatpush1.bf16.msra.mxu1 %v10825_v35  ;;  %v10835_v61 = vld [vmem:[#allocation32_spill] sm:$0xff]  ;;  %v10836_v35 = vld [vmem:[#allocation33_spill] sm:$0xff] }
 0x4f1   :  { %5979 = vmatprep.subr.bf16.mxu0 %v10826_v39  ;;  %6011 = vmatprep.subr.bf16.mxu1 %v10827_v8  ;;  %v10837_v39 = vld [vmem:[#allocation34_spill] sm:$0xff]  ;;  %v10838_v8 = vld [vmem:[#allocation35_spill] sm:$0xff] }
 0x4f4   :  { %5981 = vmatpush1.bf16.msra.mxu0 %v10828_v20  ;;  %6013 = vmatpush1.bf16.msra.mxu1 %v10829_v19  ;;  %v10839_v20 = vld [vmem:[#allocation36_spill] sm:$0xff]  ;;  %v10840_v19 = vld [vmem:[#allocation37_spill] sm:$0xff] }
 0x4f5   :  { %5983 = vmatprep.subr.bf16.mxu0 %v10830_v29  ;;  %6015 = vmatprep.subr.bf16.mxu1 %v10831_v52  ;;  %v10841_v29 = vld [vmem:[#allocation38_spill] sm:$0xff]  ;;  %v10842_v52 = vld [vmem:[#allocation39_spill] sm:$0xff] }
 0x4f8   :  { %5985 = vmatpush1.bf16.msra.mxu0 %v10832_v55  ;;  %6017 = vmatpush1.bf16.msra.mxu1 %v10833_v53  ;;  %v10843_v55 = vld [vmem:[#allocation40_spill] sm:$0xff]  ;;  %v10844_v53 = vld [vmem:[#allocation41_spill] sm:$0xff] }
 0x4f9   :  { %5987 = vmatprep.subr.bf16.mxu0 %v10834_v28  ;;  %6019 = vmatprep.subr.bf16.mxu1 %v10835_v61  ;;  %v10845_v28 = vld [vmem:[#allocation42_spill] sm:$0xff]  ;;  %v10846_v61 = vld [vmem:[#allocation43_spill] sm:$0xff] }
 0x4fc   :  { %5989 = vmatpush1.bf16.msra.mxu0 %v10836_v35  ;;  %6021 = vmatpush1.bf16.msra.mxu1 %v10837_v39  ;;  %v10847_v35 = vld [vmem:[#allocation44_spill] sm:$0xff]  ;;  %v110_v39 = vpop.permute.xlu0 %109 }
 0x4fd   :  { %5991 = vmatprep.subr.bf16.mxu0 %v10838_v8  ;;  %6023 = vmatprep.subr.bf16.mxu1 %v10839_v20  ;;  %v10848_v8 = vld [vmem:[#allocation47_spill] sm:$0xff]  ;;  %v10849_v20 = vld [vmem:[#allocation48_spill] sm:$0xff] }
 0x4fe   :  { %v164_v15 = vmul.f32 %v10848_v8, %v110_v39  ;;  %v165_v11 = vmul.f32 %v10849_v20, %v110_v39  ;;  %v166_v20 = vmul.f32 %v10437_v1, %v110_v39 }
 0x500   :  { %5993 = vmatpush1.bf16.msra.mxu0 %v10840_v19  ;;  %6025 = vmatpush1.bf16.msra.mxu1 %v10841_v29  ;;  %v10850_v19 = vld [vmem:[#allocation50_spill] sm:$0xff] }
 0x501   :  { %5995 = vmatprep.subr.bf16.mxu0 %v10842_v52  ;;  %6027 = vmatprep.subr.bf16.mxu1 %v10843_v55  ;;  %v218_v10 = vadd.f32 %v10850_v19, %v164_v15  ;;  %v219_v52 = vadd.f32 %v10713_v59, %v165_v11  ;;  %v220_v15 = vadd.f32 %v10438_v5, %v166_v20 }
 0x504   :  { %5997 = vmatpush1.bf16.msra.mxu0 %v10844_v53  ;;  %6029 = vmatpush1.bf16.msra.mxu1 %v10845_v28  ;;  %v167_v28 = vmul.f32 %v10714_v4, %v110_v39 }
 0x505   :  { %6031 = vmatprep.subr.bf16.mxu0 %v10846_v61  ;;  %6095 = vmatprep.subr.bf16.mxu1 %v10847_v35 }
 0x506   :  { %v221_v8 = vadd.f32 %v8077_v45, %v167_v28 }
 0x537   :  { %v2210_v29 = vpop.f32.mrb[18].mxu0  ;;  %v2281_v6 = vpop.f32.mrb[18].mxu1 }
 0x538   :  { %v2211_v55 = vadd.f32 %v2210_v29, %v218_v10  ;;  %v2212_v25 = vpop.f32.mrb[19].mxu0  ;;  %v2283_v53 = vpop.f32.mrb[19].mxu1  ;;  %v2282_v47 = vadd.f32 %v2281_v6, %v220_v15  ;;  %v10855_v15 = vld [vmem:[#allocation72_spill] sm:$0xff] }
 0x539   :  { %v2213_v49 = vadd.f32 %v2212_v25, %v219_v52  ;;  %v2284_v35 = vadd.f32 %v2283_v53, %v221_v8  ;;  %v10854_v8 = vld [vmem:[#allocation71_spill] sm:$0xff] }
 0x53a   :  { %v4703_v61 = vmul.f32 -1.442695, %v2211_v55 }
 0x53b   :  { %v4704_v26 = vmul.f32 -1.442695, %v2213_v49  ;;  %v4705_v19 = vmul.f32 -1.442695, %v2284_v35  ;;  %v10853_v35 = vld [vmem:[#allocation70_spill] sm:$0xff] }
 0x53c   :  { %7463 = vpow2.f32 %v4703_v61 }
 0x53d   :  { %7465 = vpow2.f32 %v4704_v26 }
 0x53e   :  { %7467 = vpow2.f32 %v4705_v19 }
 0x53f   :  { %7469 = vtanh.f32 %v2282_v47  ;;  %v10851_v47 = vld [vmem:[#allocation68_spill] sm:$0xff] }
 0x546   :  { %v7464_v11 = vpop.eup %7463 }
 0x547   :  { %v7466_v10 = vpop.eup %7465  ;;  %v2289_v29 = vadd.f32 1.0, %v7464_v11  ;;  %v10856_v11 = vld [vmem:[#allocation73_spill] sm:$0xff] }
 0x548   :  { %v2295_v25 = vadd.f32 1.0, %v7466_v10  ;;  %v7468_v49 = vpop.eup %7467  ;;  %v10857_v10 = vld [vmem:[#allocation74_spill] sm:$0xff] }
 0x549   :  { %7471 = vrcp.f32 %v2289_v29  ;;  %v7470_v52 = vpop.eup %7469  ;;  %v2302_v61 = vadd.f32 1.0, %v7468_v49  ;;  %v10858_v29 = vld [vmem:[#allocation75_spill] sm:$0xff]  ;;  %v10860_v49 = vld [vmem:[#allocation77_spill] sm:$0xff] }
 0x54a   :  { %7473 = vrcp.f32 %v2295_v25  ;;  %v10859_v25 = vld [vmem:[#allocation76_spill] sm:$0xff] }
 0x54b   :  { %7475 = vrcp.f32 %v2302_v61 }
 0x553   :  { %v7472_v26 = vpop.eup %7471 }
 0x554   :  { %v7474_v55 = vpop.eup %7473  ;;  %v2306_v28 = vmul.f32 %v7472_v26, %v7470_v52 }
 0x555   :  { %v2305_v53 = vmul.f32 %v7474_v55, %v8896_v43  ;;  %v7476_v6 = vpop.eup %7475  ;;  %v10852_v43 = vld [vmem:[#allocation69_spill] sm:$0xff] }
 0x557   :  { %v9098_v39 = vadd.f32 %v2306_v28, %v2305_v53  ;;  %v10861_v53 = vld [vmem:[#allocation78_spill] sm:$0xff] }
 0x559   :  { %7477 = vtanh.f32 %v9098_v39 }
 0x563   :  { %v7478_v20 = vpop.eup %7477 }
 0x564   :  { %v9101_v19 = vmul.f32 %v7478_v20, %v7476_v6  ;;  %v10862_v6 = vld [vmem:[#allocation120_spill] sm:$0xff] }
 0x566   :  { %2711 = vmatmul.mubr.f32.vlgmr.msra.gmra.mrb[24].mxu0 %v9101_v19  ;;  %2782 = vmatmul.mubr.f32.vlgmr.msra.gmra.mrb[24].mxu1 %v9101_v19 }
 0x567   :  { %6033 = vmatpush1.bf16.msra.mxu0 %v10574_v2  ;;  %6097 = vmatpush1.bf16.msra.mxu1 %v10575_v32 }
 0x568   :  { %6035 = vmatprep.subr.bf16.mxu0 %v10576_v58  ;;  %6099 = vmatprep.subr.bf16.mxu1 %v10577_v48 }
 0x56b   :  { %6037 = vmatpush1.bf16.msra.mxu0 %v10578_v27  ;;  %6101 = vmatpush1.bf16.msra.mxu1 %v10579_v50 }
 0x56c   :  { %6039 = vmatprep.subr.bf16.mxu0 %v10715_v44  ;;  %6103 = vmatprep.subr.bf16.mxu1 %v10716_v31 }
 0x56f   :  { %6041 = vmatpush1.bf16.msra.mxu0 %v10717_v3  ;;  %6105 = vmatpush1.bf16.msra.mxu1 %v10718_v22 }
 0x570   :  { %6043 = vmatprep.subr.bf16.mxu0 %v10851_v47  ;;  %6107 = vmatprep.subr.bf16.mxu1 %v10852_v43 }
 0x573   :  { %6045 = vmatpush1.bf16.msra.mxu0 %v10853_v35  ;;  %6109 = vmatpush1.bf16.msra.mxu1 %v10854_v8 }
 0x574   :  { %6047 = vmatprep.subr.bf16.mxu0 %v10855_v15  ;;  %6111 = vmatprep.subr.bf16.mxu1 %v10856_v11  ;;  %v10863_v11 = vld [vmem:[#allocation80_spill] sm:$0xff]  ;;  %v10866_v15 = vld [vmem:[#allocation83_spill] sm:$0xff] }
 0x577   :  { %6049 = vmatpush1.bf16.msra.mxu0 %v10857_v10  ;;  %6113 = vmatpush1.bf16.msra.mxu1 %v10858_v29  ;;  %v10864_v10 = vld [vmem:[#allocation81_spill] sm:$0xff] }
 0x578   :  { %6051 = vmatprep.subr.bf16.mxu0 %v10859_v25  ;;  %6115 = vmatprep.subr.bf16.mxu1 %v10860_v49  ;;  %v10865_v49 = vld [vmem:[#allocation82_spill] sm:$0xff] }
 0x57a   :  { %v2376_v52 = vpop.f32.mrb[20].mxu0  ;;  %v2447_v26 = vpop.f32.mrb[20].mxu1 }
 0x57b   :  { %v2377_v55 = vadd.f32 %v2376_v52, %v10729_v41  ;;  %v2378_v28 = vpop.f32.mrb[21].mxu0  ;;  %v2449_v61 = vpop.f32.mrb[21].mxu1  ;;  %6053 = vmatpush1.bf16.msra.mxu0 %v10861_v53  ;;  %6117 = vmatpush1.bf16.msra.mxu1 %v10730_v33  ;;  %v10867_v52 = vld [vmem:[#allocation84_spill] sm:$0xff]  ;;  %v10868_v41 = vld [vmem:[#allocation85_spill] sm:$0xff]  ;;  %v10869_v53 = vld [vmem:[#allocation86_spill] sm:$0xff] }
 0x57c   :  { %v2379_v20 = vadd.f32 %v2378_v28, %v10862_v6  ;;  %6055 = vmatprep.subr.bf16.mxu0 %v10863_v11  ;;  %6119 = vmatprep.subr.bf16.mxu1 %v10864_v10  ;;  %v2450_v33 = vadd.f32 %v2449_v61, %v10736_v46  ;;  %v10870_v28 = vld [vmem:[#allocation87_spill] sm:$0xff]  ;;  %v10871_v6 = vld [vmem:[#allocation88_spill] sm:$0xff]  ;;  %v10874_v10 = vld [vmem:[#allocation90_spill] sm:$0xff] }
 0x57d   :  { %v4706_v29 = vmul.f32 -1.442695, %v2377_v55  ;;  %v10872_v55 = vld [vmem:[#allocation89_spill] sm:$0xff] }
 0x57e   :  { %v4707_v25 = vmul.f32 -1.442695, %v2379_v20  ;;  %v10873_v20 = vld [vmem:[#allocation122_spill] sm:$0xff] }
 0x57f   :  { %7479 = vpow2.f32 %v4706_v29  ;;  %6057 = vmatpush1.bf16.msra.mxu0 %v10865_v49  ;;  %6121 = vmatpush1.bf16.msra.mxu1 %v10866_v15  ;;  %v4708_v29 = vmul.f32 -1.442695, %v2450_v33  ;;  %v2448_v49 = vadd.f32 %v2447_v26, %v10873_v20  ;;  %v10880_v33 = vld [vmem:[#allocation96_spill] sm:$0xff]  ;;  %v10881_v26 = vld [vmem:[#allocation97_spill] sm:$0xff]  ;;  %v10882_v20 = vld [vmem:[#allocation98_spill] sm:$0xff] }
 0x580   :  { %7481 = vpow2.f32 %v4707_v25  ;;  %6059 = vmatprep.subr.bf16.mxu0 %v10867_v52  ;;  %6123 = vmatprep.subr.bf16.mxu1 %v10868_v41  ;;  %v10875_v25 = vld [vmem:[#allocation91_spill] sm:$0xff]  ;;  %v10876_v52 = vld [vmem:[#allocation92_spill] sm:$0xff]  ;;  %v10877_v41 = vld [vmem:[#allocation93_spill] sm:$0xff] }
 0x581   :  { %7483 = vpow2.f32 %v4708_v29 }
 0x582   :  { %7485 = vtanh.f32 %v2448_v49  ;;  %v10886_v49 = vld [vmem:[#allocation102_spill] sm:$0xff] }
 0x583   :  { %6061 = vmatpush1.bf16.msra.mxu0 %v10869_v53  ;;  %6125 = vmatpush1.bf16.msra.mxu1 %v10870_v28 }
 0x584   :  { %6063 = vmatprep.subr.bf16.mxu0 %v10871_v6  ;;  %6127 = vmatprep.subr.bf16.mxu1 %v10872_v55  ;;  %v10878_v6 = vld [vmem:[#allocation94_spill] sm:$0xff]  ;;  %v10879_v55 = vld [vmem:[#allocation95_spill] sm:$0xff] }
 0x587   :  { %6065 = vmatpush1.bf16.msra.mxu0 %v10874_v10  ;;  %6129 = vmatpush1.bf16.msra.mxu1 %v10875_v25  ;;  %v10892_v25 = vld [vmem:[#allocation108_spill] sm:$0xff] }
 0x588   :  { %6067 = vmatprep.subr.bf16.mxu0 %v10876_v52  ;;  %6131 = vmatprep.subr.bf16.mxu1 %v10877_v41  ;;  %v10883_v52 = vld [vmem:[#allocation99_spill] sm:$0xff]  ;;  %v10884_v41 = vld [vmem:[#allocation100_spill] sm:$0xff] }
 0x589   :  { %v7480_v61 = vpop.eup %7479  ;;  %v10897_v10 = vld [vmem:[#allocation112_spill] sm:$0xff] }
 0x58a   :  { %v7482_v46 = vpop.eup %7481  ;;  %v2455_v53 = vadd.f32 1.0, %v7480_v61  ;;  %v10885_v61 = vld [vmem:[#allocation101_spill] sm:$0xff] }
 0x58b   :  { %v2461_v28 = vadd.f32 1.0, %v7482_v46  ;;  %6069 = vmatpush1.bf16.msra.mxu0 %v10878_v6  ;;  %6133 = vmatpush1.bf16.msra.mxu1 %v10879_v55  ;;  %v10887_v46 = vld [vmem:[#allocation103_spill] sm:$0xff]  ;;  %v7484_v29 = vpop.eup %7483  ;;  %v10888_v55 = vld [vmem:[#allocation104_spill] sm:$0xff] }
 0x58c   :  { %7487 = vrcp.f32 %v2455_v53  ;;  %6071 = vmatprep.subr.bf16.mxu0 %v10880_v33  ;;  %6135 = vmatprep.subr.bf16.mxu1 %v10881_v26  ;;  %v10889_v53 = vld [vmem:[#allocation105_spill] sm:$0xff]  ;;  %v7486_v33 = vpop.eup %7485 }
 0x58d   :  { %7489 = vrcp.f32 %v2461_v28 }
 0x58f   :  { %6073 = vmatpush1.bf16.msra.mxu0 %v10882_v20  ;;  %6137 = vmatpush1.bf16.msra.mxu1 %v10883_v52  ;;  %v2468_v20 = vadd.f32 1.0, %v7484_v29  ;;  %v10890_v52 = vld [vmem:[#allocation107_spill] sm:$0xff]  ;;  %v10901_v29 = vld [vmem:[#allocation116_spill] sm:$0xff] }
 0x590   :  { %6075 = vmatprep.subr.bf16.mxu0 %v10884_v41  ;;  %6139 = vmatprep.subr.bf16.mxu1 %v10885_v61  ;;  %v10891_v41 = vld [vmem:[#allocation63_spill] sm:$0xff] }
 0x591   :  { %7491 = vrcp.f32 %v2468_v20  ;;  %v10904_v20 = vld [vmem:[#allocation119_spill] sm:$0xff] }
 0x593   :  { %6077 = vmatpush1.bf16.msra.mxu0 %v10886_v49  ;;  %6141 = vmatpush1.bf16.msra.mxu1 %v10887_v46  ;;  %v10893_v49 = vld [vmem:[#allocation109_spill] sm:$0xff] }
 0x594   :  { %6079 = vmatprep.subr.bf16.mxu0 %v10888_v55  ;;  %6143 = vmatprep.subr.bf16.mxu1 %v10889_v53  ;;  %v10895_v55 = vld [vmem:[#allocation110_spill] sm:$0xff]  ;;  %v10896_v53 = vld [vmem:[#allocation111_spill] sm:$0xff] }
 0x596   :  { %v7488_v26 = vpop.eup %7487 }
 0x597   :  { %v7490_v28 = vpop.eup %7489  ;;  %v2472_v6 = vmul.f32 %v7488_v26, %v7486_v33  ;;  %6081 = vmatpush1.bf16.msra.mxu0 %v10758_v24  ;;  %6145 = vmatpush1.bf16.msra.mxu1 %v10890_v52  ;;  %v10898_v33 = vld [vmem:[#allocation113_spill] sm:$0xff]  ;;  %v10899_v26 = vld [vmem:[#allocation114_spill] sm:$0xff] }
 0x598   :  { %v2471_v61 = vmul.f32 %v7490_v28, %v10891_v41  ;;  %6083 = vmatprep.subr.bf16.mxu0 %v10892_v25  ;;  %6147 = vmatprep.subr.bf16.mxu1 %v10893_v49  ;;  %v10900_v41 = vld [vmem:[#allocation115_spill] sm:$0xff]  ;;  %v10902_v28 = vld [vmem:[#allocation117_spill] sm:$0xff]  ;;  %v10924_v25 = vld [vmem:[#allocation142_spill] sm:$0xff] }
 0x59a   :  { %v9162_v46 = vadd.f32 %v2472_v6, %v2471_v61  ;;  %v10903_v6 = vld [vmem:[#allocation118_spill] sm:$0xff]  ;;  %v10905_v61 = vld [vmem:[#allocation124_spill] sm:$0xff] }
 0x59b   :  { %6085 = vmatpush1.bf16.msra.mxu0 %v10895_v55  ;;  %6149 = vmatpush1.bf16.msra.mxu1 %v10896_v53  ;;  %v10906_v53 = vld [vmem:[#allocation125_spill] sm:$0xff] }
 0x59c   :  { %10894 = vst [vmem:[#allocation123_spill] sm:$0xff] %v9162_v46  ;;  %6087 = vmatprep.subr.bf16.mxu0 %v10897_v10  ;;  %6151 = vmatprep.subr.bf16.mxu1 %v10898_v33  ;;  %7493 = vtanh.f32 %v9162_v46  ;;  %v7492_v10 = vpop.eup %7491  ;;  %v10923_v46 = vld [vmem:[#allocation59_spill] sm:$0xff] }
 0x59f   :  { %6089 = vmatpush1.bf16.msra.mxu0 %v10899_v26  ;;  %6153 = vmatpush1.bf16.msra.mxu1 %v10900_v41  ;;  %v10915_v41 = vld [vmem:[#allocation134_spill] sm:$0xff]  ;;  %v10916_v26 = vld [vmem:[#allocation135_spill] sm:$0xff] }
 0x5a0   :  { %6091 = vmatprep.subr.bf16.mxu0 %v10901_v29  ;;  %6155 = vmatprep.subr.bf16.mxu1 %v10902_v28  ;;  %v10907_v28 = vld [vmem:[#allocation126_spill] sm:$0xff]  ;;  %v10914_v29 = vld [vmem:[#allocation133_spill] sm:$0xff] }
 0x5a3   :  { %6093 = vmatpush1.bf16.msra.mxu0 %v10903_v6  ;;  %6157 = vmatpush1.bf16.msra.mxu1 %v10904_v20  ;;  %v10908_v6 = vld [vmem:[#allocation127_spill] sm:$0xff]  ;;  %v10909_v20 = vld [vmem:[#allocation128_spill] sm:$0xff] }
 0x5a4   :  { %6159 = vmatprep.subr.bf16.mxu0 %v10905_v61  ;;  %6223 = vmatprep.subr.bf16.mxu1 %v10906_v53  ;;  %v10910_v61 = vld [vmem:[#allocation129_spill] sm:$0xff]  ;;  %v10911_v53 = vld [vmem:[#allocation130_spill] sm:$0xff] }
 0x5a6   :  { %v7494_v33 = vpop.eup %7493 }
 0x5a7   :  { %v9177_v55 = vmul.f32 %v7494_v33, %v7492_v10  ;;  %v10912_v10 = vld [vmem:[#allocation131_spill] sm:$0xff]  ;;  %v10913_v33 = vld [vmem:[#allocation132_spill] sm:$0xff] }
 0x5a9   :  { %2876 = vmatprep.mubr.f32.mxu0 %v9177_v55  ;;  %2947 = vmatprep.mubr.f32.mxu1 %v9177_v55 }
 0x5aa   :  { %2877 = vmatmul.mubr.f32.vlgmr.msra.gmra.mrb[26].mxu0 %v9101_v19  ;;  %2948 = vmatmul.mubr.f32.vlgmr.msra.gmra.mrb[26].mxu1 %v9101_v19  ;;  %v10917_v19 = vld [vmem:[#allocation136_spill] sm:$0xff] }
 0x5ab   :  { %6161 = vmatpush1.bf16.msra.mxu0 %v10907_v28  ;;  %6225 = vmatpush1.bf16.msra.mxu1 %v10908_v6  ;;  %v10918_v28 = vld [vmem:[#allocation137_spill] sm:$0xff]  ;;  %v10919_v6 = vld [vmem:[#allocation138_spill] sm:$0xff] }
 0x5ac   :  { %6163 = vmatprep.subr.bf16.mxu0 %v10909_v20  ;;  %6227 = vmatprep.subr.bf16.mxu1 %v10910_v61  ;;  %v10920_v20 = vld [vmem:[#allocation139_spill] sm:$0xff]  ;;  %v10921_v61 = vld [vmem:[#allocation140_spill] sm:$0xff] }
 0x5af   :  { %6165 = vmatpush1.bf16.msra.mxu0 %v10911_v53  ;;  %6229 = vmatpush1.bf16.msra.mxu1 %v10912_v10  ;;  %v10922_v53 = vld [vmem:[#allocation141_spill] sm:$0xff] }
 0x5b0   :  { %6167 = vmatprep.subr.bf16.mxu0 %v10913_v33  ;;  %6231 = vmatprep.subr.bf16.mxu1 %v10914_v29 }
 0x5b3   :  { %6169 = vmatpush1.bf16.msra.mxu0 %v10915_v41  ;;  %6233 = vmatpush1.bf16.msra.mxu1 %v10916_v26  ;;  %v10925_v26 = vld [vmem:[#allocation143_spill] sm:$0xff] }
 0x5b4   :  { %6171 = vmatprep.subr.bf16.mxu0 %v10917_v19  ;;  %6235 = vmatprep.subr.bf16.mxu1 %v10918_v28  ;;  %v10926_v19 = vld [vmem:[#allocation144_spill] sm:$0xff] }
 0x5b7   :  { %6173 = vmatpush1.bf16.msra.mxu0 %v10919_v6  ;;  %6237 = vmatpush1.bf16.msra.mxu1 %v10920_v20  ;;  %v10931_v6 = vld [vmem:[#allocation150_spill] sm:$0xff] }
 0x5b8   :  { %6175 = vmatprep.subr.bf16.mxu0 %v10921_v61  ;;  %6239 = vmatprep.subr.bf16.mxu1 %v10922_v53  ;;  %v10927_v53 = vld [vmem:[#allocation146_spill] sm:$0xff] }
 0x5ba   :  { %v2542_v10 = vpop.f32.mrb[22].mxu0  ;;  %v2613_v33 = vpop.f32.mrb[22].mxu1 }
 0x5bb   :  { %v2543_v29 = vadd.f32 %v2542_v10, %v10923_v46  ;;  %v2544_v49 = vpop.f32.mrb[23].mxu0  ;;  %v2615_v41 = vpop.f32.mrb[23].mxu1  ;;  %6177 = vmatpush1.bf16.msra.mxu0 %v10924_v25  ;;  %6241 = vmatpush1.bf16.msra.mxu1 %v10925_v26  ;;  %v10928_v10 = vld [vmem:[#allocation148_spill] sm:$0xff]  ;;  %v10929_v46 = vld [vmem:[#allocation149_spill] sm:$0xff] }
 0x5bc   :  { %v2545_v28 = vadd.f32 %v2544_v49, %v10793_v54  ;;  %6179 = vmatprep.subr.bf16.mxu0 %v10926_v19  ;;  %6243 = vmatprep.subr.bf16.mxu1 %v10659_v23  ;;  %v10930_v25 = vld [vmem:[#allocation61_spill] sm:$0xff]  ;;  %v10932_v49 = vld [vmem:[#allocation151_spill] sm:$0xff]  ;;  %v10933_v19 = vld [vmem:[#allocation152_spill] sm:$0xff] }
 0x5bd   :  { %v4709_v20 = vmul.f32 -1.442695, %v2543_v29  ;;  %v2616_v26 = vadd.f32 %v2615_v41, %v10930_v25  ;;  %v10934_v29 = vld [vmem:[#allocation153_spill] sm:$0xff] }
 0x5be   :  { %v4710_v61 = vmul.f32 -1.442695, %v2545_v28 }
 0x5bf   :  { %7495 = vpow2.f32 %v4709_v20  ;;  %6181 = vmatpush1.bf16.msra.mxu0 %v10927_v53  ;;  %6245 = vmatpush1.bf16.msra.mxu1 %v10796_v37  ;;  %v4711_v28 = vmul.f32 -1.442695, %v2616_v26  ;;  %v2614_v20 = vadd.f32 %v2613_v33, %v8805_v30  ;;  %v10940_v26 = vld [vmem:[#allocation160_spill] sm:$0xff]  ;;  %v10941_v33 = vld [vmem:[#allocation161_spill] sm:$0xff] }
 0x5c0   :  { %7497 = vpow2.f32 %v4710_v61  ;;  %6183 = vmatprep.subr.bf16.mxu0 %v10928_v10  ;;  %6247 = vmatprep.subr.bf16.mxu1 %v10929_v46  ;;  %v10935_v61 = vld [vmem:[#allocation155_spill] sm:$0xff]  ;;  %v10936_v10 = vld [vmem:[#allocation156_spill] sm:$0xff]  ;;  %v10937_v46 = vld [vmem:[#allocation157_spill] sm:$0xff] }
 0x5c1   :  { %7499 = vpow2.f32 %v4711_v28 }
 0x5c2   :  { %7501 = vtanh.f32 %v2614_v20 }
 0x5c3   :  { %6185 = vmatpush1.bf16.msra.mxu0 %v10931_v6  ;;  %6249 = vmatpush1.bf16.msra.mxu1 %v10932_v49 }
 0x5c4   :  { %6187 = vmatprep.subr.bf16.mxu0 %v10933_v19  ;;  %6251 = vmatprep.subr.bf16.mxu1 %v10934_v29  ;;  %v10938_v19 = vld [vmem:[#allocation158_spill] sm:$0xff]  ;;  %v10939_v29 = vld [vmem:[#allocation159_spill] sm:$0xff] }
 0x5c7   :  { %6189 = vmatpush1.bf16.msra.mxu0 %v10803_v12  ;;  %6253 = vmatpush1.bf16.msra.mxu1 %v10935_v61  ;;  %v10942_v61 = vld [vmem:[#allocation162_spill] sm:$0xff] }
 0x5c8   :  { %6191 = vmatprep.subr.bf16.mxu0 %v10936_v10  ;;  %6255 = vmatprep.subr.bf16.mxu1 %v10937_v46 }
 0x5c9   :  { %v7496_v41 = vpop.eup %7495 }
 0x5ca   :  { %v7498_v25 = vpop.eup %7497  ;;  %v2621_v6 = vadd.f32 1.0, %v7496_v41  ;;  %v10943_v41 = vld [vmem:[#allocation165_spill] sm:$0xff] }
 0x5cb   :  { %v2627_v49 = vadd.f32 1.0, %v7498_v25  ;;  %6193 = vmatpush1.bf16.msra.mxu0 %v10938_v19  ;;  %6257 = vmatpush1.bf16.msra.mxu1 %v10939_v29  ;;  %v10944_v25 = vld [vmem:[#allocation167_spill] sm:$0xff]  ;;  %v7500_v28 = vpop.eup %7499 }
 0x5cc   :  { %7503 = vrcp.f32 %v2621_v6  ;;  %6195 = vmatprep.subr.bf16.mxu0 %v10940_v26  ;;  %6259 = vmatprep.subr.bf16.mxu1 %v10941_v33  ;;  %v7502_v6 = vpop.eup %7501 }
 0x5cd   :  { %7505 = vrcp.f32 %v2627_v49 }
 0x5cf   :  { %6197 = vmatpush1.bf16.msra.mxu0 %v10942_v61  ;;  %6261 = vmatpush1.bf16.msra.mxu1 %v10812_v60  ;;  %v2634_v61 = vadd.f32 1.0, %v7500_v28  ;;  %v10947_v28 = vld [vmem:[#allocation186_spill] sm:$0xff] }
 0x5d0   :  { %6199 = vmatprep.subr.bf16.mxu0 %v10813_v18  ;;  %6263 = vmatprep.subr.bf16.mxu1 %v10943_v41 }
 0x5d1   :  { %7507 = vrcp.f32 %v2634_v61  ;;  %v10946_v61 = vld [vmem:[#allocation185_spill] sm:$0xff] }
 0x5d3   :  { %6201 = vmatpush1.bf16.msra.mxu0 %v10815_v34  ;;  %6265 = vmatpush1.bf16.msra.mxu1 %v10944_v25 }
 0x5d4   :  { %6203 = vmatprep.subr.bf16.mxu0 %v10817_v42  ;;  %6267 = vmatprep.subr.bf16.mxu1 %v10818_v56 }
 0x5d6   :  { %v7504_v20 = vpop.eup %7503 }
 0x5d7   :  { %v7506_v49 = vpop.eup %7505  ;;  %v2638_v33 = vmul.f32 %v7504_v20, %v7502_v6  ;;  %6205 = vmatpush1.bf16.msra.mxu0 %v10688_v62  ;;  %6269 = vmatpush1.bf16.msra.mxu1 %v10689_v0  ;;  %v10948_v6 = vld [vmem:[#allocation187_spill] sm:$0xff] }
 0x5d8   :  { %v2637_v41 = vmul.f32 %v7506_v49, %v9034_v7  ;;  %6207 = vmatprep.subr.bf16.mxu0 %v10690_v13  ;;  %6271 = vmatprep.subr.bf16.mxu1 %v10691_v16  ;;  %v10945_v7 = vld [vmem:[#allocation184_spill] sm:$0xff]  ;;  %v10949_v49 = vld [vmem:[#allocation11_spill] sm:$0xff] }
 0x5da   :  { %v9236_v25 = vadd.f32 %v2638_v33, %v2637_v41 }
 0x5db   :  { %6209 = vmatpush1.bf16.msra.mxu0 %v10692_v9  ;;  %6273 = vmatpush1.bf16.msra.mxu1 %v10693_v40  ;;  %v7508_v33 = vpop.eup %7507 }
 0x5dc   :  { %6211 = vmatprep.subr.bf16.mxu0 %v8595_v36  ;;  %6275 = vmatprep.subr.bf16.mxu1 %v8597_v17  ;;  %7509 = vtanh.f32 %v9236_v25 }
 0x5df   :  { %6213 = vmatpush1.bf16.msra.mxu0 %v8601_v14  ;;  %6277 = vmatpush1.bf16.msra.mxu1 %v8603_v38 }
 0x5e0   :  { %6215 = vmatprep.subr.bf16.mxu0 %v8607_v21  ;;  %6279 = vmatprep.subr.bf16.mxu1 %v8609_v51  ;;  %v10950_v21 = vld [vmem:[#allocation12_spill] sm:$0xff] }
 0x5e3   :  { %6217 = vmatpush1.bf16.msra.mxu0 %v8613_v57  ;;  %6281 = vmatpush1.bf16.msra.mxu1 %v8615_v63  ;;  %v10953_v63 = vld [vmem:[#allocation15_spill] sm:$0xff] }
 0x5e4   :  { %6219 = vmatprep.subr.bf16.mxu0 %v10945_v7  ;;  %6283 = vmatprep.subr.bf16.mxu1 %v10946_v61  ;;  %v10951_v7 = vld [vmem:[#allocation13_spill] sm:$0xff]  ;;  %v10952_v61 = vld [vmem:[#allocation14_spill] sm:$0xff] }
 0x5e6   :  { %v7510_v41 = vpop.eup %7509 }
 0x5e7   :  { %6221 = vmatpush1.bf16.msra.mxu0 %v10947_v28  ;;  %6285 = vmatpush1.bf16.msra.mxu1 %v10948_v6  ;;  %v2641_v20 = vmul.f32 %v7510_v41, %v7508_v33  ;;  %v10954_v28 = vld [vmem:[#allocation16_spill] sm:$0xff]  ;;  %v10955_v6 = vmov 0.0   ;;  %v10956_v33 = vld [vmem:[#allocation17_spill] sm:$0xff]  ;;  %v10957_v41 = vld [vmem:[#allocation18_spill] sm:$0xff] }
 0x5e8   :  { %6287 = vmatprep.subr.bf16.mxu0 %v10949_v49  ;;  %6319 = vmatprep.subr.bf16.mxu1 %v10950_v21  ;;  %v10959_v21 = vld [vmem:[#allocation20_spill] sm:$0xff]  ;;  %v10965_v49 = vld [vmem:[#allocation26_spill] sm:$0xff] }
 0x5e9   :  { %3042 = vmatprep.mubr.f32.mxu0 %v2641_v20  ;;  %3113 = vmatprep.mubr.f32.mxu1 %v2641_v20  ;;  %v10958_v20 = vld [vmem:[#allocation19_spill] sm:$0xff] }
 0x5ea   :  { %3043 = vmatmul.mubr.f32.vlgmr.msra.gmra.mrb[28].mxu0 %v9177_v55  ;;  %3114 = vmatmul.mubr.f32.vlgmr.msra.gmra.mrb[28].mxu1 %v9177_v55  ;;  %v10960_v55 = vld [vmem:[#allocation21_spill] sm:$0xff] }
 0x5eb   :  { %6289 = vmatpush1.bf16.msra.mxu0 %v10951_v7  ;;  %6321 = vmatpush1.bf16.msra.mxu1 %v10952_v61  ;;  %v10961_v7 = vld [vmem:[#allocation22_spill] sm:$0xff]  ;;  %v10962_v61 = vld [vmem:[#allocation23_spill] sm:$0xff] }
 0x5ec   :  { %6291 = vmatprep.subr.bf16.mxu0 %v10953_v63  ;;  %6323 = vmatprep.subr.bf16.mxu1 %v10954_v28  ;;  %v10963_v63 = vld [vmem:[#allocation24_spill] sm:$0xff]  ;;  %v10964_v28 = vld [vmem:[#allocation25_spill] sm:$0xff] }
 0x5ed   :  { %3212 = vmatprep.mubr.f32.mxu0 %v10955_v6  ;;  %3283 = vmatprep.mubr.f32.mxu1 %v10955_v6  ;;  %v10966_v6 = vld [vmem:[#allocation27_spill] sm:$0xff] }
 0x5ef   :  { %6293 = vmatpush1.bf16.msra.mxu0 %v10956_v33  ;;  %6325 = vmatpush1.bf16.msra.mxu1 %v10957_v41  ;;  %v10967_v33 = vld [vmem:[#allocation28_spill] sm:$0xff]  ;;  %v10968_v41 = vld [vmem:[#allocation29_spill] sm:$0xff] }
 0x5f0   :  { %6295 = vmatprep.subr.bf16.mxu0 %v10958_v20  ;;  %6327 = vmatprep.subr.bf16.mxu1 %v10959_v21  ;;  %v10969_v20 = vld [vmem:[#allocation30_spill] sm:$0xff]  ;;  %v10970_v21 = vld [vmem:[#allocation31_spill] sm:$0xff] }
 0x5f3   :  { %6297 = vmatpush1.bf16.msra.mxu0 %v10960_v55  ;;  %6329 = vmatpush1.bf16.msra.mxu1 %v10961_v7  ;;  %v10971_v55 = vld [vmem:[#allocation32_spill] sm:$0xff]  ;;  %v10972_v7 = vld [vmem:[#allocation33_spill] sm:$0xff] }
 0x5f4   :  { %6299 = vmatprep.subr.bf16.mxu0 %v10962_v61  ;;  %6331 = vmatprep.subr.bf16.mxu1 %v10963_v63  ;;  %v10973_v61 = vld [vmem:[#allocation34_spill] sm:$0xff]  ;;  %v10974_v63 = vld [vmem:[#allocation35_spill] sm:$0xff] }
 0x5f7   :  { %6301 = vmatpush1.bf16.msra.mxu0 %v10964_v28  ;;  %6333 = vmatpush1.bf16.msra.mxu1 %v10965_v49  ;;  %v10975_v28 = vld [vmem:[#allocation36_spill] sm:$0xff]  ;;  %v10976_v49 = vld [vmem:[#allocation37_spill] sm:$0xff] }
 0x5f8   :  { %6303 = vmatprep.subr.bf16.mxu0 %v10966_v6  ;;  %6335 = vmatprep.subr.bf16.mxu1 %v10967_v33  ;;  %v10977_v6 = vld [vmem:[#allocation38_spill] sm:$0xff]  ;;  %v10978_v33 = vld [vmem:[#allocation39_spill] sm:$0xff] }
 0x5fb   :  { %6305 = vmatpush1.bf16.msra.mxu0 %v10968_v41  ;;  %6337 = vmatpush1.bf16.msra.mxu1 %v10969_v20  ;;  %v10979_v41 = vld [vmem:[#allocation40_spill] sm:$0xff]  ;;  %v10980_v20 = vld [vmem:[#allocation41_spill] sm:$0xff] }
 0x5fc   :  { %6307 = vmatprep.subr.bf16.mxu0 %v10970_v21  ;;  %6339 = vmatprep.subr.bf16.mxu1 %v10971_v55  ;;  %v10981_v21 = vld [vmem:[#allocation42_spill] sm:$0xff]  ;;  %v10982_v55 = vld [vmem:[#allocation43_spill] sm:$0xff] }
 0x5ff   :  { %6309 = vmatpush1.bf16.msra.mxu0 %v10972_v7  ;;  %6341 = vmatpush1.bf16.msra.mxu1 %v10973_v61  ;;  %v10983_v7 = vld [vmem:[#allocation44_spill] sm:$0xff]  ;;  %v115_v61 = vpop.permute.xlu1 %114 }
 0x600   :  { %6311 = vmatprep.subr.bf16.mxu0 %v10974_v63  ;;  %6343 = vmatprep.subr.bf16.mxu1 %v10975_v28  ;;  %v10984_v63 = vld [vmem:[#allocation47_spill] sm:$0xff]  ;;  %v10985_v28 = vld [vmem:[#allocation48_spill] sm:$0xff] }
 0x601   :  { %v168_v57 = vmul.f32 %v10984_v63, %v115_v61  ;;  %v169_v51 = vmul.f32 %v10985_v28, %v115_v61  ;;  %v170_v28 = vmul.f32 %v10437_v1, %v115_v61 }
 0x603   :  { %6313 = vmatpush1.bf16.msra.mxu0 %v10976_v49  ;;  %6345 = vmatpush1.bf16.msra.mxu1 %v10977_v6  ;;  %v10986_v49 = vld [vmem:[#allocation50_spill] sm:$0xff] }
 0x604   :  { %6315 = vmatprep.subr.bf16.mxu0 %v10978_v33  ;;  %6347 = vmatprep.subr.bf16.mxu1 %v10979_v41  ;;  %v222_v38 = vadd.f32 %v10986_v49, %v168_v57  ;;  %v223_v33 = vadd.f32 %v10713_v59, %v169_v51  ;;  %v224_v57 = vadd.f32 %v10438_v5, %v170_v28 }
 0x607   :  { %6317 = vmatpush1.bf16.msra.mxu0 %v10980_v20  ;;  %6349 = vmatpush1.bf16.msra.mxu1 %v10981_v21  ;;  %v171_v21 = vmul.f32 %v10714_v4, %v115_v61 }
 0x608   :  { %6351 = vmatprep.subr.bf16.mxu0 %v10982_v55  ;;  %6415 = vmatprep.subr.bf16.mxu1 %v10983_v7 }
 0x609   :  { %v225_v63 = vadd.f32 %v8077_v45, %v171_v21 }
 0x639   :  { %v2712_v6 = vpop.f32.mrb[24].mxu0  ;;  %v2783_v14 = vpop.f32.mrb[24].mxu1 }
 0x63a   :  { %v2713_v41 = vadd.f32 %v2712_v6, %v222_v38  ;;  %v2714_v17 = vpop.f32.mrb[25].mxu0  ;;  %v2785_v20 = vpop.f32.mrb[25].mxu1  ;;  %v2784_v9 = vadd.f32 %v2783_v14, %v224_v57  ;;  %v10991_v57 = vld [vmem:[#allocation76_spill] sm:$0xff] }
 0x63b   :  { %v2715_v36 = vadd.f32 %v2714_v17, %v223_v33  ;;  %v2786_v7 = vadd.f32 %v2785_v20, %v225_v63  ;;  %v10990_v20 = vld [vmem:[#allocation75_spill] sm:$0xff] }
 0x63c   :  { %v4712_v55 = vmul.f32 -1.442695, %v2713_v41 }
 0x63d   :  { %v4713_v40 = vmul.f32 -1.442695, %v2715_v36  ;;  %v4714_v49 = vmul.f32 -1.442695, %v2786_v7 }
 0x63e   :  { %7511 = vpow2.f32 %v4712_v55 }
 0x63f   :  { %7513 = vpow2.f32 %v4713_v40 }
 0x640   :  { %7515 = vpow2.f32 %v4714_v49  ;;  %v10989_v49 = vld [vmem:[#allocation74_spill] sm:$0xff] }
 0x641   :  { %7517 = vtanh.f32 %v2784_v9  ;;  %v10987_v9 = vld [vmem:[#allocation72_spill] sm:$0xff] }
 0x648   :  { %v7512_v51 = vpop.eup %7511 }
 0x649   :  { %v7514_v38 = vpop.eup %7513  ;;  %v2791_v6 = vadd.f32 1.0, %v7512_v51  ;;  %v10992_v51 = vld [vmem:[#allocation77_spill] sm:$0xff] }
 0x64a   :  { %v2797_v17 = vadd.f32 1.0, %v7514_v38  ;;  %v7516_v36 = vpop.eup %7515 }
 0x64b   :  { %7519 = vrcp.f32 %v2791_v6  ;;  %v7518_v33 = vpop.eup %7517  ;;  %v2804_v55 = vadd.f32 1.0, %v7516_v36  ;;  %v10994_v36 = vld [vmem:[#allocation79_spill] sm:$0xff] }
 0x64c   :  { %7521 = vrcp.f32 %v2797_v17  ;;  %v10993_v17 = vld [vmem:[#allocation78_spill] sm:$0xff] }
 0x64d   :  { %7523 = vrcp.f32 %v2804_v55  ;;  %v10996_v55 = vld [vmem:[#allocation81_spill] sm:$0xff] }
 0x655   :  { %v7520_v40 = vpop.eup %7519 }
 0x656   :  { %v7522_v41 = vpop.eup %7521  ;;  %v2808_v21 = vmul.f32 %v7520_v40, %v7518_v33  ;;  %v10995_v33 = vld [vmem:[#allocation57_spill] sm:$0xff] }
 0x657   :  { %v2807_v63 = vmul.f32 %v7522_v41, %v9098_v39  ;;  %v7524_v14 = vpop.eup %7523  ;;  %v10988_v39 = vld [vmem:[#allocation73_spill] sm:$0xff] }
 0x659   :  { %v9300_v61 = vadd.f32 %v2808_v21, %v2807_v63  ;;  %v10997_v63 = vld [vmem:[#allocation120_spill] sm:$0xff] }
 0x65b   :  { %7525 = vtanh.f32 %v9300_v61 }
 0x665   :  { %v7526_v7 = vpop.eup %7525 }
 0x666   :  { %v9303_v28 = vmul.f32 %v7526_v7, %v7524_v14 }
 0x668   :  { %3213 = vmatmul.mubr.f32.vlgmr.msra.gmra.mrb[30].mxu0 %v9303_v28  ;;  %3284 = vmatmul.mubr.f32.vlgmr.msra.gmra.mrb[30].mxu1 %v9303_v28 }
 0x669   :  { %6353 = vmatpush1.bf16.msra.mxu0 %v10574_v2  ;;  %6417 = vmatpush1.bf16.msra.mxu1 %v10575_v32 }
 0x66a   :  { %6355 = vmatprep.subr.bf16.mxu0 %v10576_v58  ;;  %6419 = vmatprep.subr.bf16.mxu1 %v10577_v48 }
 0x66d   :  { %6357 = vmatpush1.bf16.msra.mxu0 %v10578_v27  ;;  %6421 = vmatpush1.bf16.msra.mxu1 %v10579_v50 }
 0x66e   :  { %6359 = vmatprep.subr.bf16.mxu0 %v10715_v44  ;;  %6423 = vmatprep.subr.bf16.mxu1 %v10716_v31 }
 0x671   :  { %6361 = vmatpush1.bf16.msra.mxu0 %v10717_v3  ;;  %6425 = vmatpush1.bf16.msra.mxu1 %v10718_v22 }
 0x672   :  { %6363 = vmatprep.subr.bf16.mxu0 %v10851_v47  ;;  %6427 = vmatprep.subr.bf16.mxu1 %v10852_v43 }
 0x675   :  { %6365 = vmatpush1.bf16.msra.mxu0 %v10853_v35  ;;  %6429 = vmatpush1.bf16.msra.mxu1 %v10854_v8 }
 0x676   :  { %6367 = vmatprep.subr.bf16.mxu0 %v10987_v9  ;;  %6431 = vmatprep.subr.bf16.mxu1 %v10988_v39 }
 0x679   :  { %6369 = vmatpush1.bf16.msra.mxu0 %v10989_v49  ;;  %6433 = vmatpush1.bf16.msra.mxu1 %v10990_v20  ;;  %v10998_v20 = vld [vmem:[#allocation82_spill] sm:$0xff] }
 0x67a   :  { %6371 = vmatprep.subr.bf16.mxu0 %v10991_v57  ;;  %6435 = vmatprep.subr.bf16.mxu1 %v10992_v51  ;;  %v11002_v51 = vld [vmem:[#allocation86_spill] sm:$0xff] }
 0x67d   :  { %v2878_v38 = vpop.f32.mrb[26].mxu0  ;;  %v2949_v6 = vpop.f32.mrb[26].mxu1  ;;  %6373 = vmatpush1.bf16.msra.mxu0 %v10993_v17  ;;  %6437 = vmatpush1.bf16.msra.mxu1 %v10994_v36  ;;  %v10999_v17 = vld [vmem:[#allocation84_spill] sm:$0xff]  ;;  %v11000_v36 = vld [vmem:[#allocation85_spill] sm:$0xff] }
 0x67e   :  { %v2879_v40 = vadd.f32 %v2878_v38, %v10995_v33  ;;  %v2880_v41 = vpop.f32.mrb[27].mxu0  ;;  %v2951_v21 = vpop.f32.mrb[27].mxu1  ;;  %6375 = vmatprep.subr.bf16.mxu0 %v10863_v11  ;;  %6439 = vmatprep.subr.bf16.mxu1 %v10996_v55  ;;  %v11001_v38 = vld [vmem:[#allocation121_spill] sm:$0xff]  ;;  %v11003_v11 = vld [vmem:[#allocation87_spill] sm:$0xff]  ;;  %v11004_v55 = vld [vmem:[#allocation88_spill] sm:$0xff] }
 0x67f   :  { %v2881_v14 = vadd.f32 %v2880_v41, %v10997_v63  ;;  %v2952_v33 = vadd.f32 %v2951_v21, %v11001_v38 }
 0x680   :  { %v4715_v7 = vmul.f32 -1.442695, %v2879_v40  ;;  %v11005_v40 = vld [vmem:[#allocation89_spill] sm:$0xff] }
 0x681   :  { %v4716_v57 = vmul.f32 -1.442695, %v2881_v14  ;;  %6377 = vmatpush1.bf16.msra.mxu0 %v10998_v20  ;;  %6441 = vmatpush1.bf16.msra.mxu1 %v10866_v15  ;;  %v4717_v41 = vmul.f32 -1.442695, %v2952_v33  ;;  %v11006_v14 = vld [vmem:[#allocation90_spill] sm:$0xff]  ;;  %v11007_v15 = vld [vmem:[#allocation91_spill] sm:$0xff] }
 0x682   :  { %7527 = vpow2.f32 %v4715_v7  ;;  %6379 = vmatprep.subr.bf16.mxu0 %v10999_v17  ;;  %6443 = vmatprep.subr.bf16.mxu1 %v11000_v36  ;;  %v11008_v7 = vld [vmem:[#allocation122_spill] sm:$0xff]  ;;  %v11009_v20 = vld [vmem:[#allocation92_spill] sm:$0xff] }
 0x683   :  { %7529 = vpow2.f32 %v4716_v57  ;;  %v2950_v17 = vadd.f32 %v2949_v6, %v11008_v7  ;;  %v11010_v57 = vld [vmem:[#allocation93_spill] sm:$0xff]  ;;  %v11015_v6 = vld [vmem:[#allocation98_spill] sm:$0xff]  ;;  %v11016_v7 = vld [vmem:[#allocation99_spill] sm:$0xff] }
 0x684   :  { %7531 = vpow2.f32 %v4717_v41  ;;  %v11019_v41 = vld [vmem:[#allocation102_spill] sm:$0xff] }
 0x685   :  { %6381 = vmatpush1.bf16.msra.mxu0 %v11002_v51  ;;  %6445 = vmatpush1.bf16.msra.mxu1 %v11003_v11  ;;  %v11011_v11 = vld [vmem:[#allocation94_spill] sm:$0xff]  ;;  %7533 = vtanh.f32 %v2950_v17  ;;  %v11021_v17 = vld [vmem:[#allocation104_spill] sm:$0xff] }
 0x686   :  { %6383 = vmatprep.subr.bf16.mxu0 %v11004_v55  ;;  %6447 = vmatprep.subr.bf16.mxu1 %v11005_v40  ;;  %v11012_v55 = vld [vmem:[#allocation95_spill] sm:$0xff]  ;;  %v11013_v40 = vld [vmem:[#allocation96_spill] sm:$0xff] }
 0x689   :  { %6385 = vmatpush1.bf16.msra.mxu0 %v11006_v14  ;;  %6449 = vmatpush1.bf16.msra.mxu1 %v11007_v15  ;;  %v11014_v14 = vld [vmem:[#allocation97_spill] sm:$0xff] }
 0x68a   :  { %6387 = vmatprep.subr.bf16.mxu0 %v11009_v20  ;;  %6451 = vmatprep.subr.bf16.mxu1 %v11010_v57  ;;  %v11017_v57 = vld [vmem:[#allocation100_spill] sm:$0xff] }
 0x68b   :  { %v11029_v20 = vld [vmem:[#allocation112_spill] sm:$0xff] }
 0x68c   :  { %v7528_v21 = vpop.eup %7527 }
 0x68d   :  { %v7530_v38 = vpop.eup %7529  ;;  %v2957_v51 = vadd.f32 1.0, %v7528_v21  ;;  %6389 = vmatpush1.bf16.msra.mxu0 %v11011_v11  ;;  %6453 = vmatpush1.bf16.msra.mxu1 %v11012_v55  ;;  %v11018_v21 = vld [vmem:[#allocation101_spill] sm:$0xff]  ;;  %v11020_v11 = vld [vmem:[#allocation103_spill] sm:$0xff] }
 0x68e   :  { %v2963_v33 = vadd.f32 1.0, %v7530_v38  ;;  %6391 = vmatprep.subr.bf16.mxu0 %v11013_v40  ;;  %6455 = vmatprep.subr.bf16.mxu1 %v11014_v14  ;;  %v11022_v38 = vld [vmem:[#allocation105_spill] sm:$0xff]  ;;  %v7532_v40 = vpop.eup %7531 }
 0x68f   :  { %7535 = vrcp.f32 %v2957_v51  ;;  %v7534_v14 = vpop.eup %7533 }
 0x690   :  { %7537 = vrcp.f32 %v2963_v33 }
 0x691   :  { %6393 = vmatpush1.bf16.msra.mxu0 %v11015_v6  ;;  %6457 = vmatpush1.bf16.msra.mxu1 %v11016_v7  ;;  %v11023_v6 = vld [vmem:[#allocation108_spill] sm:$0xff] }
 0x692   :  { %6395 = vmatprep.subr.bf16.mxu0 %v11017_v57  ;;  %6459 = vmatprep.subr.bf16.mxu1 %v11018_v21  ;;  %v2970_v57 = vadd.f32 1.0, %v7532_v40  ;;  %v11024_v21 = vld [vmem:[#allocation109_spill] sm:$0xff]  ;;  %v11031_v40 = vld [vmem:[#allocation114_spill] sm:$0xff] }
 0x694   :  { %7539 = vrcp.f32 %v2970_v57  ;;  %v11038_v57 = vld [vmem:[#allocation125_spill] sm:$0xff] }
 0x695   :  { %6397 = vmatpush1.bf16.msra.mxu0 %v11019_v41  ;;  %6461 = vmatpush1.bf16.msra.mxu1 %v11020_v11  ;;  %v11025_v41 = vld [vmem:[#allocation123_spill] sm:$0xff] }
 0x696   :  { %6399 = vmatprep.subr.bf16.mxu0 %v11021_v17  ;;  %6463 = vmatprep.subr.bf16.mxu1 %v11022_v38  ;;  %v11027_v17 = vld [vmem:[#allocation110_spill] sm:$0xff]  ;;  %v11028_v38 = vld [vmem:[#allocation111_spill] sm:$0xff] }
 0x699   :  { %v7536_v51 = vpop.eup %7535  ;;  %6401 = vmatpush1.bf16.msra.mxu0 %v10758_v24  ;;  %6465 = vmatpush1.bf16.msra.mxu1 %v10890_v52  ;;  %v11030_v24 = vld [vmem:[#allocation113_spill] sm:$0xff] }
 0x69a   :  { %v7538_v33 = vpop.eup %7537  ;;  %v2974_v7 = vmul.f32 %v7536_v51, %v7534_v14  ;;  %6403 = vmatprep.subr.bf16.mxu0 %v11023_v6  ;;  %6467 = vmatprep.subr.bf16.mxu1 %v11024_v21  ;;  %v11032_v14 = vld [vmem:[#allocation115_spill] sm:$0xff]  ;;  %v11033_v51 = vld [vmem:[#allocation116_spill] sm:$0xff]  ;;  %v11056_v21 = vld [vmem:[#allocation142_spill] sm:$0xff] }
 0x69b   :  { %v2973_v11 = vmul.f32 %v7538_v33, %v11025_v41  ;;  %v11034_v41 = vld [vmem:[#allocation117_spill] sm:$0xff]  ;;  %v11037_v33 = vld [vmem:[#allocation124_spill] sm:$0xff] }
 0x69d   :  { %v9364_v55 = vadd.f32 %v2974_v7, %v2973_v11  ;;  %6405 = vmatpush1.bf16.msra.mxu0 %v11027_v17  ;;  %6469 = vmatpush1.bf16.msra.mxu1 %v11028_v38  ;;  %v11035_v11 = vld [vmem:[#allocation118_spill] sm:$0xff]  ;;  %v11036_v7 = vld [vmem:[#allocation119_spill] sm:$0xff] }
 0x69e   :  { %6407 = vmatprep.subr.bf16.mxu0 %v11029_v20  ;;  %6471 = vmatprep.subr.bf16.mxu1 %v11030_v24  ;;  %v7540_v20 = vpop.eup %7539  ;;  %v11055_v17 = vld [vmem:[#allocation59_spill] sm:$0xff] }
 0x69f   :  { %11026 = vst [vmem:[#allocation45_spill] sm:$0xff] %v9364_v55  ;;  %7541 = vtanh.f32 %v9364_v55 }
 0x6a1   :  { %6409 = vmatpush1.bf16.msra.mxu0 %v11031_v40  ;;  %6473 = vmatpush1.bf16.msra.mxu1 %v11032_v14  ;;  %v11047_v14 = vld [vmem:[#allocation134_spill] sm:$0xff]  ;;  %v11048_v40 = vld [vmem:[#allocation135_spill] sm:$0xff] }
 0x6a2   :  { %6411 = vmatprep.subr.bf16.mxu0 %v11033_v51  ;;  %6475 = vmatprep.subr.bf16.mxu1 %v11034_v41  ;;  %v11039_v41 = vld [vmem:[#allocation126_spill] sm:$0xff]  ;;  %v11046_v51 = vld [vmem:[#allocation133_spill] sm:$0xff] }
 0x6a5   :  { %6413 = vmatpush1.bf16.msra.mxu0 %v11035_v11  ;;  %6477 = vmatpush1.bf16.msra.mxu1 %v11036_v7  ;;  %v11040_v11 = vld [vmem:[#allocation127_spill] sm:$0xff]  ;;  %v11041_v7 = vld [vmem:[#allocation128_spill] sm:$0xff] }
 0x6a6   :  { %6479 = vmatprep.subr.bf16.mxu0 %v11037_v33  ;;  %6543 = vmatprep.subr.bf16.mxu1 %v11038_v57  ;;  %v11042_v33 = vld [vmem:[#allocation129_spill] sm:$0xff]  ;;  %v11043_v57 = vld [vmem:[#allocation130_spill] sm:$0xff] }
 0x6a9   :  { %v7542_v24 = vpop.eup %7541 }
 0x6aa   :  { %v9379_v38 = vmul.f32 %v7542_v24, %v7540_v20  ;;  %v11044_v24 = vld [vmem:[#allocation131_spill] sm:$0xff]  ;;  %v11045_v20 = vld [vmem:[#allocation132_spill] sm:$0xff] }
 0x6ac   :  { %3378 = vmatprep.mubr.f32.mxu0 %v9379_v38  ;;  %3449 = vmatprep.mubr.f32.mxu1 %v9379_v38 }
 0x6ad   :  { %3379 = vmatmul.mubr.f32.vlgmr.msra.gmra.mrb[32].mxu0 %v9303_v28  ;;  %3450 = vmatmul.mubr.f32.vlgmr.msra.gmra.mrb[32].mxu1 %v9303_v28  ;;  %v11049_v28 = vld [vmem:[#allocation136_spill] sm:$0xff] }
 0x6ae   :  { %6481 = vmatpush1.bf16.msra.mxu0 %v11039_v41  ;;  %6545 = vmatpush1.bf16.msra.mxu1 %v11040_v11  ;;  %v11050_v41 = vld [vmem:[#allocation137_spill] sm:$0xff]  ;;  %v11051_v11 = vld [vmem:[#allocation138_spill] sm:$0xff] }
 0x6af   :  { %6483 = vmatprep.subr.bf16.mxu0 %v11041_v7  ;;  %6547 = vmatprep.subr.bf16.mxu1 %v11042_v33  ;;  %v11052_v7 = vld [vmem:[#allocation139_spill] sm:$0xff]  ;;  %v11053_v33 = vld [vmem:[#allocation140_spill] sm:$0xff] }
 0x6b2   :  { %6485 = vmatpush1.bf16.msra.mxu0 %v11043_v57  ;;  %6549 = vmatpush1.bf16.msra.mxu1 %v11044_v24  ;;  %v11054_v57 = vld [vmem:[#allocation141_spill] sm:$0xff] }
 0x6b3   :  { %6487 = vmatprep.subr.bf16.mxu0 %v11045_v20  ;;  %6551 = vmatprep.subr.bf16.mxu1 %v11046_v51 }
 0x6b6   :  { %6489 = vmatpush1.bf16.msra.mxu0 %v11047_v14  ;;  %6553 = vmatpush1.bf16.msra.mxu1 %v11048_v40  ;;  %v11057_v40 = vld [vmem:[#allocation143_spill] sm:$0xff] }
 0x6b7   :  { %6491 = vmatprep.subr.bf16.mxu0 %v11049_v28  ;;  %6555 = vmatprep.subr.bf16.mxu1 %v11050_v41  ;;  %v11058_v28 = vld [vmem:[#allocation144_spill] sm:$0xff] }
 0x6ba   :  { %6493 = vmatpush1.bf16.msra.mxu0 %v11051_v11  ;;  %6557 = vmatpush1.bf16.msra.mxu1 %v11052_v7 }
 0x6bb   :  { %6495 = vmatprep.subr.bf16.mxu0 %v11053_v33  ;;  %6559 = vmatprep.subr.bf16.mxu1 %v11054_v57  ;;  %v11062_v57 = vld [vmem:[#allocation150_spill] sm:$0xff] }
 0x6bd   :  { %v3044_v24 = vpop.f32.mrb[28].mxu0  ;;  %v3115_v20 = vpop.f32.mrb[28].mxu1 }
 0x6be   :  { %v3045_v51 = vadd.f32 %v3044_v24, %v11055_v17  ;;  %v3046_v55 = vpop.f32.mrb[29].mxu0  ;;  %v3117_v14 = vpop.f32.mrb[29].mxu1  ;;  %6497 = vmatpush1.bf16.msra.mxu0 %v11056_v21  ;;  %6561 = vmatpush1.bf16.msra.mxu1 %v11057_v40  ;;  %v11059_v24 = vld [vmem:[#allocation148_spill] sm:$0xff]  ;;  %v11060_v17 = vld [vmem:[#allocation149_spill] sm:$0xff] }
 0x6bf   :  { %v3047_v41 = vadd.f32 %v3046_v55, %v10793_v54  ;;  %6499 = vmatprep.subr.bf16.mxu0 %v11058_v28  ;;  %6563 = vmatprep.subr.bf16.mxu1 %v10659_v23  ;;  %v11061_v21 = vld [vmem:[#allocation61_spill] sm:$0xff]  ;;  %v11063_v55 = vld [vmem:[#allocation151_spill] sm:$0xff]  ;;  %v11064_v28 = vld [vmem:[#allocation152_spill] sm:$0xff] }
 0x6c0   :  { %v4718_v7 = vmul.f32 -1.442695, %v3045_v51  ;;  %v3118_v40 = vadd.f32 %v3117_v14, %v11061_v21  ;;  %v11065_v51 = vld [vmem:[#allocation153_spill] sm:$0xff] }
 0x6c1   :  { %v4719_v33 = vmul.f32 -1.442695, %v3047_v41 }
 0x6c2   :  { %7543 = vpow2.f32 %v4718_v7  ;;  %6501 = vmatpush1.bf16.msra.mxu0 %v10927_v53  ;;  %6565 = vmatpush1.bf16.msra.mxu1 %v10796_v37  ;;  %v4720_v41 = vmul.f32 -1.442695, %v3118_v40  ;;  %v3116_v7 = vadd.f32 %v3115_v20, %v8805_v30  ;;  %v11067_v40 = vld [vmem:[#allocation161_spill] sm:$0xff]  ;;  %v11068_v20 = vld [vmem:[#allocation162_spill] sm:$0xff] }
 0x6c3   :  { %7545 = vpow2.f32 %v4719_v33  ;;  %6503 = vmatprep.subr.bf16.mxu0 %v11059_v24  ;;  %6567 = vmatprep.subr.bf16.mxu1 %v11060_v17  ;;  %v11066_v33 = vld [vmem:[#allocation155_spill] sm:$0xff] }
 0x6c4   :  { %7547 = vpow2.f32 %v4720_v41 }
 0x6c5   :  { %7549 = vtanh.f32 %v3116_v7 }
 0x6c6   :  { %6505 = vmatpush1.bf16.msra.mxu0 %v11062_v57  ;;  %6569 = vmatpush1.bf16.msra.mxu1 %v11063_v55 }
 0x6c7   :  { %6507 = vmatprep.subr.bf16.mxu0 %v11064_v28  ;;  %6571 = vmatprep.subr.bf16.mxu1 %v11065_v51 }
 0x6ca   :  { %6509 = vmatpush1.bf16.msra.mxu0 %v10803_v12  ;;  %6573 = vmatpush1.bf16.msra.mxu1 %v11066_v33 }
 0x6cb   :  { %6511 = vmatprep.subr.bf16.mxu0 %v10936_v10  ;;  %6575 = vmatprep.subr.bf16.mxu1 %v10937_v46 }
 0x6cc   :  { %v7544_v14 = vpop.eup %7543 }
 0x6cd   :  { %v7546_v21 = vpop.eup %7545  ;;  %v3123_v57 = vadd.f32 1.0, %v7544_v14  ;;  %v11069_v14 = vld [vmem:[#allocation165_spill] sm:$0xff] }
 0x6ce   :  { %v3129_v55 = vadd.f32 1.0, %v7546_v21  ;;  %6513 = vmatpush1.bf16.msra.mxu0 %v10938_v19  ;;  %6577 = vmatpush1.bf16.msra.mxu1 %v10939_v29  ;;  %v11070_v21 = vld [vmem:[#allocation167_spill] sm:$0xff]  ;;  %v7548_v41 = vpop.eup %7547 }
 0x6cf   :  { %7551 = vrcp.f32 %v3123_v57  ;;  %6515 = vmatprep.subr.bf16.mxu0 %v10940_v26  ;;  %6579 = vmatprep.subr.bf16.mxu1 %v11067_v40  ;;  %v7550_v57 = vpop.eup %7549 }
 0x6d0   :  { %7553 = vrcp.f32 %v3129_v55 }
 0x6d2   :  { %6517 = vmatpush1.bf16.msra.mxu0 %v11068_v20  ;;  %6581 = vmatpush1.bf16.msra.mxu1 %v10812_v60  ;;  %v3136_v20 = vadd.f32 1.0, %v7548_v41  ;;  %v11075_v41 = vld [vmem:[#allocation177_spill] sm:$0xff] }
 0x6d3   :  { %6519 = vmatprep.subr.bf16.mxu0 %v10813_v18  ;;  %6583 = vmatprep.subr.bf16.mxu1 %v11069_v14 }
 0x6d4   :  { %7555 = vrcp.f32 %v3136_v20  ;;  %v11081_v20 = vld [vmem:[#allocation183_spill] sm:$0xff] }
 0x6d6   :  { %6521 = vmatpush1.bf16.msra.mxu0 %v10815_v34  ;;  %6585 = vmatpush1.bf16.msra.mxu1 %v11070_v21  ;;  %v11074_v34 = vld [vmem:[#allocation176_spill] sm:$0xff] }
 0x6d7   :  { %6523 = vmatprep.subr.bf16.mxu0 %v10817_v42  ;;  %6587 = vmatprep.subr.bf16.mxu1 %v10818_v56  ;;  %v11072_v42 = vld [vmem:[#allocation174_spill] sm:$0xff]  ;;  %v11073_v56 = vld [vmem:[#allocation175_spill] sm:$0xff] }
 0x6d9   :  { %v7552_v7 = vpop.eup %7551 }
 0x6da   :  { %v7554_v55 = vpop.eup %7553  ;;  %v3140_v40 = vmul.f32 %v7552_v7, %v7550_v57  ;;  %6525 = vmatpush1.bf16.msra.mxu0 %v10688_v62  ;;  %6589 = vmatpush1.bf16.msra.mxu1 %v10689_v0  ;;  %v11076_v57 = vld [vmem:[#allocation178_spill] sm:$0xff]  ;;  %v11078_v7 = vld [vmem:[#allocation180_spill] sm:$0xff] }
 0x6db   :  { %v3139_v14 = vmul.f32 %v7554_v55, %v9236_v25  ;;  %6527 = vmatprep.subr.bf16.mxu0 %v10690_v13  ;;  %6591 = vmatprep.subr.bf16.mxu1 %v10691_v16  ;;  %v11077_v25 = vld [vmem:[#allocation179_spill] sm:$0xff]  ;;  %v11079_v55 = vld [vmem:[#allocation181_spill] sm:$0xff] }
 0x6dc   :  { %v11085_v16 = vld [vmem:[#allocation187_spill] sm:$0xff] }
 0x6dd   :  { %v9438_v21 = vadd.f32 %v3140_v40, %v3139_v14  ;;  %v11080_v40 = vld [vmem:[#allocation182_spill] sm:$0xff]  ;;  %v11082_v14 = vld [vmem:[#allocation184_spill] sm:$0xff] }
 0x6de   :  { %6529 = vmatpush1.bf16.msra.mxu0 %v11072_v42  ;;  %6593 = vmatpush1.bf16.msra.mxu1 %v11073_v56  ;;  %v11083_v56 = vld [vmem:[#allocation185_spill] sm:$0xff]  ;;  %v11084_v42 = vld [vmem:[#allocation186_spill] sm:$0xff] }
 0x6df   :  { %11071 = vst [vmem:[#allocation46_spill] sm:$0xff] %v9438_v21  ;;  %6531 = vmatprep.subr.bf16.mxu0 %v11074_v34  ;;  %6595 = vmatprep.subr.bf16.mxu1 %v11075_v41  ;;  %7557 = vtanh.f32 %v9438_v21  ;;  %v7556_v34 = vpop.eup %7555 }
 0x6e2   :  { %6533 = vmatpush1.bf16.msra.mxu0 %v11076_v57  ;;  %6597 = vmatpush1.bf16.msra.mxu1 %v11077_v25  ;;  %v11086_v25 = vld [vmem:[#allocation11_spill] sm:$0xff] }
 0x6e3   :  { %6535 = vmatprep.subr.bf16.mxu0 %v11078_v7  ;;  %6599 = vmatprep.subr.bf16.mxu1 %v11079_v55  ;;  %v11087_v7 = vld [vmem:[#allocation12_spill] sm:$0xff] }
 0x6e6   :  { %6537 = vmatpush1.bf16.msra.mxu0 %v11080_v40  ;;  %6601 = vmatpush1.bf16.msra.mxu1 %v11081_v20  ;;  %v11090_v20 = vld [vmem:[#allocation15_spill] sm:$0xff] }
 0x6e7   :  { %6539 = vmatprep.subr.bf16.mxu0 %v11082_v14  ;;  %6603 = vmatprep.subr.bf16.mxu1 %v11083_v56  ;;  %v11088_v14 = vld [vmem:[#allocation13_spill] sm:$0xff]  ;;  %v11089_v56 = vld [vmem:[#allocation14_spill] sm:$0xff] }
 0x6e9   :  { %v7558_v41 = vpop.eup %7557 }
 0x6ea   :  { %6541 = vmatpush1.bf16.msra.mxu0 %v11084_v42  ;;  %6605 = vmatpush1.bf16.msra.mxu1 %v11085_v16  ;;  %v3143_v57 = vmul.f32 %v7558_v41, %v7556_v34  ;;  %v11091_v42 = vld [vmem:[#allocation16_spill] sm:$0xff]  ;;  %v11092_v16 = vmov 0.0   ;;  %v11093_v34 = vld [vmem:[#allocation17_spill] sm:$0xff]  ;;  %v11094_v41 = vld [vmem:[#allocation18_spill] sm:$0xff] }
 0x6eb   :  { %6607 = vmatprep.subr.bf16.mxu0 %v11086_v25  ;;  %6639 = vmatprep.subr.bf16.mxu1 %v11087_v7  ;;  %v11096_v25 = vld [vmem:[#allocation20_spill] sm:$0xff]  ;;  %v11098_v7 = vld [vmem:[#allocation22_spill] sm:$0xff] }
 0x6ec   :  { %3544 = vmatprep.mubr.f32.mxu0 %v3143_v57  ;;  %3615 = vmatprep.mubr.f32.mxu1 %v3143_v57  ;;  %v11095_v57 = vld [vmem:[#allocation19_spill] sm:$0xff] }
 0x6ed   :  { %3545 = vmatmul.mubr.f32.vlgmr.msra.gmra.mrb[34].mxu0 %v9379_v38  ;;  %3616 = vmatmul.mubr.f32.vlgmr.msra.gmra.mrb[34].mxu1 %v9379_v38  ;;  %v11097_v38 = vld [vmem:[#allocation21_spill] sm:$0xff] }
 0x6ee   :  { %6609 = vmatpush1.bf16.msra.mxu0 %v11088_v14  ;;  %6641 = vmatpush1.bf16.msra.mxu1 %v11089_v56  ;;  %v11099_v56 = vld [vmem:[#allocation23_spill] sm:$0xff]  ;;  %v11102_v14 = vld [vmem:[#allocation26_spill] sm:$0xff] }
 0x6ef   :  { %6611 = vmatprep.subr.bf16.mxu0 %v11090_v20  ;;  %6643 = vmatprep.subr.bf16.mxu1 %v11091_v42  ;;  %v11100_v20 = vld [vmem:[#allocation24_spill] sm:$0xff]  ;;  %v11101_v42 = vld [vmem:[#allocation25_spill] sm:$0xff] }
 0x6f0   :  { %3714 = vmatprep.mubr.f32.mxu0 %v11092_v16  ;;  %3785 = vmatprep.mubr.f32.mxu1 %v11092_v16  ;;  %v11103_v16 = vld [vmem:[#allocation27_spill] sm:$0xff] }
 0x6f2   :  { %6613 = vmatpush1.bf16.msra.mxu0 %v11093_v34  ;;  %6645 = vmatpush1.bf16.msra.mxu1 %v11094_v41  ;;  %v11104_v34 = vld [vmem:[#allocation28_spill] sm:$0xff]  ;;  %v11105_v41 = vld [vmem:[#allocation29_spill] sm:$0xff] }
 0x6f3   :  { %6615 = vmatprep.subr.bf16.mxu0 %v11095_v57  ;;  %6647 = vmatprep.subr.bf16.mxu1 %v11096_v25  ;;  %v11106_v57 = vld [vmem:[#allocation30_spill] sm:$0xff]  ;;  %v11107_v25 = vld [vmem:[#allocation31_spill] sm:$0xff] }
 0x6f6   :  { %6617 = vmatpush1.bf16.msra.mxu0 %v11097_v38  ;;  %6649 = vmatpush1.bf16.msra.mxu1 %v11098_v7  ;;  %v11108_v38 = vld [vmem:[#allocation32_spill] sm:$0xff]  ;;  %v11109_v7 = vld [vmem:[#allocation33_spill] sm:$0xff] }
 0x6f7   :  { %6619 = vmatprep.subr.bf16.mxu0 %v11099_v56  ;;  %6651 = vmatprep.subr.bf16.mxu1 %v11100_v20  ;;  %v11110_v56 = vld [vmem:[#allocation34_spill] sm:$0xff]  ;;  %v11111_v20 = vld [vmem:[#allocation35_spill] sm:$0xff] }
 0x6fa   :  { %6621 = vmatpush1.bf16.msra.mxu0 %v11101_v42  ;;  %6653 = vmatpush1.bf16.msra.mxu1 %v11102_v14  ;;  %v11112_v42 = vld [vmem:[#allocation36_spill] sm:$0xff]  ;;  %v11113_v14 = vld [vmem:[#allocation37_spill] sm:$0xff] }
 0x6fb   :  { %6623 = vmatprep.subr.bf16.mxu0 %v11103_v16  ;;  %6655 = vmatprep.subr.bf16.mxu1 %v11104_v34  ;;  %v11114_v16 = vld [vmem:[#allocation38_spill] sm:$0xff]  ;;  %v11115_v34 = vld [vmem:[#allocation39_spill] sm:$0xff] }
 0x6fe   :  { %6625 = vmatpush1.bf16.msra.mxu0 %v11105_v41  ;;  %6657 = vmatpush1.bf16.msra.mxu1 %v11106_v57  ;;  %v11116_v41 = vld [vmem:[#allocation40_spill] sm:$0xff]  ;;  %v11117_v57 = vld [vmem:[#allocation41_spill] sm:$0xff] }
 0x6ff   :  { %6627 = vmatprep.subr.bf16.mxu0 %v11107_v25  ;;  %6659 = vmatprep.subr.bf16.mxu1 %v11108_v38  ;;  %v11118_v25 = vld [vmem:[#allocation42_spill] sm:$0xff]  ;;  %v11119_v38 = vld [vmem:[#allocation43_spill] sm:$0xff] }
 0x702   :  { %6629 = vmatpush1.bf16.msra.mxu0 %v11109_v7  ;;  %6661 = vmatpush1.bf16.msra.mxu1 %v11110_v56  ;;  %v11120_v7 = vld [vmem:[#allocation44_spill] sm:$0xff]  ;;  %v120_v56 = vpop.permute.xlu0 %119 }
 0x703   :  { %6631 = vmatprep.subr.bf16.mxu0 %v11111_v20  ;;  %6663 = vmatprep.subr.bf16.mxu1 %v11112_v42  ;;  %v11121_v20 = vld [vmem:[#allocation47_spill] sm:$0xff]  ;;  %v11122_v42 = vld [vmem:[#allocation48_spill] sm:$0xff] }
 0x704   :  { %v172_v40 = vmul.f32 %v11121_v20, %v120_v56  ;;  %v173_v55 = vmul.f32 %v11122_v42, %v120_v56  ;;  %v174_v42 = vmul.f32 %v10437_v1, %v120_v56  ;;  %v11137_v1 = vld [vmem:[#allocation87_spill] sm:$0xff] }
 0x706   :  { %6633 = vmatpush1.bf16.msra.mxu0 %v11113_v14  ;;  %6665 = vmatpush1.bf16.msra.mxu1 %v11114_v16  ;;  %v11123_v14 = vld [vmem:[#allocation50_spill] sm:$0xff] }
 0x707   :  { %6635 = vmatprep.subr.bf16.mxu0 %v11115_v34  ;;  %6667 = vmatprep.subr.bf16.mxu1 %v11116_v41  ;;  %v226_v13 = vadd.f32 %v11123_v14, %v172_v40  ;;  %v227_v34 = vadd.f32 %v10713_v59, %v173_v55  ;;  %v228_v40 = vadd.f32 %v10438_v5, %v174_v42  ;;  %v11136_v5 = vld [vmem:[#allocation86_spill] sm:$0xff] }
 0x70a   :  { %6637 = vmatpush1.bf16.msra.mxu0 %v11117_v57  ;;  %6669 = vmatpush1.bf16.msra.mxu1 %v11118_v25  ;;  %v175_v25 = vmul.f32 %v10714_v4, %v120_v56  ;;  %v11143_v4 = vld [vmem:[#allocation93_spill] sm:$0xff] }
 0x70b   :  { %6671 = vmatprep.subr.bf16.mxu0 %v11119_v38  ;;  %6735 = vmatprep.subr.bf16.mxu1 %v11120_v7 }
 0x70c   :  { %v229_v20 = vadd.f32 %v8077_v45, %v175_v25  ;;  %v11139_v45 = vld [vmem:[#allocation88_spill] sm:$0xff] }
 0x73b   :  { %v3214_v16 = vpop.f32.mrb[30].mxu0  ;;  %v3285_v21 = vpop.f32.mrb[30].mxu1 }
 0x73c   :  { %v3215_v41 = vadd.f32 %v3214_v16, %v226_v13  ;;  %v3216_v0 = vpop.f32.mrb[31].mxu0  ;;  %v3287_v57 = vpop.f32.mrb[31].mxu1  ;;  %v3286_v60 = vadd.f32 %v3285_v21, %v228_v40  ;;  %v11129_v40 = vld [vmem:[#allocation79_spill] sm:$0xff] }
 0x73d   :  { %v3217_v62 = vadd.f32 %v3216_v0, %v227_v34  ;;  %v3288_v7 = vadd.f32 %v3287_v57, %v229_v20  ;;  %v11128_v57 = vld [vmem:[#allocation78_spill] sm:$0xff] }
 0x73e   :  { %v4721_v38 = vmul.f32 -1.442695, %v3215_v41 }
 0x73f   :  { %v4722_v18 = vmul.f32 -1.442695, %v3217_v62  ;;  %v4723_v14 = vmul.f32 -1.442695, %v3288_v7 }
 0x740   :  { %7559 = vpow2.f32 %v4721_v38 }
 0x741   :  { %7561 = vpow2.f32 %v4722_v18 }
 0x742   :  { %7563 = vpow2.f32 %v4723_v14  ;;  %v11127_v14 = vld [vmem:[#allocation77_spill] sm:$0xff] }
 0x743   :  { %7565 = vtanh.f32 %v3286_v60  ;;  %v11125_v60 = vld [vmem:[#allocation75_spill] sm:$0xff] }
 0x74a   :  { %v7560_v55 = vpop.eup %7559 }
 0x74b   :  { %v7562_v13 = vpop.eup %7561  ;;  %v3293_v16 = vadd.f32 1.0, %v7560_v55 }
 0x74c   :  { %v3299_v0 = vadd.f32 1.0, %v7562_v13  ;;  %v7564_v62 = vpop.eup %7563 }
 0x74d   :  { %7567 = vrcp.f32 %v3293_v16  ;;  %v7566_v38 = vpop.eup %7565  ;;  %v3306_v25 = vadd.f32 1.0, %v7564_v62  ;;  %v11130_v16 = vld [vmem:[#allocation80_spill] sm:$0xff]  ;;  %v11132_v62 = vld [vmem:[#allocation57_spill] sm:$0xff] }
 0x74e   :  { %7569 = vrcp.f32 %v3299_v0  ;;  %v11131_v0 = vld [vmem:[#allocation81_spill] sm:$0xff] }
 0x74f   :  { %7571 = vrcp.f32 %v3306_v25 }
 0x757   :  { %v7568_v18 = vpop.eup %7567 }
 0x758   :  { %v7570_v34 = vpop.eup %7569  ;;  %v3310_v41 = vmul.f32 %v7568_v18, %v7566_v38 }
 0x759   :  { %v3309_v56 = vmul.f32 %v7570_v34, %v9300_v61  ;;  %v7572_v21 = vpop.eup %7571  ;;  %v11126_v61 = vld [vmem:[#allocation76_spill] sm:$0xff] }
 0x75b   :  { %v9502_v20 = vadd.f32 %v3310_v41, %v3309_v56  ;;  %v11133_v56 = vld [vmem:[#allocation82_spill] sm:$0xff] }
 0x75d   :  { %11124 = vst [vmem:[#allocation145_spill] sm:$0xff] %v9502_v20  ;;  %7573 = vtanh.f32 %v9502_v20  ;;  %v11135_v20 = vld [vmem:[#allocation84_spill] sm:$0xff] }
 0x767   :  { %v7574_v7 = vpop.eup %7573 }
 0x768   :  { %v9505_v42 = vmul.f32 %v7574_v7, %v7572_v21  ;;  %v11134_v21 = vld [vmem:[#allocation83_spill] sm:$0xff] }
 0x76a   :  { %3715 = vmatmul.mubr.f32.vlgmr.msra.gmra.mrb[36].mxu0 %v9505_v42  ;;  %3786 = vmatmul.mubr.f32.vlgmr.msra.gmra.mrb[36].mxu1 %v9505_v42 }
 0x76b   :  { %6673 = vmatpush1.bf16.msra.mxu0 %v10574_v2  ;;  %6737 = vmatpush1.bf16.msra.mxu1 %v10575_v32 }
 0x76c   :  { %6675 = vmatprep.subr.bf16.mxu0 %v10576_v58  ;;  %6739 = vmatprep.subr.bf16.mxu1 %v10577_v48 }
 0x76f   :  { %6677 = vmatpush1.bf16.msra.mxu0 %v10578_v27  ;;  %6741 = vmatpush1.bf16.msra.mxu1 %v10579_v50 }
 0x770   :  { %6679 = vmatprep.subr.bf16.mxu0 %v10715_v44  ;;  %6743 = vmatprep.subr.bf16.mxu1 %v10716_v31 }
 0x773   :  { %6681 = vmatpush1.bf16.msra.mxu0 %v10717_v3  ;;  %6745 = vmatpush1.bf16.msra.mxu1 %v10718_v22 }
 0x774   :  { %6683 = vmatprep.subr.bf16.mxu0 %v10851_v47  ;;  %6747 = vmatprep.subr.bf16.mxu1 %v10852_v43 }
 0x777   :  { %6685 = vmatpush1.bf16.msra.mxu0 %v10853_v35  ;;  %6749 = vmatpush1.bf16.msra.mxu1 %v10854_v8 }
 0x778   :  { %6687 = vmatprep.subr.bf16.mxu0 %v10987_v9  ;;  %6751 = vmatprep.subr.bf16.mxu1 %v10988_v39 }
 0x77b   :  { %6689 = vmatpush1.bf16.msra.mxu0 %v10989_v49  ;;  %6753 = vmatpush1.bf16.msra.mxu1 %v11125_v60 }
 0x77c   :  { %6691 = vmatprep.subr.bf16.mxu0 %v11126_v61  ;;  %6755 = vmatprep.subr.bf16.mxu1 %v11127_v14 }
 0x77f   :  { %6693 = vmatpush1.bf16.msra.mxu0 %v11128_v57  ;;  %6757 = vmatpush1.bf16.msra.mxu1 %v11129_v40 }
 0x780   :  { %v3380_v55 = vpop.f32.mrb[32].mxu0  ;;  %v3451_v13 = vpop.f32.mrb[32].mxu1  ;;  %6695 = vmatprep.subr.bf16.mxu0 %v11130_v16  ;;  %6759 = vmatprep.subr.bf16.mxu1 %v11131_v0 }
 0x781   :  { %v3381_v38 = vadd.f32 %v3380_v55, %v11132_v62  ;;  %v3382_v18 = vpop.f32.mrb[33].mxu0  ;;  %v3453_v34 = vpop.f32.mrb[33].mxu1  ;;  %v11138_v55 = vld [vmem:[#allocation121_spill] sm:$0xff] }
 0x782   :  { %v3383_v41 = vadd.f32 %v3382_v18, %v10997_v63  ;;  %v3454_v62 = vadd.f32 %v3453_v34, %v11138_v55  ;;  %v11141_v18 = vld [vmem:[#allocation90_spill] sm:$0xff]  ;;  %v11142_v63 = vld [vmem:[#allocation92_spill] sm:$0xff] }
 0x783   :  { %v4724_v25 = vmul.f32 -1.442695, %v3381_v38  ;;  %6697 = vmatpush1.bf16.msra.mxu0 %v11133_v56  ;;  %6761 = vmatpush1.bf16.msra.mxu1 %v11134_v21  ;;  %v11140_v38 = vld [vmem:[#allocation89_spill] sm:$0xff] }
 0x784   :  { %v4725_v7 = vmul.f32 -1.442695, %v3383_v41  ;;  %6699 = vmatprep.subr.bf16.mxu0 %v11135_v20  ;;  %6763 = vmatprep.subr.bf16.mxu1 %v11000_v36  ;;  %v4726_v41 = vmul.f32 -1.442695, %v3454_v62 }
 0x785   :  { %7575 = vpow2.f32 %v4724_v25  ;;  %v11144_v25 = vld [vmem:[#allocation122_spill] sm:$0xff] }
 0x786   :  { %7577 = vpow2.f32 %v4725_v7  ;;  %v3452_v7 = vadd.f32 %v3451_v13, %v11144_v25  ;;  %v11151_v13 = vld [vmem:[#allocation100_spill] sm:$0xff]  ;;  %v11152_v25 = vld [vmem:[#allocation101_spill] sm:$0xff] }
 0x787   :  { %6701 = vmatpush1.bf16.msra.mxu0 %v11136_v5  ;;  %6765 = vmatpush1.bf16.msra.mxu1 %v11137_v1  ;;  %v11145_v5 = vld [vmem:[#allocation94_spill] sm:$0xff]  ;;  %v11146_v1 = vld [vmem:[#allocation95_spill] sm:$0xff]  ;;  %7579 = vpow2.f32 %v4726_v41  ;;  %v11155_v41 = vld [vmem:[#allocation104_spill] sm:$0xff] }
 0x788   :  { %6703 = vmatprep.subr.bf16.mxu0 %v11139_v45  ;;  %6767 = vmatprep.subr.bf16.mxu1 %v11140_v38  ;;  %v11147_v38 = vld [vmem:[#allocation96_spill] sm:$0xff]  ;;  %7581 = vtanh.f32 %v3452_v7 }
 0x78b   :  { %6705 = vmatpush1.bf16.msra.mxu0 %v11141_v18  ;;  %6769 = vmatpush1.bf16.msra.mxu1 %v11007_v15  ;;  %v11148_v18 = vld [vmem:[#allocation97_spill] sm:$0xff] }
 0x78c   :  { %6707 = vmatprep.subr.bf16.mxu0 %v11142_v63  ;;  %6771 = vmatprep.subr.bf16.mxu1 %v11143_v4  ;;  %v11149_v63 = vld [vmem:[#allocation98_spill] sm:$0xff]  ;;  %v11150_v4 = vld [vmem:[#allocation99_spill] sm:$0xff] }
 0x78f   :  { %v7576_v59 = vpop.eup %7575  ;;  %6709 = vmatpush1.bf16.msra.mxu0 %v11145_v5  ;;  %6773 = vmatpush1.bf16.msra.mxu1 %v11146_v1  ;;  %v11153_v1 = vld [vmem:[#allocation102_spill] sm:$0xff]  ;;  %v11163_v5 = vld [vmem:[#allocation112_spill] sm:$0xff] }
 0x790   :  { %v7578_v34 = vpop.eup %7577  ;;  %v3459_v55 = vadd.f32 1.0, %v7576_v59  ;;  %6711 = vmatprep.subr.bf16.mxu0 %v11147_v38  ;;  %6775 = vmatprep.subr.bf16.mxu1 %v11148_v18  ;;  %v11154_v59 = vld [vmem:[#allocation103_spill] sm:$0xff]  ;;  %v11156_v38 = vld [vmem:[#allocation105_spill] sm:$0xff]  ;;  %v11160_v18 = vld [vmem:[#allocation110_spill] sm:$0xff] }
 0x791   :  { %v3465_v62 = vadd.f32 1.0, %v7578_v34  ;;  %v7580_v7 = vpop.eup %7579 }
 0x792   :  { %7583 = vrcp.f32 %v3459_v55  ;;  %v7582_v34 = vpop.eup %7581  ;;  %v11157_v55 = vld [vmem:[#allocation106_spill] sm:$0xff] }
 0x793   :  { %7585 = vrcp.f32 %v3465_v62  ;;  %6713 = vmatpush1.bf16.msra.mxu0 %v11149_v63  ;;  %6777 = vmatpush1.bf16.msra.mxu1 %v11150_v4  ;;  %v11159_v63 = vld [vmem:[#allocation45_spill] sm:$0xff] }
 0x794   :  { %6715 = vmatprep.subr.bf16.mxu0 %v11151_v13  ;;  %6779 = vmatprep.subr.bf16.mxu1 %v11152_v25  ;;  %v11158_v13 = vld [vmem:[#allocation109_spill] sm:$0xff] }
 0x797   :  { %6717 = vmatpush1.bf16.msra.mxu0 %v11153_v1  ;;  %6781 = vmatpush1.bf16.msra.mxu1 %v11154_v59  ;;  %v3472_v1 = vadd.f32 1.0, %v7580_v7  ;;  %v11167_v7 = vld [vmem:[#allocation116_spill] sm:$0xff] }
 0x798   :  { %6719 = vmatprep.subr.bf16.mxu0 %v11155_v41  ;;  %6783 = vmatprep.subr.bf16.mxu1 %v11156_v38  ;;  %v11161_v41 = vld [vmem:[#allocation111_spill] sm:$0xff] }
 0x799   :  { %7587 = vrcp.f32 %v3472_v1 }
 0x79b   :  { %6721 = vmatpush1.bf16.msra.mxu0 %v11157_v55  ;;  %6785 = vmatpush1.bf16.msra.mxu1 %v10890_v52  ;;  %v11164_v55 = vld [vmem:[#allocation113_spill] sm:$0xff] }
 0x79c   :  { %v7584_v62 = vpop.eup %7583  ;;  %6723 = vmatprep.subr.bf16.mxu0 %v11023_v6  ;;  %6787 = vmatprep.subr.bf16.mxu1 %v11158_v13  ;;  %v11165_v6 = vld [vmem:[#allocation114_spill] sm:$0xff]  ;;  %v11166_v13 = vld [vmem:[#allocation115_spill] sm:$0xff] }
 0x79d   :  { %v7586_v25 = vpop.eup %7585  ;;  %v3476_v4 = vmul.f32 %v7584_v62, %v7582_v34  ;;  %v11170_v34 = vld [vmem:[#allocation119_spill] sm:$0xff] }
 0x79e   :  { %v3475_v59 = vmul.f32 %v7586_v25, %v11159_v63  ;;  %v11168_v63 = vld [vmem:[#allocation117_spill] sm:$0xff]  ;;  %v11169_v25 = vld [vmem:[#allocation118_spill] sm:$0xff] }
 0x79f   :  { %6725 = vmatpush1.bf16.msra.mxu0 %v11160_v18  ;;  %6789 = vmatpush1.bf16.msra.mxu1 %v11161_v41 }
 0x7a0   :  { %v9568_v38 = vadd.f32 %v3476_v4, %v3475_v59  ;;  %6727 = vmatprep.subr.bf16.mxu0 %v11163_v5  ;;  %6791 = vmatprep.subr.bf16.mxu1 %v11164_v55  ;;  %v11171_v4 = vld [vmem:[#allocation124_spill] sm:$0xff]  ;;  %v11172_v59 = vld [vmem:[#allocation125_spill] sm:$0xff]  ;;  %v11189_v5 = vld [vmem:[#allocation142_spill] sm:$0xff] }
 0x7a2   :  { %11162 = vst [vmem:[#allocation49_spill] sm:$0xff] %v9568_v38  ;;  %7589 = vtanh.f32 %v9568_v38  ;;  %v11173_v38 = vld [vmem:[#allocation126_spill] sm:$0xff] }
 0x7a3   :  { %6729 = vmatpush1.bf16.msra.mxu0 %v11165_v6  ;;  %6793 = vmatpush1.bf16.msra.mxu1 %v11166_v13  ;;  %v7588_v62 = vpop.eup %7587  ;;  %v11182_v13 = vld [vmem:[#allocation135_spill] sm:$0xff] }
 0x7a4   :  { %6731 = vmatprep.subr.bf16.mxu0 %v11167_v7  ;;  %6795 = vmatprep.subr.bf16.mxu1 %v11168_v63  ;;  %v11180_v63 = vld [vmem:[#allocation133_spill] sm:$0xff]  ;;  %v11181_v7 = vld [vmem:[#allocation134_spill] sm:$0xff] }
 0x7a7   :  { %6733 = vmatpush1.bf16.msra.mxu0 %v11169_v25  ;;  %6797 = vmatpush1.bf16.msra.mxu1 %v11170_v34  ;;  %v11174_v25 = vld [vmem:[#allocation127_spill] sm:$0xff]  ;;  %v11175_v34 = vld [vmem:[#allocation128_spill] sm:$0xff] }
 0x7a8   :  { %6799 = vmatprep.subr.bf16.mxu0 %v11171_v4  ;;  %6863 = vmatprep.subr.bf16.mxu1 %v11172_v59  ;;  %v11176_v4 = vld [vmem:[#allocation129_spill] sm:$0xff]  ;;  %v11177_v59 = vld [vmem:[#allocation130_spill] sm:$0xff] }
 0x7ac   :  { %v7590_v1 = vpop.eup %7589 }
 0x7ad   :  { %v9581_v55 = vmul.f32 %v7590_v1, %v7588_v62  ;;  %v11178_v62 = vld [vmem:[#allocation131_spill] sm:$0xff]  ;;  %v11179_v1 = vld [vmem:[#allocation132_spill] sm:$0xff] }
 0x7af   :  { %3880 = vmatprep.mubr.f32.mxu0 %v9581_v55  ;;  %3951 = vmatprep.mubr.f32.mxu1 %v9581_v55 }
 0x7b0   :  { %3881 = vmatmul.mubr.f32.vlgmr.msra.gmra.mrb[38].mxu0 %v9505_v42  ;;  %3952 = vmatmul.mubr.f32.vlgmr.msra.gmra.mrb[38].mxu1 %v9505_v42  ;;  %v11183_v42 = vld [vmem:[#allocation136_spill] sm:$0xff] }
 0x7b1   :  { %6801 = vmatpush1.bf16.msra.mxu0 %v11173_v38  ;;  %6865 = vmatpush1.bf16.msra.mxu1 %v11174_v25  ;;  %v11184_v38 = vld [vmem:[#allocation137_spill] sm:$0xff]  ;;  %v11188_v25 = vld [vmem:[#allocation59_spill] sm:$0xff] }
 0x7b2   :  { %6803 = vmatprep.subr.bf16.mxu0 %v11175_v34  ;;  %6867 = vmatprep.subr.bf16.mxu1 %v11176_v4  ;;  %v11185_v34 = vld [vmem:[#allocation139_spill] sm:$0xff]  ;;  %v11186_v4 = vld [vmem:[#allocation140_spill] sm:$0xff] }
 0x7b5   :  { %6805 = vmatpush1.bf16.msra.mxu0 %v11177_v59  ;;  %6869 = vmatpush1.bf16.msra.mxu1 %v11178_v62  ;;  %v11187_v59 = vld [vmem:[#allocation141_spill] sm:$0xff] }
 0x7b6   :  { %6807 = vmatprep.subr.bf16.mxu0 %v11179_v1  ;;  %6871 = vmatprep.subr.bf16.mxu1 %v11180_v63 }
 0x7b9   :  { %6809 = vmatpush1.bf16.msra.mxu0 %v11181_v7  ;;  %6873 = vmatpush1.bf16.msra.mxu1 %v11182_v13  ;;  %v11190_v13 = vld [vmem:[#allocation143_spill] sm:$0xff] }
 0x7ba   :  { %6811 = vmatprep.subr.bf16.mxu0 %v11183_v42  ;;  %6875 = vmatprep.subr.bf16.mxu1 %v11184_v38  ;;  %v11191_v42 = vld [vmem:[#allocation144_spill] sm:$0xff] }
 0x7bd   :  { %6813 = vmatpush1.bf16.msra.mxu0 %v11051_v11  ;;  %6877 = vmatpush1.bf16.msra.mxu1 %v11185_v34 }
 0x7be   :  { %6815 = vmatprep.subr.bf16.mxu0 %v11186_v4  ;;  %6879 = vmatprep.subr.bf16.mxu1 %v11187_v59 }
 0x7c0   :  { %v3546_v62 = vpop.f32.mrb[34].mxu0  ;;  %v3617_v1 = vpop.f32.mrb[34].mxu1 }
 0x7c1   :  { %v3547_v63 = vadd.f32 %v3546_v62, %v11188_v25  ;;  %v3548_v6 = vpop.f32.mrb[35].mxu0  ;;  %v3619_v7 = vpop.f32.mrb[35].mxu1  ;;  %6817 = vmatpush1.bf16.msra.mxu0 %v11189_v5  ;;  %6881 = vmatpush1.bf16.msra.mxu1 %v11190_v13  ;;  %v11192_v62 = vld [vmem:[#allocation61_spill] sm:$0xff]  ;;  %v11193_v5 = vld [vmem:[#allocation150_spill] sm:$0xff] }
 0x7c2   :  { %v3549_v38 = vadd.f32 %v3548_v6, %v10793_v54  ;;  %6819 = vmatprep.subr.bf16.mxu0 %v11191_v42  ;;  %6883 = vmatprep.subr.bf16.mxu1 %v10659_v23  ;;  %v3620_v13 = vadd.f32 %v3619_v7, %v11192_v62  ;;  %v11194_v6 = vld [vmem:[#allocation151_spill] sm:$0xff] }
 0x7c3   :  { %v4727_v34 = vmul.f32 -1.442695, %v3547_v63  ;;  %v3618_v63 = vadd.f32 %v3617_v1, %v8805_v30  ;;  %v11196_v1 = vld [vmem:[#allocation162_spill] sm:$0xff]  ;;  %v11211_v30 = vld [vmem:[#allocation176_spill] sm:$0xff] }
 0x7c4   :  { %v4728_v4 = vmul.f32 -1.442695, %v3549_v38  ;;  %v4729_v38 = vmul.f32 -1.442695, %v3620_v13  ;;  %v11195_v13 = vld [vmem:[#allocation161_spill] sm:$0xff] }
 0x7c5   :  { %7591 = vpow2.f32 %v4727_v34  ;;  %6821 = vmatpush1.bf16.msra.mxu0 %v10927_v53  ;;  %6885 = vmatpush1.bf16.msra.mxu1 %v10796_v37 }
 0x7c6   :  { %7593 = vpow2.f32 %v4728_v4  ;;  %6823 = vmatprep.subr.bf16.mxu0 %v11059_v24  ;;  %6887 = vmatprep.subr.bf16.mxu1 %v11060_v17 }
 0x7c7   :  { %7595 = vpow2.f32 %v4729_v38  ;;  %v11200_v38 = vld [vmem:[#allocation166_spill] sm:$0xff] }
 0x7c8   :  { %7597 = vtanh.f32 %v3618_v63  ;;  %v11201_v63 = vld [vmem:[#allocation167_spill] sm:$0xff] }
 0x7c9   :  { %6825 = vmatpush1.bf16.msra.mxu0 %v11193_v5  ;;  %6889 = vmatpush1.bf16.msra.mxu1 %v11194_v6 }
 0x7ca   :  { %6827 = vmatprep.subr.bf16.mxu0 %v11064_v28  ;;  %6891 = vmatprep.subr.bf16.mxu1 %v11065_v51 }
 0x7cd   :  { %6829 = vmatpush1.bf16.msra.mxu0 %v10803_v12  ;;  %6893 = vmatpush1.bf16.msra.mxu1 %v11066_v33  ;;  %v11204_v33 = vld [vmem:[#allocation170_spill] sm:$0xff]  ;;  %v11207_v12 = vld [vmem:[#allocation172_spill] sm:$0xff] }
 0x7ce   :  { %6831 = vmatprep.subr.bf16.mxu0 %v10936_v10  ;;  %6895 = vmatprep.subr.bf16.mxu1 %v10937_v46  ;;  %v11197_v10 = vld [vmem:[#allocation163_spill] sm:$0xff]  ;;  %v11198_v46 = vld [vmem:[#allocation164_spill] sm:$0xff] }
 0x7cf   :  { %v7592_v7 = vpop.eup %7591 }
 0x7d0   :  { %v7594_v34 = vpop.eup %7593  ;;  %v3625_v4 = vadd.f32 1.0, %v7592_v7  ;;  %v11199_v7 = vld [vmem:[#allocation165_spill] sm:$0xff] }
 0x7d1   :  { %v3631_v6 = vadd.f32 1.0, %v7594_v34  ;;  %6833 = vmatpush1.bf16.msra.mxu0 %v10938_v19  ;;  %6897 = vmatpush1.bf16.msra.mxu1 %v10939_v29  ;;  %v7596_v34 = vpop.eup %7595  ;;  %v11202_v29 = vld [vmem:[#allocation168_spill] sm:$0xff] }
 0x7d2   :  { %7599 = vrcp.f32 %v3625_v4  ;;  %6835 = vmatprep.subr.bf16.mxu0 %v10940_v26  ;;  %6899 = vmatprep.subr.bf16.mxu1 %v11195_v13  ;;  %v11203_v4 = vld [vmem:[#allocation169_spill] sm:$0xff]  ;;  %v7598_v26 = vpop.eup %7597 }
 0x7d3   :  { %7601 = vrcp.f32 %v3631_v6 }
 0x7d5   :  { %6837 = vmatpush1.bf16.msra.mxu0 %v11196_v1  ;;  %6901 = vmatpush1.bf16.msra.mxu1 %v11197_v10  ;;  %v3638_v1 = vadd.f32 1.0, %v7596_v34  ;;  %v11205_v10 = vld [vmem:[#allocation171_spill] sm:$0xff]  ;;  %v11215_v34 = vld [vmem:[#allocation180_spill] sm:$0xff] }
 0x7d6   :  { %6839 = vmatprep.subr.bf16.mxu0 %v11198_v46  ;;  %6903 = vmatprep.subr.bf16.mxu1 %v11199_v7  ;;  %v11206_v46 = vld [vmem:[#allocation46_spill] sm:$0xff] }
 0x7d7   :  { %7603 = vrcp.f32 %v3638_v1  ;;  %v11218_v1 = vld [vmem:[#allocation183_spill] sm:$0xff] }
 0x7d9   :  { %6841 = vmatpush1.bf16.msra.mxu0 %v11200_v38  ;;  %6905 = vmatpush1.bf16.msra.mxu1 %v11201_v63  ;;  %v11208_v38 = vld [vmem:[#allocation173_spill] sm:$0xff] }
 0x7da   :  { %6843 = vmatprep.subr.bf16.mxu0 %v11202_v29  ;;  %6907 = vmatprep.subr.bf16.mxu1 %v11203_v4  ;;  %v11209_v29 = vld [vmem:[#allocation174_spill] sm:$0xff]  ;;  %v11210_v4 = vld [vmem:[#allocation175_spill] sm:$0xff] }
 0x7dc   :  { %v7600_v13 = vpop.eup %7599 }
 0x7dd   :  { %v7602_v6 = vpop.eup %7601  ;;  %v3642_v19 = vmul.f32 %v7600_v13, %v7598_v26  ;;  %6845 = vmatpush1.bf16.msra.mxu0 %v11204_v33  ;;  %6909 = vmatpush1.bf16.msra.mxu1 %v11205_v10  ;;  %v11212_v26 = vld [vmem:[#allocation177_spill] sm:$0xff]  ;;  %v11213_v13 = vld [vmem:[#allocation178_spill] sm:$0xff] }
 0x7de   :  { %v3641_v7 = vmul.f32 %v7602_v6, %v11206_v46  ;;  %6847 = vmatprep.subr.bf16.mxu0 %v11207_v12  ;;  %6911 = vmatprep.subr.bf16.mxu1 %v11208_v38  ;;  %v11214_v46 = vld [vmem:[#allocation179_spill] sm:$0xff]  ;;  %v11216_v6 = vld [vmem:[#allocation181_spill] sm:$0xff] }
 0x7df   :  { %v11222_v38 = vld [vmem:[#allocation187_spill] sm:$0xff] }
 0x7e0   :  { %v9640_v63 = vadd.f32 %v3642_v19, %v3641_v7  ;;  %v11217_v19 = vld [vmem:[#allocation182_spill] sm:$0xff]  ;;  %v11219_v7 = vld [vmem:[#allocation184_spill] sm:$0xff] }
 0x7e1   :  { %6849 = vmatpush1.bf16.msra.mxu0 %v11209_v29  ;;  %6913 = vmatpush1.bf16.msra.mxu1 %v11210_v4  ;;  %v11220_v4 = vld [vmem:[#allocation185_spill] sm:$0xff]  ;;  %v11221_v29 = vld [vmem:[#allocation186_spill] sm:$0xff] }
 0x7e2   :  { %6851 = vmatprep.subr.bf16.mxu0 %v11211_v30  ;;  %6915 = vmatprep.subr.bf16.mxu1 %v11212_v26  ;;  %7605 = vtanh.f32 %v9640_v63  ;;  %v7604_v30 = vpop.eup %7603 }
 0x7e5   :  { %6853 = vmatpush1.bf16.msra.mxu0 %v11213_v13  ;;  %6917 = vmatpush1.bf16.msra.mxu1 %v11214_v46  ;;  %v11223_v46 = vld [vmem:[#allocation43_spill] sm:$0xff] }
 0x7e6   :  { %6855 = vmatprep.subr.bf16.mxu0 %v11215_v34  ;;  %6919 = vmatprep.subr.bf16.mxu1 %v11216_v6  ;;  %v11224_v34 = vld [vmem:[#allocation44_spill] sm:$0xff] }
 0x7e9   :  { %6857 = vmatpush1.bf16.msra.mxu0 %v11217_v19  ;;  %6921 = vmatpush1.bf16.msra.mxu1 %v11218_v1 }
 0x7ea   :  { %6859 = vmatprep.subr.bf16.mxu0 %v11219_v7  ;;  %6923 = vmatprep.subr.bf16.mxu1 %v11220_v4 }
 0x7ec   :  { %v7606_v26 = vpop.eup %7605 }
 0x7ed   :  { %6861 = vmatpush1.bf16.msra.mxu0 %v11221_v29  ;;  %6925 = vmatpush1.bf16.msra.mxu1 %v11222_v38  ;;  %v3645_v13 = vmul.f32 %v7606_v26, %v7604_v30  ;;  %v11231_v30 = vld [vmem:[#allocation94_spill] sm:$0xff] }
 0x7ee   :  { %6927 = vmatprep.subr.bf16.mxu0 %v11223_v46  ;;  %6991 = vmatprep.subr.bf16.mxu1 %v11224_v34 }
 0x7ef   :  { %4046 = vmatprep.mubr.f32.mxu0 %v3645_v13  ;;  %4117 = vmatprep.mubr.f32.mxu1 %v3645_v13  ;;  %v11258_v13 = vld [vmem:[#allocation50_spill] sm:$0xff] }
 0x7f0   :  { %4047 = vmatmul.mubr.f32.vlgmr.msra.gmra.mrb[40].mxu0 %v9581_v55  ;;  %4118 = vmatmul.mubr.f32.vlgmr.msra.gmra.mrb[40].mxu1 %v9581_v55  ;;  %v11257_v55 = vld [vmem:[#allocation48_spill] sm:$0xff] }
 0x7f1   :  { %6929 = vmatpush1.bf16.msra.mxu0 %v10574_v2  ;;  %6993 = vmatpush1.bf16.msra.mxu1 %v10575_v32  ;;  %v11225_v2 = vld [vmem:[#allocation86_spill] sm:$0xff]  ;;  %v11226_v32 = vld [vmem:[#allocation87_spill] sm:$0xff] }
 0x7f2   :  { %6931 = vmatprep.subr.bf16.mxu0 %v10576_v58  ;;  %6995 = vmatprep.subr.bf16.mxu1 %v10577_v48  ;;  %v11227_v58 = vld [vmem:[#allocation89_spill] sm:$0xff]  ;;  %v11228_v48 = vld [vmem:[#allocation90_spill] sm:$0xff] }
 0x7f5   :  { %6933 = vmatpush1.bf16.msra.mxu0 %v10578_v27  ;;  %6997 = vmatpush1.bf16.msra.mxu1 %v10579_v50  ;;  %v11229_v27 = vld [vmem:[#allocation92_spill] sm:$0xff]  ;;  %v11230_v50 = vld [vmem:[#allocation93_spill] sm:$0xff] }
 0x7f6   :  { %6935 = vmatprep.subr.bf16.mxu0 %v10715_v44  ;;  %6999 = vmatprep.subr.bf16.mxu1 %v10716_v31  ;;  %v11232_v44 = vld [vmem:[#allocation95_spill] sm:$0xff]  ;;  %v11233_v31 = vld [vmem:[#allocation96_spill] sm:$0xff] }
 0x7f9   :  { %6937 = vmatpush1.bf16.msra.mxu0 %v10717_v3  ;;  %7001 = vmatpush1.bf16.msra.mxu1 %v10718_v22  ;;  %v11234_v3 = vld [vmem:[#allocation97_spill] sm:$0xff]  ;;  %v11235_v22 = vld [vmem:[#allocation98_spill] sm:$0xff] }
 0x7fa   :  { %6939 = vmatprep.subr.bf16.mxu0 %v10851_v47  ;;  %7003 = vmatprep.subr.bf16.mxu1 %v10852_v43  ;;  %v11237_v47 = vld [vmem:[#allocation100_spill] sm:$0xff]  ;;  %v11238_v43 = vld [vmem:[#allocation101_spill] sm:$0xff] }
 0x7fd   :  { %6941 = vmatpush1.bf16.msra.mxu0 %v10853_v35  ;;  %7005 = vmatpush1.bf16.msra.mxu1 %v10854_v8  ;;  %v11239_v35 = vld [vmem:[#allocation102_spill] sm:$0xff]  ;;  %v11240_v8 = vld [vmem:[#allocation103_spill] sm:$0xff] }
 0x7fe   :  { %6943 = vmatprep.subr.bf16.mxu0 %v10987_v9  ;;  %7007 = vmatprep.subr.bf16.mxu1 %v10988_v39  ;;  %v11242_v9 = vld [vmem:[#allocation105_spill] sm:$0xff]  ;;  %v11243_v39 = vld [vmem:[#allocation106_spill] sm:$0xff] }
 0x801   :  { %6945 = vmatpush1.bf16.msra.mxu0 %v10989_v49  ;;  %7009 = vmatpush1.bf16.msra.mxu1 %v11125_v60  ;;  %v11244_v49 = vld [vmem:[#allocation108_spill] sm:$0xff]  ;;  %v11247_v60 = vld [vmem:[#allocation113_spill] sm:$0xff] }
 0x802   :  { %6947 = vmatprep.subr.bf16.mxu0 %v11126_v61  ;;  %7011 = vmatprep.subr.bf16.mxu1 %v11127_v14  ;;  %v11248_v61 = vld [vmem:[#allocation114_spill] sm:$0xff]  ;;  %v11249_v14 = vld [vmem:[#allocation115_spill] sm:$0xff] }
 0x805   :  { %6949 = vmatpush1.bf16.msra.mxu0 %v11128_v57  ;;  %7013 = vmatpush1.bf16.msra.mxu1 %v11129_v40  ;;  %v11250_v57 = vld [vmem:[#allocation116_spill] sm:$0xff]  ;;  %v11251_v40 = vld [vmem:[#allocation117_spill] sm:$0xff] }
 0x806   :  { %6951 = vmatprep.subr.bf16.mxu0 %v11130_v16  ;;  %7015 = vmatprep.subr.bf16.mxu1 %v11131_v0  ;;  %v11253_v16 = vld [vmem:[#allocation119_spill] sm:$0xff]  ;;  %v11254_v0 = vld [vmem:[#allocation124_spill] sm:$0xff] }
 0x809   :  { %6953 = vmatpush1.bf16.msra.mxu0 %v11133_v56  ;;  %7017 = vmatpush1.bf16.msra.mxu1 %v11134_v21  ;;  %v11255_v56 = vld [vmem:[#allocation125_spill] sm:$0xff]  ;;  %v125_v21 = vpop.permute.xlu1 %124 }
 0x80a   :  { %6955 = vmatprep.subr.bf16.mxu0 %v11135_v20  ;;  %7019 = vmatprep.subr.bf16.mxu1 %v11000_v36  ;;  %v11245_v36 = vld [vmem:[#allocation109_spill] sm:$0xff]  ;;  %v11246_v20 = vld [vmem:[#allocation112_spill] sm:$0xff]  ;;  %v177_v26 = vmul.f32 %v11257_v55, %v125_v21 }
 0x80d   :  { %6957 = vmatpush1.bf16.msra.mxu0 %v11225_v2  ;;  %7021 = vmatpush1.bf16.msra.mxu1 %v11226_v32  ;;  %v11259_v32 = vld [vmem:[#allocation51_spill] sm:$0xff] }
 0x80e   :  { %6959 = vmatprep.subr.bf16.mxu0 %v11139_v45  ;;  %7023 = vmatprep.subr.bf16.mxu1 %v11227_v58  ;;  %v11236_v45 = vld [vmem:[#allocation99_spill] sm:$0xff]  ;;  %v231_v58 = vadd.f32 %v11259_v32, %v177_v26  ;;  %v11265_v32 = vld [vmem:[#allocation57_spill] sm:$0xff] }
 0x811   :  { %6961 = vmatpush1.bf16.msra.mxu0 %v11228_v48  ;;  %7025 = vmatpush1.bf16.msra.mxu1 %v11007_v15  ;;  %v11241_v15 = vld [vmem:[#allocation104_spill] sm:$0xff] }
 0x812   :  { %6963 = vmatprep.subr.bf16.mxu0 %v11229_v27  ;;  %7027 = vmatprep.subr.bf16.mxu1 %v11230_v50 }
 0x815   :  { %6965 = vmatpush1.bf16.msra.mxu0 %v11231_v30  ;;  %7029 = vmatpush1.bf16.msra.mxu1 %v11232_v44  ;;  %v11260_v44 = vld [vmem:[#allocation52_spill] sm:$0xff] }
 0x816   :  { %6967 = vmatprep.subr.bf16.mxu0 %v11233_v31  ;;  %7031 = vmatprep.subr.bf16.mxu1 %v11234_v3  ;;  %v179_v31 = vmul.f32 %v11260_v44, %v125_v21 }
 0x819   :  { %6969 = vmatpush1.bf16.msra.mxu0 %v11235_v22  ;;  %7033 = vmatpush1.bf16.msra.mxu1 %v11236_v45  ;;  %v11261_v45 = vld [vmem:[#allocation54_spill] sm:$0xff] }
 0x81a   :  { %6971 = vmatprep.subr.bf16.mxu0 %v11237_v47  ;;  %7035 = vmatprep.subr.bf16.mxu1 %v11238_v43  ;;  %v233_v47 = vadd.f32 %v11261_v45, %v179_v31  ;;  %v11262_v43 = vld [vmem:[#allocation55_spill] sm:$0xff] }
 0x81d   :  { %6973 = vmatpush1.bf16.msra.mxu0 %v11239_v35  ;;  %7037 = vmatpush1.bf16.msra.mxu1 %v11240_v8  ;;  %v178_v35 = vmul.f32 %v11262_v43, %v125_v21 }
 0x81e   :  { %6975 = vmatprep.subr.bf16.mxu0 %v11241_v15  ;;  %7039 = vmatprep.subr.bf16.mxu1 %v11242_v9  ;;  %v11263_v15 = vld [vmem:[#allocation56_spill] sm:$0xff] }
 0x81f   :  { %v232_v9 = vadd.f32 %v11263_v15, %v178_v35 }
 0x821   :  { %6977 = vmatpush1.bf16.msra.mxu0 %v11243_v39  ;;  %7041 = vmatpush1.bf16.msra.mxu1 %v10890_v52  ;;  %v11252_v52 = vld [vmem:[#allocation118_spill] sm:$0xff] }
 0x822   :  { %6979 = vmatprep.subr.bf16.mxu0 %v11244_v49  ;;  %7043 = vmatprep.subr.bf16.mxu1 %v11245_v36 }
 0x825   :  { %6981 = vmatpush1.bf16.msra.mxu0 %v11160_v18  ;;  %7045 = vmatpush1.bf16.msra.mxu1 %v11161_v41  ;;  %v11256_v18 = vld [vmem:[#allocation47_spill] sm:$0xff] }
 0x826   :  { %6983 = vmatprep.subr.bf16.mxu0 %v11246_v20  ;;  %7047 = vmatprep.subr.bf16.mxu1 %v11247_v60  ;;  %v176_v41 = vmul.f32 %v11256_v18, %v125_v21  ;;  %v11264_v21 = vld [vmem:[#allocation145_spill] sm:$0xff] }
 0x828   :  { %v230_v46 = vadd.f32 %v11258_v13, %v176_v41 }
 0x829   :  { %6985 = vmatpush1.bf16.msra.mxu0 %v11248_v61  ;;  %7049 = vmatpush1.bf16.msra.mxu1 %v11249_v14 }
 0x82a   :  { %6987 = vmatprep.subr.bf16.mxu0 %v11250_v57  ;;  %7051 = vmatprep.subr.bf16.mxu1 %v11251_v40 }
 0x82d   :  { %6989 = vmatpush1.bf16.msra.mxu0 %v11252_v52  ;;  %7053 = vmatpush1.bf16.msra.mxu1 %v11253_v16 }
 0x82e   :  { %7055 = vmatprep.subr.bf16.mxu0 %v11254_v0  ;;  %7119 = vmatprep.subr.bf16.mxu1 %v11255_v56 }
 0x83d   :  { %v3716_v34 = vpop.f32.mrb[36].mxu0  ;;  %v3787_v2 = vpop.f32.mrb[36].mxu1 }
 0x83e   :  { %v3717_v48 = vadd.f32 %v3716_v34, %v230_v46  ;;  %v3718_v27 = vpop.f32.mrb[37].mxu0  ;;  %v3789_v50 = vpop.f32.mrb[37].mxu1  ;;  %v3788_v49 = vadd.f32 %v3787_v2, %v232_v9 }
 0x83f   :  { %v3719_v30 = vadd.f32 %v3718_v27, %v231_v58  ;;  %v3790_v8 = vadd.f32 %v3789_v50, %v233_v47  ;;  %v11266_v50 = vld [vmem:[#allocation120_spill] sm:$0xff]  ;;  %v11268_v47 = vld [vmem:[#allocation122_spill] sm:$0xff] }
 0x840   :  { %v4730_v3 = vmul.f32 -1.442695, %v3717_v48 }
 0x841   :  { %v4731_v22 = vmul.f32 -1.442695, %v3719_v30  ;;  %v4732_v39 = vmul.f32 -1.442695, %v3790_v8 }
 0x842   :  { %7607 = vpow2.f32 %v4730_v3  ;;  %v11267_v3 = vld [vmem:[#allocation121_spill] sm:$0xff] }
 0x843   :  { %7609 = vpow2.f32 %v4731_v22 }
 0x844   :  { %7611 = vpow2.f32 %v4732_v39 }
 0x845   :  { %7613 = vtanh.f32 %v3788_v49 }
 0x84c   :  { %v7608_v36 = vpop.eup %7607 }
 0x84d   :  { %v7610_v20 = vpop.eup %7609  ;;  %v3795_v60 = vadd.f32 1.0, %v7608_v36 }
 0x84e   :  { %v3801_v61 = vadd.f32 1.0, %v7610_v20  ;;  %v7612_v14 = vpop.eup %7611 }
 0x84f   :  { %7615 = vrcp.f32 %v3795_v60  ;;  %v7614_v57 = vpop.eup %7613  ;;  %v3808_v18 = vadd.f32 1.0, %v7612_v14  ;;  %v11269_v14 = vld [vmem:[#allocation49_spill] sm:$0xff] }
 0x850   :  { %7617 = vrcp.f32 %v3801_v61 }
 0x851   :  { %7619 = vrcp.f32 %v3808_v18 }
 0x859   :  { %v7616_v40 = vpop.eup %7615 }
 0x85a   :  { %v7618_v52 = vpop.eup %7617  ;;  %v3812_v16 = vmul.f32 %v7616_v40, %v7614_v57 }
 0x85b   :  { %v3811_v41 = vmul.f32 %v7618_v52, %v11264_v21  ;;  %v7620_v26 = vpop.eup %7619  ;;  %v11271_v21 = vld [vmem:[#allocation126_spill] sm:$0xff] }
 0x85d   :  { %v3813_v55 = vadd.f32 %v3812_v16, %v3811_v41  ;;  %v11272_v41 = vld [vmem:[#allocation127_spill] sm:$0xff] }
 0x85f   :  { %7621 = vtanh.f32 %v3813_v55  ;;  %v11273_v55 = vld [vmem:[#allocation128_spill] sm:$0xff] }
 0x869   :  { %v7622_v13 = vpop.eup %7621 }
 0x86a   :  { %v3815_v46 = vmul.f32 %v7622_v13, %v7620_v26  ;;  %v11274_v26 = vld [vmem:[#allocation129_spill] sm:$0xff]  ;;  %v11275_v13 = vld [vmem:[#allocation130_spill] sm:$0xff] }
 0x883   :  { %v3882_v34 = vpop.f32.mrb[38].mxu0  ;;  %v3953_v2 = vpop.f32.mrb[38].mxu1 }
 0x884   :  { %v3883_v58 = vadd.f32 %v3882_v34, %v11265_v32  ;;  %v3884_v48 = vpop.f32.mrb[39].mxu0  ;;  %v3955_v27 = vpop.f32.mrb[39].mxu1  ;;  %v3954_v43 = vadd.f32 %v3953_v2, %v11268_v47  ;;  %v11276_v34 = vld [vmem:[#allocation131_spill] sm:$0xff]  ;;  %v11277_v2 = vld [vmem:[#allocation132_spill] sm:$0xff] }
 0x885   :  { %v3885_v30 = vadd.f32 %v3884_v48, %v11266_v50  ;;  %v3956_v22 = vadd.f32 %v3955_v27, %v11267_v3  ;;  %v11279_v48 = vld [vmem:[#allocation134_spill] sm:$0xff]  ;;  %v11280_v27 = vld [vmem:[#allocation135_spill] sm:$0xff] }
 0x886   :  { %v4733_v44 = vmul.f32 -1.442695, %v3883_v58  ;;  %v11278_v58 = vld [vmem:[#allocation133_spill] sm:$0xff] }
 0x887   :  { %v4734_v31 = vmul.f32 -1.442695, %v3885_v30  ;;  %v4735_v45 = vmul.f32 -1.442695, %v3956_v22  ;;  %v11282_v30 = vld [vmem:[#allocation137_spill] sm:$0xff] }
 0x888   :  { %7623 = vpow2.f32 %v4733_v44  ;;  %v11283_v44 = vld [vmem:[#allocation139_spill] sm:$0xff] }
 0x889   :  { %7625 = vpow2.f32 %v4734_v31  ;;  %v11284_v31 = vld [vmem:[#allocation140_spill] sm:$0xff] }
 0x88a   :  { %7627 = vpow2.f32 %v4735_v45 }
 0x88b   :  { %7629 = vtanh.f32 %v3954_v43 }
 0x892   :  { %v7624_v35 = vpop.eup %7623 }
 0x893   :  { %v7626_v8 = vpop.eup %7625  ;;  %v3961_v15 = vadd.f32 1.0, %v7624_v35 }
 0x894   :  { %v3967_v9 = vadd.f32 1.0, %v7626_v8  ;;  %v7628_v39 = vpop.eup %7627 }
 0x895   :  { %7631 = vrcp.f32 %v3961_v15  ;;  %v7630_v49 = vpop.eup %7629  ;;  %v3974_v61 = vadd.f32 1.0, %v7628_v39  ;;  %v11285_v15 = vld [vmem:[#allocation142_spill] sm:$0xff] }
 0x896   :  { %7633 = vrcp.f32 %v3967_v9  ;;  %v11286_v9 = vld [vmem:[#allocation143_spill] sm:$0xff] }
 0x897   :  { %7635 = vrcp.f32 %v3974_v61 }
 0x89f   :  { %v7632_v36 = vpop.eup %7631 }
 0x8a0   :  { %v7634_v20 = vpop.eup %7633  ;;  %v3978_v60 = vmul.f32 %v7632_v36, %v7630_v49 }
 0x8a1   :  { %v3977_v57 = vmul.f32 %v7634_v20, %v11269_v14  ;;  %v7636_v52 = vpop.eup %7635  ;;  %v11288_v14 = vld [vmem:[#allocation62_spill] sm:$0xff] }
 0x8a3   :  { %v9739_v40 = vadd.f32 %v3978_v60, %v3977_v57  ;;  %v11287_v60 = vld [vmem:[#allocation151_spill] sm:$0xff] }
 0x8a5   :  { %11270 = vst [vmem:[#allocation53_spill] sm:$0xff] %v9739_v40  ;;  %7637 = vtanh.f32 %v9739_v40  ;;  %v11303_v40 = vld [vmem:[#allocation168_spill] sm:$0xff] }
 0x8af   :  { %v7638_v16 = vpop.eup %7637 }
 0x8b0   :  { %v9742_v18 = vmul.f32 %v7638_v16, %v7636_v52  ;;  %v11289_v52 = vld [vmem:[#allocation154_spill] sm:$0xff]  ;;  %v11290_v16 = vld [vmem:[#allocation155_spill] sm:$0xff] }
 0x8b2   :  { %4212 = vmatprep.mubr.f32.mxu0 %v9742_v18  ;;  %4283 = vmatprep.mubr.f32.mxu1 %v9742_v18 }
 0x8b3   :  { %4213 = vmatmul.mubr.f32.vlgmr.msra.gmra.mrb[42].mxu0 %v3815_v46  ;;  %4284 = vmatmul.mubr.f32.vlgmr.msra.gmra.mrb[42].mxu1 %v3815_v46  ;;  %v11281_v46 = vld [vmem:[#allocation136_spill] sm:$0xff] }
 0x8b4   :  { %7057 = vmatpush1.bf16.msra.mxu0 %v11271_v21  ;;  %7121 = vmatpush1.bf16.msra.mxu1 %v11272_v41 }
 0x8b5   :  { %7059 = vmatprep.subr.bf16.mxu0 %v11273_v55  ;;  %7123 = vmatprep.subr.bf16.mxu1 %v11274_v26 }
 0x8b8   :  { %7061 = vmatpush1.bf16.msra.mxu0 %v11275_v13  ;;  %7125 = vmatpush1.bf16.msra.mxu1 %v11276_v34 }
 0x8b9   :  { %7063 = vmatprep.subr.bf16.mxu0 %v11277_v2  ;;  %7127 = vmatprep.subr.bf16.mxu1 %v11278_v58 }
 0x8bc   :  { %7065 = vmatpush1.bf16.msra.mxu0 %v11279_v48  ;;  %7129 = vmatpush1.bf16.msra.mxu1 %v11280_v27 }
 0x8bd   :  { %7067 = vmatprep.subr.bf16.mxu0 %v11281_v46  ;;  %7131 = vmatprep.subr.bf16.mxu1 %v11282_v30 }
 0x8c0   :  { %7069 = vmatpush1.bf16.msra.mxu0 %v11051_v11  ;;  %7133 = vmatpush1.bf16.msra.mxu1 %v11283_v44 }
 0x8c1   :  { %7071 = vmatprep.subr.bf16.mxu0 %v11284_v31  ;;  %7135 = vmatprep.subr.bf16.mxu1 %v11187_v59 }
 0x8c3   :  { %v4048_v22 = vpop.f32.mrb[40].mxu0  ;;  %v4119_v45 = vpop.f32.mrb[40].mxu1 }
 0x8c4   :  { %v4049_v43 = vadd.f32 %v4048_v22, %v11188_v25  ;;  %v4050_v35 = vpop.f32.mrb[41].mxu0  ;;  %v4121_v8 = vpop.f32.mrb[41].mxu1  ;;  %7073 = vmatpush1.bf16.msra.mxu0 %v11285_v15  ;;  %7137 = vmatpush1.bf16.msra.mxu1 %v11286_v9  ;;  %v4120_v57 = vadd.f32 %v4119_v45, %v11288_v14  ;;  %v11291_v22 = vld [vmem:[#allocation156_spill] sm:$0xff]  ;;  %v11297_v14 = vld [vmem:[#allocation162_spill] sm:$0xff] }
 0x8c5   :  { %v4051_v39 = vadd.f32 %v4050_v35, %v10793_v54  ;;  %7075 = vmatprep.subr.bf16.mxu0 %v11191_v42  ;;  %7139 = vmatprep.subr.bf16.mxu1 %v10659_v23  ;;  %v4122_v20 = vadd.f32 %v4121_v8, %v11192_v62  ;;  %v11294_v62 = vld [vmem:[#allocation159_spill] sm:$0xff]  ;;  %v11295_v45 = vld [vmem:[#allocation160_spill] sm:$0xff] }
 0x8c6   :  { %v4736_v49 = vmul.f32 -1.442695, %v4049_v43  ;;  %v11292_v43 = vld [vmem:[#allocation157_spill] sm:$0xff]  ;;  %v11298_v54 = vld [vmem:[#allocation163_spill] sm:$0xff]  ;;  %v11299_v25 = vld [vmem:[#allocation164_spill] sm:$0xff] }
 0x8c7   :  { %v4737_v36 = vmul.f32 -1.442695, %v4051_v39  ;;  %v4738_v61 = vmul.f32 -1.442695, %v4122_v20  ;;  %v11296_v20 = vld [vmem:[#allocation161_spill] sm:$0xff] }
 0x8c8   :  { %7639 = vpow2.f32 %v4736_v49  ;;  %7077 = vmatpush1.bf16.msra.mxu0 %v10927_v53  ;;  %7141 = vmatpush1.bf16.msra.mxu1 %v10796_v37 }
 0x8c9   :  { %7641 = vpow2.f32 %v4737_v36  ;;  %7079 = vmatprep.subr.bf16.mxu0 %v11059_v24  ;;  %7143 = vmatprep.subr.bf16.mxu1 %v11060_v17  ;;  %v11293_v36 = vld [vmem:[#allocation158_spill] sm:$0xff] }
 0x8ca   :  { %7643 = vpow2.f32 %v4738_v61  ;;  %v11301_v61 = vld [vmem:[#allocation166_spill] sm:$0xff] }
 0x8cb   :  { %7645 = vtanh.f32 %v4120_v57  ;;  %v11302_v57 = vld [vmem:[#allocation167_spill] sm:$0xff] }
 0x8cc   :  { %7081 = vmatpush1.bf16.msra.mxu0 %v11193_v5  ;;  %7145 = vmatpush1.bf16.msra.mxu1 %v11287_v60 }
 0x8cd   :  { %7083 = vmatprep.subr.bf16.mxu0 %v11064_v28  ;;  %7147 = vmatprep.subr.bf16.mxu1 %v11065_v51 }
 0x8d0   :  { %7085 = vmatpush1.bf16.msra.mxu0 %v11289_v52  ;;  %7149 = vmatpush1.bf16.msra.mxu1 %v11290_v16 }
 0x8d1   :  { %7087 = vmatprep.subr.bf16.mxu0 %v11291_v22  ;;  %7151 = vmatprep.subr.bf16.mxu1 %v11292_v43 }
 0x8d2   :  { %v7640_v35 = vpop.eup %7639 }
 0x8d3   :  { %v7642_v8 = vpop.eup %7641  ;;  %v4127_v39 = vadd.f32 1.0, %v7640_v35  ;;  %v11300_v35 = vld [vmem:[#allocation165_spill] sm:$0xff] }
 0x8d4   :  { %v4133_v49 = vadd.f32 1.0, %v7642_v8  ;;  %7089 = vmatpush1.bf16.msra.mxu0 %v11293_v36  ;;  %7153 = vmatpush1.bf16.msra.mxu1 %v11294_v62  ;;  %v7644_v8 = vpop.eup %7643 }
 0x8d5   :  { %7647 = vrcp.f32 %v4127_v39  ;;  %7091 = vmatprep.subr.bf16.mxu0 %v11295_v45  ;;  %7155 = vmatprep.subr.bf16.mxu1 %v11296_v20  ;;  %v11304_v39 = vld [vmem:[#allocation169_spill] sm:$0xff]  ;;  %v7646_v47 = vpop.eup %7645  ;;  %v4140_v32 = vadd.f32 1.0, %v7644_v8  ;;  %v11312_v8 = vld [vmem:[#allocation180_spill] sm:$0xff] }
 0x8d6   :  { %7649 = vrcp.f32 %v4133_v49 }
 0x8d7   :  { %7651 = vrcp.f32 %v4140_v32 }
 0x8d8   :  { %7093 = vmatpush1.bf16.msra.mxu0 %v11297_v14  ;;  %7157 = vmatpush1.bf16.msra.mxu1 %v11298_v54 }
 0x8d9   :  { %7095 = vmatprep.subr.bf16.mxu0 %v11299_v25  ;;  %7159 = vmatprep.subr.bf16.mxu1 %v11300_v35  ;;  %v11308_v25 = vld [vmem:[#allocation176_spill] sm:$0xff] }
 0x8dc   :  { %7097 = vmatpush1.bf16.msra.mxu0 %v11301_v61  ;;  %7161 = vmatpush1.bf16.msra.mxu1 %v11302_v57  ;;  %v11305_v61 = vld [vmem:[#allocation173_spill] sm:$0xff] }
 0x8dd   :  { %7099 = vmatprep.subr.bf16.mxu0 %v11303_v40  ;;  %7163 = vmatprep.subr.bf16.mxu1 %v11304_v39  ;;  %v11306_v40 = vld [vmem:[#allocation174_spill] sm:$0xff]  ;;  %v11307_v39 = vld [vmem:[#allocation175_spill] sm:$0xff] }
 0x8df   :  { %v7648_v3 = vpop.eup %7647 }
 0x8e0   :  { %v7650_v49 = vpop.eup %7649  ;;  %v4144_v50 = vmul.f32 %v7648_v3, %v7646_v47  ;;  %7101 = vmatpush1.bf16.msra.mxu0 %v11204_v33  ;;  %7165 = vmatpush1.bf16.msra.mxu1 %v11205_v10  ;;  %v11309_v3 = vld [vmem:[#allocation177_spill] sm:$0xff]  ;;  %v11310_v47 = vld [vmem:[#allocation178_spill] sm:$0xff] }
 0x8e1   :  { %v4143_v35 = vmul.f32 %v7650_v49, %v9640_v63  ;;  %7103 = vmatprep.subr.bf16.mxu0 %v11207_v12  ;;  %7167 = vmatprep.subr.bf16.mxu1 %v11305_v61  ;;  %v11311_v63 = vld [vmem:[#allocation179_spill] sm:$0xff]  ;;  %v7652_v32 = vpop.eup %7651 }
 0x8e3   :  { %v9799_v57 = vadd.f32 %v4144_v50, %v4143_v35 }
 0x8e4   :  { %7105 = vmatpush1.bf16.msra.mxu0 %v11306_v40  ;;  %7169 = vmatpush1.bf16.msra.mxu1 %v11307_v39 }
 0x8e5   :  { %7107 = vmatprep.subr.bf16.mxu0 %v11308_v25  ;;  %7171 = vmatprep.subr.bf16.mxu1 %v11309_v3  ;;  %7653 = vtanh.f32 %v9799_v57 }
 0x8e8   :  { %7109 = vmatpush1.bf16.msra.mxu0 %v11310_v47  ;;  %7173 = vmatpush1.bf16.msra.mxu1 %v11311_v63 }
 0x8e9   :  { %7111 = vmatprep.subr.bf16.mxu0 %v11312_v8  ;;  %7175 = vmatprep.subr.bf16.mxu1 %v11216_v6 }
 0x8ec   :  { %7113 = vmatpush1.bf16.msra.mxu0 %v11217_v19  ;;  %7177 = vmatpush1.bf16.msra.mxu1 %v11218_v1 }
 0x8ed   :  { %7115 = vmatprep.subr.bf16.mxu0 %v11219_v7  ;;  %7179 = vmatprep.subr.bf16.mxu1 %v11220_v4 }
 0x8ef   :  { %v7654_v50 = vpop.eup %7653 }
 0x8f0   :  { %7117 = vmatpush1.bf16.msra.mxu0 %v11221_v29  ;;  %7181 = vmatpush1.bf16.msra.mxu1 %v11222_v38  ;;  %v4147_v35 = vmul.f32 %v7654_v50, %v7652_v32 }
 0x8f1   :  { %7183 = vmatprep.subr.bf16.mxu0 %v11254_v0  ;;  %7247 = vmatprep.subr.bf16.mxu1 %v11255_v56 }
 0x8f2   :  { %4378 = vmatprep.mubr.f32.mxu0 %v4147_v35  ;;  %4449 = vmatprep.mubr.f32.mxu1 %v4147_v35 }
 0x8f3   :  { %4379 = vmatmul.mubr.f32.vlgmr.msra.gmra.mrb[44].mxu0 %v9742_v18  ;;  %4450 = vmatmul.mubr.f32.vlgmr.msra.gmra.mrb[44].mxu1 %v9742_v18 }
 0x8f4   :  { %7185 = vmatpush1.bf16.msra.mxu0 %v11271_v21  ;;  %7249 = vmatpush1.bf16.msra.mxu1 %v11272_v41 }
 0x8f5   :  { %7187 = vmatprep.subr.bf16.mxu0 %v11273_v55  ;;  %7251 = vmatprep.subr.bf16.mxu1 %v11274_v26  ;;  %v11323_v26 = vld [vmem:[#allocation53_spill] sm:$0xff] }
 0x8f8   :  { %7189 = vmatpush1.bf16.msra.mxu0 %v11275_v13  ;;  %7253 = vmatpush1.bf16.msra.mxu1 %v11276_v34 }
 0x8f9   :  { %7191 = vmatprep.subr.bf16.mxu0 %v11277_v2  ;;  %7255 = vmatprep.subr.bf16.mxu1 %v11278_v58 }
 0x8fc   :  { %7193 = vmatpush1.bf16.msra.mxu0 %v11279_v48  ;;  %7257 = vmatpush1.bf16.msra.mxu1 %v11280_v27 }
 0x8fd   :  { %7195 = vmatprep.subr.bf16.mxu0 %v11281_v46  ;;  %7259 = vmatprep.subr.bf16.mxu1 %v11282_v30  ;;  %v11324_v30 = vld [vmem:[#allocation59_spill] sm:$0xff] }
 0x900   :  { %7197 = vmatpush1.bf16.msra.mxu0 %v11051_v11  ;;  %7261 = vmatpush1.bf16.msra.mxu1 %v11283_v44  ;;  %v11318_v11 = vld [vmem:[#allocation169_spill] sm:$0xff] }
 0x901   :  { %7199 = vmatprep.subr.bf16.mxu0 %v11284_v31  ;;  %7263 = vmatprep.subr.bf16.mxu1 %v11187_v59 }
 0x904   :  { %7201 = vmatpush1.bf16.msra.mxu0 %v11285_v15  ;;  %7265 = vmatpush1.bf16.msra.mxu1 %v11286_v9  ;;  %v11325_v9 = vld [vmem:[#allocation60_spill] sm:$0xff] }
 0x905   :  { %7203 = vmatprep.subr.bf16.mxu0 %v11191_v42  ;;  %7267 = vmatprep.subr.bf16.mxu1 %v10659_v23  ;;  %v11314_v23 = vld [vmem:[#allocation165_spill] sm:$0xff] }
 0x908   :  { %7205 = vmatpush1.bf16.msra.mxu0 %v10927_v53  ;;  %7269 = vmatpush1.bf16.msra.mxu1 %v10796_v37  ;;  %v11315_v37 = vld [vmem:[#allocation166_spill] sm:$0xff]  ;;  %v11316_v53 = vld [vmem:[#allocation167_spill] sm:$0xff] }
 0x909   :  { %7207 = vmatprep.subr.bf16.mxu0 %v11059_v24  ;;  %7271 = vmatprep.subr.bf16.mxu1 %v11060_v17  ;;  %v11317_v17 = vld [vmem:[#allocation168_spill] sm:$0xff] }
 0x90c   :  { %7209 = vmatpush1.bf16.msra.mxu0 %v11193_v5  ;;  %7273 = vmatpush1.bf16.msra.mxu1 %v11287_v60  ;;  %v11313_v5 = vld [vmem:[#allocation164_spill] sm:$0xff] }
 0x90d   :  { %7211 = vmatprep.subr.bf16.mxu0 %v11064_v28  ;;  %7275 = vmatprep.subr.bf16.mxu1 %v11065_v51 }
 0x910   :  { %7213 = vmatpush1.bf16.msra.mxu0 %v11289_v52  ;;  %7277 = vmatpush1.bf16.msra.mxu1 %v11290_v16  ;;  %v11326_v16 = vld [vmem:[#allocation61_spill] sm:$0xff] }
 0x911   :  { %7215 = vmatprep.subr.bf16.mxu0 %v11291_v22  ;;  %7279 = vmatprep.subr.bf16.mxu1 %v11292_v43 }
 0x914   :  { %7217 = vmatpush1.bf16.msra.mxu0 %v11293_v36  ;;  %7281 = vmatpush1.bf16.msra.mxu1 %v11294_v62  ;;  %v11321_v62 = vld [vmem:[#allocation121_spill] sm:$0xff]  ;;  %v11327_v36 = vld [vmem:[#allocation62_spill] sm:$0xff] }
 0x915   :  { %7219 = vmatprep.subr.bf16.mxu0 %v11295_v45  ;;  %7283 = vmatprep.subr.bf16.mxu1 %v11296_v20 }
 0x918   :  { %7221 = vmatpush1.bf16.msra.mxu0 %v11297_v14  ;;  %7285 = vmatpush1.bf16.msra.mxu1 %v11298_v54 }
 0x919   :  { %7223 = vmatprep.subr.bf16.mxu0 %v11313_v5  ;;  %7287 = vmatprep.subr.bf16.mxu1 %v11314_v23 }
 0x91c   :  { %7225 = vmatpush1.bf16.msra.mxu0 %v11315_v37  ;;  %7289 = vmatpush1.bf16.msra.mxu1 %v11316_v53 }
 0x91d   :  { %7227 = vmatprep.subr.bf16.mxu0 %v11317_v17  ;;  %7291 = vmatprep.subr.bf16.mxu1 %v11318_v11 }
 0x920   :  { %7229 = vmatpush1.bf16.msra.mxu0 %v11204_v33  ;;  %7293 = vmatpush1.bf16.msra.mxu1 %v11205_v10  ;;  %v11319_v10 = vld [vmem:[#allocation57_spill] sm:$0xff]  ;;  %v11320_v33 = vld [vmem:[#allocation120_spill] sm:$0xff] }
 0x921   :  { %7231 = vmatprep.subr.bf16.mxu0 %v11207_v12  ;;  %7295 = vmatprep.subr.bf16.mxu1 %v11305_v61 }
 0x924   :  { %7233 = vmatpush1.bf16.msra.mxu0 %v11306_v40  ;;  %7297 = vmatpush1.bf16.msra.mxu1 %v11307_v39 }
 0x925   :  { %7235 = vmatprep.subr.bf16.mxu0 %v11308_v25  ;;  %7299 = vmatprep.subr.bf16.mxu1 %v11309_v3 }
 0x928   :  { %7237 = vmatpush1.bf16.msra.mxu0 %v11310_v47  ;;  %7301 = vmatpush1.bf16.msra.mxu1 %v11311_v63 }
 0x929   :  { %7239 = vmatprep.subr.bf16.mxu0 %v11312_v8  ;;  %7303 = vmatprep.subr.bf16.mxu1 %v11216_v6 }
 0x92c   :  { %7241 = vmatpush1.bf16.msra.mxu0 %v11217_v19  ;;  %7305 = vmatpush1.bf16.msra.mxu1 %v11218_v1 }
 0x92d   :  { %7243 = vmatprep.subr.bf16.mxu0 %v11219_v7  ;;  %7307 = vmatprep.subr.bf16.mxu1 %v11220_v4  ;;  %v11322_v4 = vld [vmem:[#allocation122_spill] sm:$0xff] }
 0x930   :  { %7245 = vmatpush1.bf16.msra.mxu0 %v11221_v29  ;;  %7309 = vmatpush1.bf16.msra.mxu1 %v11222_v38 }
 0x986   :  { %v4214_v12 = vpop.f32.mrb[42].mxu0  ;;  %v4285_v54 = vpop.f32.mrb[42].mxu1 }
 0x987   :  { %v4215_v28 = vadd.f32 %v4214_v12, %v11319_v10  ;;  %v4216_v24 = vpop.f32.mrb[43].mxu0  ;;  %v4287_v51 = vpop.f32.mrb[43].mxu1  ;;  %v4286_v1 = vadd.f32 %v4285_v54, %v11322_v4 }
 0x988   :  { %v4217_v25 = vadd.f32 %v4216_v24, %v11320_v33  ;;  %v4288_v6 = vadd.f32 %v4287_v51, %v11321_v62 }
 0x989   :  { %v4739_v59 = vmul.f32 -1.442695, %v4215_v28 }
 0x98a   :  { %v4740_v42 = vmul.f32 -1.442695, %v4217_v25  ;;  %v4741_v19 = vmul.f32 -1.442695, %v4288_v6 }
 0x98b   :  { %7655 = vpow2.f32 %v4739_v59 }
 0x98c   :  { %7657 = vpow2.f32 %v4740_v42 }
 0x98d   :  { %7659 = vpow2.f32 %v4741_v19 }
 0x98e   :  { %7661 = vtanh.f32 %v4286_v1 }
 0x995   :  { %v7656_v29 = vpop.eup %7655 }
 0x996   :  { %v7658_v7 = vpop.eup %7657  ;;  %v4293_v38 = vadd.f32 1.0, %v7656_v29 }
 0x997   :  { %v4299_v0 = vadd.f32 1.0, %v7658_v7  ;;  %v7660_v56 = vpop.eup %7659 }
 0x998   :  { %7663 = vrcp.f32 %v4293_v38  ;;  %v7662_v40 = vpop.eup %7661  ;;  %v4306_v55 = vadd.f32 1.0, %v7660_v56 }
 0x999   :  { %7665 = vrcp.f32 %v4299_v0 }
 0x99a   :  { %7667 = vrcp.f32 %v4306_v55 }
 0x9a2   :  { %v7664_v18 = vpop.eup %7663 }
 0x9a3   :  { %v7666_v21 = vpop.eup %7665  ;;  %v4310_v41 = vmul.f32 %v7664_v18, %v7662_v40 }
 0x9a4   :  { %v4309_v13 = vmul.f32 %v7666_v21, %v11323_v26  ;;  %v7668_v2 = vpop.eup %7667  ;;  %v4748_v21 = vld [vmem:[%s9910_s8] ss:$0 sm:$0xff] }
 0x9a5   :  { %v4749_v26 = vld [vmem:[#allocation3] ss:$0 sm:$0xff] }
 0x9a6   :  { %v4311_v34 = vadd.f32 %v4310_v41, %v4309_v13 }
 0x9a8   :  { %7669 = vtanh.f32 %v4311_v34 }
 0x9b2   :  { %v7670_v58 = vpop.eup %7669 }
 0x9b3   :  { %v4313_v48 = vmul.f32 %v7670_v58, %v7668_v2 }
 0x9c6   :  { %v4380_v27 = vpop.f32.mrb[44].mxu0  ;;  %v4451_v46 = vpop.f32.mrb[44].mxu1 }
 0x9c7   :  { %v4381_v44 = vadd.f32 %v4380_v27, %v11324_v30  ;;  %v4382_v31 = vpop.f32.mrb[45].mxu0  ;;  %v4453_v15 = vpop.f32.mrb[45].mxu1  ;;  %v4452_v45 = vadd.f32 %v4451_v46, %v11327_v36 }
 0x9c8   :  { %v4383_v60 = vadd.f32 %v4382_v31, %v11325_v9  ;;  %v4454_v22 = vadd.f32 %v4453_v15, %v11326_v16 }
 0x9c9   :  { %v4742_v14 = vmul.f32 -1.442695, %v4381_v44 }
 0x9ca   :  { %v4743_v52 = vmul.f32 -1.442695, %v4383_v60  ;;  %v4744_v43 = vmul.f32 -1.442695, %v4454_v22 }
 0x9cb   :  { %7671 = vpow2.f32 %v4742_v14 }
 0x9cc   :  { %7673 = vpow2.f32 %v4743_v52 }
 0x9cd   :  { %7675 = vpow2.f32 %v4744_v43 }
 0x9ce   :  { %7677 = vtanh.f32 %v4452_v45 }
 0x9d5   :  { %v7672_v20 = vpop.eup %7671 }
 0x9d6   :  { %v7674_v61 = vpop.eup %7673  ;;  %v4459_v39 = vadd.f32 1.0, %v7672_v20 }
 0x9d7   :  { %v4465_v49 = vadd.f32 1.0, %v7674_v61  ;;  %v7676_v3 = vpop.eup %7675 }
 0x9d8   :  { %7679 = vrcp.f32 %v4459_v39  ;;  %v7678_v47 = vpop.eup %7677  ;;  %v4472_v50 = vadd.f32 1.0, %v7676_v3 }
 0x9d9   :  { %7681 = vrcp.f32 %v4465_v49 }
 0x9da   :  { %7683 = vrcp.f32 %v4472_v50 }
 0x9e2   :  { %v7680_v63 = vpop.eup %7679 }
 0x9e3   :  { %v7682_v8 = vpop.eup %7681  ;;  %v4476_v32 = vmul.f32 %v7680_v63, %v7678_v47 }
 0x9e4   :  { %v4475_v35 = vmul.f32 %v7682_v8, %v9799_v57  ;;  %v7684_v23 = vpop.eup %7683 }
 0x9e6   :  { %v4477_v5 = vadd.f32 %v4476_v32, %v4475_v35 }
 0x9e8   :  { %7685 = vtanh.f32 %v4477_v5 }
 0x9f2   :  { %v7686_v37 = vpop.eup %7685 }
 0x9f3   :  { %v4479_v53 = vmul.f32 %v7686_v37, %v7684_v23 }
 0x9f5   :  { %4544 = vmatprep.mubr.f32.mxu0 %v4479_v53  ;;  %4615 = vmatprep.mubr.f32.mxu1 %v4479_v53 }
 0x9f6   :  { %4545 = vmatmul.mubr.f32.vlgmr.msra.gmra.mrb[46].mxu0 %v4313_v48  ;;  %4616 = vmatmul.mubr.f32.vlgmr.msra.gmra.mrb[46].mxu1 %v4313_v48 }
 0xac9   :  { %v4546_v17 = vpop.f32.mrb[46].mxu0  ;;  %v4617_v11 = vpop.f32.mrb[46].mxu1 }
 0xaca   :  { %v4547_v12 = vadd.f32 %v4546_v17, %v11324_v30  ;;  %v4548_v54 = vpop.f32.mrb[47].mxu0  ;;  %v4619_v10 = vpop.f32.mrb[47].mxu1  ;;  %v4618_v25 = vadd.f32 %v4617_v11, %v11327_v36 }
 0xacb   :  { %v4549_v28 = vadd.f32 %v4548_v54, %v11325_v9  ;;  %v4620_v51 = vadd.f32 %v4619_v10, %v11326_v16 }
 0xacc   :  { %v4745_v24 = vmul.f32 -1.442695, %v4547_v12 }
 0xacd   :  { %v4746_v57 = vmul.f32 -1.442695, %v4549_v28  ;;  %v4747_v33 = vmul.f32 -1.442695, %v4620_v51 }
 0xace   :  { %7687 = vpow2.f32 %v4745_v24 }
 0xacf   :  { %7689 = vpow2.f32 %v4746_v57 }
 0xad0   :  { %7691 = vpow2.f32 %v4747_v33 }
 0xad1   :  { %7693 = vtanh.f32 %v4618_v25 }
 0xad8   :  { %v7688_v59 = vpop.eup %7687 }
 0xad9   :  { %v7690_v42 = vpop.eup %7689  ;;  %v4625_v62 = vadd.f32 1.0, %v7688_v59 }
 0xada   :  { %v4631_v6 = vadd.f32 1.0, %v7690_v42  ;;  %v7692_v19 = vpop.eup %7691 }
 0xadb   :  { %7695 = vrcp.f32 %v4625_v62  ;;  %v7694_v4 = vpop.eup %7693  ;;  %v4638_v38 = vadd.f32 1.0, %v7692_v19 }
 0xadc   :  { %7697 = vrcp.f32 %v4631_v6 }
 0xadd   :  { %7699 = vrcp.f32 %v4638_v38 }
 0xae5   :  { %v7696_v1 = vpop.eup %7695 }
 0xae6   :  { %v7698_v29 = vpop.eup %7697  ;;  %v4642_v7 = vmul.f32 %v7696_v1, %v7694_v4 }
 0xae7   :  { %v4641_v0 = vmul.f32 %v7698_v29, %v4477_v5  ;;  %v7700_v40 = vpop.eup %7699 }
 0xae9   :  { %v4643_v56 = vadd.f32 %v4642_v7, %v4641_v0 }
 0xaeb   :  { %7701 = vtanh.f32 %v4643_v56 }
 0xaf5   :  { %v7702_v18 = vpop.eup %7701 }
 0xaf6   :  { %v4645_v41 = vmul.f32 %v7702_v18, %v7700_v40 }
 0xaf8   :  { %v4653_v55 = vmul.f32 %v4748_v21, %v4645_v41 }
 0xafa   :  { %4654 = vadd.xlane.f32.xlu0 %v4653_v55 }
 0xb87   :  { %v4655_v13 = vpop.xlane.xlu0 %4654 }
 0xb88   :  { %v4663_v34 = vadd.f32 %v4749_v26, %v4655_v13 }
 0xb8a   :  { %4666 = vperm.xlu1 %7318, %v4663_v34  }
 0xc09   :  { %v4667_v2 = vpop.permute.xlu1 %4666 }
 0xc0a   :  { %4669 = vst [vmem:[%s9912_s10] sm:$0xff] %v4667_v2 }
 0xc0b   :  { %4674 = vsyncpa [#allocation5], 1 }
 0xc0c   :  { %4675 = vsyncpa [#allocation7], 1 }

</bundles_post_ra>
